<compile_context>
chip_gen: v6e
topology: v6e:2x2x1
jax: 0.10.0
libtpu: 0.0.40
codegen_flags: <defaults>
</compile_context>

<pallas_src>
import math

import numpy as np
import jax
import jax.numpy as jnp
from jax import lax
from jax.experimental import pallas as pl
from jax.experimental.pallas import tpu as pltpu

# ---- module-consistent sizes (small, per the spec) ---------------------------
B = 4          # titles per module invocation (MHA "L" axis, batch_first=False)
S = 8          # title length in tokens       (MHA "N" axis)
E = 32         # hparams_nrms.embedded_dimension
H = 4          # hparams_nrms.head_num
HATT = 16      # hparams_nrms.attention_hidden_dim (AttLayer2)
V = 64         # vocabulary size of word2vec_embedding (toy)
DH = E // H
SCALE = 1.0 / math.sqrt(DH)

G = 32         # independent module invocations batched per wrapper call
GB = 16        # groups per grid step (grid=(2,): keeps v7x megacore split)
NP = GB * S          # attention problems (group, position) per block = 128
M = B * NP           # token rows per block = 512, row order (title, group, token)
OUT_W = B * E        # 128 -> lane-dense packed output row per group
NL = B * H * B       # 64 score lanes, layout (query-title b, head h, key-title c)


def news_encoder_kernel(ids_ref, emb_ref, wqkv_ref, bqkv_ref, bd_ref, grp_ref,
                        spr_ref, wcomb_ref, bcomb_ref, attq_ref, o_ref):
    f32 = jnp.float32

    # ---- nn.Embedding as a one-hot MXU matmul (exact; V is toy-sized) -------
    # ids stay an (M, 1) int32 column (tiny DMA; robust for the lane compare).
    # TODO(synk): for a real word2vec vocab (V ~ tens of thousands) replace the
    # O(M*V) one-hot with SMEM scalar-prefetch ids + a row-gather DMA.
    ids = ids_ref[...]                                              # (M, 1)
    onehot = (lax.broadcasted_iota(jnp.int32, (M, V), 1) == ids).astype(f32)
    x = jnp.dot(onehot, emb_ref[...], preferred_element_type=f32)   # (M, E)
    # TODO(synk): nn.Dropout is identity at inference; training-mode dropout not implemented.

    # ---- fused Q/K/V in-projection: one (M, E)@(E, 3E) matmul ---------------
    qkv = jnp.dot(x, wqkv_ref[...], preferred_element_type=f32) + bqkv_ref[...]
    q = qkv[:, 0:E]
    k = qkv[:, E:2 * E]
    v = qkv[:, 2 * E:3 * E]

    # ---- attention over the B (title) axis, all heads at once ---------------
    # Rows [b*NP, (b+1)*NP) hold title b for all (group, token) positions, so
    # per-title Q/K/V are contiguous static row slices (no strided gathers).
    kb = [k[c * NP:(c + 1) * NP, :] for c in range(B)]
    vb = [v[c * NP:(c + 1) * NP, :] for c in range(B)]

    # all B*B query/key pair products stacked along lanes -> ONE dense matmul
    # with a constant block-diagonal matrix that sums each head's DH lanes and
    # applies 1/sqrt(DH).  Output lanes are ordered (b, h, c) so each softmax
    # group (over key titles c) is 4 contiguous lanes.
    pcat = jnp.concatenate(
        [q[b * NP:(b + 1) * NP, :] * kb[c] for b in range(B) for c in range(B)],
        axis=-1)                                                   # (NP, B*B*E)
    scores = jnp.dot(pcat, bd_ref[...], preferred_element_type=f32)  # (NP, NL)

    # subtracting the per-row max (constant within each softmax group) is exact
    scores = scores - jnp.max(scores, axis=-1, keepdims=True)
    p = jnp.exp(scores)
    # per-(title, head) denominators via one (NL, NL) group-sum matmul
    denom = jnp.dot(p, grp_ref[...], preferred_element_type=f32)
    w = p * pl.reciprocal(denom, approx=True)                      # (NP, NL)

    # spread each weight over its head's DH lanes -> (NP, B*B*E); context is
    # then 16 elementwise multiply-accumulates against the V row blocks.
    wspr = jnp.dot(w, spr_ref[...], preferred_element_type=f32)
    ctx_rows = []
    for b in range(B):
        acc = wspr[:, (b * B) * E:(b * B + 1) * E] * vb[0]
        for c in range(1, B):
            acc = acc + wspr[:, (b * B + c) * E:(b * B + c + 1) * E] * vb[c]
        ctx_rows.append(acc)
    ctx = jnp.concatenate(ctx_rows, axis=0)                        # (M, E)

    # ---- fused out_proj + AttLayer2 first projection: (M, E)@(E, E+HATT) ----
    z = jnp.dot(ctx, wcomb_ref[...], preferred_element_type=f32) + bcomb_ref[...]
    y = z[:, 0:E]                                                  # out_proj output
    a = jnp.tanh(z[:, E:E + HATT])
    sc = jnp.dot(a, attq_ref[...], preferred_element_type=f32)     # (M, 1)

    # ---- AttLayer2: additive attention pooling over the S (token) axis ------
    sc3 = sc.reshape(B * GB, S, 1)
    sc3 = sc3 - jnp.max(sc3, axis=1, keepdims=True)
    ew = jnp.exp(sc3)
    wp = ew * pl.reciprocal(jnp.sum(ew, axis=1, keepdims=True), approx=True)
    pooled = jnp.sum(y.reshape(B * GB, S, E) * wp, axis=1)         # (B*GB, E)

    # ---- pack the B title vectors of each group into one 128-lane row -------
    # pooled rows are (title, group)-ordered, so this is 4 static row-block
    # slices lane-concatenated into a single unmasked full-lane store.
    o_ref[...] = jnp.concatenate(
        [pooled[b * GB:(b + 1) * GB, :] for b in range(B)], axis=-1)  # (GB, 128)


def prepare_params(params):
    """Hoist weight transposes / fusions / constant structure matrices out of
    the hot path (done once)."""
    emb, w_in, b_in, w_o, b_o, att_w, att_b, att_q = params

    wqkv = jnp.transpose(w_in)                       # (E, 3E), columns [q | k | v]
    bqkv = b_in.reshape(1, 3 * E)

    # fused out_proj + AttLayer2 first projection (exact up to f32 reordering)
    wo_t = jnp.transpose(w_o)                        # (E, E)
    wcomb = jnp.concatenate([wo_t, wo_t @ att_w], axis=1)            # (E, E+HATT)
    bcomb = jnp.concatenate([b_o, b_o @ att_w + att_b]).reshape(1, E + HATT)

    # constant structure matrices for the dense attention reformulation
    bd = np.zeros((B * B * E, NL), np.float32)       # pair-product -> per-head scores
    spr = np.zeros((NL, B * B * E), np.float32)      # weights -> spread over head lanes
    for b in range(B):
        for c in range(B):
            pr = b * B + c
            for h in range(H):
                col = b * H * B + h * B + c
                bd[pr * E + h * DH: pr * E + (h + 1) * DH, col] = SCALE
                spr[col, pr * E + h * DH: pr * E + (h + 1) * DH] = 1.0
    grp = (np.arange(NL)[:, None] // B == np.arange(NL)[None, :] // B)
    grp = grp.astype(np.float32)                     # (NL, NL) softmax group sums

    return (emb, wqkv, bqkv,
            jnp.asarray(bd), jnp.asarray(grp), jnp.asarray(spr),
            wcomb, bcomb, att_q)


@jax.jit
def news_encoder(ids, prepped):
    """ids: (G, B, S) int32 — G independent NewsEncoder forwards, each on a
    (B, S) batch of titles exactly like the PyTorch module. Returns (G, B, E).
    NOTE: ids are assumed in [0, V); out-of-range ids would silently map to a
    zero embedding instead of nn.Embedding's error behavior."""
    g = ids.shape[0]
    assert g % GB == 0, "number of groups must be a multiple of GB"
    nblk = g // GB

    # token-row order inside each block is (title b, group g_local, token s)
    ids_col = (ids.reshape(nblk, GB, B, S)
                  .transpose(0, 2, 1, 3)
                  .reshape(nblk * M, 1)
                  .astype(jnp.int32))

    (emb, wqkv, bqkv, bd, grp, spr, wcomb, bcomb, attq) = prepped

    def full(arr):   # whole-array block, constant index map -> VMEM-resident
        zeros = (0,) * arr.ndim
        return pl.BlockSpec(arr.shape, lambda i: zeros)

    out = pl.pallas_call(
        news_encoder_kernel,
        out_shape=jax.ShapeDtypeStruct((g, OUT_W), jnp.float32),
        grid=(nblk,),
        in_specs=[pl.BlockSpec((M, 1), lambda i: (i, 0)),
                  full(emb), full(wqkv), full(bqkv), full(bd), full(grp),
                  full(spr), full(wcomb), full(bcomb), full(attq)],
        out_specs=pl.BlockSpec((GB, OUT_W), lambda i: (i, 0)),
        compiler_params=pltpu.CompilerParams(
            dimension_semantics=("parallel",)),        # v7x megacore split
    )(ids_col, emb, wqkv, bqkv, bd, grp, spr, wcomb, bcomb, attq)
    return out.reshape(g, B, E)


# ---- pure-JAX reference (mirrors the PyTorch forward, eval mode) -------------
def _news_encoder_ref_single(ids_bs, params):
    emb, w_in, b_in, w_o, b_o, att_w, att_b, att_q = params
    x = emb[ids_bs]                                              # (B, S, E)
    qkv = jnp.einsum('lne,fe->lnf', x, w_in) + b_in              # (B, S, 3E)
    q, k, v = jnp.split(qkv, 3, axis=-1)
    qh = q.reshape(B, S, H, DH)
    kh = k.reshape(B, S, H, DH)
    vh = v.reshape(B, S, H, DH)
    scores = jnp.einsum('lnhd,mnhd->nhlm', qh, kh) * SCALE       # attend over L=B
    p = jax.nn.softmax(scores, axis=-1)
    o = jnp.einsum('nhlm,mnhd->lnhd', p, vh).reshape(B, S, E)
    y = jnp.einsum('lne,fe->lnf', o, w_o) + b_o                  # out_proj
    a = jnp.tanh(y @ att_w + att_b) @ att_q                      # (B, S, 1)
    w = jax.nn.softmax(a, axis=1)
    return jnp.sum(y * w, axis=1)                                # (B, E)


def news_encoder_ref(ids, params):
    return jax.vmap(_news_encoder_ref_single, in_axes=(0, None))(ids, params)


if __name__ == "__main__":
    key = jax.random.PRNGKey(0)
    ks = jax.random.split(key, 9)
    emb   = jax.random.normal(ks[0], (V, E), jnp.float32) * 0.1          # word2vec_embedding
    w_in  = jax.random.normal(ks[1], (3 * E, E), jnp.float32) / math.sqrt(E)
    b_in  = jax.random.normal(ks[2], (3 * E,), jnp.float32) * 0.01
    w_o   = jax.random.normal(ks[3], (E, E), jnp.float32) / math.sqrt(E)
    b_o   = jax.random.normal(ks[4], (E,), jnp.float32) * 0.01
    att_w = jax.random.normal(ks[5], (E, HATT), jnp.float32) / math.sqrt(E)
    att_b = jax.random.normal(ks[6], (HATT,), jnp.float32) * 0.01
    att_q = jax.random.normal(ks[7], (HATT, 1), jnp.float32) / math.sqrt(HATT)
    params = (emb, w_in, b_in, w_o, b_o, att_w, att_b, att_q)
    prepped = prepare_params(params)     # hoisted out of the per-call hot path

    # G independent module invocations, each on a (B, S) batch of title token ids
    ids = jax.random.randint(ks[8], (G, B, S), 0, V, dtype=jnp.int32)

    out = jax.block_until_ready(news_encoder(ids, prepped))
    ref = jax.block_until_ready(news_encoder_ref(ids, params))

    assert out.shape == (G, B, E), out.shape
    # tolerance covers the (intentional) EUP approx reciprocals in both softmaxes
    assert jnp.allclose(out, ref, atol=2e-3, rtol=2e-3), \
        float(jnp.max(jnp.abs(out - ref)))
    print("KERNEL_OK")
</pallas_src>

<mosaic_0001>
module attributes {stable_mosaic.version = 11 : i64} {
  func.func @news_encoder_kernel(%arg0: i32, %arg1: memref<512x1xi32, #tpu.memory_space<vmem>>, %arg2: memref<64x32xf32, #tpu.memory_space<vmem>>, %arg3: memref<32x96xf32, #tpu.memory_space<vmem>>, %arg4: memref<1x96xf32, #tpu.memory_space<vmem>>, %arg5: memref<512x64xf32, #tpu.memory_space<vmem>>, %arg6: memref<64x64xf32, #tpu.memory_space<vmem>>, %arg7: memref<64x512xf32, #tpu.memory_space<vmem>>, %arg8: memref<32x48xf32, #tpu.memory_space<vmem>>, %arg9: memref<1x48xf32, #tpu.memory_space<vmem>>, %arg10: memref<16x1xf32, #tpu.memory_space<vmem>>, %arg11: memref<16x128xf32, #tpu.memory_space<vmem>>) attributes {dimension_semantics = [#tpu.dimension_semantics<parallel>], iteration_bounds = array<i64: 2>, scalar_prefetch = 0 : i64, scratch_operands = 0 : i64, tpu.core_type = #tpu.core_type<tc>, window_params = [{transform_indices = @transform_0, window_bounds = array<i64: 512, 1>}, {pipeline_mode = #tpu.pipeline_mode<synchronous>, transform_indices = @transform_1, window_bounds = array<i64: 64, 32>}, {pipeline_mode = #tpu.pipeline_mode<synchronous>, transform_indices = @transform_2, window_bounds = array<i64: 32, 96>}, {pipeline_mode = #tpu.pipeline_mode<synchronous>, transform_indices = @transform_3, window_bounds = array<i64: 1, 96>}, {pipeline_mode = #tpu.pipeline_mode<synchronous>, transform_indices = @transform_4, window_bounds = array<i64: 512, 64>}, {pipeline_mode = #tpu.pipeline_mode<synchronous>, transform_indices = @transform_5, window_bounds = array<i64: 64, 64>}, {pipeline_mode = #tpu.pipeline_mode<synchronous>, transform_indices = @transform_6, window_bounds = array<i64: 64, 512>}, {pipeline_mode = #tpu.pipeline_mode<synchronous>, transform_indices = @transform_7, window_bounds = array<i64: 32, 48>}, {pipeline_mode = #tpu.pipeline_mode<synchronous>, transform_indices = @transform_8, window_bounds = array<i64: 1, 48>}, {pipeline_mode = #tpu.pipeline_mode<synchronous>, transform_indices = @transform_9, window_bounds = array<i64: 16, 1>}, {transform_indices = @transform_10, window_bounds = array<i64: 16, 128>}]} {
    %c0 = arith.constant 0 : index
    %c0_0 = arith.constant 0 : index
    %0 = vector.load %arg1[%c0, %c0_0] : memref<512x1xi32, #tpu.memory_space<vmem>>, vector<512x1xi32>
    %1 = tpu.iota {dimensions = array<i32: 1>} : vector<512x64xi32>
    %2 = vector.broadcast %0 : vector<512x1xi32> to vector<512x64xi32>
    %3 = arith.cmpi eq, %1, %2 : vector<512x64xi32>
    %4 = arith.extui %3 : vector<512x64xi1> to vector<512x64xi32>
    %5 = arith.sitofp %4 : vector<512x64xi32> to vector<512x64xf32>
    %c0_1 = arith.constant 0 : index
    %c0_2 = arith.constant 0 : index
    %6 = vector.load %arg2[%c0_1, %c0_2] : memref<64x32xf32, #tpu.memory_space<vmem>>, vector<64x32xf32>
    %cst = arith.constant dense<0.000000e+00> : vector<512x32xf32>
    %7 = tpu.matmul %5, %6, %cst {dimension_numbers = #tpu.dot_dimension_numbers<[1], [0], [0], [1], [0, 0, 1, 1], [], []>} : vector<512x64xf32>, vector<64x32xf32>, vector<512x32xf32> -> vector<512x32xf32>
    %c0_3 = arith.constant 0 : index
    %c0_4 = arith.constant 0 : index
    %8 = vector.load %arg3[%c0_3, %c0_4] : memref<32x96xf32, #tpu.memory_space<vmem>>, vector<32x96xf32>
    %cst_5 = arith.constant dense<0.000000e+00> : vector<512x96xf32>
    %9 = tpu.matmul %7, %8, %cst_5 {dimension_numbers = #tpu.dot_dimension_numbers<[1], [0], [0], [1], [0, 0, 1, 1], [], []>} : vector<512x32xf32>, vector<32x96xf32>, vector<512x96xf32> -> vector<512x96xf32>
    %c0_6 = arith.constant 0 : index
    %c0_7 = arith.constant 0 : index
    %10 = vector.load %arg4[%c0_6, %c0_7] : memref<1x96xf32, #tpu.memory_space<vmem>>, vector<1x96xf32>
    %11 = vector.broadcast %10 : vector<1x96xf32> to vector<512x96xf32>
    %12 = arith.addf %9, %11 : vector<512x96xf32>
    %13 = vector.extract_strided_slice %12 {offsets = [0, 0], sizes = [512, 32], strides = [1, 1]} : vector<512x96xf32> to vector<512x32xf32>
    %14 = vector.extract_strided_slice %12 {offsets = [0, 32], sizes = [512, 32], strides = [1, 1]} : vector<512x96xf32> to vector<512x32xf32>
    %15 = vector.extract_strided_slice %12 {offsets = [0, 64], sizes = [512, 32], strides = [1, 1]} : vector<512x96xf32> to vector<512x32xf32>
    %16 = vector.extract_strided_slice %14 {offsets = [0, 0], sizes = [128, 32], strides = [1, 1]} : vector<512x32xf32> to vector<128x32xf32>
    %17 = vector.extract_strided_slice %14 {offsets = [128, 0], sizes = [128, 32], strides = [1, 1]} : vector<512x32xf32> to vector<128x32xf32>
    %18 = vector.extract_strided_slice %14 {offsets = [256, 0], sizes = [128, 32], strides = [1, 1]} : vector<512x32xf32> to vector<128x32xf32>
    %19 = vector.extract_strided_slice %14 {offsets = [384, 0], sizes = [128, 32], strides = [1, 1]} : vector<512x32xf32> to vector<128x32xf32>
    %20 = vector.extract_strided_slice %15 {offsets = [0, 0], sizes = [128, 32], strides = [1, 1]} : vector<512x32xf32> to vector<128x32xf32>
    %21 = vector.extract_strided_slice %15 {offsets = [128, 0], sizes = [128, 32], strides = [1, 1]} : vector<512x32xf32> to vector<128x32xf32>
    %22 = vector.extract_strided_slice %15 {offsets = [256, 0], sizes = [128, 32], strides = [1, 1]} : vector<512x32xf32> to vector<128x32xf32>
    %23 = vector.extract_strided_slice %15 {offsets = [384, 0], sizes = [128, 32], strides = [1, 1]} : vector<512x32xf32> to vector<128x32xf32>
    %24 = vector.extract_strided_slice %13 {offsets = [0, 0], sizes = [128, 32], strides = [1, 1]} : vector<512x32xf32> to vector<128x32xf32>
    %25 = arith.mulf %24, %16 : vector<128x32xf32>
    %26 = vector.extract_strided_slice %13 {offsets = [0, 0], sizes = [128, 32], strides = [1, 1]} : vector<512x32xf32> to vector<128x32xf32>
    %27 = arith.mulf %26, %17 : vector<128x32xf32>
    %28 = vector.extract_strided_slice %13 {offsets = [0, 0], sizes = [128, 32], strides = [1, 1]} : vector<512x32xf32> to vector<128x32xf32>
    %29 = arith.mulf %28, %18 : vector<128x32xf32>
    %30 = vector.extract_strided_slice %13 {offsets = [0, 0], sizes = [128, 32], strides = [1, 1]} : vector<512x32xf32> to vector<128x32xf32>
    %31 = arith.mulf %30, %19 : vector<128x32xf32>
    %32 = vector.extract_strided_slice %13 {offsets = [128, 0], sizes = [128, 32], strides = [1, 1]} : vector<512x32xf32> to vector<128x32xf32>
    %33 = arith.mulf %32, %16 : vector<128x32xf32>
    %34 = vector.extract_strided_slice %13 {offsets = [128, 0], sizes = [128, 32], strides = [1, 1]} : vector<512x32xf32> to vector<128x32xf32>
    %35 = arith.mulf %34, %17 : vector<128x32xf32>
    %36 = vector.extract_strided_slice %13 {offsets = [128, 0], sizes = [128, 32], strides = [1, 1]} : vector<512x32xf32> to vector<128x32xf32>
    %37 = arith.mulf %36, %18 : vector<128x32xf32>
    %38 = vector.extract_strided_slice %13 {offsets = [128, 0], sizes = [128, 32], strides = [1, 1]} : vector<512x32xf32> to vector<128x32xf32>
    %39 = arith.mulf %38, %19 : vector<128x32xf32>
    %40 = vector.extract_strided_slice %13 {offsets = [256, 0], sizes = [128, 32], strides = [1, 1]} : vector<512x32xf32> to vector<128x32xf32>
    %41 = arith.mulf %40, %16 : vector<128x32xf32>
    %42 = vector.extract_strided_slice %13 {offsets = [256, 0], sizes = [128, 32], strides = [1, 1]} : vector<512x32xf32> to vector<128x32xf32>
    %43 = arith.mulf %42, %17 : vector<128x32xf32>
    %44 = vector.extract_strided_slice %13 {offsets = [256, 0], sizes = [128, 32], strides = [1, 1]} : vector<512x32xf32> to vector<128x32xf32>
    %45 = arith.mulf %44, %18 : vector<128x32xf32>
    %46 = vector.extract_strided_slice %13 {offsets = [256, 0], sizes = [128, 32], strides = [1, 1]} : vector<512x32xf32> to vector<128x32xf32>
    %47 = arith.mulf %46, %19 : vector<128x32xf32>
    %48 = vector.extract_strided_slice %13 {offsets = [384, 0], sizes = [128, 32], strides = [1, 1]} : vector<512x32xf32> to vector<128x32xf32>
    %49 = arith.mulf %48, %16 : vector<128x32xf32>
    %50 = vector.extract_strided_slice %13 {offsets = [384, 0], sizes = [128, 32], strides = [1, 1]} : vector<512x32xf32> to vector<128x32xf32>
    %51 = arith.mulf %50, %17 : vector<128x32xf32>
    %52 = vector.extract_strided_slice %13 {offsets = [384, 0], sizes = [128, 32], strides = [1, 1]} : vector<512x32xf32> to vector<128x32xf32>
    %53 = arith.mulf %52, %18 : vector<128x32xf32>
    %54 = vector.extract_strided_slice %13 {offsets = [384, 0], sizes = [128, 32], strides = [1, 1]} : vector<512x32xf32> to vector<128x32xf32>
    %55 = arith.mulf %54, %19 : vector<128x32xf32>
    %56 = tpu.concatenate %25, %27, %29, %31, %33, %35, %37, %39, %41, %43, %45, %47, %49, %51, %53, %55 in 1 : vector<128x32xf32>, vector<128x32xf32>, vector<128x32xf32>, vector<128x32xf32>, vector<128x32xf32>, vector<128x32xf32>, vector<128x32xf32>, vector<128x32xf32>, vector<128x32xf32>, vector<128x32xf32>, vector<128x32xf32>, vector<128x32xf32>, vector<128x32xf32>, vector<128x32xf32>, vector<128x32xf32>, vector<128x32xf32> -> vector<128x512xf32>
    %c0_8 = arith.constant 0 : index
    %c0_9 = arith.constant 0 : index
    %57 = vector.load %arg5[%c0_8, %c0_9] : memref<512x64xf32, #tpu.memory_space<vmem>>, vector<512x64xf32>
    %cst_10 = arith.constant dense<0.000000e+00> : vector<128x64xf32>
    %58 = tpu.matmul %56, %57, %cst_10 {dimension_numbers = #tpu.dot_dimension_numbers<[1], [0], [0], [1], [0, 0, 1, 1], [], []>} : vector<128x512xf32>, vector<512x64xf32>, vector<128x64xf32> -> vector<128x64xf32>
    %cst_11 = arith.constant dense<0xFF800000> : vector<128xf32>
    %59 = vector.multi_reduction <maximumf>, %58, %cst_11 [1] : vector<128x64xf32> to vector<128xf32>
    %60 = vector.shape_cast %59 : vector<128xf32> to vector<128x1xf32>
    %61 = vector.broadcast %60 : vector<128x1xf32> to vector<128x64xf32>
    %62 = arith.subf %58, %61 : vector<128x64xf32>
    %63 = math.exp %62 : vector<128x64xf32>
    %c0_12 = arith.constant 0 : index
    %c0_13 = arith.constant 0 : index
    %64 = vector.load %arg6[%c0_12, %c0_13] : memref<64x64xf32, #tpu.memory_space<vmem>>, vector<64x64xf32>
    %cst_14 = arith.constant dense<0.000000e+00> : vector<128x64xf32>
    %65 = tpu.matmul %63, %64, %cst_14 {dimension_numbers = #tpu.dot_dimension_numbers<[1], [0], [0], [1], [0, 0, 1, 1], [], []>} : vector<128x64xf32>, vector<64x64xf32>, vector<128x64xf32> -> vector<128x64xf32>
    %66 = tpu.reciprocal %65 {approx = true} : vector<128x64xf32> -> vector<128x64xf32>
    %67 = arith.mulf %63, %66 : vector<128x64xf32>
    %c0_15 = arith.constant 0 : index
    %c0_16 = arith.constant 0 : index
    %68 = vector.load %arg7[%c0_15, %c0_16] : memref<64x512xf32, #tpu.memory_space<vmem>>, vector<64x512xf32>
    %cst_17 = arith.constant dense<0.000000e+00> : vector<128x512xf32>
    %69 = tpu.matmul %67, %68, %cst_17 {dimension_numbers = #tpu.dot_dimension_numbers<[1], [0], [0], [1], [0, 0, 1, 1], [], []>} : vector<128x64xf32>, vector<64x512xf32>, vector<128x512xf32> -> vector<128x512xf32>
    %70 = vector.extract_strided_slice %69 {offsets = [0, 0], sizes = [128, 32], strides = [1, 1]} : vector<128x512xf32> to vector<128x32xf32>
    %71 = arith.mulf %70, %20 : vector<128x32xf32>
    %72 = vector.extract_strided_slice %69 {offsets = [0, 32], sizes = [128, 32], strides = [1, 1]} : vector<128x512xf32> to vector<128x32xf32>
    %73 = arith.mulf %72, %21 : vector<128x32xf32>
    %74 = arith.addf %71, %73 : vector<128x32xf32>
    %75 = vector.extract_strided_slice %69 {offsets = [0, 64], sizes = [128, 32], strides = [1, 1]} : vector<128x512xf32> to vector<128x32xf32>
    %76 = arith.mulf %75, %22 : vector<128x32xf32>
    %77 = arith.addf %74, %76 : vector<128x32xf32>
    %78 = vector.extract_strided_slice %69 {offsets = [0, 96], sizes = [128, 32], strides = [1, 1]} : vector<128x512xf32> to vector<128x32xf32>
    %79 = arith.mulf %78, %23 : vector<128x32xf32>
    %80 = arith.addf %77, %79 : vector<128x32xf32>
    %81 = vector.extract_strided_slice %69 {offsets = [0, 128], sizes = [128, 32], strides = [1, 1]} : vector<128x512xf32> to vector<128x32xf32>
    %82 = arith.mulf %81, %20 : vector<128x32xf32>
    %83 = vector.extract_strided_slice %69 {offsets = [0, 160], sizes = [128, 32], strides = [1, 1]} : vector<128x512xf32> to vector<128x32xf32>
    %84 = arith.mulf %83, %21 : vector<128x32xf32>
    %85 = arith.addf %82, %84 : vector<128x32xf32>
    %86 = vector.extract_strided_slice %69 {offsets = [0, 192], sizes = [128, 32], strides = [1, 1]} : vector<128x512xf32> to vector<128x32xf32>
    %87 = arith.mulf %86, %22 : vector<128x32xf32>
    %88 = arith.addf %85, %87 : vector<128x32xf32>
    %89 = vector.extract_strided_slice %69 {offsets = [0, 224], sizes = [128, 32], strides = [1, 1]} : vector<128x512xf32> to vector<128x32xf32>
    %90 = arith.mulf %89, %23 : vector<128x32xf32>
    %91 = arith.addf %88, %90 : vector<128x32xf32>
    %92 = vector.extract_strided_slice %69 {offsets = [0, 256], sizes = [128, 32], strides = [1, 1]} : vector<128x512xf32> to vector<128x32xf32>
    %93 = arith.mulf %92, %20 : vector<128x32xf32>
    %94 = vector.extract_strided_slice %69 {offsets = [0, 288], sizes = [128, 32], strides = [1, 1]} : vector<128x512xf32> to vector<128x32xf32>
    %95 = arith.mulf %94, %21 : vector<128x32xf32>
    %96 = arith.addf %93, %95 : vector<128x32xf32>
    %97 = vector.extract_strided_slice %69 {offsets = [0, 320], sizes = [128, 32], strides = [1, 1]} : vector<128x512xf32> to vector<128x32xf32>
    %98 = arith.mulf %97, %22 : vector<128x32xf32>
    %99 = arith.addf %96, %98 : vector<128x32xf32>
    %100 = vector.extract_strided_slice %69 {offsets = [0, 352], sizes = [128, 32], strides = [1, 1]} : vector<128x512xf32> to vector<128x32xf32>
    %101 = arith.mulf %100, %23 : vector<128x32xf32>
    %102 = arith.addf %99, %101 : vector<128x32xf32>
    %103 = vector.extract_strided_slice %69 {offsets = [0, 384], sizes = [128, 32], strides = [1, 1]} : vector<128x512xf32> to vector<128x32xf32>
    %104 = arith.mulf %103, %20 : vector<128x32xf32>
    %105 = vector.extract_strided_slice %69 {offsets = [0, 416], sizes = [128, 32], strides = [1, 1]} : vector<128x512xf32> to vector<128x32xf32>
    %106 = arith.mulf %105, %21 : vector<128x32xf32>
    %107 = arith.addf %104, %106 : vector<128x32xf32>
    %108 = vector.extract_strided_slice %69 {offsets = [0, 448], sizes = [128, 32], strides = [1, 1]} : vector<128x512xf32> to vector<128x32xf32>
    %109 = arith.mulf %108, %22 : vector<128x32xf32>
    %110 = arith.addf %107, %109 : vector<128x32xf32>
    %111 = vector.extract_strided_slice %69 {offsets = [0, 480], sizes = [128, 32], strides = [1, 1]} : vector<128x512xf32> to vector<128x32xf32>
    %112 = arith.mulf %111, %23 : vector<128x32xf32>
    %113 = arith.addf %110, %112 : vector<128x32xf32>
    %114 = tpu.concatenate %80, %91, %102, %113 in 0 : vector<128x32xf32>, vector<128x32xf32>, vector<128x32xf32>, vector<128x32xf32> -> vector<512x32xf32>
    %c0_18 = arith.constant 0 : index
    %c0_19 = arith.constant 0 : index
    %115 = vector.load %arg8[%c0_18, %c0_19] : memref<32x48xf32, #tpu.memory_space<vmem>>, vector<32x48xf32>
    %cst_20 = arith.constant dense<0.000000e+00> : vector<512x48xf32>
    %116 = tpu.matmul %114, %115, %cst_20 {dimension_numbers = #tpu.dot_dimension_numbers<[1], [0], [0], [1], [0, 0, 1, 1], [], []>} : vector<512x32xf32>, vector<32x48xf32>, vector<512x48xf32> -> vector<512x48xf32>
    %c0_21 = arith.constant 0 : index
    %c0_22 = arith.constant 0 : index
    %117 = vector.load %arg9[%c0_21, %c0_22] : memref<1x48xf32, #tpu.memory_space<vmem>>, vector<1x48xf32>
    %118 = vector.broadcast %117 : vector<1x48xf32> to vector<512x48xf32>
    %119 = arith.addf %116, %118 : vector<512x48xf32>
    %120 = vector.extract_strided_slice %119 {offsets = [0, 0], sizes = [512, 32], strides = [1, 1]} : vector<512x48xf32> to vector<512x32xf32>
    %121 = vector.extract_strided_slice %119 {offsets = [0, 32], sizes = [512, 16], strides = [1, 1]} : vector<512x48xf32> to vector<512x16xf32>
    %122 = math.tanh %121 : vector<512x16xf32>
    %c0_23 = arith.constant 0 : index
    %c0_24 = arith.constant 0 : index
    %123 = vector.load %arg10[%c0_23, %c0_24] : memref<16x1xf32, #tpu.memory_space<vmem>>, vector<16x1xf32>
    %cst_25 = arith.constant dense<0.000000e+00> : vector<512x1xf32>
    %124 = tpu.matmul %122, %123, %cst_25 {dimension_numbers = #tpu.dot_dimension_numbers<[1], [0], [0], [1], [0, 0, 1, 1], [], []>} : vector<512x16xf32>, vector<16x1xf32>, vector<512x1xf32> -> vector<512x1xf32>
    %125 = vector.shape_cast %124 : vector<512x1xf32> to vector<64x8x1xf32>
    %cst_26 = arith.constant dense<0xFF800000> : vector<64x1xf32>
    %126 = vector.multi_reduction <maximumf>, %125, %cst_26 [1] : vector<64x8x1xf32> to vector<64x1xf32>
    %127 = vector.shape_cast %126 : vector<64x1xf32> to vector<64x1x1xf32>
    %128 = vector.broadcast %127 : vector<64x1x1xf32> to vector<64x8x1xf32>
    %129 = arith.subf %125, %128 : vector<64x8x1xf32>
    %130 = math.exp %129 : vector<64x8x1xf32>
    %cst_27 = arith.constant dense<0.000000e+00> : vector<64x1xf32>
    %131 = vector.multi_reduction <add>, %130, %cst_27 [1] : vector<64x8x1xf32> to vector<64x1xf32>
    %132 = vector.shape_cast %131 : vector<64x1xf32> to vector<64x1x1xf32>
    %133 = tpu.reciprocal %132 {approx = true} : vector<64x1x1xf32> -> vector<64x1x1xf32>
    %134 = vector.broadcast %133 : vector<64x1x1xf32> to vector<64x8x1xf32>
    %135 = arith.mulf %130, %134 : vector<64x8x1xf32>
    %136 = vector.shape_cast %120 : vector<512x32xf32> to vector<64x8x32xf32>
    %137 = vector.broadcast %135 : vector<64x8x1xf32> to vector<64x8x32xf32>
    %138 = arith.mulf %136, %137 : vector<64x8x32xf32>
    %cst_28 = arith.constant dense<0.000000e+00> : vector<64x32xf32>
    %139 = vector.multi_reduction <add>, %138, %cst_28 [1] : vector<64x8x32xf32> to vector<64x32xf32>
    %140 = vector.extract_strided_slice %139 {offsets = [0, 0], sizes = [16, 32], strides = [1, 1]} : vector<64x32xf32> to vector<16x32xf32>
    %141 = vector.extract_strided_slice %139 {offsets = [16, 0], sizes = [16, 32], strides = [1, 1]} : vector<64x32xf32> to vector<16x32xf32>
    %142 = vector.extract_strided_slice %139 {offsets = [32, 0], sizes = [16, 32], strides = [1, 1]} : vector<64x32xf32> to vector<16x32xf32>
    %143 = vector.extract_strided_slice %139 {offsets = [48, 0], sizes = [16, 32], strides = [1, 1]} : vector<64x32xf32> to vector<16x32xf32>
    %144 = tpu.concatenate %140, %141, %142, %143 in 1 : vector<16x32xf32>, vector<16x32xf32>, vector<16x32xf32>, vector<16x32xf32> -> vector<16x128xf32>
    %c0_29 = arith.constant 0 : index
    %c0_30 = arith.constant 0 : index
    %145 = vector.load %arg11[%c0_29, %c0_30] : memref<16x128xf32, #tpu.memory_space<vmem>>, vector<16x128xf32>
    tpu.vector_store %arg11[%c0_29, %c0_30], %144 {strides = array<i32>} : memref<16x128xf32, #tpu.memory_space<vmem>>, vector<16x128xf32>,
    return
  }
  func.func @transform_0(%arg0: i32) -> (i32, i32) {
    %c0_i32 = arith.constant 0 : i32
    %c0_i32_0 = arith.constant 0 : i32
    return %arg0, %c0_i32 : i32, i32
  }
  func.func @transform_1(%arg0: i32) -> (i32, i32) {
    %c0_i32 = arith.constant 0 : i32
    %c0_i32_0 = arith.constant 0 : i32
    %c0_i32_1 = arith.constant 0 : i32
    return %c0_i32, %c0_i32_0 : i32, i32
  }
  func.func @transform_2(%arg0: i32) -> (i32, i32) {
    %c0_i32 = arith.constant 0 : i32
    %c0_i32_0 = arith.constant 0 : i32
    %c0_i32_1 = arith.constant 0 : i32
    return %c0_i32, %c0_i32_0 : i32, i32
  }
  func.func @transform_3(%arg0: i32) -> (i32, i32) {
    %c0_i32 = arith.constant 0 : i32
    %c0_i32_0 = arith.constant 0 : i32
    %c0_i32_1 = arith.constant 0 : i32
    return %c0_i32, %c0_i32_0 : i32, i32
  }
  func.func @transform_4(%arg0: i32) -> (i32, i32) {
    %c0_i32 = arith.constant 0 : i32
    %c0_i32_0 = arith.constant 0 : i32
    %c0_i32_1 = arith.constant 0 : i32
    return %c0_i32, %c0_i32_0 : i32, i32
  }
  func.func @transform_5(%arg0: i32) -> (i32, i32) {
    %c0_i32 = arith.constant 0 : i32
    %c0_i32_0 = arith.constant 0 : i32
    %c0_i32_1 = arith.constant 0 : i32
    return %c0_i32, %c0_i32_0 : i32, i32
  }
  func.func @transform_6(%arg0: i32) -> (i32, i32) {
    %c0_i32 = arith.constant 0 : i32
    %c0_i32_0 = arith.constant 0 : i32
    %c0_i32_1 = arith.constant 0 : i32
    return %c0_i32, %c0_i32_0 : i32, i32
  }
  func.func @transform_7(%arg0: i32) -> (i32, i32) {
    %c0_i32 = arith.constant 0 : i32
    %c0_i32_0 = arith.constant 0 : i32
    %c0_i32_1 = arith.constant 0 : i32
    return %c0_i32, %c0_i32_0 : i32, i32
  }
  func.func @transform_8(%arg0: i32) -> (i32, i32) {
    %c0_i32 = arith.constant 0 : i32
    %c0_i32_0 = arith.constant 0 : i32
    %c0_i32_1 = arith.constant 0 : i32
    return %c0_i32, %c0_i32_0 : i32, i32
  }
  func.func @transform_9(%arg0: i32) -> (i32, i32) {
    %c0_i32 = arith.constant 0 : i32
    %c0_i32_0 = arith.constant 0 : i32
    %c0_i32_1 = arith.constant 0 : i32
    return %c0_i32, %c0_i32_0 : i32, i32
  }
  func.func @transform_10(%arg0: i32) -> (i32, i32) {
    %c0_i32 = arith.constant 0 : i32
    %c0_i32_0 = arith.constant 0 : i32
    return %arg0, %c0_i32 : i32, i32
  }
}

</mosaic_0001>

<bundles_post_ra>
// kernel: news_encoder.1
= control target key start
LH: loop header
LB: loop body
LE: loop exit
PB: predicated region body
PF: predicated region fallthrough
CT: control target
= control target key end

     0   :  { %s11805_s13 = smov 0   ;;  %s17533_s0 = inlined_call_operand.vmem [shape: s32[1024,1], index: 0, kind: input, shape index: {}]   ;;  %s17534_s1 = inlined_call_operand.vmem [shape: f32[64,32], index: 1, kind: input, shape index: {}]   ;;  %s17535_s2 = inlined_call_operand.vmem [shape: f32[32,96], index: 2, kind: input, shape index: {}]   ;;  %s17536_s3 = inlined_call_operand.vmem [shape: f32[1,96], index: 3, kind: input, shape index: {}]   ;;  %s17537_s4 = inlined_call_operand.vmem [shape: f32[512,64], index: 4, kind: input, shape index: {}]   ;;  %s17538_s5 = inlined_call_operand.vmem [shape: f32[64,64], index: 5, kind: input, shape index: {}]   ;;  %s17539_s6 = inlined_call_operand.vmem [shape: f32[64,512], index: 6, kind: input, shape index: {}]   ;;  %s17540_s7 = inlined_call_operand.vmem [shape: f32[32,48], index: 7, kind: input, shape index: {}]   ;;  %s17541_s8 = inlined_call_operand.vmem [shape: f32[1,48], index: 8, kind: input, shape index: {}]   ;;  %s17542_s9 = inlined_call_operand.vmem [shape: f32[16,1], index: 9, kind: input, shape index: {}]   ;;  %s17543_s10 = inlined_call_operand.vmem [shape: f32[32,128], index: 10, kind: output, shape index: {}]  }
   0x1 LB: > { %s9478_s14 = sadd.s32 4294967295, %s11743_s13   ;;  %p9482_p0 = scmp.ge.s32.totalorder %s11743_s13, 1  ;;  %s11743_s13 = sphi %s11805_s13, %s20_s13  }
   0x2   : > { %p313_p1 = scmp.lt.s32.totalorder %s11743_s13, 3 }
   0x4   : > { %p314_p2 = pnand %p9482_p0, %p313_p1 }
   0x6   : > { %317 = sbr.rel (%p314_p2) target bundleno = 3200 (0xc80), region = 60 }
   0xb   : > { %s9483_s15 = sshll.u32 %s9478_s14, 6  ;;  %v820_v0 = vld [vmem:[%s17534_s1 + $0x38] sm:$0xff]  ;;  %v11745_v1 = vmov 0   ;;  %v819_v2 = vld [vmem:[%s17534_s1 + $0x30] sm:$0xff]  ;;  %v818_v3 = vld [vmem:[%s17534_s1 + $0x28] sm:$0xff]  ;;  %vm821_vm0 = vcmask 523264  }
   0xc   : > { %10807 = vset.pattern.permute.xlu1 %v11745_v1  ;;  %10806 = vset.pattern.permute.xlu0 %v11745_v1  ;;  %p352_p3 = scmp.lt.s32.totalorder %s9483_s15, 127  ;;  %v817_v4 = vld [vmem:[%s17534_s1 + $0x20] sm:$0xff]  ;;  %v816_v7 = vld [vmem:[%s17534_s1 + $0x18] sm:$0xff]  ;;  %v815_v10 = vld [vmem:[%s17534_s1 + $0x10] sm:$0xff]  ;;  %s11747_s28 = smov 96  }
   0xd   : > { %10317 = vmatprep.subr.mxu0 %v820_v0  ;;  %v814_v13 = vld [vmem:[%s17534_s1 + $0x8] sm:$0xff]  ;;  %v813_v20 = vld [vmem:[%s17534_s1] sm:$0xff]  ;;  %s11748_s19 = smov 32   ;;  %s11749_s20 = smov 64  }
   0xe   : > { %s18910_s15 = smov (!%p352_p3, %s9483_s15), 127  ;;  %10318 = vmatpush3.msra.mxu0 %v820_v0 }
   0xf   : > { %10319 = vmatprep.subr.mxu0 %v819_v2  ;;  %s9484_s22 = sshll.u32 %s18910_s15, 3 }
  0x10   : > { %10320 = vmatpush3.msra.mxu0 %v819_v2  ;;  %s11827_s25 = scalar_lea.vmem %s17533_s0, %s9484_s22 }
  0x11   : > { %10321 = vmatprep.subr.mxu0 %v818_v3  ;;  %v365_v5 = vld [vmem:[%s11827_s25 + $0x10] sm:$0xff]  ;;  %v363_v6 = vld [vmem:[%s11827_s25] sm:$0xff]  ;;  %v366_v8 = vld [vmem:[%s11827_s25 + $0x18] sm:$0xff] }
  0x12   : > { %10322 = vmatpush3.msra.mxu0 %v818_v3  ;;  %436 = vperm.xlu1 %10807, %v365_v5   ;;  %v364_v9 = vld [vmem:[%s11827_s25 + $0x8] sm:$0xff]  ;;  %v367_v12 = vld [vmem:[%s11827_s25 + $0x20] sm:$0xff]  ;;  %v370_v14 = vld [vmem:[%s11827_s25 + $0x38] sm:$0xff]  ;;  %v427_v5 = vlaneseq }
  0x13   : > { %430 = vperm.xlu0 %10806, %v363_v6   ;;  %10323 = vmatprep.subr.mxu0 %v817_v4  ;;  %v368_v11 = vld [vmem:[%s11827_s25 + $0x28] sm:$0xff]  ;;  %v369_v15 = vld [vmem:[%s11827_s25 + $0x30] sm:$0xff]  ;;  %v371_v17 = vld [vmem:[%s11827_s25 + $0x40] sm:$0xff] }
  0x14   : > { %10324 = vmatpush3.msra.mxu0 %v817_v4  ;;  %v372_v16 = vld [vmem:[%s11827_s25 + $0x48] sm:$0xff]  ;;  %v374_v18 = vld [vmem:[%s11827_s25 + $0x58] sm:$0xff]  ;;  %v373_v19 = vld [vmem:[%s11827_s25 + $0x50] sm:$0xff] }
  0x15   : > { %10325 = vmatprep.subr.mxu0 %v816_v7  ;;  %v376_v21 = vld [vmem:[%s11827_s25 + $0x68] sm:$0xff]  ;;  %v375_v22 = vld [vmem:[%s11827_s25 + $0x60] sm:$0xff]  ;;  %v378_v23 = vld [vmem:[%s11827_s25 + $0x78] sm:$0xff] }
  0x16   : > { %439 = vperm.xlu1 %10807, %v366_v8   ;;  %10326 = vmatpush3.msra.mxu0 %v816_v7  ;;  %v377_v24 = vld [vmem:[%s11827_s25 + $0x70] sm:$0xff]  ;;  %v380_v25 = vld [vmem:[%s11827_s25 + $0x88] sm:$0xff]  ;;  %v379_v26 = vld [vmem:[%s11827_s25 + $0x80] sm:$0xff]  ;;  %v11906_v8 = vand.u32 127, %v427_v5 }
  0x17   : > { %433 = vperm.xlu0 %10806, %v364_v9   ;;  %10327 = vmatprep.subr.mxu0 %v815_v10  ;;  %v382_v27 = vld [vmem:[%s11827_s25 + $0x98] sm:$0xff]  ;;  %v381_v28 = vld [vmem:[%s11827_s25 + $0x90] sm:$0xff]  ;;  %v384_v29 = vld [vmem:[%s11827_s25 + $0xa8] sm:$0xff] }
  0x18   : > { %10328 = vmatpush3.msra.mxu0 %v815_v10  ;;  %v383_v30 = vld [vmem:[%s11827_s25 + $0xa0] sm:$0xff]  ;;  %v386_v31 = vld [vmem:[%s11827_s25 + $0xb8] sm:$0xff]  ;;  %v385_v32 = vld [vmem:[%s11827_s25 + $0xb0] sm:$0xff] }
  0x19   : > { %10329 = vmatprep.subr.mxu0 %v814_v13  ;;  %v388_v33 = vld [vmem:[%s11827_s25 + $0xc8] sm:$0xff]  ;;  %v387_v34 = vld [vmem:[%s11827_s25 + $0xc0] sm:$0xff]  ;;  %v390_v35 = vld [vmem:[%s11827_s25 + $0xd8] sm:$0xff] }
  0x1a   : > { %445 = vperm.xlu1 %10807, %v368_v11   ;;  %10330 = vmatpush3.msra.mxu0 %v814_v13  ;;  %v389_v36 = vld [vmem:[%s11827_s25 + $0xd0] sm:$0xff]  ;;  %v392_v37 = vld [vmem:[%s11827_s25 + $0xe8] sm:$0xff]  ;;  %v391_v38 = vld [vmem:[%s11827_s25 + $0xe0] sm:$0xff]  ;;  %v17544_v13 = vmov 0.0  }
  0x1b   : > { %442 = vperm.xlu0 %10806, %v367_v12   ;;  %10331 = vmatprep.subr.mxu0 %v813_v20  ;;  %v394_v39 = vld [vmem:[%s11827_s25 + $0xf8] sm:$0xff]  ;;  %v393_v40 = vld [vmem:[%s11827_s25 + $0xf0] sm:$0xff]  ;;  %v396_v41 = vld [vmem:[%s11827_s25 + $0x108] sm:$0xff] }
  0x1c   : > { %10332 = vmatpush3.msra.mxu0 %v813_v20  ;;  %v395_v42 = vld [vmem:[%s11827_s25 + $0x100] sm:$0xff]  ;;  %v398_v43 = vld [vmem:[%s11827_s25 + $0x118] sm:$0xff]  ;;  %v397_v44 = vld [vmem:[%s11827_s25 + $0x110] sm:$0xff] }
  0x1d   : > { %v400_v45 = vld [vmem:[%s11827_s25 + $0x128] sm:$0xff]  ;;  %v399_v46 = vld [vmem:[%s11827_s25 + $0x120] sm:$0xff]  ;;  %v402_v47 = vld [vmem:[%s11827_s25 + $0x138] sm:$0xff] }
  0x1e   : > { %451 = vperm.xlu1 %10807, %v370_v14   ;;  %v401_v48 = vld [vmem:[%s11827_s25 + $0x130] sm:$0xff]  ;;  %v404_v49 = vld [vmem:[%s11827_s25 + $0x148] sm:$0xff]  ;;  %v403_v50 = vld [vmem:[%s11827_s25 + $0x140] sm:$0xff] }
  0x1f   : > { %448 = vperm.xlu0 %10806, %v369_v15   ;;  %v406_v51 = vld [vmem:[%s11827_s25 + $0x158] sm:$0xff]  ;;  %v405_v52 = vld [vmem:[%s11827_s25 + $0x150] sm:$0xff]  ;;  %v408_v53 = vld [vmem:[%s11827_s25 + $0x168] sm:$0xff] }
  0x20   : > { %v407_v54 = vld [vmem:[%s11827_s25 + $0x160] sm:$0xff]  ;;  %v410_v55 = vld [vmem:[%s11827_s25 + $0x178] sm:$0xff]  ;;  %v409_v56 = vld [vmem:[%s11827_s25 + $0x170] sm:$0xff] }
  0x21   : > { %v412_v57 = vld [vmem:[%s11827_s25 + $0x188] sm:$0xff]  ;;  %v411_v58 = vld [vmem:[%s11827_s25 + $0x180] sm:$0xff]  ;;  %v414_v59 = vld [vmem:[%s11827_s25 + $0x198] sm:$0xff] }
  0x22   : > { %457 = vperm.xlu1 %10807, %v372_v16   ;;  %v413_v60 = vld [vmem:[%s11827_s25 + $0x190] sm:$0xff]  ;;  %v416_v61 = vld [vmem:[%s11827_s25 + $0x1a8] sm:$0xff]  ;;  %v415_v62 = vld [vmem:[%s11827_s25 + $0x1a0] sm:$0xff] }
  0x23   : > { %454 = vperm.xlu0 %10806, %v371_v17   ;;  %v418_v63 = vld [vmem:[%s11827_s25 + $0x1b8] sm:$0xff]  ;;  %v417_v0 = vld [vmem:[%s11827_s25 + $0x1b0] sm:$0xff]  ;;  %v420_v1 = vld [vmem:[%s11827_s25 + $0x1c8] sm:$0xff] }
  0x24   : > { %v419_v2 = vld [vmem:[%s11827_s25 + $0x1c0] sm:$0xff]  ;;  %v422_v3 = vld [vmem:[%s11827_s25 + $0x1d8] sm:$0xff]  ;;  %v421_v4 = vld [vmem:[%s11827_s25 + $0x1d0] sm:$0xff] }
  0x25   : > { %v424_v6 = vld [vmem:[%s11827_s25 + $0x1e8] sm:$0xff]  ;;  %v423_v7 = vld [vmem:[%s11827_s25 + $0x1e0] sm:$0xff]  ;;  %v426_v9 = vld [vmem:[%s11827_s25 + $0x1f8] sm:$0xff] }
  0x26   : > { %463 = vperm.xlu1 %10807, %v374_v18   ;;  %v425_v10 = vld [vmem:[%s11827_s25 + $0x1f0] sm:$0xff]  ;;  %v1402_v15 = vld [vmem:[%s17535_s2 + $0x18] sm:$0xff] }
  0x27   : > { %460 = vperm.xlu0 %10806, %v373_v19   ;;  %v1401_v16 = vld [vmem:[%s17535_s2 + $0x10] sm:$0xff]  ;;  %10429 = vmatprep.subr.mxu1 %v1402_v15 }
  0x28   : > { %10430 = vmatpush3.msra.mxu1 %v1402_v15 }
  0x29   : > { %10431 = vmatprep.subr.mxu1 %v1401_v16 }
  0x2a   : > { %469 = vperm.xlu1 %10807, %v376_v21   ;;  %10432 = vmatpush3.msra.mxu1 %v1401_v16 }
  0x2b   : > { %466 = vperm.xlu0 %10806, %v375_v22  }
  0x2e   : > { %475 = vperm.xlu1 %10807, %v378_v23  }
  0x2f   : > { %472 = vperm.xlu0 %10806, %v377_v24  }
  0x32   : > { %481 = vperm.xlu1 %10807, %v380_v25  }
  0x33   : > { %478 = vperm.xlu0 %10806, %v379_v26  }
  0x36   : > { %487 = vperm.xlu1 %10807, %v382_v27  }
  0x37   : > { %484 = vperm.xlu0 %10806, %v381_v28  }
  0x3a   : > { %493 = vperm.xlu1 %10807, %v384_v29  }
  0x3b   : > { %490 = vperm.xlu0 %10806, %v383_v30  }
  0x3e   : > { %499 = vperm.xlu1 %10807, %v386_v31  }
  0x3f   : > { %496 = vperm.xlu0 %10806, %v385_v32  }
  0x42   : > { %505 = vperm.xlu1 %10807, %v388_v33  }
  0x43   : > { %502 = vperm.xlu0 %10806, %v387_v34  }
  0x46   : > { %511 = vperm.xlu1 %10807, %v390_v35  }
  0x47   : > { %508 = vperm.xlu0 %10806, %v389_v36  }
  0x4a   : > { %517 = vperm.xlu1 %10807, %v392_v37  }
  0x4b   : > { %514 = vperm.xlu0 %10806, %v391_v38  }
  0x4e   : > { %523 = vperm.xlu1 %10807, %v394_v39  }
  0x4f   : > { %520 = vperm.xlu0 %10806, %v393_v40  }
  0x52   : > { %529 = vperm.xlu1 %10807, %v396_v41  }
  0x53   : > { %526 = vperm.xlu0 %10806, %v395_v42  }
  0x56   : > { %535 = vperm.xlu1 %10807, %v398_v43  }
  0x57   : > { %532 = vperm.xlu0 %10806, %v397_v44  }
  0x5a   : > { %541 = vperm.xlu1 %10807, %v400_v45  }
  0x5b   : > { %538 = vperm.xlu0 %10806, %v399_v46  }
  0x5e   : > { %547 = vperm.xlu1 %10807, %v402_v47  }
  0x5f   : > { %544 = vperm.xlu0 %10806, %v401_v48  }
  0x62   : > { %553 = vperm.xlu1 %10807, %v404_v49  }
  0x63   : > { %550 = vperm.xlu0 %10806, %v403_v50  }
  0x66   : > { %559 = vperm.xlu1 %10807, %v406_v51  }
  0x67   : > { %556 = vperm.xlu0 %10806, %v405_v52  }
  0x6a   : > { %565 = vperm.xlu1 %10807, %v408_v53  }
  0x6b   : > { %562 = vperm.xlu0 %10806, %v407_v54  }
  0x6e   : > { %571 = vperm.xlu1 %10807, %v410_v55  }
  0x6f   : > { %568 = vperm.xlu0 %10806, %v409_v56  }
  0x72   : > { %577 = vperm.xlu1 %10807, %v412_v57  }
  0x73   : > { %574 = vperm.xlu0 %10806, %v411_v58  }
  0x76   : > { %583 = vperm.xlu1 %10807, %v414_v59  }
  0x77   : > { %580 = vperm.xlu0 %10806, %v413_v60  }
  0x7a   : > { %589 = vperm.xlu1 %10807, %v416_v61  }
  0x7b   : > { %586 = vperm.xlu0 %10806, %v415_v62  }
  0x7e   : > { %595 = vperm.xlu1 %10807, %v418_v63  }
  0x7f   : > { %592 = vperm.xlu0 %10806, %v417_v0  }
  0x82   : > { %601 = vperm.xlu1 %10807, %v420_v1  }
  0x83   : > { %598 = vperm.xlu0 %10806, %v419_v2  }
  0x86   : > { %607 = vperm.xlu1 %10807, %v422_v3  }
  0x87   : > { %604 = vperm.xlu0 %10806, %v421_v4  }
  0x8a   : > { %613 = vperm.xlu1 %10807, %v424_v6  }
  0x8b   : > { %610 = vperm.xlu0 %10806, %v423_v7  }
  0x8d   : > { %v437_v11 = vpop.permute.xlu1 %436 }
  0x8e   : > { %v431_v12 = vpop.permute.xlu0 %430  ;;  %619 = vperm.xlu1 %10807, %v426_v9   ;;  %vm623_vm2 = vcmp.eq.s32.totalorder %v11906_v8, %v437_v11 }
  0x8f   : > { %616 = vperm.xlu0 %10806, %v425_v10   ;;  %vm621_vm1 = vcmp.eq.s32.totalorder %v11906_v8, %v431_v12  ;;  %v9489_v19 = vsel %vm623_vm2, 1.0, %v17544_v13 }
  0x90   : > { %v9487_v14 = vsel %vm621_vm1, 1.0, %v17544_v13 }
  0x91   : > { %10333 = vmatprep.mubr.msk.f32.mxu0 %vm821_vm0, %v9487_v14  ;;  %v440_v17 = vpop.permute.xlu1 %439 }
  0x92   : > { %v434_v18 = vpop.permute.xlu0 %433  ;;  %vm624_vm4 = vcmp.eq.s32.totalorder %v11906_v8, %v440_v17 }
  0x93   : > { %vm622_vm3 = vcmp.eq.s32.totalorder %v11906_v8, %v434_v18  ;;  %v9490_v23 = vsel %vm624_vm4, 1.0, %v17544_v13 }
  0x94   : > { %v9488_v20 = vsel %vm622_vm3, 1.0, %v17544_v13 }
  0x95   : > { %10334 = vmatmul.mubr.msk.f32.vlgmr.msra.gmra.mxu0 %vm821_vm0, %v9488_v20  ;;  %v446_v21 = vpop.permute.xlu1 %445 }
  0x96   : > { %10336 = vmatprep.mubr.msk.f32.mxu0 %vm821_vm0, %v9489_v19  ;;  %v443_v22 = vpop.permute.xlu0 %442  ;;  %vm626_vm6 = vcmp.eq.s32.totalorder %v11906_v8, %v446_v21 }
  0x97   : > { %vm625_vm5 = vcmp.eq.s32.totalorder %v11906_v8, %v443_v22  ;;  %v9492_v27 = vsel %vm626_vm6, 1.0, %v17544_v13 }
  0x98   : > { %v9491_v24 = vsel %vm625_vm5, 1.0, %v17544_v13 }
  0x99   : > { %10337 = vmatmul.mubr.msk.f32.gmra.mxu0 %vm821_vm0, %v9490_v23  ;;  %v452_v25 = vpop.permute.xlu1 %451  ;;  %v1400_v23 = vld [vmem:[%s17535_s2 + $0x8] sm:$0xff] }
  0x9a   : > { %10339 = vmatprep.mubr.msk.f32.mxu0 %vm821_vm0, %v9491_v24  ;;  %v449_v26 = vpop.permute.xlu0 %448  ;;  %vm628_vm8 = vcmp.eq.s32.totalorder %v11906_v8, %v452_v25  ;;  %10433 = vmatprep.subr.mxu1 %v1400_v23 }
  0x9b   : > { %vm627_vm7 = vcmp.eq.s32.totalorder %v11906_v8, %v449_v26  ;;  %v9494_v31 = vsel %vm628_vm8, 1.0, %v17544_v13  ;;  %10434 = vmatpush3.msra.mxu1 %v1400_v23  ;;  %v1399_v26 = vld [vmem:[%s17535_s2] sm:$0xff] }
  0x9c   : > { %v9493_v28 = vsel %vm627_vm7, 1.0, %v17544_v13  ;;  %10435 = vmatprep.subr.mxu1 %v1399_v26 }
  0x9d   : > { %10340 = vmatmul.mubr.msk.f32.gmra.mxu0 %vm821_vm0, %v9492_v27  ;;  %v458_v29 = vpop.permute.xlu1 %457  ;;  %10436 = vmatpush3.msra.mxu1 %v1399_v26 }
  0x9e   : > { %10342 = vmatprep.mubr.msk.f32.mxu0 %vm821_vm0, %v9493_v28  ;;  %v455_v30 = vpop.permute.xlu0 %454  ;;  %vm630_vm10 = vcmp.eq.s32.totalorder %v11906_v8, %v458_v29 }
  0x9f   : > { %vm629_vm9 = vcmp.eq.s32.totalorder %v11906_v8, %v455_v30  ;;  %v9496_v35 = vsel %vm630_vm10, 1.0, %v17544_v13 }
  0xa0   : > { %v9495_v32 = vsel %vm629_vm9, 1.0, %v17544_v13 }
  0xa1   : > { %10343 = vmatmul.mubr.msk.f32.gmra.mxu0 %vm821_vm0, %v9494_v31  ;;  %v464_v33 = vpop.permute.xlu1 %463 }
  0xa2   : > { %10345 = vmatprep.mubr.msk.f32.mxu0 %vm821_vm0, %v9495_v32  ;;  %v461_v34 = vpop.permute.xlu0 %460  ;;  %vm632_vm12 = vcmp.eq.s32.totalorder %v11906_v8, %v464_v33 }
  0xa3   : > { %vm631_vm11 = vcmp.eq.s32.totalorder %v11906_v8, %v461_v34  ;;  %v9498_v39 = vsel %vm632_vm12, 1.0, %v17544_v13 }
  0xa4   : > { %v9497_v36 = vsel %vm631_vm11, 1.0, %v17544_v13 }
  0xa5   : > { %10346 = vmatmul.mubr.msk.f32.gmra.mxu0 %vm821_vm0, %v9496_v35  ;;  %v470_v37 = vpop.permute.xlu1 %469 }
  0xa6   : > { %10348 = vmatprep.mubr.msk.f32.mxu0 %vm821_vm0, %v9497_v36  ;;  %v467_v38 = vpop.permute.xlu0 %466  ;;  %vm634_vm14 = vcmp.eq.s32.totalorder %v11906_v8, %v470_v37 }
  0xa7   : > { %vm633_vm13 = vcmp.eq.s32.totalorder %v11906_v8, %v467_v38  ;;  %v9500_v43 = vsel %vm634_vm14, 1.0, %v17544_v13 }
  0xa8   : > { %v9499_v40 = vsel %vm633_vm13, 1.0, %v17544_v13 }
  0xa9   : > { %10349 = vmatmul.mubr.msk.f32.gmra.mxu0 %vm821_vm0, %v9498_v39  ;;  %v476_v41 = vpop.permute.xlu1 %475 }
  0xaa   : > { %10351 = vmatprep.mubr.msk.f32.mxu0 %vm821_vm0, %v9499_v40  ;;  %v473_v42 = vpop.permute.xlu0 %472  ;;  %vm636_vm1 = vcmp.eq.s32.totalorder %v11906_v8, %v476_v41 }
  0xab   : > { %vm635_vm15 = vcmp.eq.s32.totalorder %v11906_v8, %v473_v42  ;;  %v9502_v47 = vsel %vm636_vm1, 1.0, %v17544_v13 }
  0xac   : > { %v9501_v44 = vsel %vm635_vm15, 1.0, %v17544_v13 }
  0xad   : > { %10352 = vmatmul.mubr.msk.f32.gmra.mxu0 %vm821_vm0, %v9500_v43  ;;  %v482_v45 = vpop.permute.xlu1 %481 }
  0xae   : > { %10354 = vmatprep.mubr.msk.f32.mxu0 %vm821_vm0, %v9501_v44  ;;  %v479_v46 = vpop.permute.xlu0 %478  ;;  %vm638_vm3 = vcmp.eq.s32.totalorder %v11906_v8, %v482_v45 }
  0xaf   : > { %vm637_vm2 = vcmp.eq.s32.totalorder %v11906_v8, %v479_v46  ;;  %v9504_v51 = vsel %vm638_vm3, 1.0, %v17544_v13 }
  0xb0   : > { %v9503_v48 = vsel %vm637_vm2, 1.0, %v17544_v13 }
  0xb1   : > { %10355 = vmatmul.mubr.msk.f32.gmra.mxu0 %vm821_vm0, %v9502_v47  ;;  %v488_v49 = vpop.permute.xlu1 %487 }
  0xb2   : > { %10357 = vmatprep.mubr.msk.f32.mxu0 %vm821_vm0, %v9503_v48  ;;  %v485_v50 = vpop.permute.xlu0 %484  ;;  %vm640_vm5 = vcmp.eq.s32.totalorder %v11906_v8, %v488_v49 }
  0xb3   : > { %vm639_vm4 = vcmp.eq.s32.totalorder %v11906_v8, %v485_v50  ;;  %v9506_v55 = vsel %vm640_vm5, 1.0, %v17544_v13 }
  0xb4   : > { %v9505_v52 = vsel %vm639_vm4, 1.0, %v17544_v13 }
  0xb5   : > { %10358 = vmatmul.mubr.msk.f32.gmra.mxu0 %vm821_vm0, %v9504_v51  ;;  %v494_v53 = vpop.permute.xlu1 %493 }
  0xb6   : > { %10360 = vmatprep.mubr.msk.f32.mxu0 %vm821_vm0, %v9505_v52  ;;  %v491_v54 = vpop.permute.xlu0 %490  ;;  %vm642_vm7 = vcmp.eq.s32.totalorder %v11906_v8, %v494_v53 }
  0xb7   : > { %vm641_vm6 = vcmp.eq.s32.totalorder %v11906_v8, %v491_v54  ;;  %v9508_v59 = vsel %vm642_vm7, 1.0, %v17544_v13 }
  0xb8   : > { %v9507_v56 = vsel %vm641_vm6, 1.0, %v17544_v13 }
  0xb9   : > { %10361 = vmatmul.mubr.msk.f32.gmra.mxu0 %vm821_vm0, %v9506_v55  ;;  %v500_v57 = vpop.permute.xlu1 %499 }
  0xba   : > { %10363 = vmatprep.mubr.msk.f32.mxu0 %vm821_vm0, %v9507_v56  ;;  %v497_v58 = vpop.permute.xlu0 %496  ;;  %vm644_vm9 = vcmp.eq.s32.totalorder %v11906_v8, %v500_v57 }
  0xbb   : > { %vm643_vm8 = vcmp.eq.s32.totalorder %v11906_v8, %v497_v58  ;;  %v9510_v63 = vsel %vm644_vm9, 1.0, %v17544_v13 }
  0xbc   : > { %v9509_v60 = vsel %vm643_vm8, 1.0, %v17544_v13 }
  0xbd   : > { %10364 = vmatmul.mubr.msk.f32.gmra.mxu0 %vm821_vm0, %v9508_v59  ;;  %v506_v61 = vpop.permute.xlu1 %505 }
  0xbe   : > { %10366 = vmatprep.mubr.msk.f32.mxu0 %vm821_vm0, %v9509_v60  ;;  %v503_v62 = vpop.permute.xlu0 %502  ;;  %vm646_vm11 = vcmp.eq.s32.totalorder %v11906_v8, %v506_v61 }
  0xbf   : > { %vm645_vm10 = vcmp.eq.s32.totalorder %v11906_v8, %v503_v62  ;;  %v9512_v3 = vsel %vm646_vm11, 1.0, %v17544_v13 }
  0xc0   : > { %v9511_v0 = vsel %vm645_vm10, 1.0, %v17544_v13 }
  0xc1   : > { %10367 = vmatmul.mubr.msk.f32.gmra.mxu0 %vm821_vm0, %v9510_v63  ;;  %v512_v1 = vpop.permute.xlu1 %511 }
  0xc2   : > { %10369 = vmatprep.mubr.msk.f32.mxu0 %vm821_vm0, %v9511_v0  ;;  %v509_v2 = vpop.permute.xlu0 %508  ;;  %vm648_vm13 = vcmp.eq.s32.totalorder %v11906_v8, %v512_v1 }
  0xc3   : > { %vm647_vm12 = vcmp.eq.s32.totalorder %v11906_v8, %v509_v2  ;;  %v9514_v7 = vsel %vm648_vm13, 1.0, %v17544_v13 }
  0xc4   : > { %v9513_v4 = vsel %vm647_vm12, 1.0, %v17544_v13 }
  0xc5   : > { %10370 = vmatmul.mubr.msk.f32.gmra.mxu0 %vm821_vm0, %v9512_v3  ;;  %v518_v5 = vpop.permute.xlu1 %517 }
  0xc6   : > { %10372 = vmatprep.mubr.msk.f32.mxu0 %vm821_vm0, %v9513_v4  ;;  %v515_v6 = vpop.permute.xlu0 %514  ;;  %vm650_vm15 = vcmp.eq.s32.totalorder %v11906_v8, %v518_v5 }
  0xc7   : > { %vm649_vm14 = vcmp.eq.s32.totalorder %v11906_v8, %v515_v6  ;;  %v9516_v12 = vsel %vm650_vm15, 1.0, %v17544_v13 }
  0xc8   : > { %v9515_v9 = vsel %vm649_vm14, 1.0, %v17544_v13 }
  0xc9   : > { %10373 = vmatmul.mubr.msk.f32.gmra.mxu0 %vm821_vm0, %v9514_v7  ;;  %v524_v10 = vpop.permute.xlu1 %523 }
  0xca   : > { %10375 = vmatprep.mubr.msk.f32.mxu0 %vm821_vm0, %v9515_v9  ;;  %v521_v11 = vpop.permute.xlu0 %520  ;;  %vm652_vm2 = vcmp.eq.s32.totalorder %v11906_v8, %v524_v10 }
  0xcb   : > { %vm651_vm1 = vcmp.eq.s32.totalorder %v11906_v8, %v521_v11  ;;  %v9518_v17 = vsel %vm652_vm2, 1.0, %v17544_v13 }
  0xcc   : > { %v9517_v14 = vsel %vm651_vm1, 1.0, %v17544_v13 }
  0xcd   : > { %10376 = vmatmul.mubr.msk.f32.gmra.mxu0 %vm821_vm0, %v9516_v12  ;;  %v530_v15 = vpop.permute.xlu1 %529 }
  0xce   : > { %10378 = vmatprep.mubr.msk.f32.mxu0 %vm821_vm0, %v9517_v14  ;;  %v527_v16 = vpop.permute.xlu0 %526  ;;  %vm654_vm4 = vcmp.eq.s32.totalorder %v11906_v8, %v530_v15 }
  0xcf   : > { %vm653_vm3 = vcmp.eq.s32.totalorder %v11906_v8, %v527_v16  ;;  %v9520_v21 = vsel %vm654_vm4, 1.0, %v17544_v13 }
  0xd0   : > { %v9519_v18 = vsel %vm653_vm3, 1.0, %v17544_v13 }
  0xd1   : > { %10379 = vmatmul.mubr.msk.f32.gmra.mxu0 %vm821_vm0, %v9518_v17  ;;  %v536_v19 = vpop.permute.xlu1 %535 }
  0xd2   : > { %10381 = vmatprep.mubr.msk.f32.mxu0 %vm821_vm0, %v9519_v18  ;;  %v533_v20 = vpop.permute.xlu0 %532  ;;  %vm656_vm6 = vcmp.eq.s32.totalorder %v11906_v8, %v536_v19 }
  0xd3   : > { %vm655_vm5 = vcmp.eq.s32.totalorder %v11906_v8, %v533_v20  ;;  %v9522_v27 = vsel %vm656_vm6, 1.0, %v17544_v13 }
  0xd4   : > { %v9521_v22 = vsel %vm655_vm5, 1.0, %v17544_v13 }
  0xd5   : > { %10382 = vmatmul.mubr.msk.f32.gmra.mxu0 %vm821_vm0, %v9520_v21  ;;  %v542_v24 = vpop.permute.xlu1 %541 }
  0xd6   : > { %10384 = vmatprep.mubr.msk.f32.mxu0 %vm821_vm0, %v9521_v22  ;;  %v539_v25 = vpop.permute.xlu0 %538  ;;  %vm658_vm8 = vcmp.eq.s32.totalorder %v11906_v8, %v542_v24 }
  0xd7   : > { %vm657_vm7 = vcmp.eq.s32.totalorder %v11906_v8, %v539_v25  ;;  %v9524_v31 = vsel %vm658_vm8, 1.0, %v17544_v13 }
  0xd8   : > { %v9523_v28 = vsel %vm657_vm7, 1.0, %v17544_v13 }
  0xd9   : > { %10385 = vmatmul.mubr.msk.f32.gmra.mxu0 %vm821_vm0, %v9522_v27  ;;  %v548_v29 = vpop.permute.xlu1 %547 }
  0xda   : > { %10387 = vmatprep.mubr.msk.f32.mxu0 %vm821_vm0, %v9523_v28  ;;  %v545_v30 = vpop.permute.xlu0 %544  ;;  %vm660_vm10 = vcmp.eq.s32.totalorder %v11906_v8, %v548_v29 }
  0xdb   : > { %vm659_vm9 = vcmp.eq.s32.totalorder %v11906_v8, %v545_v30  ;;  %v9526_v35 = vsel %vm660_vm10, 1.0, %v17544_v13 }
  0xdc   : > { %v9525_v32 = vsel %vm659_vm9, 1.0, %v17544_v13 }
  0xdd   : > { %10388 = vmatmul.mubr.msk.f32.gmra.mxu0 %vm821_vm0, %v9524_v31  ;;  %v554_v33 = vpop.permute.xlu1 %553 }
  0xde   : > { %10390 = vmatprep.mubr.msk.f32.mxu0 %vm821_vm0, %v9525_v32  ;;  %v551_v34 = vpop.permute.xlu0 %550  ;;  %vm662_vm12 = vcmp.eq.s32.totalorder %v11906_v8, %v554_v33 }
  0xdf   : > { %vm661_vm11 = vcmp.eq.s32.totalorder %v11906_v8, %v551_v34  ;;  %v9528_v39 = vsel %vm662_vm12, 1.0, %v17544_v13 }
  0xe0   : > { %v9527_v36 = vsel %vm661_vm11, 1.0, %v17544_v13 }
  0xe1   : > { %10391 = vmatmul.mubr.msk.f32.gmra.mxu0 %vm821_vm0, %v9526_v35  ;;  %v560_v37 = vpop.permute.xlu1 %559 }
  0xe2   : > { %10393 = vmatprep.mubr.msk.f32.mxu0 %vm821_vm0, %v9527_v36  ;;  %v557_v38 = vpop.permute.xlu0 %556  ;;  %vm664_vm14 = vcmp.eq.s32.totalorder %v11906_v8, %v560_v37 }
  0xe3   : > { %vm663_vm13 = vcmp.eq.s32.totalorder %v11906_v8, %v557_v38  ;;  %v9530_v43 = vsel %vm664_vm14, 1.0, %v17544_v13 }
  0xe4   : > { %v9529_v40 = vsel %vm663_vm13, 1.0, %v17544_v13 }
  0xe5   : > { %10394 = vmatmul.mubr.msk.f32.gmra.mxu0 %vm821_vm0, %v9528_v39  ;;  %v566_v41 = vpop.permute.xlu1 %565 }
  0xe6   : > { %10396 = vmatprep.mubr.msk.f32.mxu0 %vm821_vm0, %v9529_v40  ;;  %v563_v42 = vpop.permute.xlu0 %562  ;;  %vm666_vm1 = vcmp.eq.s32.totalorder %v11906_v8, %v566_v41 }
  0xe7   : > { %vm665_vm15 = vcmp.eq.s32.totalorder %v11906_v8, %v563_v42  ;;  %v9532_v47 = vsel %vm666_vm1, 1.0, %v17544_v13 }
  0xe8   : > { %v9531_v44 = vsel %vm665_vm15, 1.0, %v17544_v13 }
  0xe9   : > { %10397 = vmatmul.mubr.msk.f32.gmra.mxu0 %vm821_vm0, %v9530_v43  ;;  %v572_v45 = vpop.permute.xlu1 %571 }
  0xea   : > { %10399 = vmatprep.mubr.msk.f32.mxu0 %vm821_vm0, %v9531_v44  ;;  %v569_v46 = vpop.permute.xlu0 %568  ;;  %vm668_vm3 = vcmp.eq.s32.totalorder %v11906_v8, %v572_v45 }
  0xeb   : > { %vm667_vm2 = vcmp.eq.s32.totalorder %v11906_v8, %v569_v46  ;;  %v9534_v51 = vsel %vm668_vm3, 1.0, %v17544_v13 }
  0xec   : > { %v9533_v48 = vsel %vm667_vm2, 1.0, %v17544_v13 }
  0xed   : > { %10400 = vmatmul.mubr.msk.f32.gmra.mxu0 %vm821_vm0, %v9532_v47  ;;  %v578_v49 = vpop.permute.xlu1 %577 }
  0xee   : > { %10402 = vmatprep.mubr.msk.f32.mxu0 %vm821_vm0, %v9533_v48  ;;  %v575_v50 = vpop.permute.xlu0 %574  ;;  %vm670_vm5 = vcmp.eq.s32.totalorder %v11906_v8, %v578_v49 }
  0xef   : > { %vm669_vm4 = vcmp.eq.s32.totalorder %v11906_v8, %v575_v50  ;;  %v9536_v55 = vsel %vm670_vm5, 1.0, %v17544_v13  ;;  %vm1410_vm5 = vcmask 261120  }
  0xf0   : > { %v9535_v52 = vsel %vm669_vm4, 1.0, %v17544_v13 }
  0xf1   : > { %10403 = vmatmul.mubr.msk.f32.gmra.mxu0 %vm821_vm0, %v9534_v51  ;;  %v584_v53 = vpop.permute.xlu1 %583 }
  0xf2   : > { %10405 = vmatprep.mubr.msk.f32.mxu0 %vm821_vm0, %v9535_v52  ;;  %v581_v54 = vpop.permute.xlu0 %580  ;;  %vm672_vm7 = vcmp.eq.s32.totalorder %v11906_v8, %v584_v53 }
  0xf3   : > { %vm671_vm6 = vcmp.eq.s32.totalorder %v11906_v8, %v581_v54  ;;  %v9538_v59 = vsel %vm672_vm7, 1.0, %v17544_v13  ;;  %vm6704_vm7 = vcmask 130048  }
  0xf4   : > { %v9537_v56 = vsel %vm671_vm6, 1.0, %v17544_v13  ;;  %vm3300_vm6 = vcmask 785408  }
  0xf5   : > { %10406 = vmatmul.mubr.msk.f32.gmra.mxu0 %vm821_vm0, %v9536_v55  ;;  %v590_v57 = vpop.permute.xlu1 %589 }
  0xf6   : > { %10408 = vmatprep.mubr.msk.f32.mxu0 %vm821_vm0, %v9537_v56  ;;  %v587_v58 = vpop.permute.xlu0 %586  ;;  %vm674_vm9 = vcmp.eq.s32.totalorder %v11906_v8, %v590_v57 }
  0xf7   : > { %vm673_vm8 = vcmp.eq.s32.totalorder %v11906_v8, %v587_v58  ;;  %v9540_v63 = vsel %vm674_vm9, 1.0, %v17544_v13  ;;  %vm9283_vm9 = vcmask 1041409  }
  0xf8   : > { %v9539_v60 = vsel %vm673_vm8, 1.0, %v17544_v13  ;;  %vm7218_vm8 = vcmask 7168  }
  0xf9   : > { %10409 = vmatmul.mubr.msk.f32.gmra.mxu0 %vm821_vm0, %v9538_v59  ;;  %v596_v61 = vpop.permute.xlu1 %595 }
  0xfa   : > { %10411 = vmatprep.mubr.msk.f32.mxu0 %vm821_vm0, %v9539_v60  ;;  %v593_v62 = vpop.permute.xlu0 %592  ;;  %vm676_vm11 = vcmp.eq.s32.totalorder %v11906_v8, %v596_v61 }
  0xfb   : > { %vm675_vm10 = vcmp.eq.s32.totalorder %v11906_v8, %v593_v62  ;;  %v9542_v3 = vsel %vm676_vm11, 1.0, %v17544_v13  ;;  %vm9287_vm11 = vcmask 1043459  }
  0xfc   : > { %v9541_v0 = vsel %vm675_vm10, 1.0, %v17544_v13  ;;  %vm9285_vm10 = vcmask 1042434  }
  0xfd   : > { %10412 = vmatmul.mubr.msk.f32.gmra.mxu0 %vm821_vm0, %v9540_v63  ;;  %v602_v1 = vpop.permute.xlu1 %601 }
  0xfe   : > { %10414 = vmatprep.mubr.msk.f32.mxu0 %vm821_vm0, %v9541_v0  ;;  %v599_v2 = vpop.permute.xlu0 %598  ;;  %vm678_vm13 = vcmp.eq.s32.totalorder %v11906_v8, %v602_v1 }
  0xff   : > { %vm677_vm12 = vcmp.eq.s32.totalorder %v11906_v8, %v599_v2  ;;  %v9544_v7 = vsel %vm678_vm13, 1.0, %v17544_v13  ;;  %vm9291_vm13 = vcmask 1045509  }
 0x100   : > { %v9543_v4 = vsel %vm677_vm12, 1.0, %v17544_v13  ;;  %vm9289_vm12 = vcmask 1044484  }
 0x101   : > { %10415 = vmatmul.mubr.msk.f32.gmra.mxu0 %vm821_vm0, %v9542_v3  ;;  %v608_v5 = vpop.permute.xlu1 %607 }
 0x102   : > { %10417 = vmatprep.mubr.msk.f32.mxu0 %vm821_vm0, %v9543_v4  ;;  %v605_v6 = vpop.permute.xlu0 %604  ;;  %vm680_vm15 = vcmp.eq.s32.totalorder %v11906_v8, %v608_v5 }
 0x103   : > { %vm679_vm14 = vcmp.eq.s32.totalorder %v11906_v8, %v605_v6  ;;  %v9546_v12 = vsel %vm680_vm15, 1.0, %v17544_v13  ;;  %vm9295_vm15 = vcmask 1047559  }
 0x104   : > { %v9545_v9 = vsel %vm679_vm14, 1.0, %v17544_v13  ;;  %vm9293_vm14 = vcmask 1046534  }
 0x105   : > { %10418 = vmatmul.mubr.msk.f32.gmra.mxu0 %vm821_vm0, %v9544_v7  ;;  %v614_v10 = vpop.permute.xlu1 %613 }
 0x106   : > { %10420 = vmatprep.mubr.msk.f32.mxu0 %vm821_vm0, %v9545_v9  ;;  %v611_v11 = vpop.permute.xlu0 %610  ;;  %vm682_vm2 = vcmp.eq.s32.totalorder %v11906_v8, %v614_v10 }
 0x107   : > { %vm681_vm1 = vcmp.eq.s32.totalorder %v11906_v8, %v611_v11  ;;  %v9548_v17 = vsel %vm682_vm2, 1.0, %v17544_v13 }
 0x108   : > { %v9547_v14 = vsel %vm681_vm1, 1.0, %v17544_v13 }
 0x109   : > { %10421 = vmatmul.mubr.msk.f32.gmra.mxu0 %vm821_vm0, %v9546_v12  ;;  %v620_v15 = vpop.permute.xlu1 %619 }
 0x10a   : > { %10423 = vmatprep.mubr.msk.f32.mxu0 %vm821_vm0, %v9547_v14  ;;  %v617_v16 = vpop.permute.xlu0 %616  ;;  %vm684_vm4 = vcmp.eq.s32.totalorder %v11906_v8, %v620_v15 }
 0x10b   : > { %vm683_vm3 = vcmp.eq.s32.totalorder %v11906_v8, %v617_v16  ;;  %v9550_v19 = vsel %vm684_vm4, 1.0, %v17544_v13 }
 0x10c   : > { %v9549_v18 = vsel %vm683_vm3, 1.0, %v17544_v13 }
 0x10d   : > { %10424 = vmatmul.mubr.msk.f32.gmra.mxu0 %vm821_vm0, %v9548_v17 }
 0x10e   : > { %10426 = vmatprep.mubr.msk.f32.mxu0 %vm821_vm0, %v9549_v18 }
 0x111   : > { %10427 = vmatmul.mubr.msk.f32.gmra.mxu0 %vm821_vm0, %v9550_v19 }
 0x155   : > { %v10335_v20 = vpop.f32.mrf.mxu0 }
 0x157   : > { %v1080_v21 = vpop.f32.mrf.mxu0 }
 0x158   : > { %10437 = vmatprep.mubr.msk.f32.mxu1 %vm1410_vm5, %v1080_v21  ;;  %v12181_v21 = vld [vmem:[%s17536_s3] ss:$0 sm:$0xff] }
 0x159   : > { %v10338_v22 = vpop.f32.mrf.mxu0  ;;  %10438 = vmatmul.mubr.msk.f32.vlgmr.msra.gmra.mxu1 %vm1410_vm5, %v10335_v20 }
 0x15b   : > { %v1090_v23 = vpop.f32.mrf.mxu0 }
 0x15c   : > { %10440 = vmatprep.mubr.msk.f32.mxu1 %vm1410_vm5, %v1090_v23 }
 0x15d   : > { %v10341_v8 = vpop.f32.mrf.mxu0  ;;  %10441 = vmatmul.mubr.msk.f32.gmra.mxu1 %vm1410_vm5, %v10338_v22 }
 0x15f   : > { %v1100_v24 = vpop.f32.mrf.mxu0 }
 0x160   : > { %10443 = vmatprep.mubr.msk.f32.mxu1 %vm1410_vm5, %v1100_v24 }
 0x161   : > { %v10344_v25 = vpop.f32.mrf.mxu0  ;;  %10444 = vmatmul.mubr.msk.f32.gmra.mxu1 %vm1410_vm5, %v10341_v8 }
 0x163   : > { %v1110_v26 = vpop.f32.mrf.mxu0 }
 0x164   : > { %10446 = vmatprep.mubr.msk.f32.mxu1 %vm1410_vm5, %v1110_v26 }
 0x165   : > { %v10347_v27 = vpop.f32.mrf.mxu0  ;;  %10447 = vmatmul.mubr.msk.f32.gmra.mxu1 %vm1410_vm5, %v10344_v25 }
 0x167   : > { %v1120_v28 = vpop.f32.mrf.mxu0 }
 0x168   : > { %10449 = vmatprep.mubr.msk.f32.mxu1 %vm1410_vm5, %v1120_v28 }
 0x169   : > { %v10350_v29 = vpop.f32.mrf.mxu0  ;;  %10450 = vmatmul.mubr.msk.f32.gmra.mxu1 %vm1410_vm5, %v10347_v27 }
 0x16b   : > { %v1130_v30 = vpop.f32.mrf.mxu0 }
 0x16c   : > { %10452 = vmatprep.mubr.msk.f32.mxu1 %vm1410_vm5, %v1130_v30 }
 0x16d   : > { %v10353_v31 = vpop.f32.mrf.mxu0  ;;  %10453 = vmatmul.mubr.msk.f32.gmra.mxu1 %vm1410_vm5, %v10350_v29 }
 0x16f   : > { %v1140_v32 = vpop.f32.mrf.mxu0 }
 0x170   : > { %10455 = vmatprep.mubr.msk.f32.mxu1 %vm1410_vm5, %v1140_v32 }
 0x171   : > { %v10356_v33 = vpop.f32.mrf.mxu0  ;;  %10456 = vmatmul.mubr.msk.f32.gmra.mxu1 %vm1410_vm5, %v10353_v31 }
 0x173   : > { %v1150_v34 = vpop.f32.mrf.mxu0 }
 0x174   : > { %10458 = vmatprep.mubr.msk.f32.mxu1 %vm1410_vm5, %v1150_v34 }
 0x175   : > { %v10359_v35 = vpop.f32.mrf.mxu0  ;;  %10459 = vmatmul.mubr.msk.f32.gmra.mxu1 %vm1410_vm5, %v10356_v33 }
 0x177   : > { %v1160_v36 = vpop.f32.mrf.mxu0 }
 0x178   : > { %10461 = vmatprep.mubr.msk.f32.mxu1 %vm1410_vm5, %v1160_v36 }
 0x179   : > { %v10362_v37 = vpop.f32.mrf.mxu0  ;;  %10462 = vmatmul.mubr.msk.f32.gmra.mxu1 %vm1410_vm5, %v10359_v35 }
 0x17b   : > { %v1170_v38 = vpop.f32.mrf.mxu0 }
 0x17c   : > { %10464 = vmatprep.mubr.msk.f32.mxu1 %vm1410_vm5, %v1170_v38 }
 0x17d   : > { %v10365_v39 = vpop.f32.mrf.mxu0  ;;  %10465 = vmatmul.mubr.msk.f32.gmra.mxu1 %vm1410_vm5, %v10362_v37 }
 0x17f   : > { %v1180_v40 = vpop.f32.mrf.mxu0 }
 0x180   : > { %10467 = vmatprep.mubr.msk.f32.mxu1 %vm1410_vm5, %v1180_v40 }
 0x181   : > { %v10368_v41 = vpop.f32.mrf.mxu0  ;;  %10468 = vmatmul.mubr.msk.f32.gmra.mxu1 %vm1410_vm5, %v10365_v39 }
 0x183   : > { %v1190_v42 = vpop.f32.mrf.mxu0 }
 0x184   : > { %10470 = vmatprep.mubr.msk.f32.mxu1 %vm1410_vm5, %v1190_v42 }
 0x185   : > { %v10371_v43 = vpop.f32.mrf.mxu0  ;;  %10471 = vmatmul.mubr.msk.f32.gmra.mxu1 %vm1410_vm5, %v10368_v41 }
 0x187   : > { %v1200_v44 = vpop.f32.mrf.mxu0 }
 0x188   : > { %10473 = vmatprep.mubr.msk.f32.mxu1 %vm1410_vm5, %v1200_v44 }
 0x189   : > { %v10374_v45 = vpop.f32.mrf.mxu0  ;;  %10474 = vmatmul.mubr.msk.f32.gmra.mxu1 %vm1410_vm5, %v10371_v43 }
 0x18b   : > { %v1210_v46 = vpop.f32.mrf.mxu0 }
 0x18c   : > { %10476 = vmatprep.mubr.msk.f32.mxu1 %vm1410_vm5, %v1210_v46 }
 0x18d   : > { %v10377_v47 = vpop.f32.mrf.mxu0  ;;  %10477 = vmatmul.mubr.msk.f32.gmra.mxu1 %vm1410_vm5, %v10374_v45 }
 0x18f   : > { %v1220_v48 = vpop.f32.mrf.mxu0 }
 0x190   : > { %10479 = vmatprep.mubr.msk.f32.mxu1 %vm1410_vm5, %v1220_v48 }
 0x191   : > { %v10380_v49 = vpop.f32.mrf.mxu0  ;;  %10480 = vmatmul.mubr.msk.f32.gmra.mxu1 %vm1410_vm5, %v10377_v47 }
 0x193   : > { %v1230_v50 = vpop.f32.mrf.mxu0 }
 0x194   : > { %10482 = vmatprep.mubr.msk.f32.mxu1 %vm1410_vm5, %v1230_v50 }
 0x195   : > { %v10383_v51 = vpop.f32.mrf.mxu0  ;;  %10483 = vmatmul.mubr.msk.f32.gmra.mxu1 %vm1410_vm5, %v10380_v49 }
 0x197   : > { %v1240_v52 = vpop.f32.mrf.mxu0 }
 0x198   : > { %10485 = vmatprep.mubr.msk.f32.mxu1 %vm1410_vm5, %v1240_v52 }
 0x199   : > { %v10386_v53 = vpop.f32.mrf.mxu0  ;;  %10486 = vmatmul.mubr.msk.f32.gmra.mxu1 %vm1410_vm5, %v10383_v51 }
 0x19b   : > { %v1250_v54 = vpop.f32.mrf.mxu0 }
 0x19c   : > { %10488 = vmatprep.mubr.msk.f32.mxu1 %vm1410_vm5, %v1250_v54 }
 0x19d   : > { %v10389_v55 = vpop.f32.mrf.mxu0  ;;  %10489 = vmatmul.mubr.msk.f32.gmra.mxu1 %vm1410_vm5, %v10386_v53 }
 0x19f   : > { %v1260_v56 = vpop.f32.mrf.mxu0 }
 0x1a0   : > { %10491 = vmatprep.mubr.msk.f32.mxu1 %vm1410_vm5, %v1260_v56 }
 0x1a1   : > { %v10392_v57 = vpop.f32.mrf.mxu0  ;;  %10492 = vmatmul.mubr.msk.f32.gmra.mxu1 %vm1410_vm5, %v10389_v55 }
 0x1a3   : > { %v1270_v58 = vpop.f32.mrf.mxu0 }
 0x1a4   : > { %10494 = vmatprep.mubr.msk.f32.mxu1 %vm1410_vm5, %v1270_v58 }
 0x1a5   : > { %v10395_v59 = vpop.f32.mrf.mxu0  ;;  %10495 = vmatmul.mubr.msk.f32.gmra.mxu1 %vm1410_vm5, %v10392_v57 }
 0x1a7   : > { %v1280_v60 = vpop.f32.mrf.mxu0 }
 0x1a8   : > { %10497 = vmatprep.mubr.msk.f32.mxu1 %vm1410_vm5, %v1280_v60 }
 0x1a9   : > { %v10398_v61 = vpop.f32.mrf.mxu0  ;;  %10498 = vmatmul.mubr.msk.f32.gmra.mxu1 %vm1410_vm5, %v10395_v59 }
 0x1ab   : > { %v1290_v62 = vpop.f32.mrf.mxu0 }
 0x1ac   : > { %10500 = vmatprep.mubr.msk.f32.mxu1 %vm1410_vm5, %v1290_v62 }
 0x1ad   : > { %v10401_v63 = vpop.f32.mrf.mxu0  ;;  %10501 = vmatmul.mubr.msk.f32.gmra.mxu1 %vm1410_vm5, %v10398_v61 }
 0x1af   : > { %v1300_v0 = vpop.f32.mrf.mxu0 }
 0x1b0   : > { %10503 = vmatprep.mubr.msk.f32.mxu1 %vm1410_vm5, %v1300_v0 }
 0x1b1   : > { %v10404_v1 = vpop.f32.mrf.mxu0  ;;  %10504 = vmatmul.mubr.msk.f32.gmra.mxu1 %vm1410_vm5, %v10401_v63 }
 0x1b3   : > { %v1310_v2 = vpop.f32.mrf.mxu0 }
 0x1b4   : > { %10506 = vmatprep.mubr.msk.f32.mxu1 %vm1410_vm5, %v1310_v2 }
 0x1b5   : > { %v10407_v3 = vpop.f32.mrf.mxu0  ;;  %10507 = vmatmul.mubr.msk.f32.gmra.mxu1 %vm1410_vm5, %v10404_v1 }
 0x1b7   : > { %v1320_v4 = vpop.f32.mrf.mxu0 }
 0x1b8   : > { %10509 = vmatprep.mubr.msk.f32.mxu1 %vm1410_vm5, %v1320_v4 }
 0x1b9   : > { %v10410_v5 = vpop.f32.mrf.mxu0  ;;  %10510 = vmatmul.mubr.msk.f32.gmra.mxu1 %vm1410_vm5, %v10407_v3 }
 0x1bb   : > { %v1330_v6 = vpop.f32.mrf.mxu0 }
 0x1bc   : > { %10512 = vmatprep.mubr.msk.f32.mxu1 %vm1410_vm5, %v1330_v6 }
 0x1bd   : > { %v10413_v7 = vpop.f32.mrf.mxu0  ;;  %10513 = vmatmul.mubr.msk.f32.gmra.mxu1 %vm1410_vm5, %v10410_v5 }
 0x1bf   : > { %v1340_v9 = vpop.f32.mrf.mxu0 }
 0x1c0   : > { %10515 = vmatprep.mubr.msk.f32.mxu1 %vm1410_vm5, %v1340_v9 }
 0x1c1   : > { %v10416_v10 = vpop.f32.mrf.mxu0  ;;  %10516 = vmatmul.mubr.msk.f32.gmra.mxu1 %vm1410_vm5, %v10413_v7 }
 0x1c3   : > { %v1350_v11 = vpop.f32.mrf.mxu0 }
 0x1c4   : > { %10518 = vmatprep.mubr.msk.f32.mxu1 %vm1410_vm5, %v1350_v11 }
 0x1c5   : > { %v10419_v12 = vpop.f32.mrf.mxu0  ;;  %10519 = vmatmul.mubr.msk.f32.gmra.mxu1 %vm1410_vm5, %v10416_v10 }
 0x1c7   : > { %v1360_v14 = vpop.f32.mrf.mxu0 }
 0x1c8   : > { %10521 = vmatprep.mubr.msk.f32.mxu1 %vm1410_vm5, %v1360_v14 }
 0x1c9   : > { %v10422_v15 = vpop.f32.mrf.mxu0  ;;  %10522 = vmatmul.mubr.msk.f32.gmra.mxu1 %vm1410_vm5, %v10419_v12 }
 0x1cb   : > { %v1370_v16 = vpop.f32.mrf.mxu0 }
 0x1cc   : > { %10524 = vmatprep.mubr.msk.f32.mxu1 %vm1410_vm5, %v1370_v16 }
 0x1cd   : > { %v10425_v17 = vpop.f32.mrf.mxu0  ;;  %10525 = vmatmul.mubr.msk.f32.gmra.mxu1 %vm1410_vm5, %v10422_v15 }
 0x1cf   : > { %v1380_v18 = vpop.f32.mrf.mxu0 }
 0x1d0   : > { %10527 = vmatprep.mubr.msk.f32.mxu1 %vm1410_vm5, %v1380_v18 }
 0x1d1   : > { %v10428_v19 = vpop.f32.mrf.mxu0  ;;  %10528 = vmatmul.mubr.msk.f32.gmra.mxu1 %vm1410_vm5, %v10425_v17 }
 0x1d3   : > { %v1390_v20 = vpop.f32.mrf.mxu0 }
 0x1d4   : > { %10530 = vmatprep.mubr.msk.f32.mxu1 %vm1410_vm5, %v1390_v20 }
 0x1d5   : > { %10531 = vmatmul.mubr.msk.f32.gmra.mxu1 %vm1410_vm5, %v10428_v19 }
 0x219   : > { %v10439_v22 = vpop.f32.mrf.mxu1 }
 0x21a   : > { %v12184_v23 = vadd.f32 %v10439_v22, %v12181_v21 }
 0x21b   : > { %v1669_v8 = vpop.f32.mrf.mxu1 }
 0x21c   : > { %17963 = vst [vmem:[#allocation2_spill] sm:$0xff] %v12184_v23  ;;  %v12187_v24 = vadd.f32 %v12181_v21, %v1669_v8  ;;  %2006 = vrot.lane.b32.xlu1 %v12184_v23, %s11747_s28 }
 0x21d   : > { %v10442_v25 = vpop.f32.mrf.mxu1 }
 0x21e   : > { %17964 = vst [vmem:[#allocation3_spill] sm:$0xff] %v12187_v24  ;;  %2004 = vrot.lane.b32.xlu0 %v12187_v24, %s11747_s28  ;;  %v12194_v27 = vadd.f32 %v10442_v25, %v12181_v21 }
 0x21f   : > { %v1679_v26 = vpop.f32.mrf.mxu1 }
 0x220   : > { %17965 = vst [vmem:[#allocation4_spill] sm:$0xff] %v12194_v27  ;;  %v12197_v28 = vadd.f32 %v12181_v21, %v1679_v26 }
 0x221   : > { %v10445_v29 = vpop.f32.mrf.mxu1 }
 0x222   : > { %17966 = vst [vmem:[#allocation5_spill] sm:$0xff] %v12197_v28  ;;  %2010 = vrot.lane.b32.xlu0 %v12194_v27, %s11747_s28  ;;  %2008 = vrot.lane.b32.xlu1 %v12197_v28, %s11747_s28  ;;  %v12204_v31 = vadd.f32 %v10445_v29, %v12181_v21 }
 0x223   : > { %v1689_v30 = vpop.f32.mrf.mxu1 }
 0x224   : > { %17967 = vst [vmem:[#allocation6_spill] sm:$0xff] %v12204_v31  ;;  %v12207_v32 = vadd.f32 %v12181_v21, %v1689_v30 }
 0x225   : > { %v10448_v33 = vpop.f32.mrf.mxu1 }
 0x226   : > { %17968 = vst [vmem:[#allocation7_spill] sm:$0xff] %v12207_v32  ;;  %2014 = vrot.lane.b32.xlu0 %v12204_v31, %s11747_s28  ;;  %2012 = vrot.lane.b32.xlu1 %v12207_v32, %s11747_s28  ;;  %v12214_v35 = vadd.f32 %v10448_v33, %v12181_v21 }
 0x227   : > { %v1699_v34 = vpop.f32.mrf.mxu1 }
 0x228   : > { %17969 = vst [vmem:[#allocation8_spill] sm:$0xff] %v12214_v35  ;;  %v12217_v36 = vadd.f32 %v12181_v21, %v1699_v34 }
 0x229   : > { %v10451_v37 = vpop.f32.mrf.mxu1 }
 0x22a   : > { %17970 = vst [vmem:[#allocation9_spill] sm:$0xff] %v12217_v36  ;;  %2018 = vrot.lane.b32.xlu0 %v12214_v35, %s11747_s28  ;;  %2016 = vrot.lane.b32.xlu1 %v12217_v36, %s11747_s28  ;;  %v12224_v39 = vadd.f32 %v10451_v37, %v12181_v21 }
 0x22b   : > { %v1709_v38 = vpop.f32.mrf.mxu1 }
 0x22c   : > { %17971 = vst [vmem:[#allocation10_spill] sm:$0xff] %v12224_v39  ;;  %v12227_v40 = vadd.f32 %v12181_v21, %v1709_v38 }
 0x22d   : > { %v10454_v41 = vpop.f32.mrf.mxu1 }
 0x22e   : > { %17972 = vst [vmem:[#allocation11_spill] sm:$0xff] %v12227_v40  ;;  %2022 = vrot.lane.b32.xlu0 %v12224_v39, %s11747_s28  ;;  %2020 = vrot.lane.b32.xlu1 %v12227_v40, %s11747_s28  ;;  %v12234_v43 = vadd.f32 %v10454_v41, %v12181_v21 }
 0x22f   : > { %v1719_v42 = vpop.f32.mrf.mxu1 }
 0x230   : > { %17973 = vst [vmem:[#allocation12_spill] sm:$0xff] %v12234_v43  ;;  %v12237_v44 = vadd.f32 %v12181_v21, %v1719_v42 }
 0x231   : > { %v10457_v45 = vpop.f32.mrf.mxu1 }
 0x232   : > { %17974 = vst [vmem:[#allocation13_spill] sm:$0xff] %v12237_v44  ;;  %2026 = vrot.lane.b32.xlu0 %v12234_v43, %s11747_s28  ;;  %2024 = vrot.lane.b32.xlu1 %v12237_v44, %s11747_s28  ;;  %v12244_v47 = vadd.f32 %v10457_v45, %v12181_v21 }
 0x233   : > { %v1729_v46 = vpop.f32.mrf.mxu1 }
 0x234   : > { %17975 = vst [vmem:[#allocation14_spill] sm:$0xff] %v12244_v47  ;;  %v12247_v48 = vadd.f32 %v12181_v21, %v1729_v46 }
 0x235   : > { %v10460_v49 = vpop.f32.mrf.mxu1 }
 0x236   : > { %17976 = vst [vmem:[#allocation15_spill] sm:$0xff] %v12247_v48  ;;  %2030 = vrot.lane.b32.xlu0 %v12244_v47, %s11747_s28  ;;  %2028 = vrot.lane.b32.xlu1 %v12247_v48, %s11747_s28  ;;  %v12254_v51 = vadd.f32 %v10460_v49, %v12181_v21 }
 0x237   : > { %v1739_v50 = vpop.f32.mrf.mxu1 }
 0x238   : > { %17977 = vst [vmem:[#allocation16_spill] sm:$0xff] %v12254_v51  ;;  %v12257_v52 = vadd.f32 %v12181_v21, %v1739_v50 }
 0x239   : > { %v10463_v53 = vpop.f32.mrf.mxu1 }
 0x23a   : > { %17978 = vst [vmem:[#allocation17_spill] sm:$0xff] %v12257_v52  ;;  %2034 = vrot.lane.b32.xlu0 %v12254_v51, %s11747_s28  ;;  %2032 = vrot.lane.b32.xlu1 %v12257_v52, %s11747_s28  ;;  %v12264_v55 = vadd.f32 %v10463_v53, %v12181_v21 }
 0x23b   : > { %v1749_v54 = vpop.f32.mrf.mxu1 }
 0x23c   : > { %17979 = vst [vmem:[#allocation18_spill] sm:$0xff] %v12264_v55  ;;  %v12267_v56 = vadd.f32 %v12181_v21, %v1749_v54 }
 0x23d   : > { %v10466_v57 = vpop.f32.mrf.mxu1 }
 0x23e   : > { %17980 = vst [vmem:[#allocation19_spill] sm:$0xff] %v12267_v56  ;;  %2086 = vrot.lane.b32.xlu1 %v12264_v55, %s11747_s28  ;;  %2084 = vrot.lane.b32.xlu0 %v12267_v56, %s11747_s28  ;;  %v12274_v59 = vadd.f32 %v10466_v57, %v12181_v21 }
 0x23f   : > { %v1759_v58 = vpop.f32.mrf.mxu1 }
 0x240   : > { %17981 = vst [vmem:[#allocation20_spill] sm:$0xff] %v12274_v59  ;;  %v12277_v60 = vadd.f32 %v12181_v21, %v1759_v58 }
 0x241   : > { %v10469_v61 = vpop.f32.mrf.mxu1 }
 0x242   : > { %2090 = vrot.lane.b32.xlu1 %v12274_v59, %s11747_s28  ;;  %2088 = vrot.lane.b32.xlu0 %v12277_v60, %s11747_s28  ;;  %v12284_v63 = vadd.f32 %v10469_v61, %v12181_v21 }
 0x243   : > { %v1769_v62 = vpop.f32.mrf.mxu1 }
 0x244   : > { %v12287_v0 = vadd.f32 %v12181_v21, %v1769_v62 }
 0x245   : > { %v10472_v1 = vpop.f32.mrf.mxu1 }
 0x246   : > { %17982 = vst [vmem:[#allocation21_spill] sm:$0xff] %v12287_v0  ;;  %2094 = vrot.lane.b32.xlu1 %v12284_v63, %s11747_s28  ;;  %2092 = vrot.lane.b32.xlu0 %v12287_v0, %s11747_s28  ;;  %v12294_v3 = vadd.f32 %v10472_v1, %v12181_v21 }
 0x247   : > { %v1779_v2 = vpop.f32.mrf.mxu1 }
 0x248   : > { %v12297_v4 = vadd.f32 %v12181_v21, %v1779_v2 }
 0x249   : > { %v10475_v5 = vpop.f32.mrf.mxu1 }
 0x24a   : > { %2098 = vrot.lane.b32.xlu1 %v12294_v3, %s11747_s28  ;;  %2096 = vrot.lane.b32.xlu0 %v12297_v4, %s11747_s28  ;;  %v12304_v7 = vadd.f32 %v10475_v5, %v12181_v21 }
 0x24b   : > { %v1789_v6 = vpop.f32.mrf.mxu1 }
 0x24c   : > { %v12307_v9 = vadd.f32 %v12181_v21, %v1789_v6 }
 0x24d   : > { %v10478_v10 = vpop.f32.mrf.mxu1 }
 0x24e   : > { %2102 = vrot.lane.b32.xlu1 %v12304_v7, %s11747_s28  ;;  %2100 = vrot.lane.b32.xlu0 %v12307_v9, %s11747_s28  ;;  %v12314_v12 = vadd.f32 %v10478_v10, %v12181_v21 }
 0x24f   : > { %v1799_v11 = vpop.f32.mrf.mxu1 }
 0x250   : > { %17983 = vst [vmem:[#allocation22_spill] sm:$0xff] %v12314_v12  ;;  %v12317_v14 = vadd.f32 %v12181_v21, %v1799_v11 }
 0x251   : > { %v10481_v15 = vpop.f32.mrf.mxu1 }
 0x252   : > { %17984 = vst [vmem:[#allocation23_spill] sm:$0xff] %v12317_v14  ;;  %2106 = vrot.lane.b32.xlu1 %v12314_v12, %s11747_s28  ;;  %2104 = vrot.lane.b32.xlu0 %v12317_v14, %s11747_s28  ;;  %v12324_v17 = vadd.f32 %v10481_v15, %v12181_v21 }
 0x253   : > { %v1809_v16 = vpop.f32.mrf.mxu1 }
 0x254   : > { %17985 = vst [vmem:[#allocation24_spill] sm:$0xff] %v12324_v17  ;;  %v12327_v18 = vadd.f32 %v12181_v21, %v1809_v16 }
 0x255   : > { %v10484_v19 = vpop.f32.mrf.mxu1 }
 0x256   : > { %17986 = vst [vmem:[#allocation25_spill] sm:$0xff] %v12327_v18  ;;  %2110 = vrot.lane.b32.xlu1 %v12324_v17, %s11747_s28  ;;  %2108 = vrot.lane.b32.xlu0 %v12327_v18, %s11747_s28  ;;  %v12334_v22 = vadd.f32 %v10484_v19, %v12181_v21 }
 0x257   : > { %v1819_v20 = vpop.f32.mrf.mxu1 }
 0x258   : > { %17987 = vst [vmem:[#allocation26_spill] sm:$0xff] %v12334_v22  ;;  %v12339_v26 = vadd.f32 %v12181_v21, %v1819_v20 }
 0x259   : > { %v10487_v8 = vpop.f32.mrf.mxu1 }
 0x25a   : > { %2114 = vrot.lane.b32.xlu0 %v12334_v22, %s11747_s28  ;;  %17988 = vst [vmem:[#allocation27_spill] sm:$0xff] %v12339_v26  ;;  %v12349_v34 = vadd.f32 %v10487_v8, %v12181_v21 }
 0x25b   : > { %v1829_v25 = vpop.f32.mrf.mxu1 }
 0x25c   : > { %v12342_v29 = vadd.f32 %v12181_v21, %v1829_v25  ;;  %17990 = vst [vmem:[#allocation29_spill] sm:$0xff] %v12349_v34 }
 0x25d   : > { %v10490_v30 = vpop.f32.mrf.mxu1 }
 0x25e   : > { %17989 = vst [vmem:[#allocation28_spill] sm:$0xff] %v12342_v29  ;;  %2112 = vrot.lane.b32.xlu0 %v12339_v26, %s11747_s28  ;;  %2164 = vrot.lane.b32.xlu1 %v12342_v29, %s11747_s28  ;;  %v12359_v42 = vadd.f32 %v10490_v30, %v12181_v21 }
 0x25f   : > { %v1839_v33 = vpop.f32.mrf.mxu1 }
 0x260   : > { %v12352_v37 = vadd.f32 %v12181_v21, %v1839_v33  ;;  %17992 = vst [vmem:[#allocation31_spill] sm:$0xff] %v12359_v42 }
 0x261   : > { %v10493_v38 = vpop.f32.mrf.mxu1 }
 0x262   : > { %17991 = vst [vmem:[#allocation30_spill] sm:$0xff] %v12352_v37  ;;  %2166 = vrot.lane.b32.xlu0 %v12349_v34, %s11747_s28  ;;  %2168 = vrot.lane.b32.xlu1 %v12352_v37, %s11747_s28  ;;  %v12369_v50 = vadd.f32 %v10493_v38, %v12181_v21 }
 0x263   : > { %v1849_v41 = vpop.f32.mrf.mxu1 }
 0x264   : > { %v12362_v45 = vadd.f32 %v12181_v21, %v1849_v41  ;;  %17994 = vst [vmem:[#allocation33_spill] sm:$0xff] %v12369_v50 }
 0x265   : > { %v10496_v46 = vpop.f32.mrf.mxu1 }
 0x266   : > { %17993 = vst [vmem:[#allocation32_spill] sm:$0xff] %v12362_v45  ;;  %2170 = vrot.lane.b32.xlu0 %v12359_v42, %s11747_s28  ;;  %2172 = vrot.lane.b32.xlu1 %v12362_v45, %s11747_s28  ;;  %v12379_v58 = vadd.f32 %v10496_v46, %v12181_v21 }
 0x267   : > { %v1859_v49 = vpop.f32.mrf.mxu1 }
 0x268   : > { %v12372_v53 = vadd.f32 %v12181_v21, %v1859_v49  ;;  %17996 = vst [vmem:[#allocation35_spill] sm:$0xff] %v12379_v58 }
 0x269   : > { %v10499_v54 = vpop.f32.mrf.mxu1 }
 0x26a   : > { %17995 = vst [vmem:[#allocation34_spill] sm:$0xff] %v12372_v53  ;;  %2174 = vrot.lane.b32.xlu0 %v12369_v50, %s11747_s28  ;;  %2176 = vrot.lane.b32.xlu1 %v12372_v53, %s11747_s28  ;;  %v12389_v2 = vadd.f32 %v10499_v54, %v12181_v21 }
 0x26b   : > { %v1869_v57 = vpop.f32.mrf.mxu1 }
 0x26c   : > { %v12382_v61 = vadd.f32 %v12181_v21, %v1869_v57  ;;  %17998 = vst [vmem:[#allocation37_spill] sm:$0xff] %v12389_v2 }
 0x26d   : > { %v10502_v62 = vpop.f32.mrf.mxu1 }
 0x26e   : > { %17997 = vst [vmem:[#allocation36_spill] sm:$0xff] %v12382_v61  ;;  %2178 = vrot.lane.b32.xlu0 %v12379_v58, %s11747_s28  ;;  %2180 = vrot.lane.b32.xlu1 %v12382_v61, %s11747_s28  ;;  %v12399_v11 = vadd.f32 %v10502_v62, %v12181_v21 }
 0x26f   : > { %v1879_v1 = vpop.f32.mrf.mxu1 }
 0x270   : > { %v12392_v5 = vadd.f32 %v12181_v21, %v1879_v1  ;;  %18000 = vst [vmem:[#allocation39_spill] sm:$0xff] %v12399_v11 }
 0x271   : > { %v10505_v6 = vpop.f32.mrf.mxu1 }
 0x272   : > { %17999 = vst [vmem:[#allocation38_spill] sm:$0xff] %v12392_v5  ;;  %2182 = vrot.lane.b32.xlu0 %v12389_v2, %s11747_s28  ;;  %2184 = vrot.lane.b32.xlu1 %v12392_v5, %s11747_s28  ;;  %v12409_v20 = vadd.f32 %v10505_v6, %v12181_v21 }
 0x273   : > { %v1889_v10 = vpop.f32.mrf.mxu1 }
 0x274   : > { %v12402_v15 = vadd.f32 %v12181_v21, %v1889_v10  ;;  %18002 = vst [vmem:[#allocation41_spill] sm:$0xff] %v12409_v20 }
 0x275   : > { %v10508_v16 = vpop.f32.mrf.mxu1 }
 0x276   : > { %18001 = vst [vmem:[#allocation40_spill] sm:$0xff] %v12402_v15  ;;  %2186 = vrot.lane.b32.xlu0 %v12399_v11, %s11747_s28  ;;  %2188 = vrot.lane.b32.xlu1 %v12402_v15, %s11747_s28  ;;  %v12419_v33 = vadd.f32 %v10508_v16, %v12181_v21 }
 0x277   : > { %v1899_v19 = vpop.f32.mrf.mxu1 }
 0x278   : > { %v12412_v8 = vadd.f32 %v12181_v21, %v1899_v19  ;;  %18004 = vst [vmem:[#allocation43_spill] sm:$0xff] %v12419_v33 }
 0x279   : > { %v10511_v25 = vpop.f32.mrf.mxu1 }
 0x27a   : > { %18003 = vst [vmem:[#allocation42_spill] sm:$0xff] %v12412_v8  ;;  %2190 = vrot.lane.b32.xlu0 %v12409_v20, %s11747_s28  ;;  %2192 = vrot.lane.b32.xlu1 %v12412_v8, %s11747_s28  ;;  %v12422_v38 = vadd.f32 %v10511_v25, %v12181_v21 }
 0x27b   : > { %v1909_v30 = vpop.f32.mrf.mxu1 }
 0x27c   : > { %18005 = vst [vmem:[#allocation44_spill] sm:$0xff] %v12422_v38  ;;  %v12429_v49 = vadd.f32 %v12181_v21, %v1909_v30 }
 0x27d   : > { %v10514_v41 = vpop.f32.mrf.mxu1 }
 0x27e   : > { %2194 = vrot.lane.b32.xlu0 %v12419_v33, %s11747_s28  ;;  %2246 = vrot.lane.b32.xlu1 %v12422_v38, %s11747_s28  ;;  %18006 = vst [vmem:[#allocation45_spill] sm:$0xff] %v12429_v49  ;;  %v12432_v54 = vadd.f32 %v10514_v41, %v12181_v21 }
 0x27f   : > { %v1919_v46 = vpop.f32.mrf.mxu1 }
 0x280   : > { %18007 = vst [vmem:[#allocation46_spill] sm:$0xff] %v12432_v54  ;;  %v12439_v1 = vadd.f32 %v12181_v21, %v1919_v46 }
 0x281   : > { %v10517_v57 = vpop.f32.mrf.mxu1 }
 0x282   : > { %2244 = vrot.lane.b32.xlu0 %v12429_v49, %s11747_s28  ;;  %2250 = vrot.lane.b32.xlu1 %v12432_v54, %s11747_s28  ;;  %18008 = vst [vmem:[#allocation47_spill] sm:$0xff] %v12439_v1  ;;  %v12442_v6 = vadd.f32 %v10517_v57, %v12181_v21 }
 0x283   : > { %v1929_v62 = vpop.f32.mrf.mxu1 }
 0x284   : > { %18009 = vst [vmem:[#allocation48_spill] sm:$0xff] %v12442_v6  ;;  %v12449_v19 = vadd.f32 %v12181_v21, %v1929_v62 }
 0x285   : > { %v10520_v10 = vpop.f32.mrf.mxu1 }
 0x286   : > { %2248 = vrot.lane.b32.xlu0 %v12439_v1, %s11747_s28  ;;  %2254 = vrot.lane.b32.xlu1 %v12442_v6, %s11747_s28  ;;  %18010 = vst [vmem:[#allocation49_spill] sm:$0xff] %v12449_v19  ;;  %v12452_v25 = vadd.f32 %v10520_v10, %v12181_v21 }
 0x287   : > { %v1939_v16 = vpop.f32.mrf.mxu1 }
 0x288   : > { %18011 = vst [vmem:[#allocation50_spill] sm:$0xff] %v12452_v25  ;;  %v12459_v46 = vadd.f32 %v12181_v21, %v1939_v16 }
 0x289   : > { %v10523_v30 = vpop.f32.mrf.mxu1 }
 0x28a   : > { %2252 = vrot.lane.b32.xlu0 %v12449_v19, %s11747_s28  ;;  %2258 = vrot.lane.b32.xlu1 %v12452_v25, %s11747_s28  ;;  %18012 = vst [vmem:[#allocation51_spill] sm:$0xff] %v12459_v46  ;;  %v12462_v57 = vadd.f32 %v10523_v30, %v12181_v21 }
 0x28b   : > { %v1949_v41 = vpop.f32.mrf.mxu1 }
 0x28c   : > { %18013 = vst [vmem:[#allocation52_spill] sm:$0xff] %v12462_v57  ;;  %v12469_v10 = vadd.f32 %v12181_v21, %v1949_v41 }
 0x28d   : > { %v10526_v13 = vpop.f32.mrf.mxu1 }
 0x28e   : > { %2256 = vrot.lane.b32.xlu0 %v12459_v46, %s11747_s28  ;;  %2262 = vrot.lane.b32.xlu1 %v12462_v57, %s11747_s28  ;;  %18014 = vst [vmem:[#allocation53_spill] sm:$0xff] %v12469_v10  ;;  %v12472_v26 = vadd.f32 %v10526_v13, %v12181_v21  ;;  %v12474_v33 = vpop.permute.xlu1 %2006 }
 0x28f   : > { %v1959_v62 = vpop.f32.mrf.mxu1  ;;  %18016 = vst [vmem:[#allocation55_spill] sm:$0xff] %v12474_v33 }
 0x290   : > { %18015 = vst [vmem:[#allocation54_spill] sm:$0xff] %v12472_v26  ;;  %v12476_v16 = vpop.permute.xlu0 %2004  ;;  %v12483_v8 = vadd.f32 %v12181_v21, %v1959_v62 }
 0x291   : > { %18017 = vst [vmem:[#allocation56_spill] sm:$0xff] %v12476_v16  ;;  %v10529_v30 = vpop.f32.mrf.mxu1 }
 0x292   : > { %2260 = vrot.lane.b32.xlu0 %v12469_v10, %s11747_s28  ;;  %2266 = vrot.lane.b32.xlu1 %v12472_v26, %s11747_s28  ;;  %18018 = vst [vmem:[#allocation57_spill] sm:$0xff] %v12483_v8  ;;  %v12490_v13 = vadd.f32 %v10529_v30, %v12181_v21 }
 0x293   : > { %v1969_v51 = vpop.f32.mrf.mxu1 }
 0x294   : > { %v12485_v41 = vpop.permute.xlu1 %2008  ;;  %v12487_v52 = vpop.permute.xlu0 %2010  ;;  %18021 = vst [vmem:[#allocation60_spill] sm:$0xff] %v12490_v13  ;;  %v12497_v18 = vadd.f32 %v12181_v21, %v1969_v51 }
 0x295   : > { %18019 = vst [vmem:[#allocation58_spill] sm:$0xff] %v12485_v41  ;;  %18020 = vst [vmem:[#allocation59_spill] sm:$0xff] %v12487_v52  ;;  %v10532_v33 = vpop.f32.mrf.mxu1 }
 0x296   : > { %2264 = vrot.lane.b32.xlu0 %v12483_v8, %s11747_s28  ;;  %2270 = vrot.lane.b32.xlu1 %v12490_v13, %s11747_s28  ;;  %18022 = vst [vmem:[#allocation61_spill] sm:$0xff] %v12497_v18  ;;  %v12511_v30 = vadd.f32 %v10532_v33, %v12181_v21 }
 0x297   : > { %v1979_v16 = vpop.f32.mrf.mxu1 }
 0x298   : > { %v12500_v62 = vadd.f32 %v12181_v21, %v1979_v16  ;;  %v12502_v41 = vpop.permute.xlu1 %2012  ;;  %v12504_v52 = vpop.permute.xlu0 %2014  ;;  %18026 = vst [vmem:[#allocation65_spill] sm:$0xff] %v12511_v30 }
 0x299   : > { %18024 = vst [vmem:[#allocation63_spill] sm:$0xff] %v12502_v41  ;;  %18025 = vst [vmem:[#allocation64_spill] sm:$0xff] %v12504_v52 }
 0x29a   : > { %18023 = vst [vmem:[#allocation62_spill] sm:$0xff] %v12500_v62  ;;  %2268 = vrot.lane.b32.xlu0 %v12497_v18, %s11747_s28  ;;  %2272 = vrot.lane.b32.xlu1 %v12500_v62, %s11747_s28 }
 0x29c   : > { %v12513_v22 = vpop.permute.xlu1 %2016  ;;  %v12515_v51 = vpop.permute.xlu0 %2018 }
 0x29d   : > { %18027 = vst [vmem:[#allocation66_spill] sm:$0xff] %v12513_v22  ;;  %18028 = vst [vmem:[#allocation67_spill] sm:$0xff] %v12515_v51  ;;  %v3492_v51 = vld [vmem:[%s17537_s4 + $0xf8] sm:$0xff] }
 0x29e   : > { %2274 = vrot.lane.b32.xlu0 %v12511_v30, %s11747_s28  ;;  %9999 = vmatprep.subr.mxu1 %v3492_v51 }
 0x2a0   : > { %v12519_v16 = vpop.permute.xlu1 %2020  ;;  %v12521_v41 = vpop.permute.xlu0 %2022 }
 0x2a1   : > { %18029 = vst [vmem:[#allocation68_spill] sm:$0xff] %v12519_v16  ;;  %18030 = vst [vmem:[#allocation69_spill] sm:$0xff] %v12521_v41  ;;  %v3524_v41 = vld [vmem:[%s17537_s4 + $0x1f8] sm:$0xff] }
 0x2a2   : > { %10079 = vmatprep.subr.mxu0 %v3524_v41 }
 0x2a4   : > { %v12523_v52 = vpop.permute.xlu1 %2024  ;;  %v12525_v18 = vpop.permute.xlu0 %2026 }
 0x2a5   : > { %18031 = vst [vmem:[#allocation70_spill] sm:$0xff] %v12523_v52  ;;  %18032 = vst [vmem:[#allocation71_spill] sm:$0xff] %v12525_v18  ;;  %v3476_v18 = vld [vmem:[%s17537_s4 + $0x78] sm:$0xff] }
 0x2a6   : > { %10000 = vmatpush3.msra.mxu1 %v3476_v18 }
 0x2a8   : > { %v12527_v20 = vpop.permute.xlu1 %2028  ;;  %v12529_v62 = vpop.permute.xlu0 %2030 }
 0x2a9   : > { %18033 = vst [vmem:[#allocation72_spill] sm:$0xff] %v12527_v20  ;;  %18034 = vst [vmem:[#allocation73_spill] sm:$0xff] %v12529_v62 }
 0x2ac   : > { %v12531_v21 = vpop.permute.xlu1 %2032  ;;  %v12533_v33 = vpop.permute.xlu0 %2034 }
 0x2ad   : > { %18035 = vst [vmem:[#allocation74_spill] sm:$0xff] %v12531_v21  ;;  %18036 = vst [vmem:[#allocation75_spill] sm:$0xff] %v12533_v33  ;;  %v3508_v21 = vld [vmem:[%s17537_s4 + $0x178] sm:$0xff] }
 0x2ae   : > { %10080 = vmatpush3.msra.mxu0 %v3508_v21 }
 0x2b0   : > { %v12547_v62 = vpop.permute.xlu1 %2086  ;;  %v12549_v33 = vpop.permute.xlu0 %2084 }
 0x2b1   : > { %18037 = vst [vmem:[#allocation76_spill] sm:$0xff] %v12547_v62  ;;  %18038 = vst [vmem:[#allocation77_spill] sm:$0xff] %v12549_v33  ;;  %v2325_v20 = vmul.f32 %v12547_v62, %v12264_v55  ;;  %v2453_v52 = vmul.f32 %v12547_v62, %v12422_v38  ;;  %v2133_v51 = vmul.f32 %v12547_v62, %v12184_v23 }
 0x2b2   : > { %v2389_v41 = vmul.f32 %v12547_v62, %v12349_v34  ;;  %v2324_v16 = vmul.f32 %v12549_v33, %v12267_v56  ;;  %v2452_v22 = vmul.f32 %v12549_v33, %v12429_v49 }
 0x2b3   : > { %v10808_v18 = vpack.i.bf16 %v2453_v52, %v2325_v20  ;;  %v2132_v52 = vmul.f32 %v12549_v33, %v12187_v24  ;;  %v2388_v20 = vmul.f32 %v12549_v33, %v12342_v29  ;;  %v3507_v33 = vld [vmem:[%s17537_s4 + $0x170] sm:$0xff] }
 0x2b4   : > { %v10813_v21 = vpack.i.bf16 %v2389_v41, %v2133_v51  ;;  %v12563_v30 = vpop.permute.xlu1 %2090  ;;  %v12565_v55 = vpop.permute.xlu0 %2088  ;;  %v10818_v34 = vpack.i.bf16 %v2452_v22, %v2324_v16  ;;  %v3491_v51 = vld [vmem:[%s17537_s4 + $0xf0] sm:$0xff] }
 0x2b5   : > { %18039 = vst [vmem:[#allocation78_spill] sm:$0xff] %v12563_v30  ;;  %18040 = vst [vmem:[#allocation79_spill] sm:$0xff] %v12565_v55  ;;  %10809 = vrot.lane.b32.xlu0 %v10808_v18, %s11748_s19  ;;  %v2327_v62 = vmul.f32 %v12563_v30, %v12274_v59  ;;  %v2455_v56 = vmul.f32 %v12563_v30, %v12432_v54  ;;  %v3523_v41 = vld [vmem:[%s17537_s4 + $0x1f0] sm:$0xff]  ;;  %v2134_v22 = vmul.f32 %v12565_v55, %v12197_v28 }
 0x2b6   : > { %10814 = vrot.lane.b32.xlu1 %v10813_v21, %s11748_s19  ;;  %v3475_v18 = vld [vmem:[%s17537_s4 + $0x70] sm:$0xff]  ;;  %v2390_v16 = vmul.f32 %v12565_v55, %v12352_v37  ;;  %10001 = vmatprep.subr.mxu1 %v3491_v51  ;;  %v10823_v51 = vpack.i.bf16 %v2388_v20, %v2132_v52  ;;  %v2454_v52 = vmul.f32 %v12565_v55, %v12439_v1  ;;  %v3490_v20 = vld [vmem:[%s17537_s4 + $0xe8] sm:$0xff] }
 0x2b7   : > { %v10828_v21 = vpack.i.bf16 %v2455_v56, %v2327_v62  ;;  %10081 = vmatprep.subr.mxu0 %v3523_v41  ;;  %10002 = vmatpush3.msra.mxu1 %v3475_v18  ;;  %v2135_v56 = vmul.f32 %v12563_v30, %v12194_v27  ;;  %v2391_v62 = vmul.f32 %v12563_v30, %v12359_v42 }
 0x2b8   : > { %v12593_v54 = vpop.permute.xlu1 %2094  ;;  %v12595_v59 = vpop.permute.xlu0 %2092  ;;  %10082 = vmatpush3.msra.mxu0 %v3507_v33  ;;  %v10843_v41 = vpack.i.bf16 %v2390_v16, %v2134_v22  ;;  %v3522_v22 = vld [vmem:[%s17537_s4 + $0x1e8] sm:$0xff]  ;;  %10003 = vmatprep.subr.mxu1 %v3490_v20 }
 0x2b9   : > { %18041 = vst [vmem:[#allocation80_spill] sm:$0xff] %v12593_v54  ;;  %18042 = vst [vmem:[#allocation81_spill] sm:$0xff] %v12595_v59  ;;  %10829 = vrot.lane.b32.xlu0 %v10828_v21, %s11748_s19  ;;  %v2329_v37 = vmul.f32 %v12593_v54, %v12284_v63  ;;  %v2457_v28 = vmul.f32 %v12593_v54, %v12442_v6  ;;  %v2326_v21 = vmul.f32 %v12565_v55, %v12277_v60  ;;  %v3474_v16 = vld [vmem:[%s17537_s4 + $0x68] sm:$0xff] }
 0x2ba   : > { %10819 = vrot.lane.b32.xlu1 %v10818_v34, %s11748_s19  ;;  %v10833_v34 = vpack.i.bf16 %v2391_v62, %v2135_v56  ;;  %v2136_v56 = vmul.f32 %v12595_v59, %v12207_v32  ;;  %v2392_v62 = vmul.f32 %v12595_v59, %v12362_v45  ;;  %10083 = vmatprep.subr.mxu0 %v3522_v22 }
 0x2bb   : > { %10004 = vmatpush3.msra.mxu1 %v3474_v16  ;;  %v10838_v20 = vpack.i.bf16 %v2454_v52, %v2326_v21  ;;  %v2456_v21 = vmul.f32 %v12595_v59, %v12449_v19  ;;  %v3489_v52 = vld [vmem:[%s17537_s4 + $0xe0] sm:$0xff] }
 0x2bc   : > { %v12607_v18 = vpop.permute.xlu1 %2098  ;;  %v12609_v33 = vpop.permute.xlu0 %2096  ;;  %v10863_v22 = vpack.i.bf16 %v2392_v62, %v2136_v56  ;;  %v3521_v56 = vld [vmem:[%s17537_s4 + $0x1e0] sm:$0xff]  ;;  %10005 = vmatprep.subr.mxu1 %v3489_v52 }
 0x2bd   : > { %18043 = vst [vmem:[#allocation82_spill] sm:$0xff] %v12607_v18  ;;  %18044 = vst [vmem:[#allocation83_spill] sm:$0xff] %v12609_v33  ;;  %10844 = vrot.lane.b32.xlu0 %v10843_v41, %s11748_s19  ;;  %v3506_v41 = vld [vmem:[%s17537_s4 + $0x168] sm:$0xff]  ;;  %v2331_v45 = vmul.f32 %v12607_v18, %v12294_v3  ;;  %v2459_v32 = vmul.f32 %v12607_v18, %v12452_v25  ;;  %v3473_v62 = vld [vmem:[%s17537_s4 + $0x60] sm:$0xff]  ;;  %v2395_v52 = vmul.f32 %v12607_v18, %v12379_v58 }
 0x2be   : > { %10824 = vrot.lane.b32.xlu1 %v10823_v51, %s11748_s19  ;;  %v10848_v51 = vpack.i.bf16 %v2457_v28, %v2329_v37  ;;  %10084 = vmatpush3.msra.mxu0 %v3506_v41  ;;  %v2137_v28 = vmul.f32 %v12593_v54, %v12204_v31  ;;  %v2393_v37 = vmul.f32 %v12593_v54, %v12369_v50 }
 0x2bf   : > { %v2328_v41 = vmul.f32 %v12595_v59, %v12287_v0  ;;  %10085 = vmatprep.subr.mxu0 %v3521_v56  ;;  %10006 = vmatpush3.msra.mxu1 %v3473_v62  ;;  %v2139_v59 = vmul.f32 %v12607_v18, %v12214_v35 }
 0x2c0   : > { %v12633_v55 = vpop.permute.xlu1 %2102  ;;  %v12635_v30 = vpop.permute.xlu0 %2100 }
 0x2c1   : > { %18045 = vst [vmem:[#allocation84_spill] sm:$0xff] %v12633_v55  ;;  %18046 = vst [vmem:[#allocation85_spill] sm:$0xff] %v12635_v30  ;;  %10849 = vrot.lane.b32.xlu0 %v10848_v51, %s11748_s19  ;;  %v10853_v51 = vpack.i.bf16 %v2393_v37, %v2137_v28  ;;  %v2138_v28 = vmul.f32 %v12609_v33, %v12217_v36  ;;  %v2394_v37 = vmul.f32 %v12609_v33, %v12372_v53 }
 0x2c2   : > { %10834 = vrot.lane.b32.xlu1 %v10833_v34, %s11748_s19  ;;  %v2333_v62 = vmul.f32 %v12633_v55, %v12304_v7 }
 0x2c4   : > { %v12647_v16 = vpop.permute.xlu0 %2104  ;;  %v12651_v34 = vpop.permute.xlu1 %2106 }
 0x2c5   : > { %18047 = vst [vmem:[#allocation86_spill] sm:$0xff] %v12647_v16  ;;  %10864 = vrot.lane.b32.xlu0 %v10863_v22, %s11748_s19  ;;  %18048 = vst [vmem:[#allocation87_spill] sm:$0xff] %v12651_v34  ;;  %v3505_v22 = vld [vmem:[%s17537_s4 + $0x160] sm:$0xff] }
 0x2c6   : > { %10839 = vrot.lane.b32.xlu1 %v10838_v20, %s11748_s19  ;;  %v10868_v20 = vpack.i.bf16 %v2459_v32, %v2331_v45  ;;  %10086 = vmatpush3.msra.mxu0 %v3505_v22  ;;  %v10858_v32 = vpack.i.bf16 %v2456_v21, %v2328_v41  ;;  %v10883_v45 = vpack.i.bf16 %v2394_v37, %v2138_v28  ;;  %v3488_v41 = vld [vmem:[%s17537_s4 + $0xd8] sm:$0xff] }
 0x2c7   : > { %v3520_v21 = vld [vmem:[%s17537_s4 + $0x1d8] sm:$0xff]  ;;  %v10873_v28 = vpack.i.bf16 %v2395_v52, %v2139_v59  ;;  %v2330_v37 = vmul.f32 %v12609_v33, %v12297_v4  ;;  %v2458_v22 = vmul.f32 %v12609_v33, %v12459_v46  ;;  %10007 = vmatprep.subr.mxu1 %v3488_v41  ;;  %v2140_v59 = vmul.f32 %v12635_v30, %v12227_v40 }
 0x2c8   : > { %v12673_v54 = vpop.permute.xlu0 %2108  ;;  %v12681_v56 = vpop.permute.xlu1 %2110  ;;  %10087 = vmatprep.subr.mxu0 %v3520_v21  ;;  %v2396_v52 = vmul.f32 %v12635_v30, %v12382_v61  ;;  %v2141_v21 = vmul.f32 %v12633_v55, %v12224_v39  ;;  %v2397_v33 = vmul.f32 %v12633_v55, %v12389_v2 }
 0x2c9   : > { %18049 = vst [vmem:[#allocation88_spill] sm:$0xff] %v12673_v54  ;;  %10869 = vrot.lane.b32.xlu0 %v10868_v20, %s11748_s19  ;;  %18050 = vst [vmem:[#allocation89_spill] sm:$0xff] %v12681_v56  ;;  %v3472_v20 = vld [vmem:[%s17537_s4 + $0x58] sm:$0xff]  ;;  %v10878_v41 = vpack.i.bf16 %v2458_v22, %v2330_v37  ;;  %v3519_v37 = vld [vmem:[%s17537_s4 + $0x1d0] sm:$0xff] }
 0x2ca   : > { %10854 = vrot.lane.b32.xlu1 %v10853_v51, %s11748_s19  ;;  %v2461_v51 = vmul.f32 %v12633_v55, %v12462_v57  ;;  %10008 = vmatpush3.msra.mxu1 %v3472_v20  ;;  %v10903_v40 = vpack.i.bf16 %v2396_v52, %v2140_v59  ;;  %v2335_v20 = vmul.f32 %v12651_v34, %v12314_v12  ;;  %v3471_v22 = vld [vmem:[%s17537_s4 + $0x50] sm:$0xff] }
 0x2cb   : > { %v2332_v59 = vmul.f32 %v12635_v30, %v12307_v9  ;;  %v2460_v52 = vmul.f32 %v12635_v30, %v12469_v10  ;;  %v2399_v30 = vmul.f32 %v12651_v34, %v12399_v11 }
 0x2cc   : > { %v12683_v53 = vpop.permute.xlu0 %2114  ;;  %v10888_v57 = vpack.i.bf16 %v2461_v51, %v2333_v62 }
 0x2cd   : > { %18051 = vst [vmem:[#allocation90_spill] sm:$0xff] %v12683_v53  ;;  %10884 = vrot.lane.b32.xlu0 %v10883_v45, %s11748_s19 }
 0x2ce   : > { %10859 = vrot.lane.b32.xlu1 %v10858_v32, %s11748_s19  ;;  %v3504_v32 = vld [vmem:[%s17537_s4 + $0x158] sm:$0xff] }
 0x2cf   : > { %10088 = vmatpush3.msra.mxu0 %v3504_v32  ;;  %v10893_v32 = vpack.i.bf16 %v2397_v33, %v2141_v21  ;;  %v2142_v33 = vmul.f32 %v12647_v16, %v12237_v44  ;;  %v2398_v21 = vmul.f32 %v12647_v16, %v12392_v5 }
 0x2d0   : > { %v12707_v45 = vpop.permute.xlu1 %2164  ;;  %v12709_v18 = vpop.permute.xlu0 %2112  ;;  %10089 = vmatprep.subr.mxu0 %v3519_v37  ;;  %v2143_v37 = vmul.f32 %v12651_v34, %v12234_v43  ;;  %v18059_v43 = vld [vmem:[#allocation42_spill] sm:$0xff] }
 0x2d1   : > { %18052 = vst [vmem:[#allocation91_spill] sm:$0xff] %v12709_v18  ;;  %10889 = vrot.lane.b32.xlu0 %v10888_v57, %s11748_s19  ;;  %v3487_v57 = vld [vmem:[%s17537_s4 + $0xd0] sm:$0xff]  ;;  %v10923_v44 = vpack.i.bf16 %v2398_v21, %v2142_v33  ;;  %v2334_v33 = vmul.f32 %v12647_v16, %v12317_v14  ;;  %v2462_v21 = vmul.f32 %v12647_v16, %v12483_v8  ;;  %v18053_v16 = vld [vmem:[#allocation41_spill] sm:$0xff] }
 0x2d2   : > { %10874 = vrot.lane.b32.xlu1 %v10873_v28, %s11748_s19  ;;  %v2463_v28 = vmul.f32 %v12651_v34, %v12472_v26  ;;  %10009 = vmatprep.subr.mxu1 %v3487_v57  ;;  %v10898_v57 = vpack.i.bf16 %v2460_v52, %v2332_v59  ;;  %v3518_v59 = vld [vmem:[%s17537_s4 + $0x1c8] sm:$0xff] }
 0x2d3   : > { %10010 = vmatpush3.msra.mxu1 %v3471_v22  ;;  %v2337_v22 = vmul.f32 %v12681_v56, %v12324_v17  ;;  %v3470_v52 = vld [vmem:[%s17537_s4 + $0x48] sm:$0xff]  ;;  %v18054_v17 = vld [vmem:[#allocation26_spill] sm:$0xff] }
 0x2d4   : > { %v12721_v62 = vpop.permute.xlu1 %2168  ;;  %v12723_v51 = vpop.permute.xlu0 %2166  ;;  %v10908_v26 = vpack.i.bf16 %v2463_v28, %v2335_v20 }
 0x2d5   : > { %10904 = vrot.lane.b32.xlu0 %v10903_v40, %s11748_s19  ;;  %v3503_v40 = vld [vmem:[%s17537_s4 + $0x150] sm:$0xff] }
 0x2d6   : > { %10879 = vrot.lane.b32.xlu1 %v10878_v41, %s11748_s19  ;;  %10090 = vmatpush3.msra.mxu0 %v3503_v40  ;;  %v10913_v40 = vpack.i.bf16 %v2399_v30, %v2143_v37  ;;  %v2400_v30 = vmul.f32 %v12673_v54, %v12402_v15 }
 0x2d7   : > { %10091 = vmatprep.subr.mxu0 %v3518_v59  ;;  %v2145_v59 = vmul.f32 %v12681_v56, %v12244_v47  ;;  %v18058_v47 = vld [vmem:[#allocation17_spill] sm:$0xff] }
 0x2d8   : > { %v12747_v41 = vpop.permute.xlu1 %2172  ;;  %v12749_v55 = vpop.permute.xlu0 %2170  ;;  %v2146_v11 = vmul.f32 %v12709_v18, %v18058_v47  ;;  %v2469_v47 = vmul.f32 %v12723_v51, %v12422_v38 }
 0x2d9   : > { %10909 = vrot.lane.b32.xlu0 %v10908_v26, %s11748_s19  ;;  %v3486_v26 = vld [vmem:[%s17537_s4 + $0xc8] sm:$0xff] }
 0x2da   : > { %10894 = vrot.lane.b32.xlu1 %v10893_v32, %s11748_s19  ;;  %v2465_v32 = vmul.f32 %v12681_v56, %v12490_v13  ;;  %10011 = vmatprep.subr.mxu1 %v3486_v26  ;;  %v2144_v13 = vmul.f32 %v12673_v54, %v12247_v48  ;;  %v10918_v26 = vpack.i.bf16 %v2462_v21, %v2334_v33 }
 0x2db   : > { %10012 = vmatpush3.msra.mxu1 %v3470_v52  ;;  %v2339_v52 = vmul.f32 %v12683_v53, %v18054_v17 }
 0x2dc   : > { %v12761_v20 = vpop.permute.xlu1 %2176  ;;  %v12763_v28 = vpop.permute.xlu0 %2174  ;;  %v10928_v34 = vpack.i.bf16 %v2465_v32, %v2337_v22  ;;  %v2401_v22 = vmul.f32 %v12681_v56, %v18053_v16  ;;  %v10943_v48 = vpack.i.bf16 %v2400_v30, %v2144_v13  ;;  %v3469_v13 = vld [vmem:[%s17537_s4 + $0x40] sm:$0xff]  ;;  %v18056_v30 = vld [vmem:[#allocation25_spill] sm:$0xff] }
 0x2dd   : > { %10924 = vrot.lane.b32.xlu0 %v10923_v44, %s11748_s19  ;;  %v3502_v44 = vld [vmem:[%s17537_s4 + $0x148] sm:$0xff]  ;;  %v18057_v56 = vld [vmem:[#allocation61_spill] sm:$0xff] }
 0x2de   : > { %10899 = vrot.lane.b32.xlu1 %v10898_v57, %s11748_s19  ;;  %10092 = vmatpush3.msra.mxu0 %v3502_v44  ;;  %v18055_v44 = vld [vmem:[#allocation65_spill] sm:$0xff]  ;;  %v10933_v21 = vpack.i.bf16 %v2401_v22, %v2145_v59  ;;  %v2402_v59 = vmul.f32 %v12709_v18, %v18059_v43 }
 0x2df   : > { %v2467_v15 = vmul.f32 %v12683_v53, %v18055_v44  ;;  %v3501_v44 = vld [vmem:[%s17537_s4 + $0x140] sm:$0xff] }
 0x2e0   : > { %v12787_v57 = vpop.permute.xlu0 %2178  ;;  %v12793_v37 = vpop.permute.xlu1 %2180  ;;  %v10963_v43 = vpack.i.bf16 %v2402_v59, %v2146_v11  ;;  %v3468_v11 = vld [vmem:[%s17537_s4 + $0x38] sm:$0xff] }
 0x2e1   : > { %10929 = vrot.lane.b32.xlu0 %v10928_v34, %s11748_s19  ;;  %v3485_v34 = vld [vmem:[%s17537_s4 + $0xc0] sm:$0xff]  ;;  %v10948_v16 = vpack.i.bf16 %v2467_v15, %v2339_v52 }
 0x2e2   : > { %10914 = vrot.lane.b32.xlu1 %v10913_v40, %s11748_s19  ;;  %v3517_v40 = vld [vmem:[%s17537_s4 + $0x1c0] sm:$0xff]  ;;  %10013 = vmatprep.subr.mxu1 %v3485_v34  ;;  %v18060_v34 = vld [vmem:[#allocation16_spill] sm:$0xff] }
 0x2e3   : > { %10093 = vmatprep.subr.mxu0 %v3517_v40  ;;  %10014 = vmatpush3.msra.mxu1 %v3469_v13  ;;  %v2147_v40 = vmul.f32 %v12683_v53, %v18060_v34  ;;  %v18062_v15 = vld [vmem:[#allocation18_spill] sm:$0xff]  ;;  %v18065_v34 = vld [vmem:[#allocation29_spill] sm:$0xff] }
 0x2e4   : > { %v12801_v32 = vpop.permute.xlu0 %2182  ;;  %v12818_v33 = vpop.permute.xlu1 %2184  ;;  %10094 = vmatpush3.msra.mxu0 %v3501_v44  ;;  %v2341_v52 = vmul.f32 %v12723_v51, %v18062_v15  ;;  %v2405_v38 = vmul.f32 %v12723_v51, %v18065_v34 }
 0x2e5   : > { %10944 = vrot.lane.b32.xlu0 %v10943_v48, %s11748_s19  ;;  %v2464_v48 = vmul.f32 %v12673_v54, %v18057_v56 }
 0x2e6   : > { %10919 = vrot.lane.b32.xlu1 %v10918_v26, %s11748_s19  ;;  %v2336_v26 = vmul.f32 %v12673_v54, %v18056_v30  ;;  %v18061_v54 = vld [vmem:[#allocation43_spill] sm:$0xff]  ;;  %v10968_v15 = vpack.i.bf16 %v2469_v47, %v2341_v52  ;;  %v2468_v52 = vmul.f32 %v12707_v45, %v12429_v49 }
 0x2e7   : > { %v2403_v56 = vmul.f32 %v12683_v53, %v18061_v54  ;;  %v18064_v53 = vld [vmem:[#allocation62_spill] sm:$0xff]  ;;  %v2213_v54 = vmul.f32 %v12723_v51, %v12184_v23  ;;  %v18067_v51 = vld [vmem:[#allocation19_spill] sm:$0xff] }
 0x2e8   : > { %v12827_v17 = vpop.permute.xlu0 %2186  ;;  %v10938_v22 = vpack.i.bf16 %v2464_v48, %v2336_v26  ;;  %v12843_v13 = vpop.permute.xlu1 %2188  ;;  %v18063_v48 = vld [vmem:[#allocation27_spill] sm:$0xff]  ;;  %v2340_v47 = vmul.f32 %v12707_v45, %v18067_v51 }
 0x2e9   : > { %10949 = vrot.lane.b32.xlu0 %v10948_v16, %s11748_s19  ;;  %v3484_v16 = vld [vmem:[%s17537_s4 + $0xb8] sm:$0xff]  ;;  %v10953_v26 = vpack.i.bf16 %v2403_v56, %v2147_v40  ;;  %v2338_v59 = vmul.f32 %v12709_v18, %v18063_v48  ;;  %v2212_v56 = vmul.f32 %v12707_v45, %v12187_v24  ;;  %v2404_v40 = vmul.f32 %v12707_v45, %v12342_v29 }
 0x2ea   : > { %10934 = vrot.lane.b32.xlu1 %v10933_v21, %s11748_s19  ;;  %v3516_v21 = vld [vmem:[%s17537_s4 + $0x1b8] sm:$0xff]  ;;  %10015 = vmatprep.subr.mxu1 %v3484_v16 }
 0x2eb   : > { %10095 = vmatprep.subr.mxu0 %v3516_v21  ;;  %10016 = vmatpush3.msra.mxu1 %v3468_v11  ;;  %v10973_v11 = vpack.i.bf16 %v2405_v38, %v2213_v54  ;;  %v3499_v38 = vld [vmem:[%s17537_s4 + $0x130] sm:$0xff]  ;;  %v2342_v54 = vmul.f32 %v12721_v62, %v12277_v60  ;;  %v10983_v45 = vpack.i.bf16 %v2404_v40, %v2212_v56  ;;  %v18070_v56 = vld [vmem:[#allocation5_spill] sm:$0xff] }
 0x2ec   : > { %v12845_v44 = vpop.permute.xlu0 %2190  ;;  %v12875_v16 = vpop.permute.xlu1 %2192  ;;  %v2214_v40 = vmul.f32 %v12721_v62, %v18070_v56  ;;  %v18073_v56 = vld [vmem:[#allocation32_spill] sm:$0xff] }
 0x2ed   : > { %10964 = vrot.lane.b32.xlu0 %v10963_v43, %s11748_s19  ;;  %v3500_v43 = vld [vmem:[%s17537_s4 + $0x138] sm:$0xff] }
 0x2ee   : > { %10939 = vrot.lane.b32.xlu1 %v10938_v22, %s11748_s19  ;;  %v2466_v22 = vmul.f32 %v12709_v18, %v18064_v53  ;;  %10096 = vmatpush3.msra.mxu0 %v3500_v43 }
 0x2f0   : > { %v12877_v21 = vpop.permute.xlu0 %2194  ;;  %v10958_v18 = vpack.i.bf16 %v2466_v22, %v2338_v59  ;;  %v3467_v59 = vld [vmem:[%s17537_s4 + $0x30] sm:$0xff]  ;;  %v12905_v24 = vpop.permute.xlu1 %2246 }
 0x2f1   : > { %10969 = vrot.lane.b32.xlu0 %v10968_v15, %s11749_s20  ;;  %18066 = vst [vmem:[#allocation92_spill] sm:$0xff] %v12877_v21  ;;  %v3483_v15 = vld [vmem:[%s17537_s4 + $0xb0] sm:$0xff]  ;;  %v18069_v21 = vld [vmem:[#allocation46_spill] sm:$0xff] }
 0x2f2   : > { %10954 = vrot.lane.b32.xlu1 %v10953_v26, %s11748_s19  ;;  %v3515_v26 = vld [vmem:[%s17537_s4 + $0x1b0] sm:$0xff]  ;;  %10017 = vmatprep.subr.mxu1 %v3483_v15  ;;  %v2471_v29 = vmul.f32 %v12749_v55, %v18069_v21  ;;  %v18071_v15 = vld [vmem:[#allocation30_spill] sm:$0xff] }
 0x2f3   : > { %10097 = vmatprep.subr.mxu0 %v3515_v26  ;;  %v18068_v22 = vld [vmem:[#allocation20_spill] sm:$0xff]  ;;  %10018 = vmatpush3.msra.mxu1 %v3467_v59  ;;  %v2406_v26 = vmul.f32 %v12721_v62, %v18071_v15 }
 0x2f4   : > { %v2343_v43 = vmul.f32 %v12749_v55, %v18068_v22  ;;  %10098 = vmatpush3.msra.mxu0 %v3499_v38  ;;  %v12907_v49 = vpop.permute.xlu0 %2244  ;;  %v3482_v38 = vld [vmem:[%s17537_s4 + $0xa8] sm:$0xff] }
 0x2f5   : > { %10974 = vrot.lane.b32.xlu0 %v10973_v11, %s11749_s20  ;;  %v10978_v11 = vpack.i.bf16 %v2468_v52, %v2340_v47  ;;  %v2215_v47 = vmul.f32 %v12749_v55, %v12194_v27  ;;  %v2407_v52 = vmul.f32 %v12749_v55, %v12359_v42  ;;  %v3498_v55 = vld [vmem:[%s17537_s4 + $0x128] sm:$0xff]  ;;  %10019 = vmatprep.subr.mxu1 %v3482_v38 }
 0x2f6   : > { %10959 = vrot.lane.b32.xlu1 %v10958_v18, %s11748_s19  ;;  %v2470_v18 = vmul.f32 %v12721_v62, %v12439_v1  ;;  %v10988_v59 = vpack.i.bf16 %v2471_v29, %v2343_v43  ;;  %v3466_v62 = vld [vmem:[%s17537_s4 + $0x28] sm:$0xff]  ;;  %v2344_v29 = vmul.f32 %v12747_v41, %v12287_v0  ;;  %v11003_v43 = vpack.i.bf16 %v2406_v26, %v2214_v40 }
 0x2f7   : > { %v10993_v15 = vpack.i.bf16 %v2407_v52, %v2215_v47  ;;  %10020 = vmatpush3.msra.mxu1 %v3466_v62  ;;  %v2408_v40 = vmul.f32 %v12747_v41, %v18073_v56  ;;  %v2217_v38 = vmul.f32 %v12763_v28, %v12204_v31 }
 0x2f8   : > { %v10998_v22 = vpack.i.bf16 %v2470_v18, %v2342_v54  ;;  %v2472_v54 = vmul.f32 %v12747_v41, %v12449_v19  ;;  %v12937_v18 = vpop.permute.xlu1 %2250  ;;  %v18072_v19 = vld [vmem:[#allocation7_spill] sm:$0xff] }
 0x2f9   : > { %10979 = vrot.lane.b32.xlu0 %v10978_v11, %s11749_s20  ;;  %v2345_v11 = vmul.f32 %v12763_v28, %v12284_v63  ;;  %v2216_v0 = vmul.f32 %v12747_v41, %v18072_v19  ;;  %v3513_v41 = vld [vmem:[%s17537_s4 + $0x1a0] sm:$0xff] }
 0x2fa   : > { %10984 = vrot.lane.b32.xlu1 %v10983_v45, %s11749_s20  ;;  %v3514_v45 = vld [vmem:[%s17537_s4 + $0x1a8] sm:$0xff]  ;;  %v11018_v26 = vpack.i.bf16 %v2472_v54, %v2344_v29  ;;  %v2346_v29 = vmul.f32 %v12761_v20, %v12297_v4  ;;  %v2474_v54 = vmul.f32 %v12761_v20, %v12459_v46  ;;  %v18074_v46 = vld [vmem:[#allocation34_spill] sm:$0xff] }
 0x2fb   : > { %10099 = vmatprep.subr.mxu0 %v3514_v45  ;;  %v2409_v45 = vmul.f32 %v12763_v28, %v12369_v50 }
 0x2fc   : > { %10100 = vmatpush3.msra.mxu0 %v3498_v55  ;;  %v12955_v52 = vpop.permute.xlu1 %2254  ;;  %v3465_v55 = vld [vmem:[%s17537_s4 + $0x20] sm:$0xff] }
 0x2fd   : > { %10989 = vrot.lane.b32.xlu0 %v10988_v59, %s11749_s20  ;;  %v2473_v59 = vmul.f32 %v12763_v28, %v12442_v6  ;;  %v3497_v28 = vld [vmem:[%s17537_s4 + $0x120] sm:$0xff]  ;;  %10101 = vmatprep.subr.mxu0 %v3513_v41  ;;  %v11038_v41 = vpack.i.bf16 %v2474_v54, %v2346_v29  ;;  %v3464_v29 = vld [vmem:[%s17537_s4 + $0x18] sm:$0xff]  ;;  %v2348_v54 = vmul.f32 %v12793_v37, %v12307_v9 }
 0x2fe   : > { %10999 = vrot.lane.b32.xlu1 %v10998_v22, %s11749_s20  ;;  %v12939_v22 = vpop.permute.xlu0 %2248  ;;  %10102 = vmatpush3.msra.mxu0 %v3497_v28  ;;  %v3480_v28 = vld [vmem:[%s17537_s4 + $0x98] sm:$0xff] }
 0x2ff   : > { %v11008_v47 = vpack.i.bf16 %v2473_v59, %v2345_v11  ;;  %v2347_v11 = vmul.f32 %v12787_v57, %v12294_v3  ;;  %v2475_v59 = vmul.f32 %v12787_v57, %v12452_v25 }
 0x301   : > { %10994 = vrot.lane.b32.xlu0 %v10993_v15, %s11749_s20  ;;  %v3481_v15 = vld [vmem:[%s17537_s4 + $0xa0] sm:$0xff] }
 0x302   : > { %11004 = vrot.lane.b32.xlu1 %v11003_v43, %s11749_s20  ;;  %v12957_v62 = vpop.permute.xlu0 %2252  ;;  %v11023_v43 = vpack.i.bf16 %v2408_v40, %v2216_v0  ;;  %10021 = vmatprep.subr.mxu1 %v3481_v15  ;;  %v2410_v0 = vmul.f32 %v12761_v20, %v18074_v46  ;;  %v12987_v40 = vpop.permute.xlu1 %2258 }
 0x303   : > { %10022 = vmatpush3.msra.mxu1 %v3465_v55  ;;  %v11028_v55 = vpack.i.bf16 %v2475_v59, %v2347_v11  ;;  %v2349_v59 = vmul.f32 %v12801_v32, %v12304_v7 }
 0x304   : > { %10023 = vmatprep.subr.mxu1 %v3480_v28  ;;  %v2412_v28 = vmul.f32 %v12793_v37, %v12382_v61 }
 0x305   : > { %11009 = vrot.lane.b32.xlu0 %v11008_v47, %s11749_s20  ;;  %v2218_v47 = vmul.f32 %v12761_v20, %v12217_v36  ;;  %v3512_v20 = vld [vmem:[%s17537_s4 + $0x198] sm:$0xff]  ;;  %10024 = vmatpush3.msra.mxu1 %v3464_v29 }
 0x306   : > { %11019 = vrot.lane.b32.xlu1 %v11018_v26, %s11749_s20  ;;  %v11013_v26 = vpack.i.bf16 %v2409_v45, %v2217_v38  ;;  %v12989_v15 = vpop.permute.xlu0 %2256  ;;  %v2219_v38 = vmul.f32 %v12787_v57, %v12214_v35  ;;  %v2411_v45 = vmul.f32 %v12787_v57, %v12379_v58  ;;  %v3496_v57 = vld [vmem:[%s17537_s4 + $0x118] sm:$0xff]  ;;  %10103 = vmatprep.subr.mxu0 %v3512_v20  ;;  %v13017_v46 = vpop.permute.xlu1 %2262 }
 0x307   : > { %v11043_v11 = vpack.i.bf16 %v2410_v0, %v2218_v47  ;;  %10104 = vmatpush3.msra.mxu0 %v3496_v57  ;;  %v18076_v47 = vld [vmem:[#allocation11_spill] sm:$0xff]  ;;  %v3479_v57 = vld [vmem:[%s17537_s4 + $0x90] sm:$0xff] }
 0x308   : > { %v2220_v0 = vmul.f32 %v12793_v37, %v18076_v47  ;;  %10025 = vmatprep.subr.mxu1 %v3479_v57 }
 0x309   : > { %11014 = vrot.lane.b32.xlu0 %v11013_v26, %s11749_s20  ;;  %v18075_v26 = vld [vmem:[#allocation52_spill] sm:$0xff] }
 0x30a   : > { %11024 = vrot.lane.b32.xlu1 %v11023_v43, %s11749_s20  ;;  %v2476_v43 = vmul.f32 %v12793_v37, %v12469_v10  ;;  %v13019_v36 = vpop.permute.xlu0 %2260  ;;  %v3463_v37 = vld [vmem:[%s17537_s4 + $0x10] sm:$0xff] }
 0x30b   : > { %10026 = vmatpush3.msra.mxu1 %v3463_v37 }
 0x30c   : > { %v11058_v20 = vpack.i.bf16 %v2476_v43, %v2348_v54  ;;  %v2350_v54 = vmul.f32 %v12818_v33, %v12317_v14  ;;  %v2478_v43 = vmul.f32 %v12818_v33, %v12483_v8  ;;  %v18079_v8 = vld [vmem:[#allocation13_spill] sm:$0xff] }
 0x30d   : > { %11029 = vrot.lane.b32.xlu0 %v11028_v55, %s11749_s20  ;;  %v11033_v55 = vpack.i.bf16 %v2411_v45, %v2219_v38  ;;  %v2221_v38 = vmul.f32 %v12801_v32, %v12224_v39  ;;  %v2413_v45 = vmul.f32 %v12801_v32, %v12389_v2  ;;  %v2222_v14 = vmul.f32 %v12818_v33, %v18079_v8  ;;  %v18087_v8 = vld [vmem:[#allocation40_spill] sm:$0xff] }
 0x30e   : > { %11039 = vrot.lane.b32.xlu1 %v11038_v41, %s11749_s20  ;;  %v2477_v41 = vmul.f32 %v12801_v32, %v18075_v26  ;;  %v3495_v32 = vld [vmem:[%s17537_s4 + $0x110] sm:$0xff] }
 0x30f   : > { %v11053_v61 = vpack.i.bf16 %v2413_v45, %v2221_v38 }
 0x310   : > { %v11048_v29 = vpack.i.bf16 %v2477_v41, %v2349_v59  ;;  %v13049_v59 = vpop.permute.xlu1 %2266  ;;  %v13051_v41 = vpop.permute.xlu0 %2264 }
 0x311   : > { %11034 = vrot.lane.b32.xlu0 %v11033_v55, %s11749_s20  ;;  %18077 = vst [vmem:[#allocation19_spill] sm:$0xff] %v13051_v41  ;;  %v11063_v55 = vpack.i.bf16 %v2412_v28, %v2220_v0  ;;  %v2414_v0 = vmul.f32 %v12818_v33, %v12392_v5  ;;  %v11078_v28 = vpack.i.bf16 %v2478_v43, %v2350_v54  ;;  %v3510_v33 = vld [vmem:[%s17537_s4 + $0x188] sm:$0xff]  ;;  %v18083_v43 = vld [vmem:[#allocation61_spill] sm:$0xff] }
 0x312   : > { %11044 = vrot.lane.b32.xlu1 %v11043_v11, %s11749_s20  ;;  %v3511_v11 = vld [vmem:[%s17537_s4 + $0x190] sm:$0xff]  ;;  %v2352_v54 = vmul.f32 %v12843_v13, %v18056_v30  ;;  %v18086_v5 = vld [vmem:[#allocation15_spill] sm:$0xff] }
 0x313   : > { %10105 = vmatprep.subr.mxu0 %v3511_v11  ;;  %v18080_v11 = vld [vmem:[#allocation12_spill] sm:$0xff]  ;;  %v2224_v30 = vmul.f32 %v12843_v13, %v18086_v5 }
 0x314   : > { %10106 = vmatpush3.msra.mxu0 %v3495_v32  ;;  %v2223_v37 = vmul.f32 %v12827_v17, %v18080_v11  ;;  %v13067_v38 = vpop.permute.xlu1 %2270  ;;  %v13069_v45 = vpop.permute.xlu0 %2268  ;;  %v3462_v32 = vld [vmem:[%s17537_s4 + $0x8] sm:$0xff] }
 0x315   : > { %11049 = vrot.lane.b32.xlu0 %v11048_v29, %s11749_s20  ;;  %v18078_v29 = vld [vmem:[#allocation54_spill] sm:$0xff]  ;;  %18082 = vst [vmem:[#allocation93_spill] sm:$0xff] %v13069_v45  ;;  %10107 = vmatprep.subr.mxu0 %v3510_v33  ;;  %v18085_v45 = vld [vmem:[#allocation60_spill] sm:$0xff] }
 0x316   : > { %11059 = vrot.lane.b32.xlu1 %v11058_v20, %s11749_s20  ;;  %v2351_v20 = vmul.f32 %v12827_v17, %v12314_v12  ;;  %v2479_v57 = vmul.f32 %v12827_v17, %v18078_v29  ;;  %v18081_v12 = vld [vmem:[#allocation39_spill] sm:$0xff] }
 0x317   : > { %v2415_v41 = vmul.f32 %v12827_v17, %v18081_v12  ;;  %v3494_v17 = vld [vmem:[%s17537_s4 + $0x108] sm:$0xff] }
 0x318   : > { %v11068_v29 = vpack.i.bf16 %v2479_v57, %v2351_v20  ;;  %v11083_v20 = vpack.i.bf16 %v2414_v0, %v2222_v14  ;;  %v18084_v57 = vld [vmem:[#allocation24_spill] sm:$0xff]  ;;  %10108 = vmatpush3.msra.mxu0 %v3494_v17  ;;  %v2416_v14 = vmul.f32 %v12843_v13, %v18087_v8  ;;  %v13099_v0 = vpop.permute.xlu1 %2272  ;;  %v13101_v33 = vpop.permute.xlu0 %2274 }
 0x319   : > { %11054 = vrot.lane.b32.xlu0 %v11053_v61, %s11749_s20  ;;  %v3478_v61 = vld [vmem:[%s17537_s4 + $0x88] sm:$0xff]  ;;  %18088 = vst [vmem:[#allocation94_spill] sm:$0xff] %v13099_v0  ;;  %18089 = vst [vmem:[#allocation95_spill] sm:$0xff] %v13101_v33  ;;  %v18095_v0 = vld [vmem:[#allocation42_spill] sm:$0xff] }
 0x31a   : > { %11064 = vrot.lane.b32.xlu1 %v11063_v55, %s11749_s20  ;;  %10027 = vmatprep.subr.mxu1 %v3478_v61  ;;  %v2480_v55 = vmul.f32 %v12843_v13, %v18083_v43  ;;  %v11073_v61 = vpack.i.bf16 %v2415_v41, %v2223_v37  ;;  %v18091_v41 = vld [vmem:[#allocation41_spill] sm:$0xff]  ;;  %v3509_v13 = vld [vmem:[%s17537_s4 + $0x180] sm:$0xff] }
 0x31b   : > { %10028 = vmatpush3.msra.mxu1 %v3462_v32  ;;  %v2417_v37 = vmul.f32 %v12845_v44, %v18091_v41  ;;  %10109 = vmatprep.subr.mxu0 %v3509_v13 }
 0x31c   : > { %v11098_v32 = vpack.i.bf16 %v2480_v55, %v2352_v54  ;;  %v3461_v54 = vld [vmem:[%s17537_s4] sm:$0xff]  ;;  %v2354_v55 = vmul.f32 %v12875_v16, %v18063_v48 }
 0x31d   : > { %11069 = vrot.lane.b32.xlu0 %v11068_v29, %s11749_s20  ;;  %v2481_v29 = vmul.f32 %v12845_v44, %v18085_v45 }
 0x31e   : > { %11079 = vrot.lane.b32.xlu1 %v11078_v28, %s11749_s20  ;;  %v2353_v28 = vmul.f32 %v12845_v44, %v18084_v57  ;;  %v18090_v57 = vld [vmem:[#allocation14_spill] sm:$0xff] }
 0x31f   : > { %v2225_v45 = vmul.f32 %v12845_v44, %v18090_v57  ;;  %v3493_v44 = vld [vmem:[%s17537_s4 + $0x100] sm:$0xff] }
 0x320   : > { %v11088_v17 = vpack.i.bf16 %v2481_v29, %v2353_v28  ;;  %v2482_v28 = vmul.f32 %v12875_v16, %v18064_v53  ;;  %10110 = vmatpush3.msra.mxu0 %v3493_v44  ;;  %v18094_v53 = vld [vmem:[#allocation17_spill] sm:$0xff] }
 0x321   : > { %11074 = vrot.lane.b32.xlu0 %v11073_v61, %s11749_s20  ;;  %v11093_v33 = vpack.i.bf16 %v2417_v37, %v2225_v45  ;;  %v18098_v45 = vld [vmem:[#allocation45_spill] sm:$0xff] }
 0x322   : > { %11084 = vrot.lane.b32.xlu1 %v11083_v20, %s11749_s20  ;;  %v3477_v20 = vld [vmem:[%s17537_s4 + $0x80] sm:$0xff]  ;;  %v2484_v37 = vmul.f32 %v12907_v49, %v18098_v45 }
 0x323   : > { %10029 = vmatprep.subr.mxu1 %v3477_v20  ;;  %v2421_v20 = vmul.f32 %v12905_v24, %v18065_v34 }
 0x324   : > { %10030 = vmatpush3.msra.mxu1 %v3461_v54  ;;  %v11108_v54 = vpack.i.bf16 %v2482_v28, %v2354_v55 }
 0x325   : > { %11089 = vrot.lane.b32.xlu0 %v11088_v17, %s11749_s20  ;;  %v2293_v17 = vmul.f32 %v12905_v24, %v12184_v23 }
 0x326   : > { %11099 = vrot.lane.b32.xlu1 %v11098_v32, %s11749_s20  ;;  %v11103_v32 = vpack.i.bf16 %v2416_v14, %v2224_v30  ;;  %v2418_v30 = vmul.f32 %v12875_v16, %v18095_v0 }
 0x327   : > { %v13127_v61 = vpop.permute.xlu0 %10809  ;;  %v11123_v44 = vpack.i.bf16 %v2421_v20, %v2293_v17  ;;  %v2423_v17 = vmul.f32 %v12937_v18, %v12359_v42 }
 0x328   : > { %v13125_v29 = vpop.permute.xlu1 %10814  ;;  %18093 = vst [vmem:[#allocation97_spill] sm:$0xff] %v13127_v61  ;;  %v2356_v61 = vmul.f32 %v12907_v49, %v18067_v51 }
 0x329   : > { %18092 = vst [vmem:[#allocation96_spill] sm:$0xff] %v13125_v29  ;;  %11094 = vrot.lane.b32.xlu0 %v11093_v33, %s11749_s20  ;;  %v2226_v29 = vmul.f32 %v12875_v16, %v18094_v53  ;;  %v18099_v33 = vld [vmem:[#allocation18_spill] sm:$0xff]  ;;  %v18100_v16 = vld [vmem:[#allocation44_spill] sm:$0xff] }
 0x32a   : > { %11104 = vrot.lane.b32.xlu1 %v11103_v32, %s11749_s20  ;;  %v2357_v32 = vmul.f32 %v12905_v24, %v18099_v33  ;;  %v11128_v20 = vpack.i.bf16 %v2484_v37, %v2356_v61  ;;  %v2486_v61 = vmul.f32 %v12939_v22, %v12439_v1 }
 0x32b   : > { %v13141_v13 = vpop.permute.xlu0 %10829  ;;  %v11113_v28 = vpack.i.bf16 %v2418_v30, %v2226_v29 }
 0x32c   : > { %v13139_v14 = vpop.permute.xlu1 %10819  ;;  %18097 = vst [vmem:[#allocation99_spill] sm:$0xff] %v13141_v13  ;;  %v2295_v13 = vmul.f32 %v12937_v18, %v12194_v27 }
 0x32d   : > { %18096 = vst [vmem:[#allocation98_spill] sm:$0xff] %v13139_v14  ;;  %11124 = vrot.lane.b32.xlu0 %v11123_v44, %s11747_s28  ;;  %v2485_v14 = vmul.f32 %v12905_v24, %v18100_v16  ;;  %v18104_v24 = vld [vmem:[#allocation28_spill] sm:$0xff] }
 0x32e   : > { %11109 = vrot.lane.b32.xlu1 %v11108_v54, %s11749_s20  ;;  %v18103_v54 = vld [vmem:[#allocation3_spill] sm:$0xff]  ;;  %v11143_v37 = vpack.i.bf16 %v2423_v17, %v2295_v13  ;;  %v2425_v13 = vmul.f32 %v12955_v52, %v12369_v50  ;;  %v18115_v50 = vld [vmem:[#allocation49_spill] sm:$0xff] }
 0x32f   : > { %v13155_v55 = vpop.permute.xlu0 %10844  ;;  %v2292_v44 = vmul.f32 %v12907_v49, %v18103_v54  ;;  %v11118_v30 = vpack.i.bf16 %v2485_v14, %v2357_v32 }
 0x330   : > { %v13153_v34 = vpop.permute.xlu1 %10824  ;;  %18102 = vst [vmem:[#allocation100_spill] sm:$0xff] %v13155_v55  ;;  %v2358_v55 = vmul.f32 %v12939_v22, %v12277_v60 }
 0x331   : > { %18101 = vst [vmem:[#allocation18_spill] sm:$0xff] %v13153_v34  ;;  %11129 = vrot.lane.b32.xlu0 %v11128_v20, %s11747_s28  ;;  %v2420_v34 = vmul.f32 %v12907_v49, %v18104_v24  ;;  %v2487_v49 = vmul.f32 %v12937_v18, %v18069_v21 }
 0x332   : > { %11114 = vrot.lane.b32.xlu1 %v11113_v28, %s11749_s20  ;;  %v18107_v28 = vld [vmem:[#allocation20_spill] sm:$0xff]  ;;  %v11148_v17 = vpack.i.bf16 %v2486_v61, %v2358_v55  ;;  %v2488_v55 = vmul.f32 %v12957_v62, %v18115_v50 }
 0x333   : > { %v13169_v29 = vpop.permute.xlu0 %10849  ;;  %v2359_v20 = vmul.f32 %v12937_v18, %v18107_v28  ;;  %v11133_v32 = vpack.i.bf16 %v2420_v34, %v2292_v44  ;;  %v18111_v18 = vld [vmem:[#allocation30_spill] sm:$0xff] }
 0x334   : > { %v13167_v45 = vpop.permute.xlu1 %10834  ;;  %18106 = vst [vmem:[#allocation102_spill] sm:$0xff] %v13169_v29  ;;  %v2297_v29 = vmul.f32 %v12955_v52, %v12204_v31 }
 0x335   : > { %18105 = vst [vmem:[#allocation101_spill] sm:$0xff] %v13167_v45  ;;  %11144 = vrot.lane.b32.xlu0 %v11143_v37, %s11747_s28  ;;  %v11138_v44 = vpack.i.bf16 %v2487_v49, %v2359_v20 }
 0x336   : > { %11119 = vrot.lane.b32.xlu1 %v11118_v30, %s11747_s28  ;;  %v18110_v30 = vld [vmem:[#allocation5_spill] sm:$0xff]  ;;  %v11163_v61 = vpack.i.bf16 %v2425_v13, %v2297_v29  ;;  %v2427_v29 = vmul.f32 %v12987_v40, %v12379_v58 }
 0x337   : > { %v13183_v14 = vpop.permute.xlu0 %10864  ;;  %v2294_v37 = vmul.f32 %v12939_v22, %v18110_v30 }
 0x338   : > { %v13181_v45 = vpop.permute.xlu1 %10839  ;;  %18109 = vst [vmem:[#allocation103_spill] sm:$0xff] %v13183_v14  ;;  %v18114_v14 = vld [vmem:[#allocation21_spill] sm:$0xff] }
 0x339   : > { %18108 = vst [vmem:[#allocation20_spill] sm:$0xff] %v13181_v45  ;;  %11149 = vrot.lane.b32.xlu0 %v11148_v17, %s11747_s28  ;;  %v2422_v45 = vmul.f32 %v12939_v22, %v18111_v18  ;;  %v2360_v31 = vmul.f32 %v12957_v62, %v18114_v14  ;;  %v2489_v22 = vmul.f32 %v12955_v52, %v12442_v6 }
 0x33a   : > { %11134 = vrot.lane.b32.xlu1 %v11133_v32, %s11747_s28  ;;  %v2361_v32 = vmul.f32 %v12955_v52, %v12284_v63  ;;  %v2424_v52 = vmul.f32 %v12957_v62, %v18073_v56 }
 0x33b   : > { %v13197_v34 = vpop.permute.xlu0 %10869  ;;  %v11153_v49 = vpack.i.bf16 %v2422_v45, %v2294_v37  ;;  %v11168_v13 = vpack.i.bf16 %v2488_v55, %v2360_v31  ;;  %v2362_v37 = vmul.f32 %v12989_v15, %v12297_v4 }
 0x33c   : > { %v13195_v21 = vpop.permute.xlu1 %10854  ;;  %18113 = vst [vmem:[#allocation105_spill] sm:$0xff] %v13197_v34  ;;  %v2299_v34 = vmul.f32 %v12987_v40, %v12214_v35  ;;  %v11158_v45 = vpack.i.bf16 %v2489_v22, %v2361_v32 }
 0x33d   : > { %18112 = vst [vmem:[#allocation104_spill] sm:$0xff] %v13195_v21  ;;  %11164 = vrot.lane.b32.xlu0 %v11163_v61, %s11747_s28 }
 0x33e   : > { %11139 = vrot.lane.b32.xlu1 %v11138_v44, %s11747_s28  ;;  %v2296_v44 = vmul.f32 %v12957_v62, %v18072_v19  ;;  %v11183_v55 = vpack.i.bf16 %v2427_v29, %v2299_v34  ;;  %v2491_v62 = vmul.f32 %v12987_v40, %v12452_v25 }
 0x33f   : > { %v13211_v20 = vpop.permute.xlu0 %10884 }
 0x340   : > { %v13209_v17 = vpop.permute.xlu1 %10859  ;;  %18117 = vst [vmem:[#allocation106_spill] sm:$0xff] %v13211_v20  ;;  %v18119_v20 = vld [vmem:[#allocation51_spill] sm:$0xff]  ;;  %v11173_v22 = vpack.i.bf16 %v2424_v52, %v2296_v44 }
 0x341   : > { %18116 = vst [vmem:[#allocation21_spill] sm:$0xff] %v13209_v17  ;;  %11169 = vrot.lane.b32.xlu0 %v11168_v13, %s11747_s28  ;;  %v2490_v17 = vmul.f32 %v12989_v15, %v18119_v20  ;;  %v2301_v13 = vmul.f32 %v13017_v46, %v12224_v39 }
 0x342   : > { %11154 = vrot.lane.b32.xlu1 %v11153_v49, %s11747_s28  ;;  %v2363_v49 = vmul.f32 %v12987_v40, %v12294_v3  ;;  %v18124_v40 = vld [vmem:[#allocation34_spill] sm:$0xff] }
 0x343   : > { %v13229_v31 = vpop.permute.xlu0 %10889  ;;  %v11188_v29 = vpack.i.bf16 %v2490_v17, %v2362_v37 }
 0x344   : > { %v13223_v61 = vpop.permute.xlu1 %10874  ;;  %18120 = vst [vmem:[#allocation108_spill] sm:$0xff] %v13229_v31  ;;  %v2429_v31 = vmul.f32 %v13017_v46, %v12389_v2  ;;  %v11178_v52 = vpack.i.bf16 %v2491_v62, %v2363_v49 }
 0x345   : > { %18118 = vst [vmem:[#allocation107_spill] sm:$0xff] %v13223_v61  ;;  %11184 = vrot.lane.b32.xlu0 %v11183_v55, %s11747_s28  ;;  %v2364_v61 = vmul.f32 %v13019_v36, %v12307_v9 }
 0x346   : > { %11159 = vrot.lane.b32.xlu1 %v11158_v45, %s11747_s28  ;;  %v18123_v45 = vld [vmem:[#allocation9_spill] sm:$0xff]  ;;  %v11203_v37 = vpack.i.bf16 %v2429_v31, %v2301_v13 }
 0x347   : > { %v13243_v34 = vpop.permute.xlu0 %10904  ;;  %v2298_v55 = vmul.f32 %v12989_v15, %v18123_v45 }
 0x348   : > { %v13237_v32 = vpop.permute.xlu1 %10879  ;;  %18122 = vst [vmem:[#allocation110_spill] sm:$0xff] %v13243_v34  ;;  %v2492_v34 = vmul.f32 %v13019_v36, %v12469_v10 }
 0x349   : > { %18121 = vst [vmem:[#allocation109_spill] sm:$0xff] %v13237_v32  ;;  %11189 = vrot.lane.b32.xlu0 %v11188_v29, %s11747_s28  ;;  %v2426_v32 = vmul.f32 %v12989_v15, %v18124_v40  ;;  %v2493_v15 = vmul.f32 %v13017_v46, %v18075_v26  ;;  %v2303_v29 = vmul.f32 %v13049_v59, %v18080_v11 }
 0x34a   : > { %11174 = vrot.lane.b32.xlu1 %v11173_v22, %s11747_s28  ;;  %v2365_v22 = vmul.f32 %v13017_v46, %v12304_v7  ;;  %v11208_v13 = vpack.i.bf16 %v2492_v34, %v2364_v61  ;;  %v18129_v46 = vld [vmem:[#allocation36_spill] sm:$0xff]  ;;  %v2305_v11 = vmul.f32 %v13067_v38, %v18090_v57  ;;  %v18142_v57 = vld [vmem:[#allocation25_spill] sm:$0xff] }
 0x34b   : > { %v13257_v17 = vpop.permute.xlu0 %10909  ;;  %v11193_v62 = vpack.i.bf16 %v2426_v32, %v2298_v55 }
 0x34c   : > { %v13251_v44 = vpop.permute.xlu1 %10894  ;;  %18126 = vst [vmem:[#allocation112_spill] sm:$0xff] %v13257_v17  ;;  %v2431_v17 = vmul.f32 %v13049_v59, %v18081_v12  ;;  %v11198_v55 = vpack.i.bf16 %v2493_v15, %v2365_v22  ;;  %v18133_v12 = vld [vmem:[#allocation57_spill] sm:$0xff] }
 0x34d   : > { %18125 = vst [vmem:[#allocation111_spill] sm:$0xff] %v13251_v44  ;;  %11204 = vrot.lane.b32.xlu0 %v11203_v37, %s11747_s28  ;;  %v2428_v37 = vmul.f32 %v13019_v36, %v18129_v46  ;;  %v18132_v44 = vld [vmem:[#allocation19_spill] sm:$0xff] }
 0x34e   : > { %11179 = vrot.lane.b32.xlu1 %v11178_v52, %s11747_s28  ;;  %v2300_v52 = vmul.f32 %v13019_v36, %v18076_v47  ;;  %v11223_v34 = vpack.i.bf16 %v2431_v17, %v2303_v29  ;;  %v18136_v36 = vld [vmem:[#allocation54_spill] sm:$0xff] }
 0x34f   : > { %v13271_v31 = vpop.permute.xlu0 %10924 }
 0x350   : > { %v13265_v49 = vpop.permute.xlu1 %10899  ;;  %18128 = vst [vmem:[#allocation114_spill] sm:$0xff] %v13271_v31  ;;  %v2494_v31 = vmul.f32 %v18132_v44, %v18133_v12  ;;  %v11213_v15 = vpack.i.bf16 %v2428_v37, %v2300_v52 }
 0x351   : > { %18127 = vst [vmem:[#allocation113_spill] sm:$0xff] %v13265_v49  ;;  %11209 = vrot.lane.b32.xlu0 %v11208_v13, %s11747_s28  ;;  %v18131_v49 = vld [vmem:[#allocation23_spill] sm:$0xff] }
 0x352   : > { %11194 = vrot.lane.b32.xlu1 %v11193_v62, %s11747_s28  ;;  %v2366_v21 = vmul.f32 %v18132_v44, %v18131_v49  ;;  %v18135_v62 = vld [vmem:[#allocation22_spill] sm:$0xff] }
 0x353   : > { %v13285_v61 = vpop.permute.xlu0 %10929  ;;  %v2367_v13 = vmul.f32 %v13049_v59, %v18135_v62 }
 0x354   : > { %v13279_v32 = vpop.permute.xlu1 %10914  ;;  %18134 = vst [vmem:[#allocation23_spill] sm:$0xff] %v13285_v61  ;;  %v2433_v61 = vmul.f32 %v13067_v38, %v18091_v41  ;;  %v11228_v29 = vpack.i.bf16 %v2494_v31, %v2366_v21  ;;  %v18148_v41 = vld [vmem:[#allocation26_spill] sm:$0xff] }
 0x355   : > { %18130 = vst [vmem:[#allocation115_spill] sm:$0xff] %v13279_v32  ;;  %11224 = vrot.lane.b32.xlu0 %v11223_v34, %s11747_s28  ;;  %v2495_v32 = vmul.f32 %v13049_v59, %v18136_v36  ;;  %v18140_v59 = vld [vmem:[#allocation38_spill] sm:$0xff]  ;;  %v18143_v36 = vld [vmem:[#allocation93_spill] sm:$0xff] }
 0x356   : > { %11199 = vrot.lane.b32.xlu1 %v11198_v55, %s11747_s28  ;;  %v18139_v55 = vld [vmem:[#allocation13_spill] sm:$0xff]  ;;  %v2368_v62 = vmul.f32 %v18143_v36, %v18142_v57  ;;  %v11243_v31 = vpack.i.bf16 %v2433_v61, %v2305_v11  ;;  %v18149_v57 = vld [vmem:[#allocation92_spill] sm:$0xff] }
 0x357   : > { %v13299_v17 = vpop.permute.xlu0 %10944  ;;  %v2302_v34 = vmul.f32 %v18132_v44, %v18139_v55  ;;  %v11218_v37 = vpack.i.bf16 %v2495_v32, %v2367_v13  ;;  %v2355_v12 = vmul.f32 %v18149_v57, %v18148_v41 }
 0x358   : > { %v13293_v22 = vpop.permute.xlu1 %10919  ;;  %18138 = vst [vmem:[#allocation116_spill] sm:$0xff] %v13299_v17  ;;  %v2496_v17 = vmul.f32 %v18143_v36, %v18083_v43  ;;  %v18150_v43 = vld [vmem:[#allocation65_spill] sm:$0xff] }
 0x359   : > { %18137 = vst [vmem:[#allocation19_spill] sm:$0xff] %v13293_v22  ;;  %11229 = vrot.lane.b32.xlu0 %v11228_v29, %s11747_s28  ;;  %v2430_v22 = vmul.f32 %v18132_v44, %v18140_v59  ;;  %v18146_v44 = vld [vmem:[#allocation60_spill] sm:$0xff] }
 0x35a   : > { %11214 = vrot.lane.b32.xlu1 %v11213_v15, %s11747_s28  ;;  %v18145_v15 = vld [vmem:[#allocation24_spill] sm:$0xff]  ;;  %v11248_v61 = vpack.i.bf16 %v2496_v17, %v2368_v62 }
 0x35b   : > { %v13313_v21 = vpop.permute.xlu0 %10949  ;;  %v2369_v29 = vmul.f32 %v13067_v38, %v18145_v15  ;;  %v11233_v13 = vpack.i.bf16 %v2430_v22, %v2302_v34 }
 0x35c   : > { %v13307_v52 = vpop.permute.xlu1 %10934  ;;  %18144 = vst [vmem:[#allocation93_spill] sm:$0xff] %v13313_v21  ;;  %v2483_v21 = vmul.f32 %v18149_v57, %v18150_v43 }
 0x35d   : > { %18141 = vst [vmem:[#allocation117_spill] sm:$0xff] %v13307_v52  ;;  %11244 = vrot.lane.b32.xlu0 %v11243_v31, %s11747_s28  ;;  %v2497_v52 = vmul.f32 %v13067_v38, %v18146_v44  ;;  %v2432_v38 = vmul.f32 %v18143_v36, %v18087_v8  ;;  %v18153_v31 = vld [vmem:[#allocation94_spill] sm:$0xff] }
 0x35e   : > { %11219 = vrot.lane.b32.xlu1 %v11218_v37, %s11747_s28  ;;  %v2304_v37 = vmul.f32 %v18143_v36, %v18086_v5  ;;  %v18154_v44 = vld [vmem:[#allocation62_spill] sm:$0xff]  ;;  %v11253_v17 = vpack.i.bf16 %v2483_v21, %v2355_v12  ;;  %v18157_v36 = vld [vmem:[#allocation43_spill] sm:$0xff] }
 0x35f   : > { %v13327_v11 = vpop.permute.xlu0 %10964  ;;  %v11238_v34 = vpack.i.bf16 %v2497_v52, %v2369_v29 }
 0x360   : > { %v13321_v32 = vpop.permute.xlu1 %10939  ;;  %18151 = vst [vmem:[#allocation26_spill] sm:$0xff] %v13327_v11  ;;  %v2498_v11 = vmul.f32 %v18153_v31, %v18154_v44  ;;  %v11258_v29 = vpack.i.bf16 %v2432_v38, %v2304_v37 }
 0x361   : > { %18147 = vst [vmem:[#allocation118_spill] sm:$0xff] %v13321_v32  ;;  %11249 = vrot.lane.b32.xlu0 %v11248_v61, %s11747_s28  ;;  %v2370_v32 = vmul.f32 %v18153_v31, %v18063_v48  ;;  %v18159_v48 = vld [vmem:[#allocation95_spill] sm:$0xff] }
 0x362   : > { %11234 = vrot.lane.b32.xlu1 %v11233_v13, %s11747_s28  ;;  %v18156_v13 = vld [vmem:[#allocation16_spill] sm:$0xff]  ;;  %v2371_v15 = vmul.f32 %v18159_v48, %v18148_v41 }
 0x363   : > { %v13341_v62 = vpop.permute.xlu0 %10969  ;;  %v2227_v61 = vmul.f32 %v18149_v57, %v18156_v13  ;;  %v11268_v21 = vpack.i.bf16 %v2498_v11, %v2370_v32  ;;  %v2307_v32 = vmul.f32 %v18159_v48, %v18156_v13  ;;  %v2435_v11 = vmul.f32 %v18159_v48, %v18157_v36 }
 0x364   : > { %v13335_v22 = vpop.permute.xlu1 %10954  ;;  %18155 = vst [vmem:[#allocation94_spill] sm:$0xff] %v13341_v62  ;;  %v2499_v62 = vmul.f32 %v18159_v48, %v18150_v43  ;;  %v18169_v48 = vld [vmem:[#allocation55_spill] sm:$0xff] }
 0x365   : > { %18152 = vst [vmem:[#allocation92_spill] sm:$0xff] %v13335_v22  ;;  %11254 = vrot.lane.b32.xlu0 %v11253_v17, %s11749_s20  ;;  %v2419_v22 = vmul.f32 %v18149_v57, %v18157_v36  ;;  %v2434_v57 = vmul.f32 %v18153_v31, %v18095_v0 }
 0x366   : > { %11239 = vrot.lane.b32.xlu1 %v11238_v34, %s11747_s28  ;;  %v2306_v34 = vmul.f32 %v18153_v31, %v18094_v53 }
 0x367   : > { %v13355_v12 = vpop.permute.xlu0 %10974  ;;  %v11263_v38 = vpack.i.bf16 %v2419_v22, %v2227_v61 }
 0x368   : > { %v13349_v52 = vpop.permute.xlu1 %10959  ;;  %18160 = vst [vmem:[#allocation95_spill] sm:$0xff] %v13355_v12 }
 0x369   : > { %18158 = vst [vmem:[#allocation119_spill] sm:$0xff] %v13349_v52  ;;  %11269 = vrot.lane.b32.xlu0 %v11268_v21, %s11747_s28  ;;  %v11273_v52 = vpack.i.bf16 %v2499_v62, %v2371_v15  ;;  %v11278_v21 = vpack.i.bf16 %v2434_v57, %v2306_v34  ;;  %v11283_v15 = vpack.i.bf16 %v2435_v11, %v2307_v32  ;;  %v18170_v57 = vld [vmem:[#allocation29_spill] sm:$0xff]  ;;  %v18171_v11 = vld [vmem:[#allocation56_spill] sm:$0xff] }
 0x36a   : > { %11259 = vrot.lane.b32.xlu1 %v11258_v29, %s11747_s28  ;;  %v13393_v34 = vmul.f32 %v18169_v48, %v18099_v33  ;;  %v13401_v32 = vmul.f32 %v18169_v48, %v18100_v16  ;;  %v13413_v33 = vmul.f32 %v18171_v11, %v18104_v24 }
 0x36b   : > { %v13365_v17 = vpop.permute.xlu0 %10979 }
 0x36c   : > { %v13363_v37 = vpop.permute.xlu1 %10984  ;;  %18162 = vst [vmem:[#allocation121_spill] sm:$0xff] %v13365_v17  ;;  %v18202_v17 = vld [vmem:[#allocation54_spill] sm:$0xff] }
 0x36d   : > { %18161 = vst [vmem:[#allocation120_spill] sm:$0xff] %v13363_v37  ;;  %11274 = vrot.lane.b32.xlu0 %v11273_v52, %s11747_s28 }
 0x36e   : > { %11264 = vrot.lane.b32.xlu1 %v11263_v38, %s11749_s20  ;;  %v13389_v38 = vmul.f32 %v18169_v48, %v12184_v23  ;;  %v13409_v23 = vmul.f32 %v18171_v11, %v18067_v51 }
 0x36f   : > { %v13375_v31 = vpop.permute.xlu0 %10989 }
 0x370   : > { %v13373_v29 = vpop.permute.xlu1 %10999  ;;  %18164 = vst [vmem:[#allocation123_spill] sm:$0xff] %v13375_v31  ;;  %v18182_v31 = vld [vmem:[#allocation66_spill] sm:$0xff] }
 0x371   : > { %18163 = vst [vmem:[#allocation122_spill] sm:$0xff] %v13373_v29 }
 0x372   : > { %11279 = vrot.lane.b32.xlu1 %v11278_v21, %s11747_s28  ;;  %v13397_v21 = vmul.f32 %v18169_v48, %v18170_v57 }
 0x373   : > { %v13380_v62 = vpop.permute.xlu0 %10994 }
 0x374   : > { %v13378_v22 = vpop.permute.xlu1 %11004  ;;  %18166 = vst [vmem:[#allocation125_spill] sm:$0xff] %v13380_v62  ;;  %v18177_v62 = vld [vmem:[#allocation46_spill] sm:$0xff] }
 0x375   : > { %18165 = vst [vmem:[#allocation124_spill] sm:$0xff] %v13378_v22  ;;  %v18180_v22 = vld [vmem:[#allocation64_spill] sm:$0xff] }
 0x376   : > { %11284 = vrot.lane.b32.xlu1 %v11283_v15, %s11747_s28  ;;  %v13405_v15 = vmul.f32 %v18171_v11, %v18103_v54 }
 0x377   : > { %v13385_v52 = vpop.permute.xlu0 %11009 }
 0x378   : > { %v13383_v61 = vpop.permute.xlu1 %11019  ;;  %18168 = vst [vmem:[#allocation127_spill] sm:$0xff] %v13385_v52  ;;  %v18172_v52 = vld [vmem:[#allocation45_spill] sm:$0xff] }
 0x379   : > { %18167 = vst [vmem:[#allocation126_spill] sm:$0xff] %v13383_v61  ;;  %v13417_v57 = vmul.f32 %v18171_v11, %v18172_v52  ;;  %v18173_v61 = vld [vmem:[#allocation58_spill] sm:$0xff]  ;;  %v18175_v11 = vld [vmem:[#allocation59_spill] sm:$0xff] }
 0x37a   : > { %v13421_v48 = vmul.f32 %v18173_v61, %v18110_v30  ;;  %v13425_v54 = vmul.f32 %v18173_v61, %v12277_v60  ;;  %v13429_v51 = vmul.f32 %v18173_v61, %v18111_v18  ;;  %v13435_v24 = vmul.f32 %v18173_v61, %v12439_v1  ;;  %v18178_v61 = vld [vmem:[#allocation63_spill] sm:$0xff] }
 0x37b   : > { %v13439_v52 = vmul.f32 %v18175_v11, %v12194_v27  ;;  %v13443_v30 = vmul.f32 %v18175_v11, %v18107_v28  ;;  %v13447_v60 = vmul.f32 %v18175_v11, %v12359_v42  ;;  %v13449_v18 = vpop.permute.xlu0 %11014  ;;  %v13457_v1 = vmul.f32 %v18178_v61, %v18072_v19 }
 0x37c   : > { %v13431_v16 = vpop.permute.xlu1 %11024  ;;  %18176 = vst [vmem:[#allocation56_spill] sm:$0xff] %v13449_v18  ;;  %v13461_v27 = vmul.f32 %v18178_v61, %v18114_v14  ;;  %v13465_v28 = vmul.f32 %v18178_v61, %v18073_v56  ;;  %v13469_v42 = vmul.f32 %v18178_v61, %v18115_v50  ;;  %v18179_v18 = vld [vmem:[#allocation6_spill] sm:$0xff]  ;;  %v13477_v19 = vmul.f32 %v18180_v22, %v12284_v63 }
 0x37d   : > { %18174 = vst [vmem:[#allocation55_spill] sm:$0xff] %v13431_v16  ;;  %v13453_v16 = vmul.f32 %v18175_v11, %v18177_v62  ;;  %v13473_v11 = vmul.f32 %v18180_v22, %v18179_v18  ;;  %v18181_v62 = vld [vmem:[#allocation33_spill] sm:$0xff]  ;;  %v13485_v56 = vmul.f32 %v18180_v22, %v12442_v6  ;;  %v13489_v61 = vmul.f32 %v18182_v31, %v18123_v45 }
 0x37e   : > { %v13481_v14 = vmul.f32 %v18180_v22, %v18181_v62  ;;  %v13493_v18 = vmul.f32 %v18182_v31, %v12297_v4  ;;  %v13497_v63 = vmul.f32 %v18182_v31, %v18124_v40  ;;  %v13503_v62 = vmul.f32 %v18182_v31, %v18119_v20  ;;  %v18184_v22 = vld [vmem:[#allocation67_spill] sm:$0xff]  ;;  %v18186_v31 = vld [vmem:[#allocation68_spill] sm:$0xff] }
 0x37f   : > { %v13507_v6 = vmul.f32 %v18184_v22, %v12214_v35  ;;  %v13511_v45 = vmul.f32 %v18184_v22, %v12294_v3  ;;  %v13515_v4 = vmul.f32 %v18184_v22, %v12379_v58  ;;  %v13517_v40 = vpop.permute.xlu0 %11029  ;;  %v13525_v20 = vmul.f32 %v18186_v31, %v18076_v47 }
 0x380   : > { %v13499_v50 = vpop.permute.xlu1 %11039  ;;  %18185 = vst [vmem:[#allocation59_spill] sm:$0xff] %v13517_v40  ;;  %v13529_v35 = vmul.f32 %v18186_v31, %v12307_v9  ;;  %v13533_v3 = vmul.f32 %v18186_v31, %v18129_v46  ;;  %v13537_v58 = vmul.f32 %v18186_v31, %v12469_v10  ;;  %v18187_v40 = vld [vmem:[#allocation69_spill] sm:$0xff] }
 0x381   : > { %18183 = vst [vmem:[#allocation58_spill] sm:$0xff] %v13499_v50  ;;  %v13521_v50 = vmul.f32 %v18184_v22, %v12452_v25  ;;  %v13541_v22 = vmul.f32 %v18187_v40, %v12224_v39  ;;  %v13545_v47 = vmul.f32 %v18187_v40, %v12304_v7  ;;  %v13549_v9 = vmul.f32 %v18187_v40, %v12389_v2  ;;  %v18188_v25 = vld [vmem:[#allocation70_spill] sm:$0xff]  ;;  %v18193_v2 = vld [vmem:[#allocation57_spill] sm:$0xff] }
 0x382   : > { %v13553_v46 = vmul.f32 %v18187_v40, %v18075_v26  ;;  %v13557_v31 = vmul.f32 %v18188_v25, %v18139_v55  ;;  %v13561_v39 = vmul.f32 %v18188_v25, %v18131_v49  ;;  %v13565_v7 = vmul.f32 %v18188_v25, %v18140_v59  ;;  %v18195_v40 = vld [vmem:[#allocation12_spill] sm:$0xff]  ;;  %v18196_v26 = vld [vmem:[#allocation71_spill] sm:$0xff]  ;;  %v18198_v55 = vld [vmem:[#allocation22_spill] sm:$0xff] }
 0x383   : > { %v13571_v29 = vmul.f32 %v18188_v25, %v18193_v2  ;;  %v13575_v12 = vmul.f32 %v18196_v26, %v18195_v40  ;;  %v13579_v37 = vmul.f32 %v18196_v26, %v18198_v55  ;;  %v18199_v49 = vld [vmem:[#allocation39_spill] sm:$0xff]  ;;  %v13585_v59 = vpop.permute.xlu0 %11034  ;;  %v18203_v25 = vld [vmem:[#allocation72_spill] sm:$0xff]  ;;  %v18205_v40 = vld [vmem:[#allocation25_spill] sm:$0xff] }
 0x384   : > { %18189 = vst [vmem:[#allocation63_spill] sm:$0xff] %v13557_v31  ;;  %18190 = vst [vmem:[#allocation64_spill] sm:$0xff] %v13561_v39  ;;  %v13567_v10 = vpop.permute.xlu1 %11044  ;;  %v13583_v39 = vmul.f32 %v18196_v26, %v18199_v49  ;;  %v13593_v2 = vmul.f32 %v18203_v25, %v18086_v5  ;;  %v13601_v55 = vmul.f32 %v18203_v25, %v18087_v8  ;;  %v18208_v49 = vld [vmem:[#allocation61_spill] sm:$0xff]  ;;  %v18217_v8 = vld [vmem:[#allocation60_spill] sm:$0xff] }
 0x385   : > { %18191 = vst [vmem:[#allocation66_spill] sm:$0xff] %v13565_v7  ;;  %18192 = vst [vmem:[#allocation67_spill] sm:$0xff] %v13567_v10  ;;  %v13589_v10 = vmul.f32 %v18196_v26, %v18202_v17  ;;  %v18213_v17 = vld [vmem:[#allocation24_spill] sm:$0xff] }
 0x386   : > { %18194 = vst [vmem:[#allocation68_spill] sm:$0xff] %v13571_v29  ;;  %18197 = vst [vmem:[#allocation69_spill] sm:$0xff] %v13575_v12  ;;  %v13597_v29 = vmul.f32 %v18203_v25, %v18205_v40  ;;  %v18211_v12 = vld [vmem:[#allocation73_spill] sm:$0xff] }
 0x387   : > { %18200 = vst [vmem:[#allocation70_spill] sm:$0xff] %v13583_v39  ;;  %18201 = vst [vmem:[#allocation71_spill] sm:$0xff] %v13585_v59  ;;  %v13605_v39 = vmul.f32 %v18203_v25, %v18208_v49  ;;  %v18210_v59 = vld [vmem:[#allocation14_spill] sm:$0xff]  ;;  %v13613_v5 = vmul.f32 %v18211_v12, %v18213_v17  ;;  %v18216_v40 = vld [vmem:[#allocation41_spill] sm:$0xff] }
 0x388   : > { %18204 = vst [vmem:[#allocation22_spill] sm:$0xff] %v13593_v2  ;;  %18206 = vst [vmem:[#allocation72_spill] sm:$0xff] %v13597_v29  ;;  %v13609_v26 = vmul.f32 %v18211_v12, %v18210_v59  ;;  %v18215_v2 = vld [vmem:[#allocation97_spill] sm:$0xff]  ;;  %v13618_v29 = vmul.f32 %v18211_v12, %v18216_v40  ;;  %v18218_v25 = vld [vmem:[#allocation96_spill] sm:$0xff]  ;;  %v13626_v59 = vpop.permute.xlu1 %11059 }
 0x389   : > { %18207 = vst [vmem:[#allocation25_spill] sm:$0xff] %v13601_v55  ;;  %18209 = vst [vmem:[#allocation128_spill] sm:$0xff] %v13605_v39  ;;  %v10811_v7 = vunpack.i.l.bf16 %v18215_v2  ;;  %v13622_v55 = vmul.f32 %v18211_v12, %v18217_v8  ;;  %v10816_v49 = vunpack.i.l.bf16 %v18218_v25  ;;  %v10812_v39 = vunpack.i.h.bf16 %v18215_v2  ;;  %v13644_v8 = vpop.permute.xlu0 %11049  ;;  %v18227_v2 = vld [vmem:[#allocation75_spill] sm:$0xff] }
 0x38a   : > { %18212 = vst [vmem:[#allocation73_spill] sm:$0xff] %v13609_v26  ;;  %18214 = vst [vmem:[#allocation24_spill] sm:$0xff] %v13613_v5  ;;  %v18220_v26 = vld [vmem:[#allocation74_spill] sm:$0xff]  ;;  %v18222_v5 = vld [vmem:[#allocation27_spill] sm:$0xff] }
 0x38b   : > { %18219 = vst [vmem:[#allocation97_spill] sm:$0xff] %v13626_v59  ;;  %v13630_v17 = vmul.f32 %v18220_v26, %v18094_v53  ;;  %v13634_v31 = vmul.f32 %v18220_v26, %v18222_v5  ;;  %v13638_v40 = vmul.f32 %v18220_v26, %v18095_v0  ;;  %v13642_v12 = vmul.f32 %v18220_v26, %v18154_v44  ;;  %v18232_v44 = vld [vmem:[#allocation98_spill] sm:$0xff] }
 0x38c   : > { %18226 = vst [vmem:[#allocation130_spill] sm:$0xff] %v13644_v8  ;;  %v13648_v59 = vmul.f32 %v18227_v2, %v18156_v13  ;;  %v13652_v53 = vmul.f32 %v18227_v2, %v18148_v41  ;;  %v13656_v5 = vmul.f32 %v18227_v2, %v18157_v36  ;;  %v13660_v0 = vmul.f32 %v18227_v2, %v18150_v43  ;;  %v18234_v41 = vld [vmem:[#allocation99_spill] sm:$0xff]  ;;  %v13671_v36 = vpop.permute.xlu1 %11064  ;;  %v18238_v43 = vld [vmem:[#allocation18_spill] sm:$0xff] }
 0x38d   : > { %18221 = vst [vmem:[#allocation96_spill] sm:$0xff] %v13630_v17  ;;  %18223 = vst [vmem:[#allocation74_spill] sm:$0xff] %v13634_v31  ;;  %v10817_v26 = vunpack.i.h.bf16 %v18218_v25  ;;  %v10821_v31 = vunpack.i.l.bf16 %v18232_v44  ;;  %v13667_v13 = vsel %vm1410_vm5, %v13393_v34, %v10811_v7  ;;  %v10831_v8 = vunpack.i.l.bf16 %v18234_v41  ;;  %v18239_v34 = vld [vmem:[#allocation100_spill] sm:$0xff] }
 0x38e   : > { %18224 = vst [vmem:[#allocation27_spill] sm:$0xff] %v13638_v40  ;;  %18225 = vst [vmem:[#allocation129_spill] sm:$0xff] %v13642_v12  ;;  %v10822_v12 = vunpack.i.h.bf16 %v18232_v44  ;;  %v13675_v2 = vsel %vm1410_vm5, %v13401_v32, %v10812_v39  ;;  %v13679_v25 = vsel %vm1410_vm5, %v13389_v38, %v10816_v49  ;;  %v10827_v44 = vunpack.i.h.bf16 %v18238_v43  ;;  %v18242_v39 = vld [vmem:[#allocation102_spill] sm:$0xff]  ;;  %v18243_v38 = vld [vmem:[#allocation20_spill] sm:$0xff] }
 0x38f   : > { %18228 = vst [vmem:[#allocation75_spill] sm:$0xff] %v13648_v59  ;;  %18229 = vst [vmem:[#allocation131_spill] sm:$0xff] %v13652_v53  ;;  %v10832_v59 = vunpack.i.h.bf16 %v18234_v41  ;;  %v10847_v7 = vunpack.i.h.bf16 %v18239_v34  ;;  %v10846_v40 = vunpack.i.l.bf16 %v18239_v34  ;;  %v18241_v41 = vld [vmem:[#allocation101_spill] sm:$0xff]  ;;  %v10852_v32 = vunpack.i.h.bf16 %v18242_v39 }
 0x390   : > { %18230 = vst [vmem:[#allocation132_spill] sm:$0xff] %v13656_v5  ;;  %18231 = vst [vmem:[#allocation133_spill] sm:$0xff] %v13660_v0  ;;  %v10826_v5 = vunpack.i.l.bf16 %v18238_v43  ;;  %v10836_v0 = vunpack.i.l.bf16 %v18241_v41  ;;  %v10841_v49 = vunpack.i.l.bf16 %v18243_v38  ;;  %v13698_v43 = vsel %vm1410_vm5, %v13417_v57, %v10822_v12  ;;  %v13706_v53 = vpop.permute.xlu1 %11079 }
 0x391   : > { %18233 = vst [vmem:[#allocation98_spill] sm:$0xff] %v13667_v13  ;;  %18235 = vst [vmem:[#allocation99_spill] sm:$0xff] %v13671_v36  ;;  %v13685_v13 = vpop.permute.xlu0 %11054  ;;  %v10837_v36 = vunpack.i.h.bf16 %v18241_v41  ;;  %v13702_v34 = vsel %vm1410_vm5, %v13397_v21, %v10817_v26  ;;  %v10842_v41 = vunpack.i.h.bf16 %v18243_v38  ;;  %v13718_v57 = vsel %vm1410_vm5, %v13413_v33, %v10827_v44  ;;  %v18253_v38 = vld [vmem:[#allocation107_spill] sm:$0xff] }
 0x392   : > { %18236 = vst [vmem:[#allocation134_spill] sm:$0xff] %v13675_v2  ;;  %18237 = vst [vmem:[#allocation135_spill] sm:$0xff] %v13679_v25  ;;  %v10851_v2 = vunpack.i.l.bf16 %v18242_v39  ;;  %v13694_v25 = vsel %vm1410_vm5, %v13409_v23, %v10821_v31  ;;  %v13710_v39 = vsel %vm1410_vm5, %v13443_v30, %v10831_v8  ;;  %v13714_v23 = vsel %vm1410_vm5, %v13453_v16, %v10832_v59 }
 0x393   : > { %18240 = vst [vmem:[#allocation18_spill] sm:$0xff] %v13685_v13  ;;  %v18244_v13 = vld [vmem:[#allocation103_spill] sm:$0xff]  ;;  %18245 = vst [vmem:[#allocation100_spill] sm:$0xff] %v13706_v53  ;;  %v13722_v21 = vsel %vm1410_vm5, %v13405_v15, %v10826_v5  ;;  %v13728_v12 = vsel %vm1410_vm5, %v13421_v48, %v10846_v40  ;;  %v13732_v8 = vsel %vm1410_vm5, %v13429_v51, %v10847_v7  ;;  %v18247_v48 = vld [vmem:[#allocation104_spill] sm:$0xff] }
 0x394   : > { %v10866_v17 = vunpack.i.l.bf16 %v18244_v13  ;;  %v13736_v16 = vsel %vm1410_vm5, %v13439_v52, %v10836_v0  ;;  %v13740_v30 = vsel %vm1410_vm5, %v13447_v60, %v10837_v36  ;;  %v13744_v59 = vsel %vm1410_vm5, %v13477_v19, %v10851_v2  ;;  %v18248_v36 = vld [vmem:[#allocation105_spill] sm:$0xff]  ;;  %v13759_v19 = vpop.permute.xlu1 %11084 }
 0x395   : > { %v13724_v31 = vpop.permute.xlu0 %11069  ;;  %v13748_v15 = vsel %vm1410_vm5, %v13485_v56, %v10852_v32  ;;  %v10867_v33 = vunpack.i.h.bf16 %v18244_v13  ;;  %v10857_v51 = vunpack.i.h.bf16 %v18247_v48  ;;  %v10856_v40 = vunpack.i.l.bf16 %v18247_v48  ;;  %18249 = vst [vmem:[#allocation102_spill] sm:$0xff] %v13759_v19  ;;  %v18250_v5 = vld [vmem:[#allocation21_spill] sm:$0xff] }
 0x396   : > { %18246 = vst [vmem:[#allocation101_spill] sm:$0xff] %v13724_v31  ;;  %v13755_v0 = vsel %vm1410_vm5, %v13425_v54, %v10841_v49  ;;  %v10872_v52 = vunpack.i.h.bf16 %v18248_v36  ;;  %v10871_v60 = vunpack.i.l.bf16 %v18248_v36  ;;  %v13763_v56 = vsel %vm1410_vm5, %v13435_v24, %v10842_v41  ;;  %v18251_v54 = vld [vmem:[#allocation106_spill] sm:$0xff]  ;;  %v18254_v24 = vld [vmem:[#allocation108_spill] sm:$0xff] }
 0x397   : > { %v13767_v13 = vsel %vm1410_vm5, %v13457_v1, %v10866_v17  ;;  %v10862_v26 = vunpack.i.h.bf16 %v18250_v5  ;;  %v10861_v2 = vunpack.i.l.bf16 %v18250_v5  ;;  %v10887_v44 = vunpack.i.h.bf16 %v18251_v54  ;;  %v18255_v1 = vld [vmem:[#allocation109_spill] sm:$0xff] }
 0x398   : > { %v10886_v7 = vunpack.i.l.bf16 %v18251_v54  ;;  %v10877_v49 = vunpack.i.h.bf16 %v18253_v38  ;;  %v10876_v48 = vunpack.i.l.bf16 %v18253_v38  ;;  %v10892_v41 = vunpack.i.h.bf16 %v18254_v24  ;;  %v13794_v53 = vpop.permute.xlu1 %11099 }
 0x399   : > { %v13773_v32 = vpop.permute.xlu0 %11074  ;;  %v10891_v36 = vunpack.i.l.bf16 %v18254_v24  ;;  %v10881_v17 = vunpack.i.l.bf16 %v18255_v1  ;;  %v13782_v19 = vsel %vm1410_vm5, %v13465_v28, %v10867_v33  ;;  %v13786_v5 = vsel %vm1410_vm5, %v13473_v11, %v10856_v40  ;;  %18257 = vst [vmem:[#allocation103_spill] sm:$0xff] %v13794_v53 }
 0x39a   : > { %18252 = vst [vmem:[#allocation20_spill] sm:$0xff] %v13773_v32  ;;  %v13790_v54 = vsel %vm1410_vm5, %v13481_v14, %v10857_v51  ;;  %v10882_v38 = vunpack.i.h.bf16 %v18255_v1  ;;  %v18256_v32 = vld [vmem:[#allocation110_spill] sm:$0xff]  ;;  %v13798_v24 = vsel %vm1410_vm5, %v13511_v45, %v10871_v60  ;;  %v13802_v28 = vsel %vm1410_vm5, %v13521_v50, %v10872_v52  ;;  %v18265_v1 = vld [vmem:[#allocation115_spill] sm:$0xff] }
 0x39b   : > { %v10906_v31 = vunpack.i.l.bf16 %v18256_v32  ;;  %v13808_v14 = vsel %vm1410_vm5, %v13461_v27, %v10861_v2  ;;  %v13812_v33 = vsel %vm1410_vm5, %v13469_v42, %v10862_v26  ;;  %v13816_v51 = vsel %vm1410_vm5, %v13489_v61, %v10886_v7  ;;  %v18262_v7 = vld [vmem:[#allocation113_spill] sm:$0xff] }
 0x39c   : > { %v13820_v45 = vsel %vm1410_vm5, %v13497_v63, %v10887_v44  ;;  %v13824_v50 = vsel %vm1410_vm5, %v13507_v6, %v10876_v48  ;;  %v13828_v27 = vsel %vm1410_vm5, %v13515_v4, %v10877_v49  ;;  %v13832_v42 = vsel %vm1410_vm5, %v13545_v47, %v10891_v36  ;;  %v18259_v63 = vld [vmem:[#allocation111_spill] sm:$0xff]  ;;  %v18260_v4 = vld [vmem:[#allocation112_spill] sm:$0xff]  ;;  %v13847_v47 = vpop.permute.xlu1 %11104 }
 0x39d   : > { %v13804_v11 = vpop.permute.xlu0 %11089  ;;  %v13836_v61 = vsel %vm1410_vm5, %v13553_v46, %v10892_v41  ;;  %v10907_v40 = vunpack.i.h.bf16 %v18256_v32  ;;  %v10897_v52 = vunpack.i.h.bf16 %v18259_v63  ;;  %v10896_v60 = vunpack.i.l.bf16 %v18259_v63  ;;  %18261 = vst [vmem:[#allocation105_spill] sm:$0xff] %v13847_v47  ;;  %v18269_v47 = vld [vmem:[#allocation116_spill] sm:$0xff] }
 0x39e   : > { %18258 = vst [vmem:[#allocation104_spill] sm:$0xff] %v13804_v11  ;;  %v13843_v6 = vsel %vm1410_vm5, %v13493_v18, %v10881_v17  ;;  %v10912_v26 = vunpack.i.h.bf16 %v18260_v4  ;;  %v10911_v2 = vunpack.i.l.bf16 %v18260_v4  ;;  %v13851_v46 = vsel %vm1410_vm5, %v13503_v62, %v10882_v38  ;;  %v18263_v18 = vld [vmem:[#allocation114_spill] sm:$0xff]  ;;  %v18266_v62 = vld [vmem:[#allocation23_spill] sm:$0xff] }
 0x39f   : > { %v13855_v44 = vsel %vm1410_vm5, %v13525_v20, %v10906_v31  ;;  %v10902_v32 = vunpack.i.h.bf16 %v18262_v7  ;;  %v10901_v49 = vunpack.i.l.bf16 %v18262_v7  ;;  %v10927_v48 = vunpack.i.h.bf16 %v18263_v18  ;;  %v18267_v20 = vld [vmem:[#allocation19_spill] sm:$0xff] }
 0x3a0   : > { %v10926_v41 = vunpack.i.l.bf16 %v18263_v18  ;;  %v10917_v17 = vunpack.i.h.bf16 %v18265_v1  ;;  %v10916_v63 = vunpack.i.l.bf16 %v18265_v1  ;;  %v10932_v38 = vunpack.i.h.bf16 %v18266_v62 }
 0x3a1   : > { %v13861_v36 = vpop.permute.xlu0 %11094  ;;  %v10931_v4 = vunpack.i.l.bf16 %v18266_v62  ;;  %v10921_v31 = vunpack.i.l.bf16 %v18267_v20  ;;  %v13870_v7 = vsel %vm1410_vm5, %v13533_v3, %v10907_v40  ;;  %v13874_v18 = vsel %vm1410_vm5, %v13541_v22, %v10896_v60  ;;  %v13882_v62 = vpop.permute.xlu1 %11109 }
 0x3a2   : > { %18264 = vst [vmem:[#allocation21_spill] sm:$0xff] %v13861_v36  ;;  %v13878_v36 = vsel %vm1410_vm5, %v13549_v9, %v10897_v52  ;;  %v10922_v1 = vunpack.i.h.bf16 %v18267_v20  ;;  %v10946_v11 = vunpack.i.l.bf16 %v18269_v47  ;;  %18270 = vst [vmem:[#allocation107_spill] sm:$0xff] %v13882_v62  ;;  %v13886_v53 = vsel %vm1410_vm5, %v13579_v37, %v10911_v2  ;;  %v18273_v52 = vld [vmem:[#allocation63_spill] sm:$0xff]  ;;  %v18275_v37 = vld [vmem:[#allocation66_spill] sm:$0xff] }
 0x3a3   : > { %18268 = vst [vmem:[#allocation106_spill] sm:$0xff] %v13878_v36  ;;  %18271 = vst [vmem:[#allocation108_spill] sm:$0xff] %v13886_v53  ;;  %v13890_v3 = vsel %vm1410_vm5, %v13589_v10, %v10912_v26  ;;  %v13896_v9 = vsel %vm1410_vm5, %v13529_v35, %v10901_v49  ;;  %v13900_v40 = vsel %vm1410_vm5, %v13537_v58, %v10902_v32  ;;  %v18277_v10 = vld [vmem:[#allocation69_spill] sm:$0xff]  ;;  %v18279_v20 = vld [vmem:[#allocation70_spill] sm:$0xff] }
 0x3a4   : > { %18272 = vst [vmem:[#allocation109_spill] sm:$0xff] %v13890_v3  ;;  %v13904_v60 = vsel %vm1410_vm5, %v18273_v52, %v10926_v41  ;;  %v13908_v2 = vsel %vm1410_vm5, %v18275_v37, %v10927_v48  ;;  %v13912_v26 = vsel %vm1410_vm5, %v18277_v10, %v10916_v63  ;;  %v13916_v35 = vsel %vm1410_vm5, %v18279_v20, %v10917_v17  ;;  %v18281_v49 = vld [vmem:[#allocation24_spill] sm:$0xff]  ;;  %v18284_v48 = vld [vmem:[#allocation121_spill] sm:$0xff] }
 0x3a5   : > { %v13892_v22 = vpop.permute.xlu0 %11124  ;;  %18274 = vst [vmem:[#allocation110_spill] sm:$0xff] %v13904_v60  ;;  %18276 = vst [vmem:[#allocation111_spill] sm:$0xff] %v13908_v2  ;;  %v13920_v58 = vsel %vm1410_vm5, %v18281_v49, %v10931_v4  ;;  %v13924_v32 = vsel %vm1410_vm5, %v13622_v55, %v10932_v38  ;;  %v10947_v41 = vunpack.i.h.bf16 %v18269_v47  ;;  %v10982_v52 = vunpack.i.h.bf16 %v18284_v48  ;;  %v18285_v63 = vld [vmem:[#allocation64_spill] sm:$0xff]  ;;  %v18287_v17 = vld [vmem:[#allocation117_spill] sm:$0xff]  ;;  %v13935_v4 = vpop.permute.xlu1 %11114 }
 0x3a6   : > { %18278 = vst [vmem:[#allocation112_spill] sm:$0xff] %v13912_v26  ;;  %18280 = vst [vmem:[#allocation113_spill] sm:$0xff] %v13916_v35  ;;  %v10981_v37 = vunpack.i.l.bf16 %v18284_v48  ;;  %v13931_v10 = vsel %vm1410_vm5, %v18285_v63, %v10921_v31  ;;  %v10937_v20 = vunpack.i.h.bf16 %v18287_v17  ;;  %v10936_v62 = vunpack.i.l.bf16 %v18287_v17  ;;  %v18289_v49 = vld [vmem:[#allocation68_spill] sm:$0xff]  ;;  %v18291_v38 = vld [vmem:[#allocation22_spill] sm:$0xff] }
 0x3a7   : > { %18282 = vst [vmem:[#allocation114_spill] sm:$0xff] %v13920_v58  ;;  %18283 = vst [vmem:[#allocation115_spill] sm:$0xff] %v13924_v32  ;;  %v13939_v55 = vsel %vm1410_vm5, %v18289_v49, %v10922_v1  ;;  %v13943_v47 = vsel %vm1410_vm5, %v18291_v38, %v10946_v11  ;;  %v18293_v32 = vld [vmem:[#allocation93_spill] sm:$0xff]  ;;  %v18294_v31 = vld [vmem:[#allocation118_spill] sm:$0xff] }
 0x3a8   : > { %18286 = vst [vmem:[#allocation23_spill] sm:$0xff] %v13931_v10  ;;  %18288 = vst [vmem:[#allocation19_spill] sm:$0xff] %v13935_v4  ;;  %v10952_v48 = vunpack.i.h.bf16 %v18293_v32  ;;  %v10951_v58 = vunpack.i.l.bf16 %v18293_v32  ;;  %v10942_v63 = vunpack.i.h.bf16 %v18294_v31  ;;  %v10941_v35 = vunpack.i.l.bf16 %v18294_v31  ;;  %v18295_v17 = vld [vmem:[#allocation26_spill] sm:$0xff] }
 0x3a9   : > { %18290 = vst [vmem:[#allocation116_spill] sm:$0xff] %v13939_v55  ;;  %18292 = vst [vmem:[#allocation63_spill] sm:$0xff] %v13943_v47  ;;  %v11130_v26 = vpop.permute.xlu0 %11129  ;;  %v10967_v2 = vunpack.i.h.bf16 %v18295_v17  ;;  %v10966_v4 = vunpack.i.l.bf16 %v18295_v17  ;;  %v18296_v49 = vld [vmem:[#allocation94_spill] sm:$0xff]  ;;  %v3333_v38 = vsel %vm821_vm0, %v13694_v25, %v10981_v37  ;;  %v3429_v32 = vsel %vm821_vm0, %v13698_v43, %v10982_v52  ;;  %v11120_v47 = vpop.permute.xlu1 %11119  ;;  %v18297_v55 = vld [vmem:[#allocation25_spill] sm:$0xff] }
 0x3aa   : > { %v11132_v60 = vunpack.i.h.bf16 %v11130_v26  ;;  %v11131_v1 = vunpack.i.l.bf16 %v11130_v26  ;;  %v10972_v3 = vunpack.i.h.bf16 %v18296_v49  ;;  %v10971_v11 = vunpack.i.l.bf16 %v18296_v49  ;;  %v18299_v26 = vld [vmem:[#allocation73_spill] sm:$0xff]  ;;  %v18301_v49 = vld [vmem:[#allocation120_spill] sm:$0xff] }
 0x3ab   : > { %v13961_v17 = vsel %vm1410_vm5, %v18297_v55, %v10947_v41  ;;  %v13965_v10 = vsel %vm1410_vm5, %v18299_v26, %v10936_v62  ;;  %v10987_v36 = vunpack.i.h.bf16 %v18301_v49  ;;  %v10986_v25 = vunpack.i.l.bf16 %v18301_v49  ;;  %v18305_v52 = vld [vmem:[#allocation72_spill] sm:$0xff]  ;;  %v18314_v49 = vld [vmem:[#allocation134_spill] sm:$0xff] }
 0x3ac   : > { %v3349_v31 = vsel %vm3300_vm6, %v3333_v38, %v11131_v1  ;;  %v3445_v53 = vsel %vm3300_vm6, %v3429_v32, %v11132_v60  ;;  %18298 = vst [vmem:[#allocation66_spill] sm:$0xff] %v13961_v17  ;;  %18300 = vst [vmem:[#allocation69_spill] sm:$0xff] %v13965_v10  ;;  %v13973_v43 = vsel %vm1410_vm5, %v13618_v29, %v10937_v20  ;;  %v18303_v60 = vld [vmem:[#allocation131_spill] sm:$0xff]  ;;  %v18306_v55 = vld [vmem:[#allocation128_spill] sm:$0xff] }
 0x3ad   : > { %v13969_v37 = vpop.permute.xlu0 %11144  ;;  %3589 = vmatprep.mubr.f32.mxu1 %v3349_v31  ;;  %3734 = vmatprep.mubr.f32.mxu0 %v3445_v53  ;;  %18302 = vst [vmem:[#allocation70_spill] sm:$0xff] %v13973_v43  ;;  %v13977_v41 = vsel %vm1410_vm5, %v18303_v60, %v10951_v58  ;;  %v13981_v62 = vsel %vm1410_vm5, %v18305_v52, %v10941_v35  ;;  %v18308_v38 = vld [vmem:[#allocation96_spill] sm:$0xff]  ;;  %v18310_v53 = vld [vmem:[#allocation133_spill] sm:$0xff]  ;;  %v18312_v20 = vld [vmem:[#allocation119_spill] sm:$0xff] }
 0x3ae   : > { %18304 = vst [vmem:[#allocation24_spill] sm:$0xff] %v13977_v41  ;;  %v13985_v1 = vsel %vm1410_vm5, %v18306_v55, %v10942_v63  ;;  %v13989_v32 = vsel %vm1410_vm5, %v18308_v38, %v10966_v4  ;;  %v13993_v29 = vsel %vm1410_vm5, %v18310_v53, %v10952_v48  ;;  %v18313_v58 = vld [vmem:[#allocation98_spill] sm:$0xff]  ;;  %v3430_v35 = vsel %vm821_vm0, %v18314_v49, %v10972_v3  ;;  %v18315_v60 = vld [vmem:[#allocation27_spill] sm:$0xff]  ;;  %v11135_v48 = vpop.permute.xlu1 %11134 }
 0x3af   : > { %18307 = vst [vmem:[#allocation121_spill] sm:$0xff] %v13985_v1  ;;  %18309 = vst [vmem:[#allocation64_spill] sm:$0xff] %v13989_v32  ;;  %v3334_v26 = vsel %vm821_vm0, %v18313_v58, %v10971_v11  ;;  %v14002_v63 = vsel %vm1410_vm5, %v18315_v60, %v10967_v2  ;;  %v18317_v52 = vld [vmem:[#allocation95_spill] sm:$0xff]  ;;  %v11122_v38 = vunpack.i.h.bf16 %v11120_v47  ;;  %v11121_v41 = vunpack.i.l.bf16 %v11120_v47  ;;  %v18318_v58 = vld [vmem:[#allocation122_spill] sm:$0xff] }
 0x3b0   : > { %18311 = vst [vmem:[#allocation117_spill] sm:$0xff] %v13993_v29  ;;  %18316 = vst [vmem:[#allocation68_spill] sm:$0xff] %v14002_v63  ;;  %v10977_v55 = vunpack.i.h.bf16 %v18317_v52  ;;  %v10976_v4 = vunpack.i.l.bf16 %v18317_v52  ;;  %v11137_v53 = vunpack.i.h.bf16 %v11135_v48  ;;  %v11136_v29 = vunpack.i.l.bf16 %v11135_v48  ;;  %v18319_v60 = vld [vmem:[#allocation123_spill] sm:$0xff] }
 0x3b1   : > { %v11150_v31 = vpop.permute.xlu0 %11149  ;;  %v3284_v11 = vsel %vm821_vm0, %v13722_v21, %v10986_v25  ;;  %v3381_v3 = vsel %vm821_vm0, %v13718_v57, %v10987_v36  ;;  %v11002_v49 = vunpack.i.h.bf16 %v18318_v58  ;;  %v11001_v2 = vunpack.i.l.bf16 %v18318_v58  ;;  %v18320_v58 = vld [vmem:[#allocation124_spill] sm:$0xff] }
 0x3b2   : > { %v10992_v63 = vunpack.i.h.bf16 %v18319_v60  ;;  %v10991_v52 = vunpack.i.l.bf16 %v18319_v60  ;;  %v11127_v47 = vunpack.i.h.bf16 %v13892_v22  ;;  %v11126_v32 = vunpack.i.l.bf16 %v13892_v22  ;;  %v11140_v10 = vpop.permute.xlu1 %11139  ;;  %v18321_v22 = vld [vmem:[#allocation135_spill] sm:$0xff] }
 0x3b3   : > { %v3301_v48 = vsel %vm3300_vm6, %v3284_v11, %v11136_v29  ;;  %v3397_v43 = vsel %vm3300_vm6, %v3381_v3, %v11137_v53  ;;  %v11152_v21 = vunpack.i.h.bf16 %v11150_v31  ;;  %v11151_v25 = vunpack.i.l.bf16 %v11150_v31 }
 0x3b4   : > { %3590 = vmatmul.mubr.f32.vlgmr.msra.gmra.mxu1 %v3301_v48  ;;  %3735 = vmatmul.mubr.f32.vlgmr.msra.gmra.mxu0 %v3397_v43  ;;  %v3350_v57 = vsel %vm3300_vm6, %v3334_v26, %v11121_v41  ;;  %v3446_v36 = vsel %vm3300_vm6, %v3430_v35, %v11122_v38  ;;  %v11007_v17 = vunpack.i.h.bf16 %v18320_v58  ;;  %v11006_v60 = vunpack.i.l.bf16 %v18320_v58  ;;  %v18322_v38 = vld [vmem:[#allocation125_spill] sm:$0xff]  ;;  %v18324_v48 = vld [vmem:[#allocation127_spill] sm:$0xff] }
 0x3b5   : > { %v14022_v1 = vpop.permute.xlu0 %11164  ;;  %3594 = vmatprep.mubr.f32.mxu1 %v3350_v57  ;;  %3739 = vmatprep.mubr.f32.mxu0 %v3446_v36  ;;  %v3285_v29 = vsel %vm821_vm0, %v18321_v22, %v10976_v4  ;;  %v3382_v31 = vsel %vm821_vm0, %v13702_v34, %v10977_v55  ;;  %v3335_v43 = vsel %vm821_vm0, %v13755_v0, %v11001_v2  ;;  %v10997_v53 = vunpack.i.h.bf16 %v18322_v38 }
 0x3b6   : > { %v3431_v41 = vsel %vm821_vm0, %v13763_v56, %v11002_v49  ;;  %v3336_v26 = vsel %vm821_vm0, %v13710_v39, %v10991_v52  ;;  %v3432_v35 = vsel %vm821_vm0, %v13714_v23, %v10992_v63  ;;  %v10996_v11 = vunpack.i.l.bf16 %v18322_v38  ;;  %v11155_v0 = vpop.permute.xlu1 %11154  ;;  %v18323_v52 = vld [vmem:[#allocation126_spill] sm:$0xff] }
 0x3b7   : > { %v3302_v4 = vsel %vm3300_vm6, %v3285_v29, %v11126_v32  ;;  %v3398_v34 = vsel %vm3300_vm6, %v3382_v31, %v11127_v47  ;;  %v11142_v55 = vunpack.i.h.bf16 %v11140_v10  ;;  %v11141_v3 = vunpack.i.l.bf16 %v11140_v10  ;;  %v18325_v31 = vld [vmem:[#allocation55_spill] sm:$0xff] }
 0x3b8   : > { %3595 = vmatmul.mubr.f32.gmra.mxu1 %v3302_v4  ;;  %3740 = vmatmul.mubr.f32.gmra.mxu0 %v3398_v34  ;;  %v3351_v56 = vsel %vm3300_vm6, %v3335_v43, %v11151_v25  ;;  %v3447_v39 = vsel %vm3300_vm6, %v3431_v41, %v11152_v21  ;;  %v11157_v49 = vunpack.i.h.bf16 %v11155_v0  ;;  %v11156_v2 = vunpack.i.l.bf16 %v11155_v0 }
 0x3b9   : > { %v11170_v23 = vpop.permute.xlu0 %11169  ;;  %3599 = vmatprep.mubr.f32.mxu1 %v3351_v56  ;;  %3744 = vmatprep.mubr.f32.mxu0 %v3447_v39  ;;  %v3286_v63 = vsel %vm821_vm0, %v13728_v12, %v11006_v60  ;;  %v3383_v32 = vsel %vm821_vm0, %v13732_v8, %v11007_v17  ;;  %v11022_v10 = vunpack.i.h.bf16 %v18323_v52  ;;  %v11021_v47 = vunpack.i.l.bf16 %v18323_v52 }
 0x3ba   : > { %v11012_v57 = vunpack.i.h.bf16 %v18324_v48  ;;  %v11011_v25 = vunpack.i.l.bf16 %v18324_v48  ;;  %v11147_v21 = vunpack.i.h.bf16 %v13969_v37  ;;  %v11146_v36 = vunpack.i.l.bf16 %v13969_v37  ;;  %v11160_v29 = vpop.permute.xlu1 %11159 }
 0x3bb   : > { %v3303_v58 = vsel %vm3300_vm6, %v3286_v63, %v11156_v2  ;;  %v3399_v22 = vsel %vm3300_vm6, %v3383_v32, %v11157_v49  ;;  %v11172_v12 = vunpack.i.h.bf16 %v11170_v23  ;;  %v11171_v60 = vunpack.i.l.bf16 %v11170_v23  ;;  %v18327_v63 = vld [vmem:[#allocation58_spill] sm:$0xff] }
 0x3bc   : > { %3600 = vmatmul.mubr.f32.gmra.mxu1 %v3303_v58  ;;  %3745 = vmatmul.mubr.f32.gmra.mxu0 %v3399_v22  ;;  %v3352_v8 = vsel %vm3300_vm6, %v3336_v26, %v11141_v3  ;;  %v3448_v17 = vsel %vm3300_vm6, %v3432_v35, %v11142_v55  ;;  %v11027_v43 = vunpack.i.h.bf16 %v18325_v31  ;;  %v11026_v41 = vunpack.i.l.bf16 %v18325_v31  ;;  %v18326_v3 = vld [vmem:[#allocation56_spill] sm:$0xff] }
 0x3bd   : > { %v14058_v38 = vpop.permute.xlu0 %11184  ;;  %3604 = vmatprep.mubr.f32.mxu1 %v3352_v8  ;;  %3749 = vmatprep.mubr.f32.mxu0 %v3448_v17  ;;  %v3287_v37 = vsel %vm821_vm0, %v13736_v16, %v10996_v11  ;;  %v3384_v4 = vsel %vm821_vm0, %v13740_v30, %v10997_v53  ;;  %v3337_v34 = vsel %vm821_vm0, %v13808_v14, %v11021_v47  ;;  %v11017_v0 = vunpack.i.h.bf16 %v18326_v3 }
 0x3be   : > { %v3433_v26 = vsel %vm821_vm0, %v13812_v33, %v11022_v10  ;;  %v3338_v35 = vsel %vm821_vm0, %v13744_v59, %v11011_v25  ;;  %v3434_v55 = vsel %vm821_vm0, %v13748_v15, %v11012_v57  ;;  %v11016_v56 = vunpack.i.l.bf16 %v18326_v3  ;;  %v11175_v14 = vpop.permute.xlu1 %11174  ;;  %v18328_v10 = vld [vmem:[#allocation59_spill] sm:$0xff] }
 0x3bf   : > { %v3304_v16 = vsel %vm3300_vm6, %v3287_v37, %v11146_v36  ;;  %v3400_v30 = vsel %vm3300_vm6, %v3384_v4, %v11147_v21  ;;  %v11162_v53 = vunpack.i.h.bf16 %v11160_v29  ;;  %v11161_v11 = vunpack.i.l.bf16 %v11160_v29 }
 0x3c0   : > { %3605 = vmatmul.mubr.f32.gmra.mxu1 %v3304_v16  ;;  %3750 = vmatmul.mubr.f32.gmra.mxu0 %v3400_v30  ;;  %v3353_v33 = vsel %vm3300_vm6, %v3337_v34, %v11171_v60  ;;  %v3449_v59 = vsel %vm3300_vm6, %v3433_v26, %v11172_v12  ;;  %v11177_v39 = vunpack.i.h.bf16 %v11175_v14  ;;  %v11176_v49 = vunpack.i.l.bf16 %v11175_v14  ;;  %v18329_v60 = vld [vmem:[#allocation67_spill] sm:$0xff] }
 0x3c1   : > { %v11190_v15 = vpop.permute.xlu0 %11189  ;;  %3609 = vmatprep.mubr.f32.mxu1 %v3353_v33  ;;  %3754 = vmatprep.mubr.f32.mxu0 %v3449_v59  ;;  %v3288_v2 = vsel %vm821_vm0, %v13767_v13, %v11026_v41  ;;  %v3385_v23 = vsel %vm821_vm0, %v13782_v19, %v11027_v43  ;;  %v11042_v32 = vunpack.i.h.bf16 %v18327_v63  ;;  %v11041_v52 = vunpack.i.l.bf16 %v18327_v63  ;;  %v18330_v34 = vld [vmem:[#allocation71_spill] sm:$0xff]  ;;  %v18332_v33 = vld [vmem:[#allocation130_spill] sm:$0xff] }
 0x3c2   : > { %v11032_v47 = vunpack.i.h.bf16 %v18328_v10  ;;  %v11031_v48 = vunpack.i.l.bf16 %v18328_v10  ;;  %v11167_v57 = vunpack.i.h.bf16 %v14022_v1  ;;  %v11166_v25 = vunpack.i.l.bf16 %v14022_v1  ;;  %v11180_v22 = vpop.permute.xlu1 %11179  ;;  %v18333_v10 = vld [vmem:[#allocation99_spill] sm:$0xff] }
 0x3c3   : > { %v3305_v21 = vsel %vm3300_vm6, %v3288_v2, %v11176_v49  ;;  %v3401_v36 = vsel %vm3300_vm6, %v3385_v23, %v11177_v39  ;;  %v11192_v13 = vunpack.i.h.bf16 %v11190_v15  ;;  %v11191_v58 = vunpack.i.l.bf16 %v11190_v15 }
 0x3c4   : > { %3610 = vmatmul.mubr.f32.gmra.mxu1 %v3305_v21  ;;  %3755 = vmatmul.mubr.f32.gmra.mxu0 %v3401_v36  ;;  %v3354_v19 = vsel %vm3300_vm6, %v3338_v35, %v11161_v11  ;;  %v3450_v12 = vsel %vm3300_vm6, %v3434_v55, %v11162_v53  ;;  %v11047_v29 = vunpack.i.h.bf16 %v18329_v60  ;;  %v11046_v8 = vunpack.i.l.bf16 %v18329_v60  ;;  %v18331_v53 = vld [vmem:[#allocation97_spill] sm:$0xff] }
 0x3c5   : > { %v14094_v17 = vpop.permute.xlu0 %11204  ;;  %3614 = vmatprep.mubr.f32.mxu1 %v3354_v19  ;;  %3759 = vmatprep.mubr.f32.mxu0 %v3450_v12  ;;  %v3289_v1 = vsel %vm821_vm0, %v13786_v5, %v11016_v56  ;;  %v3386_v31 = vsel %vm821_vm0, %v13790_v54, %v11017_v0  ;;  %v3339_v43 = vsel %vm821_vm0, %v13843_v6, %v11041_v52  ;;  %v11037_v26 = vunpack.i.h.bf16 %v18330_v34 }
 0x3c6   : > { %v3435_v41 = vsel %vm821_vm0, %v13851_v46, %v11042_v32  ;;  %v3340_v37 = vsel %vm821_vm0, %v13798_v24, %v11031_v48  ;;  %v3436_v4 = vsel %vm821_vm0, %v13802_v28, %v11032_v47  ;;  %v11036_v35 = vunpack.i.l.bf16 %v18330_v34  ;;  %v11195_v6 = vpop.permute.xlu1 %11194  ;;  %v18336_v34 = vld [vmem:[#allocation101_spill] sm:$0xff] }
 0x3c7   : > { %v3306_v5 = vsel %vm3300_vm6, %v3289_v1, %v11166_v25  ;;  %v3402_v54 = vsel %vm3300_vm6, %v3386_v31, %v11167_v57  ;;  %v11182_v55 = vunpack.i.h.bf16 %v11180_v22  ;;  %v11181_v3 = vunpack.i.l.bf16 %v11180_v22  ;;  %v18334_v22 = vld [vmem:[#allocation18_spill] sm:$0xff] }
 0x3c8   : > { %3615 = vmatmul.mubr.f32.gmra.mxu1 %v3306_v5  ;;  %3760 = vmatmul.mubr.f32.gmra.mxu0 %v3402_v54  ;;  %v3355_v46 = vsel %vm3300_vm6, %v3339_v43, %v11191_v58  ;;  %v3451_v24 = vsel %vm3300_vm6, %v3435_v41, %v11192_v13  ;;  %v11197_v0 = vunpack.i.h.bf16 %v11195_v6  ;;  %v11196_v56 = vunpack.i.l.bf16 %v11195_v6  ;;  %v18335_v41 = vld [vmem:[#allocation100_spill] sm:$0xff] }
 0x3c9   : > { %v11210_v28 = vpop.permute.xlu0 %11209  ;;  %3619 = vmatprep.mubr.f32.mxu1 %v3355_v46  ;;  %3764 = vmatprep.mubr.f32.mxu0 %v3451_v24  ;;  %v3290_v16 = vsel %vm821_vm0, %v13816_v51, %v11046_v8  ;;  %v3387_v30 = vsel %vm821_vm0, %v13820_v45, %v11047_v29  ;;  %v11062_v11 = vunpack.i.h.bf16 %v18331_v53  ;;  %v11061_v14 = vunpack.i.l.bf16 %v18331_v53 }
 0x3ca   : > { %v11052_v59 = vunpack.i.h.bf16 %v18332_v33  ;;  %v11051_v39 = vunpack.i.l.bf16 %v18332_v33  ;;  %v11187_v49 = vunpack.i.h.bf16 %v14058_v38  ;;  %v11186_v15 = vunpack.i.l.bf16 %v14058_v38  ;;  %v11200_v32 = vpop.permute.xlu1 %11199  ;;  %v18340_v33 = vld [vmem:[#allocation116_spill] sm:$0xff] }
 0x3cb   : > { %v3307_v2 = vsel %vm3300_vm6, %v3290_v16, %v11196_v56  ;;  %v3403_v23 = vsel %vm3300_vm6, %v3387_v30, %v11197_v0  ;;  %v11212_v51 = vunpack.i.h.bf16 %v11210_v28  ;;  %v11211_v63 = vunpack.i.l.bf16 %v11210_v28  ;;  %v18337_v0 = vld [vmem:[#allocation102_spill] sm:$0xff] }
 0x3cc   : > { %3620 = vmatmul.mubr.f32.gmra.mxu1 %v3307_v2  ;;  %3765 = vmatmul.mubr.f32.gmra.mxu0 %v3403_v23  ;;  %v3356_v45 = vsel %vm3300_vm6, %v3340_v37, %v11181_v3  ;;  %v3452_v52 = vsel %vm3300_vm6, %v3436_v4, %v11182_v55  ;;  %v11067_v47 = vunpack.i.h.bf16 %v18333_v10  ;;  %v11066_v48 = vunpack.i.l.bf16 %v18333_v10  ;;  %v18338_v30 = vld [vmem:[#allocation106_spill] sm:$0xff]  ;;  %v18343_v23 = vld [vmem:[#allocation20_spill] sm:$0xff] }
 0x3cd   : > { %v14130_v57 = vpop.permute.xlu0 %11224  ;;  %3624 = vmatprep.mubr.f32.mxu1 %v3356_v45  ;;  %3769 = vmatprep.mubr.f32.mxu0 %v3452_v52  ;;  %v3291_v38 = vsel %vm821_vm0, %v13824_v50, %v11036_v35  ;;  %v3388_v25 = vsel %vm821_vm0, %v13828_v27, %v11037_v26  ;;  %v3341_v21 = vsel %vm821_vm0, %v13896_v9, %v11061_v14  ;;  %v11057_v19 = vunpack.i.h.bf16 %v18334_v22 }
 0x3ce   : > { %v3437_v36 = vsel %vm821_vm0, %v13900_v40, %v11062_v11  ;;  %v3342_v13 = vsel %vm821_vm0, %v13832_v42, %v11051_v39  ;;  %v3438_v58 = vsel %vm821_vm0, %v13836_v61, %v11052_v59  ;;  %v11056_v12 = vunpack.i.l.bf16 %v18334_v22  ;;  %v11215_v9 = vpop.permute.xlu1 %11214  ;;  %v18339_v11 = vld [vmem:[#allocation23_spill] sm:$0xff]  ;;  %v18341_v39 = vld [vmem:[#allocation108_spill] sm:$0xff] }
 0x3cf   : > { %v3308_v50 = vsel %vm3300_vm6, %v3291_v38, %v11186_v15  ;;  %v3404_v27 = vsel %vm3300_vm6, %v3388_v25, %v11187_v49  ;;  %v11202_v60 = vunpack.i.h.bf16 %v11200_v32  ;;  %v11201_v29 = vunpack.i.l.bf16 %v11200_v32  ;;  %v18342_v15 = vld [vmem:[#allocation109_spill] sm:$0xff] }
 0x3d0   : > { %3625 = vmatmul.mubr.f32.gmra.mxu1 %v3308_v50  ;;  %3770 = vmatmul.mubr.f32.gmra.mxu0 %v3404_v27  ;;  %v3357_v40 = vsel %vm3300_vm6, %v3341_v21, %v11211_v63  ;;  %v3453_v42 = vsel %vm3300_vm6, %v3437_v36, %v11212_v51  ;;  %v11217_v8 = vunpack.i.h.bf16 %v11215_v9  ;;  %v11216_v1 = vunpack.i.l.bf16 %v11215_v9  ;;  %v18344_v36 = vld [vmem:[#allocation110_spill] sm:$0xff]  ;;  %v18347_v27 = vld [vmem:[#allocation104_spill] sm:$0xff] }
 0x3d1   : > { %v11230_v61 = vpop.permute.xlu0 %11229  ;;  %3629 = vmatprep.mubr.f32.mxu1 %v3357_v40  ;;  %3774 = vmatprep.mubr.f32.mxu0 %v3453_v42  ;;  %v3292_v31 = vsel %vm821_vm0, %v13855_v44, %v11066_v48  ;;  %v3389_v43 = vsel %vm821_vm0, %v13870_v7, %v11067_v47  ;;  %v11082_v37 = vunpack.i.h.bf16 %v18335_v41  ;;  %v11081_v4 = vunpack.i.l.bf16 %v18335_v41 }
 0x3d2   : > { %v11072_v26 = vunpack.i.h.bf16 %v18336_v34  ;;  %v11071_v35 = vunpack.i.l.bf16 %v18336_v34  ;;  %v11207_v5 = vunpack.i.h.bf16 %v14094_v17  ;;  %v11206_v54 = vunpack.i.l.bf16 %v14094_v17  ;;  %v11220_v46 = vpop.permute.xlu1 %11219 }
 0x3d3   : > { %v3309_v55 = vsel %vm3300_vm6, %v3292_v31, %v11216_v1  ;;  %v3405_v3 = vsel %vm3300_vm6, %v3389_v43, %v11217_v8  ;;  %v11232_v44 = vunpack.i.h.bf16 %v11230_v61  ;;  %v11231_v6 = vunpack.i.l.bf16 %v11230_v61 }
 0x3d4   : > { %3630 = vmatmul.mubr.f32.gmra.mxu1 %v3309_v55  ;;  %3775 = vmatmul.mubr.f32.gmra.mxu0 %v3405_v3  ;;  %v3358_v7 = vsel %vm3300_vm6, %v3342_v13, %v11201_v29  ;;  %v3454_v24 = vsel %vm3300_vm6, %v3438_v58, %v11202_v60  ;;  %v11087_v56 = vunpack.i.h.bf16 %v18337_v0  ;;  %v11086_v28 = vunpack.i.l.bf16 %v18337_v0  ;;  %v18345_v58 = vld [vmem:[#allocation111_spill] sm:$0xff]  ;;  %v18352_v3 = vld [vmem:[#allocation105_spill] sm:$0xff] }
 0x3d5   : > { %v14166_v16 = vpop.permute.xlu0 %11244  ;;  %3634 = vmatprep.mubr.f32.mxu1 %v3358_v7  ;;  %3779 = vmatprep.mubr.f32.mxu0 %v3454_v24  ;;  %v3293_v17 = vsel %vm821_vm0, %v13874_v18, %v11056_v12  ;;  %v3390_v53 = vsel %vm821_vm0, %v18338_v30, %v11057_v19  ;;  %v3343_v14 = vsel %vm821_vm0, %v18339_v11, %v11081_v4  ;;  %v11077_v51 = vunpack.i.h.bf16 %v18343_v23  ;;  %v18346_v19 = vld [vmem:[#allocation103_spill] sm:$0xff]  ;;  %v18353_v7 = vld [vmem:[#allocation121_spill] sm:$0xff] }
 0x3d6   : > { %v3439_v59 = vsel %vm821_vm0, %v18340_v33, %v11082_v37  ;;  %v3344_v49 = vsel %vm821_vm0, %v18341_v39, %v11071_v35  ;;  %v3440_v2 = vsel %vm821_vm0, %v18342_v15, %v11072_v26  ;;  %v11076_v63 = vunpack.i.l.bf16 %v18343_v23  ;;  %v11235_v10 = vpop.permute.xlu1 %11234  ;;  %v18349_v26 = vld [vmem:[#allocation113_spill] sm:$0xff] }
 0x3d7   : > { %v3310_v18 = vsel %vm3300_vm6, %v3293_v17, %v11206_v54  ;;  %v3406_v32 = vsel %vm3300_vm6, %v3390_v53, %v11207_v5  ;;  %v11222_v45 = vunpack.i.h.bf16 %v11220_v46  ;;  %v11221_v52 = vunpack.i.l.bf16 %v11220_v46  ;;  %v18351_v54 = vld [vmem:[#allocation74_spill] sm:$0xff]  ;;  %v18355_v17 = vld [vmem:[#allocation115_spill] sm:$0xff] }
 0x3d8   : > { %3635 = vmatmul.mubr.f32.gmra.mxu1 %v3310_v18  ;;  %3780 = vmatmul.mubr.f32.gmra.mxu0 %v3406_v32  ;;  %v3359_v47 = vsel %vm3300_vm6, %v3343_v14, %v11231_v6  ;;  %v3455_v48 = vsel %vm3300_vm6, %v3439_v59, %v11232_v44  ;;  %v11237_v38 = vunpack.i.h.bf16 %v11235_v10  ;;  %v11236_v25 = vunpack.i.l.bf16 %v11235_v10  ;;  %v18356_v59 = vld [vmem:[#allocation21_spill] sm:$0xff]  ;;  %v18358_v32 = vld [vmem:[#allocation63_spill] sm:$0xff] }
 0x3d9   : > { %v11250_v21 = vpop.permute.xlu0 %11249  ;;  %3639 = vmatprep.mubr.f32.mxu1 %v3359_v47  ;;  %3784 = vmatprep.mubr.f32.mxu0 %v3455_v48  ;;  %v3294_v13 = vsel %vm821_vm0, %v18344_v36, %v11086_v28  ;;  %v3391_v22 = vsel %vm821_vm0, %v18345_v58, %v11087_v56  ;;  %v11102_v12 = vunpack.i.h.bf16 %v18346_v19  ;;  %v11101_v50 = vunpack.i.l.bf16 %v18346_v19  ;;  %v18354_v28 = vld [vmem:[#allocation114_spill] sm:$0xff] }
 0x3da   : > { %v11092_v60 = vunpack.i.h.bf16 %v18347_v27  ;;  %v11091_v29 = vunpack.i.l.bf16 %v18347_v27  ;;  %v11227_v9 = vunpack.i.h.bf16 %v14130_v57  ;;  %v11226_v40 = vunpack.i.l.bf16 %v14130_v57  ;;  %v11240_v31 = vpop.permute.xlu1 %11239  ;;  %v18348_v57 = vld [vmem:[#allocation112_spill] sm:$0xff] }
 0x3db   : > { %v3311_v42 = vsel %vm3300_vm6, %v3294_v13, %v11236_v25  ;;  %v3407_v8 = vsel %vm3300_vm6, %v3391_v22, %v11237_v38  ;;  %v11252_v1 = vunpack.i.h.bf16 %v11250_v21  ;;  %v11251_v61 = vunpack.i.l.bf16 %v11250_v21 }
 0x3dc   : > { %3640 = vmatmul.mubr.f32.gmra.mxu1 %v3311_v42  ;;  %3785 = vmatmul.mubr.f32.gmra.mxu0 %v3407_v8  ;;  %v3360_v43 = vsel %vm3300_vm6, %v3344_v49, %v11221_v52  ;;  %v3456_v41 = vsel %vm3300_vm6, %v3440_v2, %v11222_v45  ;;  %v10962_v37 = vunpack.i.h.bf16 %v18312_v20  ;;  %v3295_v34 = vsel %vm821_vm0, %v18348_v57, %v11076_v63  ;;  %v18359_v52 = vld [vmem:[#allocation66_spill] sm:$0xff] }
 0x3dd   : > { %v14201_v4 = vpop.permute.xlu0 %11254  ;;  %3644 = vmatprep.mubr.f32.mxu1 %v3360_v43  ;;  %3789 = vmatprep.mubr.f32.mxu0 %v3456_v41  ;;  %v3392_v35 = vsel %vm821_vm0, %v18349_v26, %v11077_v51  ;;  %v18350_v5 = vunpack.i.l.bf16 %v18312_v20  ;;  %v11107_v44 = vunpack.i.h.bf16 %v18352_v3  ;;  %v11106_v6 = vunpack.i.l.bf16 %v18352_v3  ;;  %v18357_v51 = vld [vmem:[#allocation107_spill] sm:$0xff] }
 0x3de   : > { %v3345_v46 = vsel %vm821_vm0, %v13981_v62, %v11101_v50  ;;  %v3441_v24 = vsel %vm821_vm0, %v18353_v7, %v11102_v12  ;;  %v3312_v0 = vsel %vm3300_vm6, %v3295_v34, %v11226_v40  ;;  %v3408_v56 = vsel %vm3300_vm6, %v3392_v35, %v11227_v9  ;;  %v11260_v14 = vpop.permute.xlu1 %11259  ;;  %v18360_v12 = vld [vmem:[#allocation69_spill] sm:$0xff]  ;;  %v18363_v9 = vld [vmem:[#allocation19_spill] sm:$0xff] }
 0x3df   : > { %v3331_v55 = vsel %vm1410_vm5, %v18351_v54, %v18350_v5  ;;  %v3346_v20 = vsel %vm821_vm0, %v18354_v28, %v11091_v29  ;;  %v3442_v30 = vsel %vm821_vm0, %v18355_v17, %v11092_v60  ;;  %v11242_v53 = vunpack.i.h.bf16 %v11240_v31  ;;  %v18362_v60 = vld [vmem:[#allocation129_spill] sm:$0xff]  ;;  %v18364_v5 = vld [vmem:[#allocation92_spill] sm:$0xff] }
 0x3e0   : > { %v11241_v11 = vunpack.i.l.bf16 %v11240_v31  ;;  %3645 = vmatmul.mubr.f32.gmra.mxu1 %v3312_v0  ;;  %3790 = vmatmul.mubr.f32.gmra.mxu0 %v3408_v56  ;;  %v3361_v62 = vsel %vm3300_vm6, %v3345_v46, %v11251_v61  ;;  %v3457_v33 = vsel %vm3300_vm6, %v3441_v24, %v11252_v1  ;;  %v11097_v39 = vunpack.i.h.bf16 %v18356_v59  ;;  %v18365_v46 = vld [vmem:[#allocation64_spill] sm:$0xff] }
 0x3e1   : > { %v11096_v49 = vunpack.i.l.bf16 %v18356_v59  ;;  %v11262_v15 = vunpack.i.h.bf16 %v11260_v14  ;;  %v11261_v2 = vunpack.i.l.bf16 %v11260_v14  ;;  %v11270_v23 = vpop.permute.xlu0 %11269  ;;  %3649 = vmatprep.mubr.f32.mxu1 %v3361_v62  ;;  %3794 = vmatprep.mubr.f32.mxu0 %v3457_v33  ;;  %v11112_v63 = vunpack.i.h.bf16 %v18357_v51  ;;  %v18366_v24 = vld [vmem:[#allocation68_spill] sm:$0xff] }
 0x3e2   : > { %v11111_v18 = vunpack.i.l.bf16 %v18357_v51  ;;  %v3296_v45 = vsel %vm821_vm0, %v18358_v32, %v11106_v6  ;;  %v3393_v10 = vsel %vm821_vm0, %v18359_v52, %v11107_v44  ;;  %v11247_v47 = vunpack.i.h.bf16 %v14166_v16  ;;  %v11265_v13 = vpop.permute.xlu1 %11264  ;;  %v3917_v52 = vld [vmem:[%s17538_s5 + $0x30] sm:$0xff] }
 0x3e3   : > { %v11246_v48 = vunpack.i.l.bf16 %v14166_v16  ;;  %v3313_v38 = vsel %vm3300_vm6, %v3296_v45, %v11261_v2  ;;  %v3409_v25 = vsel %vm3300_vm6, %v3393_v10, %v11262_v15  ;;  %v11272_v21 = vunpack.i.h.bf16 %v11270_v23  ;;  %v18361_v16 = vld [vmem:[#allocation70_spill] sm:$0xff]  ;;  %v18370_v15 = vld [vmem:[#allocation132_spill] sm:$0xff]  ;;  %v3918_v45 = vld [vmem:[%s17538_s5 + $0x38] sm:$0xff] }
 0x3e4   : > { %v11271_v36 = vunpack.i.l.bf16 %v11270_v23  ;;  %3650 = vmatmul.mubr.f32.gmra.mxu1 %v3313_v38  ;;  %3795 = vmatmul.mubr.f32.gmra.mxu0 %v3409_v25  ;;  %v3362_v58 = vsel %vm3300_vm6, %v3346_v20, %v11241_v11  ;;  %v3458_v22 = vsel %vm3300_vm6, %v3442_v30, %v11242_v53  ;;  %v3297_v50 = vsel %vm821_vm0, %v18360_v12, %v11096_v49  ;;  %v18367_v20 = vld [vmem:[#allocation24_spill] sm:$0xff]  ;;  %v18368_v30 = vld [vmem:[#allocation117_spill] sm:$0xff]  ;;  %v3916_v10 = vld [vmem:[%s17538_s5 + $0x28] sm:$0xff] }
 0x3e5   : > { %v11275_v19 = vpop.permute.xlu0 %11274  ;;  %3654 = vmatprep.mubr.f32.mxu1 %v3362_v58  ;;  %3799 = vmatprep.mubr.f32.mxu0 %v3458_v22  ;;  %v3394_v27 = vsel %vm821_vm0, %v18361_v16, %v11097_v39  ;;  %v3427_v29 = vsel %vm1410_vm5, %v18362_v60, %v10962_v37  ;;  %v11117_v40 = vunpack.i.h.bf16 %v18363_v9  ;;  %v11116_v42 = vunpack.i.l.bf16 %v18363_v9  ;;  %v18369_v39 = vld [vmem:[#allocation75_spill] sm:$0xff]  ;;  %v3914_v16 = vld [vmem:[%s17538_s5 + $0x18] sm:$0xff] }
 0x3e6   : > { %v3347_v8 = vsel %vm821_vm0, %v3331_v55, %v11111_v18  ;;  %v3443_v1 = vsel %vm821_vm0, %v3427_v29, %v11112_v63  ;;  %v11257_v61 = vunpack.i.h.bf16 %v14201_v4  ;;  %v11256_v31 = vunpack.i.l.bf16 %v14201_v4  ;;  %v11280_v26 = vpop.permute.xlu1 %11279  ;;  %10533 = vmatprep.subr.mxu1 %v3918_v45 }
 0x3e7   : > { %v3314_v43 = vsel %vm3300_vm6, %v3297_v50, %v11246_v48  ;;  %v3410_v41 = vsel %vm3300_vm6, %v3394_v27, %v11247_v47  ;;  %v11277_v57 = vunpack.i.h.bf16 %v11275_v19  ;;  %v11276_v34 = vunpack.i.l.bf16 %v11275_v19  ;;  %10534 = vmatpush3.msra.mxu1 %v3918_v45  ;;  %v3915_v47 = vld [vmem:[%s17538_s5 + $0x20] sm:$0xff] }
 0x3e8   : > { %3655 = vmatmul.mubr.f32.gmra.mxu1 %v3314_v43  ;;  %3800 = vmatmul.mubr.f32.gmra.mxu0 %v3410_v41  ;;  %v3363_v37 = vsel %vm3300_vm6, %v3347_v8, %v11271_v36  ;;  %v3459_v35 = vsel %vm3300_vm6, %v3443_v1, %v11272_v21  ;;  %v10957_v54 = vunpack.i.h.bf16 %v18364_v5  ;;  %v10956_v55 = vunpack.i.l.bf16 %v18364_v5 }
 0x3e9   : > { %v11282_v3 = vunpack.i.h.bf16 %v11280_v26  ;;  %v11281_v44 = vunpack.i.l.bf16 %v11280_v26  ;;  %3659 = vmatprep.mubr.f32.mxu1 %v3363_v37  ;;  %3804 = vmatprep.mubr.f32.mxu0 %v3459_v35  ;;  %v11267_v4 = vunpack.i.h.bf16 %v11265_v13  ;;  %v11266_v6 = vunpack.i.l.bf16 %v11265_v13  ;;  %v3913_v35 = vld [vmem:[%s17538_s5 + $0x10] sm:$0xff] }
 0x3ea   : > { %v3298_v7 = vsel %vm821_vm0, %v18365_v46, %v11116_v42  ;;  %v3395_v0 = vsel %vm821_vm0, %v18366_v24, %v11117_v40  ;;  %v3348_v17 = vsel %vm821_vm0, %v18367_v20, %v11256_v31  ;;  %v3444_v53 = vsel %vm821_vm0, %v18368_v30, %v11257_v61  ;;  %v11285_v11 = vpop.permute.xlu1 %11284  ;;  %10535 = vmatprep.subr.mxu1 %v3917_v52 }
 0x3eb   : > { %v3315_v56 = vsel %vm3300_vm6, %v3298_v7, %v11281_v44  ;;  %v3411_v28 = vsel %vm3300_vm6, %v3395_v0, %v11282_v3  ;;  %v3364_v14 = vsel %vm3300_vm6, %v3348_v17, %v11276_v34  ;;  %v3460_v62 = vsel %vm3300_vm6, %v3444_v53, %v11277_v57  ;;  %10536 = vmatpush3.msra.mxu1 %v3917_v52 }
 0x3ec   : > { %3660 = vmatmul.mubr.f32.gmra.mxu1 %v3315_v56  ;;  %3805 = vmatmul.mubr.f32.gmra.mxu0 %v3411_v28  ;;  %v11287_v33 = vunpack.i.h.bf16 %v11285_v11  ;;  %v11286_v59 = vunpack.i.l.bf16 %v11285_v11  ;;  %v3283_v49 = vsel %vm1410_vm5, %v18369_v39, %v10956_v55  ;;  %v3380_v2 = vsel %vm1410_vm5, %v18370_v15, %v10957_v54  ;;  %v3912_v15 = vld [vmem:[%s17538_s5 + $0x8] sm:$0xff] }
 0x3ed   : > { %3664 = vmatprep.mubr.f32.mxu1 %v3364_v14  ;;  %3809 = vmatprep.mubr.f32.mxu0 %v3460_v62  ;;  %v3299_v23 = vsel %vm821_vm0, %v3283_v49, %v11266_v6  ;;  %v3396_v51 = vsel %vm821_vm0, %v3380_v2, %v11267_v4  ;;  %v18371_v32 = vmov 0.0  }
 0x3ee   : > { %v3316_v63 = vsel %vm3300_vm6, %v3299_v23, %v11286_v59  ;;  %v3412_v18 = vsel %vm3300_vm6, %v3396_v51, %v11287_v33  ;;  %10537 = vmatprep.subr.mxu1 %v3916_v10 }
 0x3ef   : > { %10538 = vmatpush3.msra.mxu1 %v3916_v10 }
 0x3f0   : > { %3665 = vmatmul.mubr.f32.gmra.mxu1 %v3316_v63  ;;  %3810 = vmatmul.mubr.f32.gmra.mxu0 %v3412_v18 }
 0x3f1   : > { %4288 = vmatprep.mubr.f32.mxu0 %v18371_v32  ;;  %10539 = vmatprep.subr.mxu1 %v3915_v47 }
 0x3f2   : > { %10540 = vmatpush3.msra.mxu1 %v3915_v47 }
 0x3f3   : > { %10541 = vmatprep.subr.mxu1 %v3914_v16 }
 0x3f4   : > { %10542 = vmatpush3.msra.mxu1 %v3914_v16 }
 0x3f5   : > { %10543 = vmatprep.subr.mxu1 %v3913_v35 }
 0x3f6   : > { %10544 = vmatpush3.msra.mxu1 %v3913_v35 }
 0x3f7   : > { %10545 = vmatprep.subr.mxu1 %v3912_v15 }
 0x3f8   : > { %10546 = vmatpush3.msra.mxu1 %v3912_v15 }
 0x474   : > { %v10031_v48 = vpop.f32.mrf.mxu1  ;;  %v10111_v38 = vpop.f32.mrf.mxu0 }
 0x476   : > { %v10032_v25 = vpop.f32.mrf.mxu1  ;;  %v10112_v21 = vpop.f32.mrf.mxu0 }
 0x477   : > { %v10033_v36 = vadd.f32 %v10032_v25, %v10031_v48  ;;  %v10113_v13 = vadd.f32 %v10112_v21, %v10111_v38 }
 0x478   : > { %v10034_v58 = vpop.f32.mrf.mxu1  ;;  %v10114_v22 = vpop.f32.mrf.mxu0 }
 0x479   : > { %v14290_v19 = vadd.f32 %v10113_v13, %v10033_v36 }
 0x47a   : > { %v10035_v12 = vpop.f32.mrf.mxu1  ;;  %v10115_v50 = vpop.f32.mrf.mxu0 }
 0x47b   : > { %v10036_v27 = vadd.f32 %v10035_v12, %v10034_v58  ;;  %v10116_v60 = vadd.f32 %v10115_v50, %v10114_v22  ;;  %v3815_v29 = vsel %vm821_vm0, %v14290_v19, -inf  ;;  %v3911_v22 = vld [vmem:[%s17538_s5] sm:$0xff] }
 0x47c   : > { %3816 = vmax.xlane.f32.xlu0 %v3815_v29  ;;  %v10037_v9 = vpop.f32.mrf.mxu1  ;;  %v10117_v40 = vpop.f32.mrf.mxu0  ;;  %10547 = vmatprep.subr.mxu1 %v3911_v22 }
 0x47d   : > { %v14297_v42 = vadd.f32 %v10116_v60, %v10036_v27  ;;  %10548 = vmatpush3.msra.mxu1 %v3911_v22 }
 0x47e   : > { %v10038_v8 = vpop.f32.mrf.mxu1  ;;  %v10118_v1 = vpop.f32.mrf.mxu0 }
 0x47f   : > { %v10039_v61 = vadd.f32 %v10038_v8, %v10037_v9  ;;  %v10119_v31 = vadd.f32 %v10118_v1, %v10117_v40  ;;  %v3818_v43 = vsel %vm821_vm0, %v14297_v42, -inf }
 0x480   : > { %v10040_v41 = vpop.f32.mrf.mxu1  ;;  %v10120_v57 = vpop.f32.mrf.mxu0  ;;  %3819 = vmax.xlane.f32.xlu1 %v3818_v43 }
 0x481   : > { %v14301_v34 = vadd.f32 %v10119_v31, %v10039_v61 }
 0x482   : > { %v10041_v26 = vpop.f32.mrf.mxu1  ;;  %v10121_v37 = vpop.f32.mrf.mxu0 }
 0x483   : > { %v10042_v5 = vadd.f32 %v10041_v26, %v10040_v41  ;;  %v10122_v54 = vadd.f32 %v10121_v37, %v10120_v57  ;;  %v3821_v55 = vsel %vm821_vm0, %v14301_v34, -inf }
 0x484   : > { %v10043_v3 = vpop.f32.mrf.mxu1  ;;  %v10123_v44 = vpop.f32.mrf.mxu0  ;;  %3822 = vmax.xlane.f32.xlu0 %v3821_v55 }
 0x485   : > { %v14308_v4 = vadd.f32 %v10122_v54, %v10042_v5 }
 0x486   : > { %v10044_v6 = vpop.f32.mrf.mxu1  ;;  %v10124_v46 = vpop.f32.mrf.mxu0 }
 0x487   : > { %v10045_v7 = vadd.f32 %v10044_v6, %v10043_v3  ;;  %v10125_v24 = vadd.f32 %v10124_v46, %v10123_v44  ;;  %v3824_v0 = vsel %vm821_vm0, %v14308_v4, -inf }
 0x488   : > { %v10046_v56 = vpop.f32.mrf.mxu1  ;;  %v10126_v28 = vpop.f32.mrf.mxu0  ;;  %3825 = vmax.xlane.f32.xlu0 %v3824_v0 }
 0x489   : > { %v14312_v20 = vadd.f32 %v10125_v24, %v10045_v7 }
 0x48a   : > { %v10047_v17 = vpop.f32.mrf.mxu1  ;;  %v10127_v30 = vpop.f32.mrf.mxu0 }
 0x48b   : > { %v10048_v53 = vadd.f32 %v10047_v17, %v10046_v56  ;;  %v10128_v11 = vadd.f32 %v10127_v30, %v10126_v28  ;;  %v3827_v14 = vsel %vm821_vm0, %v14312_v20, -inf }
 0x48c   : > { %v10049_v62 = vpop.f32.mrf.mxu1  ;;  %v10129_v33 = vpop.f32.mrf.mxu0  ;;  %3828 = vmax.xlane.f32.xlu1 %v3827_v14 }
 0x48d   : > { %v14316_v59 = vadd.f32 %v10128_v11, %v10048_v53 }
 0x48e   : > { %v10050_v39 = vpop.f32.mrf.mxu1  ;;  %v10130_v49 = vpop.f32.mrf.mxu0 }
 0x48f   : > { %v10051_v2 = vadd.f32 %v10050_v39, %v10049_v62  ;;  %v10131_v23 = vadd.f32 %v10130_v49, %v10129_v33  ;;  %v3830_v51 = vsel %vm821_vm0, %v14316_v59, -inf }
 0x490   : > { %v10052_v63 = vpop.f32.mrf.mxu1  ;;  %v10132_v18 = vpop.f32.mrf.mxu0  ;;  %3831 = vmax.xlane.f32.xlu0 %v3830_v51 }
 0x491   : > { %v14323_v45 = vadd.f32 %v10131_v23, %v10051_v2 }
 0x492   : > { %v10053_v52 = vpop.f32.mrf.mxu1  ;;  %v10133_v10 = vpop.f32.mrf.mxu0 }
 0x493   : > { %v10054_v47 = vadd.f32 %v10053_v52, %v10052_v63  ;;  %v10134_v48 = vadd.f32 %v10133_v10, %v10132_v18  ;;  %v3833_v38 = vsel %vm821_vm0, %v14323_v45, -inf }
 0x494   : > { %v10055_v25 = vpop.f32.mrf.mxu1  ;;  %v10135_v21 = vpop.f32.mrf.mxu0  ;;  %3834 = vmax.xlane.f32.xlu1 %v3833_v38 }
 0x495   : > { %v14327_v36 = vadd.f32 %v10134_v48, %v10054_v47 }
 0x496   : > { %v10056_v13 = vpop.f32.mrf.mxu1  ;;  %v10136_v58 = vpop.f32.mrf.mxu0 }
 0x497   : > { %v10057_v12 = vadd.f32 %v10056_v13, %v10055_v25  ;;  %v10137_v50 = vadd.f32 %v10136_v58, %v10135_v21  ;;  %v3836_v16 = vsel %vm821_vm0, %v14327_v36, -inf }
 0x498   : > { %v10058_v27 = vpop.f32.mrf.mxu1  ;;  %v10138_v60 = vpop.f32.mrf.mxu0  ;;  %3837 = vmax.xlane.f32.xlu0 %v3836_v16 }
 0x499   : > { %v14334_v29 = vadd.f32 %v10137_v50, %v10057_v12 }
 0x49a   : > { %v10059_v9 = vpop.f32.mrf.mxu1  ;;  %v10139_v40 = vpop.f32.mrf.mxu0 }
 0x49b   : > { %v10060_v8 = vadd.f32 %v10059_v9, %v10058_v27  ;;  %v10140_v1 = vadd.f32 %v10139_v40, %v10138_v60  ;;  %v3839_v61 = vsel %vm821_vm0, %v14334_v29, -inf  ;;  %v18372_v40 = vld [vmem:[#allocation45_spill] sm:$0xff] }
 0x49c   : > { %v10061_v31 = vpop.f32.mrf.mxu1  ;;  %v10141_v43 = vpop.f32.mrf.mxu0  ;;  %3840 = vmax.xlane.f32.xlu1 %v3839_v61  ;;  %v18375_v61 = vld [vmem:[#allocation44_spill] sm:$0xff] }
 0x49d   : > { %v14338_v41 = vadd.f32 %v10140_v1, %v10060_v8  ;;  %v18373_v8 = vld [vmem:[#allocation47_spill] sm:$0xff]  ;;  %v18374_v1 = vld [vmem:[#allocation46_spill] sm:$0xff] }
 0x49e   : > { %v10062_v57 = vpop.f32.mrf.mxu1  ;;  %v10142_v26 = vpop.f32.mrf.mxu0 }
 0x49f   : > { %v10063_v37 = vadd.f32 %v10062_v57, %v10061_v31  ;;  %v10143_v35 = vadd.f32 %v10142_v26, %v10141_v43  ;;  %v3842_v5 = vsel %vm821_vm0, %v14338_v41, -inf  ;;  %v18376_v31 = vld [vmem:[#allocation48_spill] sm:$0xff]  ;;  %v18377_v43 = vld [vmem:[#allocation49_spill] sm:$0xff]  ;;  %v18378_v57 = vld [vmem:[#allocation50_spill] sm:$0xff] }
 0x4a0   : > { %v10064_v54 = vpop.f32.mrf.mxu1  ;;  %v10144_v55 = vpop.f32.mrf.mxu0  ;;  %3843 = vmax.xlane.f32.xlu0 %v3842_v5  ;;  %v18379_v26 = vld [vmem:[#allocation51_spill] sm:$0xff]  ;;  %v18382_v5 = vld [vmem:[#allocation54_spill] sm:$0xff] }
 0x4a1   : > { %v14342_v3 = vadd.f32 %v10143_v35, %v10063_v37  ;;  %v18380_v37 = vld [vmem:[#allocation52_spill] sm:$0xff]  ;;  %v18381_v35 = vld [vmem:[#allocation53_spill] sm:$0xff] }
 0x4a2   : > { %v10065_v44 = vpop.f32.mrf.mxu1  ;;  %v10145_v6 = vpop.f32.mrf.mxu0 }
 0x4a3   : > { %v10066_v46 = vadd.f32 %v10065_v44, %v10064_v54  ;;  %v10146_v7 = vadd.f32 %v10145_v6, %v10144_v55  ;;  %v3845_v24 = vsel %vm821_vm0, %v14342_v3, -inf  ;;  %v18383_v54 = vld [vmem:[#allocation57_spill] sm:$0xff]  ;;  %v18384_v55 = vld [vmem:[#allocation60_spill] sm:$0xff] }
 0x4a4   : > { %v10067_v0 = vpop.f32.mrf.mxu1  ;;  %v10147_v56 = vpop.f32.mrf.mxu0  ;;  %3846 = vmax.xlane.f32.xlu1 %v3845_v24  ;;  %v18385_v44 = vld [vmem:[#allocation61_spill] sm:$0xff]  ;;  %v18389_v24 = vld [vmem:[#allocation3_spill] sm:$0xff] }
 0x4a5   : > { %v14346_v28 = vadd.f32 %v10146_v7, %v10066_v46  ;;  %v18386_v6 = vld [vmem:[#allocation65_spill] sm:$0xff]  ;;  %v18387_v46 = vld [vmem:[#allocation62_spill] sm:$0xff] }
 0x4a6   : > { %v10068_v17 = vpop.f32.mrf.mxu1  ;;  %v10148_v30 = vpop.f32.mrf.mxu0  ;;  %v18388_v7 = vld [vmem:[#allocation2_spill] sm:$0xff] }
 0x4a7   : > { %v10069_v53 = vadd.f32 %v10068_v17, %v10067_v0  ;;  %v10149_v11 = vadd.f32 %v10148_v30, %v10147_v56  ;;  %v3848_v14 = vsel %vm821_vm0, %v14346_v28, -inf  ;;  %v18390_v0 = vld [vmem:[#allocation5_spill] sm:$0xff]  ;;  %v18391_v56 = vld [vmem:[#allocation4_spill] sm:$0xff]  ;;  %v18392_v17 = vld [vmem:[#allocation7_spill] sm:$0xff] }
 0x4a8   : > { %v10070_v62 = vpop.f32.mrf.mxu1  ;;  %v10150_v33 = vpop.f32.mrf.mxu0  ;;  %3849 = vmax.xlane.f32.xlu0 %v3848_v14  ;;  %v18393_v30 = vld [vmem:[#allocation6_spill] sm:$0xff] }
 0x4a9   : > { %v14350_v39 = vadd.f32 %v10149_v11, %v10069_v53  ;;  %v18394_v53 = vld [vmem:[#allocation9_spill] sm:$0xff]  ;;  %v18395_v11 = vld [vmem:[#allocation8_spill] sm:$0xff] }
 0x4aa   : > { %v10071_v49 = vpop.f32.mrf.mxu1  ;;  %v10151_v15 = vpop.f32.mrf.mxu0 }
 0x4ab   : > { %v10072_v2 = vadd.f32 %v10071_v49, %v10070_v62  ;;  %v10152_v23 = vadd.f32 %v10151_v15, %v10150_v33  ;;  %v3851_v51 = vsel %vm821_vm0, %v14350_v39, -inf  ;;  %v18396_v33 = vld [vmem:[#allocation11_spill] sm:$0xff] }
 0x4ac   : > { %v10073_v63 = vpop.f32.mrf.mxu1  ;;  %v10153_v18 = vpop.f32.mrf.mxu0  ;;  %3852 = vmax.xlane.f32.xlu1 %v3851_v51 }
 0x4ad   : > { %v14354_v52 = vadd.f32 %v10152_v23, %v10072_v2  ;;  %v18397_v23 = vld [vmem:[#allocation10_spill] sm:$0xff] }
 0x4ae   : > { %v10074_v10 = vpop.f32.mrf.mxu1  ;;  %v10154_v47 = vpop.f32.mrf.mxu0 }
 0x4af   : > { %v10075_v48 = vadd.f32 %v10074_v10, %v10073_v63  ;;  %v10155_v38 = vadd.f32 %v10154_v47, %v10153_v18  ;;  %v3854_v25 = vsel %vm821_vm0, %v14354_v52, -inf  ;;  %v18398_v10 = vld [vmem:[#allocation13_spill] sm:$0xff] }
 0x4b0   : > { %v10076_v21 = vpop.f32.mrf.mxu1  ;;  %v10156_v13 = vpop.f32.mrf.mxu0  ;;  %3855 = vmax.xlane.f32.xlu0 %v3854_v25 }
 0x4b1   : > { %v14358_v58 = vadd.f32 %v10155_v38, %v10075_v48  ;;  %v18399_v38 = vld [vmem:[#allocation12_spill] sm:$0xff] }
 0x4b2   : > { %v10077_v22 = vpop.f32.mrf.mxu1  ;;  %v10157_v12 = vpop.f32.mrf.mxu0 }
 0x4b3   : > { %v10078_v50 = vadd.f32 %v10077_v22, %v10076_v21  ;;  %v10158_v16 = vadd.f32 %v10157_v12, %v10156_v13  ;;  %v3857_v27 = vsel %vm821_vm0, %v14358_v58, -inf  ;;  %v18400_v13 = vld [vmem:[#allocation15_spill] sm:$0xff] }
 0x4b4   : > { %3858 = vmax.xlane.f32.xlu1 %v3857_v27  ;;  %v18401_v27 = vld [vmem:[#allocation14_spill] sm:$0xff] }
 0x4b5   : > { %v14362_v60 = vadd.f32 %v10158_v16, %v10078_v50  ;;  %v4172_v50 = vld [vmem:[%s17539_s6 + $0xe0] sm:$0xff] }
 0x4b7   : > { %v3860_v9 = vsel %vm821_vm0, %v14362_v60, -inf }
 0x4b8   : > { %3861 = vmax.xlane.f32.xlu0 %v3860_v9  ;;  %v4168_v9 = vld [vmem:[%s17539_s6 + $0xc0] sm:$0xff] }
 0x4c5   : > { %4802 = vrot.lane.b32.xlu1 %v18372_v40, %s11748_s19 }
 0x4c9   : > { %4806 = vrot.lane.b32.xlu1 %v18373_v8, %s11748_s19  ;;  %v4165_v8 = vld [vmem:[%s17539_s6 + $0xa8] sm:$0xff] }
 0x4cd   : > { %4808 = vrot.lane.b32.xlu1 %v18374_v1, %s11748_s19 }
 0x4ce   : > { %4804 = vrot.lane.b32.xlu0 %v18375_v61, %s11748_s19 }
 0x4d1   : > { %4812 = vrot.lane.b32.xlu1 %v18376_v31, %s11748_s19  ;;  %v4161_v31 = vld [vmem:[%s17539_s6 + $0x88] sm:$0xff] }
 0x4d2   : > { %4810 = vrot.lane.b32.xlu0 %v18377_v43, %s11748_s19 }
 0x4d5   : > { %4816 = vrot.lane.b32.xlu1 %v18378_v57, %s11748_s19  ;;  %v18402_v57 = vld [vmem:[#allocation17_spill] sm:$0xff] }
 0x4d6   : > { %4814 = vrot.lane.b32.xlu0 %v18379_v26, %s11748_s19  ;;  %v4160_v26 = vld [vmem:[%s17539_s6 + $0x80] sm:$0xff] }
 0x4d9   : > { %4820 = vrot.lane.b32.xlu1 %v18380_v37, %s11748_s19 }
 0x4da   : > { %4818 = vrot.lane.b32.xlu0 %v18381_v35, %s11748_s19  ;;  %v4157_v35 = vld [vmem:[%s17539_s6 + $0x68] sm:$0xff] }
 0x4dd   : > { %4824 = vrot.lane.b32.xlu1 %v18382_v5, %s11748_s19 }
 0x4de   : > { %4822 = vrot.lane.b32.xlu0 %v18383_v54, %s11748_s19 }
 0x4e1   : > { %4828 = vrot.lane.b32.xlu1 %v18384_v55, %s11748_s19  ;;  %v4153_v55 = vld [vmem:[%s17539_s6 + $0x48] sm:$0xff] }
 0x4e2   : > { %4826 = vrot.lane.b32.xlu0 %v18385_v44, %s11748_s19 }
 0x4e5   : > { %4832 = vrot.lane.b32.xlu1 %v18386_v6, %s11748_s19  ;;  %v18403_v6 = vld [vmem:[#allocation16_spill] sm:$0xff] }
 0x4e6   : > { %4830 = vrot.lane.b32.xlu0 %v18387_v46, %s11748_s19  ;;  %v4152_v46 = vld [vmem:[%s17539_s6 + $0x40] sm:$0xff] }
 0x4e9   : > { %4548 = vrot.lane.b32.xlu1 %v18388_v7, %s11749_s20 }
 0x4ea   : > { %4546 = vrot.lane.b32.xlu0 %v18389_v24, %s11749_s20 }
 0x4ee   : > { %4550 = vrot.lane.b32.xlu0 %v18390_v0, %s11749_s20 }
 0x4f2   : > { %4552 = vrot.lane.b32.xlu0 %v18391_v56, %s11749_s20 }
 0x4f6   : > { %4554 = vrot.lane.b32.xlu0 %v18392_v17, %s11749_s20 }
 0x4fa   : > { %4556 = vrot.lane.b32.xlu0 %v18393_v30, %s11749_s20 }
 0x4fe   : > { %4558 = vrot.lane.b32.xlu0 %v18394_v53, %s11749_s20 }
 0x502   : > { %4560 = vrot.lane.b32.xlu0 %v18395_v11, %s11749_s20 }
 0x505   : > { %v3817_v14 = vpop.xlane.xlu0 %3816 }
 0x506   : > { %v3863_v62 = vsub.f32 %v14290_v19, %v3817_v14  ;;  %4562 = vrot.lane.b32.xlu0 %v18396_v33, %s11749_s20 }
 0x508   : > { %v3879_v49 = vmul.f32 1.442695, %v3863_v62 }
 0x509   : > { %v3820_v15 = vpop.xlane.xlu1 %3819 }
 0x50a   : > { %11288 = vpow2.f32 %v3879_v49  ;;  %v3864_v2 = vsub.f32 %v14297_v42, %v3820_v15  ;;  %4564 = vrot.lane.b32.xlu0 %v18397_v23, %s11749_s20 }
 0x50c   : > { %v3881_v51 = vmul.f32 1.442695, %v3864_v2 }
 0x50d   : > { %v3823_v63 = vpop.xlane.xlu0 %3822 }
 0x50e   : > { %11290 = vpow2.f32 %v3881_v51  ;;  %v3865_v18 = vsub.f32 %v14301_v34, %v3823_v63  ;;  %4566 = vrot.lane.b32.xlu0 %v18398_v10, %s11749_s20 }
 0x510   : > { %v3883_v19 = vmul.f32 1.442695, %v3865_v18 }
 0x511   : > { %v3826_v47 = vpop.xlane.xlu0 %3825 }
 0x512   : > { %11292 = vpow2.f32 %v3883_v19  ;;  %v3866_v48 = vsub.f32 %v14308_v4, %v3826_v47  ;;  %4568 = vrot.lane.b32.xlu0 %v18399_v38, %s11749_s20  ;;  %v4173_v4 = vld [vmem:[%s17539_s6 + $0xe8] sm:$0xff] }
 0x513   : > { %4240 = vmatprep.subr.mxu0 %v4173_v4  ;;  %v4175_v4 = vld [vmem:[%s17539_s6 + $0xf8] sm:$0xff] }
 0x514   : > { %v3885_v42 = vmul.f32 1.442695, %v3866_v48  ;;  %4241 = vmatpush1.msra.mxu0 %v4172_v50  ;;  %10777 = vmatprep.subr.mxu1 %v4175_v4  ;;  %v4174_v50 = vld [vmem:[%s17539_s6 + $0xf0] sm:$0xff] }
 0x515   : > { %v3829_v25 = vpop.xlane.xlu1 %3828 }
 0x516   : > { %11294 = vpow2.f32 %v3885_v42  ;;  %v3867_v21 = vsub.f32 %v14312_v20, %v3829_v25  ;;  %4570 = vrot.lane.b32.xlu0 %v18400_v13, %s11749_s20  ;;  %v4169_v20 = vld [vmem:[%s17539_s6 + $0xc8] sm:$0xff] }
 0x517   : > { %v14429_v34 = vpop.eup %11288  ;;  %4242 = vmatprep.subr.mxu0 %v4169_v20  ;;  %v4171_v20 = vld [vmem:[%s17539_s6 + $0xd8] sm:$0xff] }
 0x518   : > { %v3887_v22 = vmul.f32 1.442695, %v3867_v21  ;;  %10549 = vmatprep.mubr.msk.f32.mxu1 %vm821_vm0, %v14429_v34  ;;  %4243 = vmatpush1.msra.mxu0 %v4168_v9  ;;  %v4166_v9 = vld [vmem:[%s17539_s6 + $0xb0] sm:$0xff] }
 0x519   : > { %v3832_v12 = vpop.xlane.xlu0 %3831  ;;  %4244 = vmatprep.subr.mxu0 %v4165_v8  ;;  %v4149_v8 = vld [vmem:[%s17539_s6 + $0x28] sm:$0xff] }
 0x51a   : > { %11296 = vpow2.f32 %v3887_v22  ;;  %v3868_v16 = vsub.f32 %v14316_v59, %v3832_v12  ;;  %4572 = vrot.lane.b32.xlu0 %v18401_v27, %s11749_s20  ;;  %v4164_v59 = vld [vmem:[%s17539_s6 + $0xa0] sm:$0xff]  ;;  %v4167_v27 = vld [vmem:[%s17539_s6 + $0xb8] sm:$0xff] }
 0x51b   : > { %v14448_v40 = vpop.eup %11290  ;;  %4245 = vmatpush1.msra.mxu0 %v4164_v59  ;;  %v4148_v59 = vld [vmem:[%s17539_s6 + $0x20] sm:$0xff] }
 0x51c   : > { %v3889_v1 = vmul.f32 1.442695, %v3868_v16  ;;  %10550 = vmatmul.mubr.msk.f32.vlgmr.msra.gmra.mxu1 %vm821_vm0, %v14448_v40  ;;  %4246 = vmatprep.subr.mxu0 %v4161_v31  ;;  %v4170_v16 = vld [vmem:[%s17539_s6 + $0xd0] sm:$0xff]  ;;  %v4145_v31 = vld [vmem:[%s17539_s6 + $0x8] sm:$0xff] }
 0x51d   : > { %v3835_v61 = vpop.xlane.xlu1 %3834  ;;  %4247 = vmatpush1.msra.mxu0 %v4160_v26  ;;  %10785 = vmatpush1.msra.mxu1 %v4174_v50  ;;  %v4158_v26 = vld [vmem:[%s17539_s6 + $0x70] sm:$0xff] }
 0x51e   : > { %11298 = vpow2.f32 %v3889_v1  ;;  %v3869_v43 = vsub.f32 %v14323_v45, %v3835_v61  ;;  %4574 = vrot.lane.b32.xlu0 %v18402_v57, %s11749_s20  ;;  %v4156_v45 = vld [vmem:[%s17539_s6 + $0x60] sm:$0xff]  ;;  %4248 = vmatprep.subr.mxu0 %v4157_v35  ;;  %v4163_v1 = vld [vmem:[%s17539_s6 + $0x98] sm:$0xff]  ;;  %v4162_v61 = vld [vmem:[%s17539_s6 + $0x90] sm:$0xff] }
 0x51f   : > { %v14467_v37 = vpop.eup %11292  ;;  %4249 = vmatpush1.msra.mxu0 %v4156_v45  ;;  %10778 = vmatprep.subr.mxu1 %v4171_v20  ;;  %v4144_v57 = vld [vmem:[%s17539_s6] sm:$0xff]  ;;  %v4155_v35 = vld [vmem:[%s17539_s6 + $0x58] sm:$0xff] }
 0x520   : > { %v3891_v5 = vmul.f32 1.442695, %v3869_v43  ;;  %10552 = vmatprep.mubr.msk.f32.mxu1 %vm821_vm0, %v14467_v37  ;;  %4250 = vmatprep.subr.mxu0 %v4153_v55  ;;  %v4159_v43 = vld [vmem:[%s17539_s6 + $0x78] sm:$0xff] }
 0x521   : > { %v3838_v54 = vpop.xlane.xlu0 %3837  ;;  %4251 = vmatpush1.msra.mxu0 %v4152_v46  ;;  %10786 = vmatpush1.msra.mxu1 %v4170_v16  ;;  %v4151_v45 = vld [vmem:[%s17539_s6 + $0x38] sm:$0xff] }
 0x522   : > { %11300 = vpow2.f32 %v3891_v5  ;;  %v3870_v44 = vsub.f32 %v14327_v36, %v3838_v54  ;;  %4576 = vrot.lane.b32.xlu0 %v18403_v6, %s11749_s20  ;;  %10779 = vmatprep.subr.mxu1 %v4167_v27  ;;  %v4154_v5 = vld [vmem:[%s17539_s6 + $0x50] sm:$0xff]  ;;  %v4147_v55 = vld [vmem:[%s17539_s6 + $0x18] sm:$0xff] }
 0x523   : > { %v14486_v7 = vpop.eup %11294  ;;  %10787 = vmatpush1.msra.mxu1 %v4166_v9  ;;  %4252 = vmatprep.subr.mxu0 %v4149_v8  ;;  %v4150_v54 = vld [vmem:[%s17539_s6 + $0x30] sm:$0xff] }
 0x524   : > { %v3893_v24 = vmul.f32 1.442695, %v3870_v44  ;;  %10553 = vmatmul.mubr.msk.f32.gmra.mxu1 %vm821_vm0, %v14486_v7  ;;  %10780 = vmatprep.subr.mxu1 %v4163_v1  ;;  %v4146_v44 = vld [vmem:[%s17539_s6 + $0x10] sm:$0xff] }
 0x525   : > { %v3841_v0 = vpop.xlane.xlu1 %3840  ;;  %4253 = vmatpush1.msra.mxu0 %v4148_v59  ;;  %10788 = vmatpush1.msra.mxu1 %v4162_v61 }
 0x526   : > { %11302 = vpow2.f32 %v3893_v24  ;;  %v3871_v36 = vsub.f32 %v14334_v29, %v3841_v0  ;;  %4254 = vmatprep.subr.mxu0 %v4145_v31  ;;  %10781 = vmatprep.subr.mxu1 %v4159_v43 }
 0x527   : > { %v14491_v56 = vpop.eup %11296  ;;  %4255 = vmatpush1.msra.mxu0 %v4144_v57  ;;  %10789 = vmatpush1.msra.mxu1 %v4158_v26 }
 0x528   : > { %v3895_v17 = vmul.f32 1.442695, %v3871_v36  ;;  %10555 = vmatprep.mubr.msk.f32.mxu1 %vm821_vm0, %v14491_v56  ;;  %10782 = vmatprep.subr.mxu1 %v4155_v35 }
 0x529   : > { %v3844_v30 = vpop.xlane.xlu0 %3843  ;;  %4401 = vmatprep.subr.mxu0 %v4175_v4  ;;  %10790 = vmatpush1.msra.mxu1 %v4154_v5 }
 0x52a   : > { %11304 = vpow2.f32 %v3895_v17  ;;  %v3872_v53 = vsub.f32 %v14338_v41, %v3844_v30  ;;  %10783 = vmatprep.subr.mxu1 %v4151_v45 }
 0x52b   : > { %v14496_v11 = vpop.eup %11298  ;;  %10791 = vmatpush1.msra.mxu1 %v4150_v54 }
 0x52c   : > { %v3897_v14 = vmul.f32 1.442695, %v3872_v53  ;;  %10556 = vmatmul.mubr.msk.f32.gmra.mxu1 %vm821_vm0, %v14496_v11  ;;  %10784 = vmatprep.subr.mxu1 %v4147_v55 }
 0x52d   : > { %v3847_v62 = vpop.xlane.xlu1 %3846  ;;  %10792 = vmatpush1.msra.mxu1 %v4146_v44 }
 0x52e   : > { %11306 = vpow2.f32 %v3897_v14  ;;  %v3873_v29 = vsub.f32 %v14342_v3, %v3847_v62 }
 0x52f   : > { %v14501_v33 = vpop.eup %11300 }
 0x530   : > { %v3899_v49 = vmul.f32 1.442695, %v3873_v29  ;;  %10558 = vmatprep.mubr.msk.f32.mxu1 %vm821_vm0, %v14501_v33 }
 0x531   : > { %v3850_v15 = vpop.xlane.xlu0 %3849 }
 0x532   : > { %11308 = vpow2.f32 %v3899_v49  ;;  %v3874_v41 = vsub.f32 %v14346_v28, %v3850_v15 }
 0x533   : > { %v14506_v2 = vpop.eup %11302 }
 0x534   : > { %v3901_v23 = vmul.f32 1.442695, %v3874_v41  ;;  %10559 = vmatmul.mubr.msk.f32.gmra.mxu1 %vm821_vm0, %v14506_v2 }
 0x535   : > { %v3853_v51 = vpop.xlane.xlu1 %3852 }
 0x536   : > { %11310 = vpow2.f32 %v3901_v23  ;;  %v3875_v3 = vsub.f32 %v14350_v39, %v3853_v51 }
 0x537   : > { %v14511_v63 = vpop.eup %11304 }
 0x538   : > { %v3903_v18 = vmul.f32 1.442695, %v3875_v3  ;;  %10561 = vmatprep.mubr.msk.f32.mxu1 %vm821_vm0, %v14511_v63 }
 0x539   : > { %v3856_v10 = vpop.xlane.xlu0 %3855 }
 0x53a   : > { %11312 = vpow2.f32 %v3903_v18  ;;  %v3876_v28 = vsub.f32 %v14354_v52, %v3856_v10 }
 0x53b   : > { %v14516_v19 = vpop.eup %11306 }
 0x53c   : > { %v3905_v47 = vmul.f32 1.442695, %v3876_v28  ;;  %10562 = vmatmul.mubr.msk.f32.gmra.mxu1 %vm821_vm0, %v14516_v19 }
 0x53d   : > { %v3859_v48 = vpop.xlane.xlu1 %3858 }
 0x53e   : > { %11314 = vpow2.f32 %v3905_v47  ;;  %v3877_v39 = vsub.f32 %v14358_v58, %v3859_v48 }
 0x53f   : > { %v14521_v38 = vpop.eup %11308 }
 0x540   : > { %v3907_v42 = vmul.f32 1.442695, %v3877_v39  ;;  %10564 = vmatprep.mubr.msk.f32.mxu1 %vm821_vm0, %v14521_v38 }
 0x541   : > { %v3862_v25 = vpop.xlane.xlu0 %3861 }
 0x542   : > { %11316 = vpow2.f32 %v3907_v42  ;;  %v3878_v52 = vsub.f32 %v14362_v60, %v3862_v25 }
 0x543   : > { %v14526_v21 = vpop.eup %11310 }
 0x544   : > { %v3909_v13 = vmul.f32 1.442695, %v3878_v52  ;;  %10565 = vmatmul.mubr.msk.f32.gmra.mxu1 %vm821_vm0, %v14526_v21 }
 0x546   : > { %11318 = vpow2.f32 %v3909_v13 }
 0x547   : > { %v14530_v22 = vpop.eup %11312 }
 0x548   : > { %10567 = vmatprep.mubr.msk.f32.mxu1 %vm821_vm0, %v14530_v22 }
 0x54b   : > { %v14534_v58 = vpop.eup %11314 }
 0x54c   : > { %10568 = vmatmul.mubr.msk.f32.gmra.mxu1 %vm821_vm0, %v14534_v58 }
 0x54f   : > { %v14538_v12 = vpop.eup %11316 }
 0x550   : > { %10570 = vmatprep.mubr.msk.f32.mxu1 %vm821_vm0, %v14538_v12 }
 0x553   : > { %v14542_v60 = vpop.eup %11318 }
 0x554   : > { %10571 = vmatmul.mubr.msk.f32.gmra.mxu1 %vm821_vm0, %v14542_v60 }
 0x555   : > { %4467 = vmatprep.mubr.f32.mxu1 %v18371_v32 }
 0x5dc   : > { %v10551_v6 = vpop.f32.mrf.mxu1 }
 0x5de   : > { %v4033_v46 = vpop.f32.mrf.mxu1 }
 0x5df   : > { %11320 = vrcp.f32 %v4033_v46  ;;  %v18412_v46 = vld [vmem:[#allocation78_spill] sm:$0xff] }
 0x5e0   : > { %11322 = vrcp.f32 %v10551_v6  ;;  %v5861_v6 = vld [vmem:[%s17540_s7 + $0x18] sm:$0xff] }
 0x5e4   : > { %v10554_v24 = vpop.f32.mrf.mxu1 }
 0x5e5   : > { %11324 = vrcp.f32 %v10554_v24 }
 0x5e6   : > { %v4043_v0 = vpop.f32.mrf.mxu1 }
 0x5e7   : > { %11326 = vrcp.f32 %v4043_v0 }
 0x5ec   : > { %v11321_v36 = vpop.eup %11320  ;;  %v10557_v17 = vpop.f32.mrf.mxu1 }
 0x5ed   : > { %v14608_v30 = vmul.f32 %v11321_v36, %v14429_v34  ;;  %v11323_v53 = vpop.eup %11322 }
 0x5ee   : > { %v4053_v14 = vpop.f32.mrf.mxu1  ;;  %v14614_v62 = vmul.f32 %v11323_v53, %v14448_v40  ;;  %v5859_v53 = vld [vmem:[%s17540_s7 + $0x8] sm:$0xff] }
 0x5ef   : > { %11328 = vrcp.f32 %v4053_v14  ;;  %9696 = vmatmul.mubr.msk.f32.vlgmr.msra.gmra.mxu0 %vm821_vm0, %v14608_v30  ;;  %v18413_v14 = vld [vmem:[#allocation79_spill] sm:$0xff] }
 0x5f0   : > { %4294 = vmatprep.mubr.f32.mxu0 %v18371_v32  ;;  %4402 = vmatpush1.msra.mxu0 %v4174_v50  ;;  %11330 = vrcp.f32 %v10557_v17 }
 0x5f1   : > { %4403 = vmatprep.subr.mxu0 %v4171_v20 }
 0x5f2   : > { %v11325_v29 = vpop.eup %11324  ;;  %4404 = vmatpush1.msra.mxu0 %v4170_v16 }
 0x5f3   : > { %v4131_v49 = vmul.f32 %v11325_v29, %v14486_v7  ;;  %9697 = vmatmul.mubr.msk.f32.gmra.mxu0 %vm821_vm0, %v14614_v62  ;;  %4405 = vmatprep.subr.mxu0 %v4167_v27 }
 0x5f4   : > { %v11327_v34 = vpop.eup %11326  ;;  %v10560_v15 = vpop.f32.mrf.mxu1  ;;  %4300 = vmatprep.mubr.f32.mxu0 %v18371_v32  ;;  %4406 = vmatpush1.msra.mxu0 %v4166_v9 }
 0x5f5   : > { %9715 = vmatmul.mubr.msk.f32.vlgmr.msra.gmra.mxu1 %vm821_vm0, %v4131_v49  ;;  %v14622_v41 = vmul.f32 %v11327_v34, %v14467_v37  ;;  %4407 = vmatprep.subr.mxu0 %v4163_v1  ;;  %v5858_v34 = vld [vmem:[%s17540_s7] sm:$0xff] }
 0x5f6   : > { %v4063_v40 = vpop.f32.mrf.mxu1  ;;  %4473 = vmatprep.mubr.f32.mxu1 %v18371_v32  ;;  %4408 = vmatpush1.msra.mxu0 %v4162_v61  ;;  %v18406_v61 = vld [vmem:[#allocation77_spill] sm:$0xff] }
 0x5f7   : > { %11332 = vrcp.f32 %v4063_v40  ;;  %9698 = vmatmul.mubr.msk.f32.gmra.mxu0 %vm821_vm0, %v14622_v41  ;;  %4409 = vmatprep.subr.mxu0 %v4159_v43  ;;  %v18407_v43 = vld [vmem:[#allocation28_spill] sm:$0xff] }
 0x5f8   : > { %4306 = vmatprep.mubr.f32.mxu0 %v18371_v32  ;;  %4410 = vmatpush1.msra.mxu0 %v4158_v26  ;;  %11334 = vrcp.f32 %v10560_v15  ;;  %v18415_v40 = vld [vmem:[#allocation76_spill] sm:$0xff] }
 0x5f9   : > { %4411 = vmatprep.subr.mxu0 %v4155_v35  ;;  %v14715_v35 = vpop.permute.xlu1 %4802 }
 0x5fa   : > { %4412 = vmatpush1.msra.mxu0 %v4154_v5 }
 0x5fb   : > { %9699 = vmatmul.mubr.msk.f32.gmra.mxu0 %vm821_vm0, %v4131_v49  ;;  %4413 = vmatprep.subr.mxu0 %v4151_v45 }
 0x5fc   : > { %v11329_v37 = vpop.eup %11328  ;;  %v10563_v7 = vpop.f32.mrf.mxu1  ;;  %4312 = vmatprep.mubr.f32.mxu0 %v18371_v32  ;;  %4414 = vmatpush1.msra.mxu0 %v4150_v54 }
 0x5fd   : > { %v4132_v23 = vmul.f32 %v11329_v37, %v14491_v56  ;;  %4415 = vmatprep.subr.mxu0 %v4147_v55  ;;  %v11331_v51 = vpop.eup %11330 }
 0x5fe   : > { %v4073_v3 = vpop.f32.mrf.mxu1  ;;  %4416 = vmatpush1.msra.mxu0 %v4146_v44  ;;  %v4133_v18 = vmul.f32 %v11331_v51, %v14496_v11  ;;  %v18417_v51 = vld [vmem:[#allocation29_spill] sm:$0xff] }
 0x5ff   : > { %11336 = vrcp.f32 %v4073_v3  ;;  %9700 = vmatmul.mubr.msk.f32.gmra.mxu0 %vm821_vm0, %v4132_v23  ;;  %9716 = vmatmul.mubr.msk.f32.gmra.mxu1 %vm821_vm0, %v4132_v23 }
 0x600   : > { %4318 = vmatprep.mubr.f32.mxu0 %v18371_v32  ;;  %4479 = vmatprep.mubr.f32.mxu1 %v18371_v32  ;;  %11338 = vrcp.f32 %v10563_v7 }
 0x601   : > { %10573 = vmatprep.subr.mxu0 %v5861_v6 }
 0x603   : > { %9701 = vmatmul.mubr.msk.f32.gmra.mxu0 %vm821_vm0, %v4133_v18  ;;  %9717 = vmatmul.mubr.msk.f32.gmra.mxu1 %vm821_vm0, %v4133_v18 }
 0x604   : > { %v11333_v56 = vpop.eup %11332  ;;  %v10566_v10 = vpop.f32.mrf.mxu1  ;;  %4324 = vmatprep.mubr.f32.mxu0 %v18371_v32  ;;  %4485 = vmatprep.mubr.f32.mxu1 %v18371_v32 }
 0x605   : > { %v4134_v28 = vmul.f32 %v11333_v56, %v14501_v33  ;;  %v11335_v47 = vpop.eup %11334  ;;  %v18418_v56 = vld [vmem:[#allocation30_spill] sm:$0xff] }
 0x606   : > { %v4083_v48 = vpop.f32.mrf.mxu1  ;;  %v4135_v11 = vmul.f32 %v11335_v47, %v14506_v2 }
 0x607   : > { %11340 = vrcp.f32 %v4083_v48  ;;  %9702 = vmatmul.mubr.msk.f32.gmra.mxu0 %vm821_vm0, %v4134_v28  ;;  %9718 = vmatmul.mubr.msk.f32.gmra.mxu1 %vm821_vm0, %v4134_v28 }
 0x608   : > { %4330 = vmatprep.mubr.f32.mxu0 %v18371_v32  ;;  %4491 = vmatprep.mubr.f32.mxu1 %v18371_v32  ;;  %11342 = vrcp.f32 %v10566_v10 }
 0x60b   : > { %9703 = vmatmul.mubr.msk.f32.gmra.mxu0 %vm821_vm0, %v4135_v11  ;;  %9719 = vmatmul.mubr.msk.f32.gmra.mxu1 %vm821_vm0, %v4135_v11 }
 0x60c   : > { %v11337_v39 = vpop.eup %11336  ;;  %v10569_v33 = vpop.f32.mrf.mxu1  ;;  %4336 = vmatprep.mubr.f32.mxu0 %v18371_v32  ;;  %4497 = vmatprep.mubr.f32.mxu1 %v18371_v32 }
 0x60d   : > { %v4136_v42 = vmul.f32 %v11337_v39, %v14511_v63  ;;  %v11339_v25 = vpop.eup %11338 }
 0x60e   : > { %v4093_v52 = vpop.f32.mrf.mxu1  ;;  %v4137_v2 = vmul.f32 %v11339_v25, %v14516_v19 }
 0x60f   : > { %11344 = vrcp.f32 %v4093_v52  ;;  %9704 = vmatmul.mubr.msk.f32.gmra.mxu0 %vm821_vm0, %v4136_v42  ;;  %9720 = vmatmul.mubr.msk.f32.gmra.mxu1 %vm821_vm0, %v4136_v42 }
 0x610   : > { %4342 = vmatprep.mubr.f32.mxu0 %v18371_v32  ;;  %4503 = vmatprep.mubr.f32.mxu1 %v18371_v32  ;;  %11346 = vrcp.f32 %v10569_v33 }
 0x613   : > { %9705 = vmatmul.mubr.msk.f32.gmra.mxu0 %vm821_vm0, %v4137_v2  ;;  %9721 = vmatmul.mubr.msk.f32.gmra.mxu1 %vm821_vm0, %v4137_v2 }
 0x614   : > { %v11341_v13 = vpop.eup %11340  ;;  %v10572_v63 = vpop.f32.mrf.mxu1  ;;  %4348 = vmatprep.mubr.f32.mxu0 %v18371_v32  ;;  %4509 = vmatprep.mubr.f32.mxu1 %v18371_v32 }
 0x615   : > { %v4138_v4 = vmul.f32 %v11341_v13, %v14521_v38  ;;  %v11343_v50 = vpop.eup %11342  ;;  %v18422_v13 = vld [vmem:[#allocation81_spill] sm:$0xff] }
 0x616   : > { %v4103_v20 = vpop.f32.mrf.mxu1  ;;  %v4139_v19 = vmul.f32 %v11343_v50, %v14526_v21 }
 0x617   : > { %11348 = vrcp.f32 %v4103_v20  ;;  %9706 = vmatmul.mubr.msk.f32.gmra.mxu0 %vm821_vm0, %v4138_v4  ;;  %9722 = vmatmul.mubr.msk.f32.gmra.mxu1 %vm821_vm0, %v4138_v4  ;;  %v14811_v20 = vpop.permute.xlu1 %4806 }
 0x618   : > { %4354 = vmatprep.mubr.f32.mxu0 %v18371_v32  ;;  %4515 = vmatprep.mubr.f32.mxu1 %v18371_v32  ;;  %11350 = vrcp.f32 %v10572_v63  ;;  %18424 = vst [vmem:[#allocation133_spill] sm:$0xff] %v14811_v20 }
 0x61b   : > { %9707 = vmatmul.mubr.msk.f32.gmra.mxu0 %vm821_vm0, %v4139_v19  ;;  %9723 = vmatmul.mubr.msk.f32.gmra.mxu1 %vm821_vm0, %v4139_v19 }
 0x61c   : > { %v11345_v16 = vpop.eup %11344  ;;  %4360 = vmatprep.mubr.f32.mxu0 %v18371_v32  ;;  %4521 = vmatprep.mubr.f32.mxu1 %v18371_v32 }
 0x61d   : > { %v4140_v38 = vmul.f32 %v11345_v16, %v14530_v22  ;;  %v11347_v27 = vpop.eup %11346 }
 0x61e   : > { %v4141_v21 = vmul.f32 %v11347_v27, %v14534_v58 }
 0x61f   : > { %9708 = vmatmul.mubr.msk.f32.gmra.mxu0 %vm821_vm0, %v4140_v38  ;;  %9724 = vmatmul.mubr.msk.f32.gmra.mxu1 %vm821_vm0, %v4140_v38  ;;  %v18426_v38 = vld [vmem:[#allocation31_spill] sm:$0xff] }
 0x620   : > { %4366 = vmatprep.mubr.f32.mxu0 %v18371_v32  ;;  %4527 = vmatprep.mubr.f32.mxu1 %v18371_v32 }
 0x623   : > { %9709 = vmatmul.mubr.msk.f32.gmra.mxu0 %vm821_vm0, %v4141_v21  ;;  %9725 = vmatmul.mubr.msk.f32.gmra.mxu1 %vm821_vm0, %v4141_v21  ;;  %v4809_v21 = vpop.permute.xlu1 %4808 }
 0x624   : > { %v11349_v9 = vpop.eup %11348  ;;  %4372 = vmatprep.mubr.f32.mxu0 %v18371_v32  ;;  %4533 = vmatprep.mubr.f32.mxu1 %v18371_v32 }
 0x625   : > { %v4142_v22 = vmul.f32 %v11349_v9, %v14538_v12  ;;  %v11351_v8 = vpop.eup %11350  ;;  %v14697_v12 = vpop.permute.xlu0 %4804  ;;  %v18427_v9 = vld [vmem:[#allocation32_spill] sm:$0xff] }
 0x626   : > { %v4143_v58 = vmul.f32 %v11351_v8, %v14542_v60  ;;  %18404 = vst [vmem:[#allocation22_spill] sm:$0xff] %v14697_v12 }
 0x627   : > { %9710 = vmatmul.mubr.msk.f32.gmra.mxu0 %vm821_vm0, %v4142_v22  ;;  %9726 = vmatmul.mubr.msk.f32.gmra.mxu1 %vm821_vm0, %v4142_v22 }
 0x628   : > { %4378 = vmatprep.mubr.f32.mxu0 %v18371_v32  ;;  %4539 = vmatprep.mubr.f32.mxu1 %v18371_v32 }
 0x629   : > { %v14699_v60 = vpop.permute.xlu0 %4810 }
 0x62b   : > { %9711 = vmatmul.mubr.msk.f32.gmra.mxu0 %vm821_vm0, %v4143_v58  ;;  %9727 = vmatmul.mubr.msk.f32.gmra.mxu1 %vm821_vm0, %v4143_v58 }
 0x62c   : > { %4449 = vmatprep.mubr.f32.mxu0 %v18371_v32 }
 0x62d   : > { %v14701_v1 = vpop.permute.xlu0 %4814 }
 0x62e   : > { %18405 = vst [vmem:[#allocation93_spill] sm:$0xff] %v14701_v1 }
 0x62f   : > { %9712 = vmatmul.mubr.msk.f32.vlgmr.msra.gmra.mxu0 %vm821_vm0, %v14608_v30  ;;  %v5860_v30 = vld [vmem:[%s17540_s7 + $0x10] sm:$0xff] }
 0x630   : > { %4455 = vmatprep.mubr.f32.mxu0 %v18371_v32  ;;  %10574 = vmatpush3.msra.mxu0 %v5861_v6 }
 0x631   : > { %v14717_v5 = vpop.permute.xlu0 %4818  ;;  %10575 = vmatprep.subr.mxu0 %v5860_v30 }
 0x632   : > { %18409 = vst [vmem:[#allocation26_spill] sm:$0xff] %v14717_v5  ;;  %10576 = vmatpush3.msra.mxu0 %v5860_v30 }
 0x633   : > { %9713 = vmatmul.mubr.msk.f32.gmra.mxu0 %vm821_vm0, %v14614_v62  ;;  %10577 = vmatprep.subr.mxu0 %v5859_v53 }
 0x634   : > { %4461 = vmatprep.mubr.f32.mxu0 %v18371_v32  ;;  %10578 = vmatpush3.msra.mxu0 %v5859_v53 }
 0x635   : > { %v14738_v17 = vpop.permute.xlu0 %4822  ;;  %10579 = vmatprep.subr.mxu0 %v5858_v34 }
 0x636   : > { %10580 = vmatpush3.msra.mxu0 %v5858_v34 }
 0x637   : > { %9714 = vmatmul.mubr.msk.f32.gmra.mxu0 %vm821_vm0, %v14622_v41 }
 0x639   : > { %v14759_v15 = vpop.permute.xlu0 %4826 }
 0x63d   : > { %v14773_v18 = vpop.permute.xlu0 %4830 }
 0x641   : > { %v14785_v48 = vpop.permute.xlu0 %4546 }
 0x642   : > { %18419 = vst [vmem:[#allocation131_spill] sm:$0xff] %v14785_v48 }
 0x645   : > { %v14801_v2 = vpop.permute.xlu0 %4550 }
 0x646   : > { %18421 = vst [vmem:[#allocation128_spill] sm:$0xff] %v14801_v2 }
 0x649   : > { %v14815_v19 = vpop.permute.xlu0 %4552 }
 0x64a   : > { %18425 = vst [vmem:[#allocation119_spill] sm:$0xff] %v14815_v19 }
 0x6af   : > { %v14703_v59 = vpop.f32.mrf.mxu0 }
 0x6b0   : > { %v4610_v31 = vmul.f32 %v14703_v59, %v18406_v61  ;;  %v4706_v57 = vmul.f32 %v14703_v59, %v18407_v43  ;;  %v4850_v54 = vmul.f32 %v14715_v35, %v14703_v59 }
 0x6b1   : > { %v14709_v26 = vpop.f32.mrf.mxu0 }
 0x6b2   : > { %18408 = vst [vmem:[#allocation118_spill] sm:$0xff] %v14709_v26  ;;  %4738 = vrot.lane.b32.xlu1 %v4706_v57, %s11749_s20  ;;  %4642 = vrot.lane.b32.xlu0 %v4610_v31, %s11747_s28  ;;  %v5058_v45 = vmul.f32 %v14709_v26, %v18407_v43  ;;  %v4962_v0 = vmul.f32 %v14709_v26, %v18406_v61  ;;  %v14828_v31 = vpop.permute.xlu0 %4554 }
 0x6b3   : > { %v14713_v32 = vpop.f32.mrf.mxu0  ;;  %v5154_v29 = vmul.f32 %v14715_v35, %v14709_v26  ;;  %18429 = vst [vmem:[#allocation134_spill] sm:$0xff] %v14828_v31 }
 0x6b4   : > { %v4611_v37 = vmul.f32 %v14713_v32, %v18415_v40  ;;  %v4707_v3 = vmul.f32 %v14713_v32, %v18417_v51  ;;  %v4851_v28 = vmul.f32 %v14697_v12, %v14713_v32 }
 0x6b5   : > { %v14723_v55 = vpop.f32.mrf.mxu0  ;;  %v14725_v44 = vpop.f32.mrf.mxu1 }
 0x6b6   : > { %18410 = vst [vmem:[#allocation94_spill] sm:$0xff] %v14723_v55  ;;  %18411 = vst [vmem:[#allocation25_spill] sm:$0xff] %v14725_v44  ;;  %5090 = vrot.lane.b32.xlu0 %v5058_v45, %s11749_s20  ;;  %4882 = vrot.lane.b32.xlu1 %v4850_v54, %s11748_s19  ;;  %v5269_v24 = vmul.f32 %v14725_v44, %v18412_v46  ;;  %v4963_v39 = vmul.f32 %v14723_v55, %v18415_v40  ;;  %v14838_v54 = vpop.permute.xlu0 %4556 }
 0x6b7   : > { %v14736_v36 = vpop.f32.mrf.mxu0  ;;  %v14752_v49 = vpop.f32.mrf.mxu1  ;;  %v5059_v25 = vmul.f32 %v14723_v55, %v18417_v51  ;;  %v5155_v4 = vmul.f32 %v14697_v12, %v14723_v55  ;;  %v5365_v27 = vmul.f32 %v14725_v44, %v18426_v38  ;;  %v5461_v8 = vmul.f32 %v4809_v21, %v14725_v44  ;;  %18430 = vst [vmem:[#allocation27_spill] sm:$0xff] %v14838_v54 }
 0x6b8   : > { %v4612_v62 = vmul.f32 %v14736_v36, %v18413_v14  ;;  %18414 = vst [vmem:[#allocation73_spill] sm:$0xff] %v14752_v49  ;;  %v5573_v41 = vmul.f32 %v14752_v49, %v18412_v46  ;;  %v4708_v45 = vmul.f32 %v14736_v36, %v18418_v56  ;;  %v5669_v30 = vmul.f32 %v14752_v49, %v18426_v38 }
 0x6b9   : > { %v14765_v7 = vpop.f32.mrf.mxu0 }
 0x6ba   : > { %5304 = vrot.lane.b32.xlu0 %v5269_v24, %s11747_s28  ;;  %4994 = vrot.lane.b32.xlu1 %v4962_v0, %s11747_s28  ;;  %18416 = vst [vmem:[#allocation120_spill] sm:$0xff] %v14765_v7  ;;  %v4964_v23 = vmul.f32 %v14765_v7, %v18413_v14  ;;  %v5060_v10 = vmul.f32 %v14765_v7, %v18418_v56  ;;  %v14852_v53 = vpop.permute.xlu0 %4558 }
 0x6bb   : > { %v14781_v47 = vpop.f32.mrf.mxu0 }
 0x6bc   : > { %v4613_v11 = vmul.f32 %v14781_v47, %v18412_v46 }
 0x6bd   : > { %v14791_v33 = vpop.f32.mrf.mxu0 }
 0x6be   : > { %4646 = vrot.lane.b32.xlu0 %v4612_v62, %s11747_s28  ;;  %5186 = vrot.lane.b32.xlu1 %v5154_v29, %s11748_s19  ;;  %18420 = vst [vmem:[#allocation72_spill] sm:$0xff] %v14791_v33  ;;  %v4965_v42 = vmul.f32 %v14791_v33, %v18412_v46  ;;  %v4852_v46 = vmul.f32 %v14811_v20, %v14736_v36 }
 0x6bf   : > { %v14799_v52 = vpop.f32.mrf.mxu0  ;;  %v14809_v50 = vpop.f32.mrf.mxu1  ;;  %v5765_v29 = vmul.f32 %v4809_v21, %v14752_v49 }
 0x6c0   : > { %v4614_v63 = vmul.f32 %v14799_v52, %v18422_v13  ;;  %18423 = vst [vmem:[#allocation96_spill] sm:$0xff] %v14809_v50  ;;  %v5270_v16 = vmul.f32 %v14809_v50, %v18422_v13  ;;  %v5366_v22 = vmul.f32 %v14809_v50, %v18427_v9 }
 0x6c1   : > { %v14826_v58 = vpop.f32.mrf.mxu0  ;;  %v14844_v24 = vpop.f32.mrf.mxu1 }
 0x6c2   : > { %5608 = vrot.lane.b32.xlu0 %v5573_v41, %s11747_s28  ;;  %4644 = vrot.lane.b32.xlu1 %v4611_v37, %s11747_s28  ;;  %18428 = vst [vmem:[#allocation98_spill] sm:$0xff] %v14826_v58  ;;  %v4966_v57 = vmul.f32 %v14826_v58, %v18422_v13  ;;  %v5062_v6 = vmul.f32 %v14826_v58, %v18427_v9  ;;  %18431 = vst [vmem:[#allocation95_spill] sm:$0xff] %v14844_v24  ;;  %v14863_v41 = vpop.permute.xlu0 %4560  ;;  %v18432_v37 = vld [vmem:[#allocation80_spill] sm:$0xff] }
 0x6c3   : > { %v5574_v0 = vmul.f32 %v14844_v24, %v18422_v13  ;;  %v5670_v62 = vmul.f32 %v14844_v24, %v18427_v9  ;;  %v14859_v34 = vpop.f32.mrf.mxu0  ;;  %v4853_v13 = vmul.f32 %v4809_v21, %v14781_v47 }
 0x6c6   : > { %4998 = vrot.lane.b32.xlu0 %v4964_v23, %s11747_s28  ;;  %4740 = vrot.lane.b32.xlu1 %v4707_v3, %s11749_s20  ;;  %v4615_v23 = vmul.f32 %v14859_v34, %v18432_v37  ;;  %v5156_v3 = vmul.f32 %v14811_v20, %v14765_v7 }
 0x6ca   : > { %5094 = vrot.lane.b32.xlu0 %v5060_v10, %s11749_s20  ;;  %4884 = vrot.lane.b32.xlu1 %v4851_v28, %s11748_s19  ;;  %v14869_v10 = vpop.f32.mrf.mxu1 }
 0x6cb   : > { %18433 = vst [vmem:[#allocation122_spill] sm:$0xff] %v14869_v10  ;;  %v5271_v28 = vmul.f32 %v14869_v10, %v18432_v37 }
 0x6ce   : > { %4648 = vrot.lane.b32.xlu0 %v4613_v11, %s11747_s28  ;;  %4996 = vrot.lane.b32.xlu1 %v4963_v39, %s11747_s28  ;;  %v4709_v11 = vmul.f32 %v14781_v47, %v18426_v38  ;;  %v14877_v39 = vpop.f32.mrf.mxu0 }
 0x6cf   : > { %18434 = vst [vmem:[#allocation123_spill] sm:$0xff] %v14877_v39 }
 0x6d2   : > { %5000 = vrot.lane.b32.xlu0 %v4965_v42, %s11747_s28  ;;  %5092 = vrot.lane.b32.xlu1 %v5059_v25, %s11749_s20  ;;  %v14879_v42 = vpop.permute.xlu0 %4562  ;;  %v4967_v25 = vmul.f32 %v14877_v39, %v18432_v37 }
 0x6d3   : > { %18435 = vst [vmem:[#allocation124_spill] sm:$0xff] %v14879_v42 }
 0x6d6   : > { %4650 = vrot.lane.b32.xlu0 %v4614_v63, %s11747_s28  ;;  %5188 = vrot.lane.b32.xlu1 %v5155_v4, %s11748_s19  ;;  %v14886_v63 = vpop.f32.mrf.mxu1  ;;  %v14890_v4 = vpop.permute.xlu1 %4812 }
 0x6d7   : > { %18436 = vst [vmem:[#allocation135_spill] sm:$0xff] %v14886_v63  ;;  %v5463_v55 = vmul.f32 %v14890_v4, %v14869_v10 }
 0x6da   : > { %5306 = vrot.lane.b32.xlu0 %v5270_v16, %s11747_s28  ;;  %5400 = vrot.lane.b32.xlu1 %v5365_v27, %s11749_s20  ;;  %v14892_v16 = vpop.permute.xlu0 %4564  ;;  %v5575_v27 = vmul.f32 %v14886_v63, %v18432_v37  ;;  %v18443_v37 = vld [vmem:[#allocation34_spill] sm:$0xff] }
 0x6de   : > { %5402 = vrot.lane.b32.xlu0 %v5366_v22, %s11749_s20  ;;  %5496 = vrot.lane.b32.xlu1 %v5461_v8, %s11748_s19  ;;  %v5061_v22 = vmul.f32 %v14791_v33, %v18426_v38  ;;  %v14898_v8 = vpop.f32.mrf.mxu0 }
 0x6e2   : > { %5002 = vrot.lane.b32.xlu0 %v4966_v57, %s11747_s28  ;;  %4742 = vrot.lane.b32.xlu1 %v4708_v45, %s11749_s20  ;;  %v18437_v57 = vld [vmem:[#allocation83_spill] sm:$0xff] }
 0x6e3   : > { %v4616_v45 = vmul.f32 %v14898_v8, %v18437_v57 }
 0x6e6   : > { %5098 = vrot.lane.b32.xlu0 %v5062_v6, %s11749_s20  ;;  %4886 = vrot.lane.b32.xlu1 %v4852_v46, %s11748_s19  ;;  %v5157_v6 = vmul.f32 %v4809_v21, %v14791_v33  ;;  %v14905_v46 = vpop.f32.mrf.mxu1 }
 0x6e7   : > { %18438 = vst [vmem:[#allocation125_spill] sm:$0xff] %v14905_v46  ;;  %v5272_v38 = vmul.f32 %v14905_v46, %v18437_v57 }
 0x6ea   : > { %5610 = vrot.lane.b32.xlu0 %v5574_v0, %s11747_s28  ;;  %5704 = vrot.lane.b32.xlu1 %v5669_v30, %s11749_s20  ;;  %v14907_v0 = vpop.permute.xlu1 %4816  ;;  %v14909_v30 = vpop.permute.xlu0 %4566 }
 0x6eb   : > { %18439 = vst [vmem:[#allocation126_spill] sm:$0xff] %v14907_v0  ;;  %18440 = vst [vmem:[#allocation127_spill] sm:$0xff] %v14909_v30 }
 0x6ee   : > { %5706 = vrot.lane.b32.xlu0 %v5670_v62, %s11749_s20  ;;  %5800 = vrot.lane.b32.xlu1 %v5765_v29, %s11748_s19  ;;  %v4710_v62 = vmul.f32 %v14799_v52, %v18427_v9  ;;  %v14919_v21 = vpop.permute.xlu1 %4820  ;;  %v14921_v29 = vpop.permute.xlu0 %4568 }
 0x6ef   : > { %18441 = vst [vmem:[#allocation55_spill] sm:$0xff] %v14919_v21  ;;  %18442 = vst [vmem:[#allocation56_spill] sm:$0xff] %v14921_v29 }
 0x6f2   : > { %4652 = vrot.lane.b32.xlu0 %v4615_v23, %s11747_s28  ;;  %5190 = vrot.lane.b32.xlu1 %v5156_v3, %s11748_s19  ;;  %v5368_v23 = vmul.f32 %v14905_v46, %v18443_v37  ;;  %v4854_v3 = vmul.f32 %v14699_v60, %v14799_v52 }
 0x6f6   : > { %5308 = vrot.lane.b32.xlu0 %v5271_v28, %s11747_s28  ;;  %4744 = vrot.lane.b32.xlu1 %v4709_v11, %s11749_s20  ;;  %v14927_v28 = vpop.f32.mrf.mxu0  ;;  %v5462_v11 = vmul.f32 %v14699_v60, %v14809_v50 }
 0x6f7   : > { %18444 = vst [vmem:[#allocation58_spill] sm:$0xff] %v14927_v28  ;;  %v4968_v9 = vmul.f32 %v14927_v28, %v18437_v57 }
 0x6fa   : > { %5004 = vrot.lane.b32.xlu0 %v4967_v25, %s11747_s28  ;;  %4888 = vrot.lane.b32.xlu1 %v4853_v13, %s11748_s19  ;;  %v14935_v25 = vpop.permute.xlu1 %4824  ;;  %v14937_v13 = vpop.permute.xlu0 %4570 }
 0x6fb   : > { %18445 = vst [vmem:[#allocation59_spill] sm:$0xff] %v14937_v13 }
 0x6fe   : > { %5612 = vrot.lane.b32.xlu0 %v5575_v27, %s11747_s28  ;;  %5096 = vrot.lane.b32.xlu1 %v5061_v22, %s11749_s20  ;;  %v5064_v27 = vmul.f32 %v14927_v28, %v18443_v37  ;;  %v5158_v22 = vmul.f32 %v14699_v60, %v14826_v58 }
 0x702   : > { %4654 = vrot.lane.b32.xlu0 %v4616_v45, %s11747_s28  ;;  %5192 = vrot.lane.b32.xlu1 %v5157_v6, %s11748_s19  ;;  %v14945_v45 = vpop.f32.mrf.mxu1  ;;  %v14949_v6 = vpop.permute.xlu1 %4828 }
 0x703   : > { %18446 = vst [vmem:[#allocation67_spill] sm:$0xff] %v14945_v45 }
 0x704   : > { %v14965_v49 = vpop.f32.mrf.mxu1 }
 0x705   : > { %18450 = vst [vmem:[#allocation97_spill] sm:$0xff] %v14965_v49 }
 0x706   : > { %5310 = vrot.lane.b32.xlu0 %v5272_v38, %s11747_s28  ;;  %4746 = vrot.lane.b32.xlu1 %v4710_v62, %s11749_s20  ;;  %v14951_v38 = vpop.permute.xlu0 %4572  ;;  %v5576_v62 = vmul.f32 %v14945_v45, %v18437_v57  ;;  %v14967_v50 = vpop.permute.xlu1 %4832 }
 0x707   : > { %18447 = vst [vmem:[#allocation71_spill] sm:$0xff] %v14951_v38  ;;  %v14989_v58 = vpop.f32.mrf.mxu1 }
 0x708   : > { %18455 = vst [vmem:[#allocation101_spill] sm:$0xff] %v14989_v58 }
 0x70a   : > { %5406 = vrot.lane.b32.xlu0 %v5368_v23, %s11749_s20  ;;  %4890 = vrot.lane.b32.xlu1 %v4854_v3, %s11748_s19  ;;  %v5766_v23 = vmul.f32 %v14699_v60, %v14844_v24  ;;  %v14957_v3 = vpop.f32.mrf.mxu0  ;;  %v14969_v57 = vpop.permute.xlu0 %4574 }
 0x70b   : > { %18451 = vst [vmem:[#allocation130_spill] sm:$0xff] %v14969_v57  ;;  %v14981_v24 = vpop.permute.xlu1 %4548 }
 0x70c   : > { %18453 = vst [vmem:[#allocation18_spill] sm:$0xff] %v14981_v24 }
 0x70e   : > { %5006 = vrot.lane.b32.xlu0 %v4968_v9, %s11747_s28  ;;  %5498 = vrot.lane.b32.xlu1 %v5462_v11, %s11748_s19  ;;  %v18448_v9 = vld [vmem:[#allocation82_spill] sm:$0xff]  ;;  %v14983_v44 = vpop.permute.xlu0 %4576 }
 0x70f   : > { %v4617_v11 = vmul.f32 %v14957_v3, %v18448_v9  ;;  %v5273_v60 = vmul.f32 %v14965_v49, %v18448_v9  ;;  %18454 = vst [vmem:[#allocation100_spill] sm:$0xff] %v14983_v44 }
 0x712   : > { %5102 = vrot.lane.b32.xlu0 %v5064_v27, %s11749_s20  ;;  %5194 = vrot.lane.b32.xlu1 %v5158_v22, %s11748_s19  ;;  %v18449_v27 = vld [vmem:[#allocation33_spill] sm:$0xff] }
 0x713   : > { %v4711_v22 = vmul.f32 %v14859_v34, %v18449_v27 }
 0x716   : > { %5614 = vrot.lane.b32.xlu0 %v5576_v62, %s11747_s28  ;;  %5802 = vrot.lane.b32.xlu1 %v5766_v23, %s11748_s19  ;;  %v4855_v62 = vmul.f32 %v14890_v4, %v14859_v34  ;;  %v14977_v23 = vpop.f32.mrf.mxu0 }
 0x717   : > { %18452 = vst [vmem:[#allocation99_spill] sm:$0xff] %v14977_v23 }
 0x718   : > { %v14999_v44 = vpop.f32.mrf.mxu0 }
 0x71a   : > { %4656 = vrot.lane.b32.xlu0 %v4617_v11, %s11747_s28  ;;  %4748 = vrot.lane.b32.xlu1 %v4711_v22, %s11749_s20  ;;  %v4969_v11 = vmul.f32 %v14977_v23, %v18448_v9  ;;  %v5367_v22 = vmul.f32 %v14869_v10, %v18449_v27 }
 0x71e   : > { %5312 = vrot.lane.b32.xlu0 %v5273_v60, %s11747_s28  ;;  %4892 = vrot.lane.b32.xlu1 %v4855_v62, %s11748_s19  ;;  %v4594_v60 = vmul.f32 %v14785_v48, %v14703_v59  ;;  %v5577_v62 = vmul.f32 %v14989_v58, %v18448_v9  ;;  %v5063_v9 = vmul.f32 %v14877_v39, %v18449_v27  ;;  %v15009_v48 = vpop.f32.mrf.mxu1 }
 0x71f   : > { %18458 = vst [vmem:[#allocation106_spill] sm:$0xff] %v15009_v48 }
 0x722   : > { %5008 = vrot.lane.b32.xlu0 %v4969_v11, %s11747_s28  ;;  %5404 = vrot.lane.b32.xlu1 %v5367_v22, %s11749_s20  ;;  %v18456_v11 = vld [vmem:[#allocation85_spill] sm:$0xff] }
 0x723   : > { %v4618_v22 = vmul.f32 %v14999_v44, %v18456_v11 }
 0x724   : > { %v4643_v33 = vpop.permute.xlu0 %4642  ;;  %v4739_v7 = vpop.permute.xlu1 %4738 }
 0x725   : > { %v4690_v26 = vadd.f32 %v4643_v33, %v4594_v60 }
 0x726   : > { %5616 = vrot.lane.b32.xlu0 %v5577_v62, %s11747_s28  ;;  %5500 = vrot.lane.b32.xlu1 %v5463_v55, %s11748_s19  ;;  %v5671_v62 = vmul.f32 %v14886_v63, %v18449_v27 }
 0x727   : > { %v4786_v57 = vadd.f32 %v4739_v7, %v4690_v26  ;;  %v5274_v26 = vmul.f32 %v15009_v48, %v18456_v11  ;;  %v5159_v7 = vmul.f32 %v14890_v4, %v14877_v39  ;;  %v15046_v39 = vpop.f32.mrf.mxu1 }
 0x728   : > { %v15005_v59 = vpop.permute.xlu0 %5090  ;;  %v4883_v38 = vpop.permute.xlu1 %4882  ;;  %18465 = vst [vmem:[#allocation110_spill] sm:$0xff] %v15046_v39 }
 0x729   : > { %18457 = vst [vmem:[#allocation102_spill] sm:$0xff] %v15005_v59  ;;  %v4930_v10 = vadd.f32 %v4883_v38, %v4786_v57  ;;  %v18461_v38 = vld [vmem:[#allocation36_spill] sm:$0xff] }
 0x72a   : > { %4658 = vrot.lane.b32.xlu0 %v4618_v22, %s11747_s28  ;;  %5100 = vrot.lane.b32.xlu1 %v5063_v9, %s11749_s20  ;;  %v5370_v57 = vmul.f32 %v15009_v48, %v18461_v38 }
 0x72b   : > { %10581 = vmatprep.mubr.msk.f32.mxu0 %vm1410_vm5, %v4930_v10  ;;  %v15030_v10 = vpop.f32.mrf.mxu0 }
 0x72c   : > { %v15016_v55 = vpop.permute.xlu0 %5304  ;;  %v15020_v33 = vpop.permute.xlu1 %4994  ;;  %18462 = vst [vmem:[#allocation108_spill] sm:$0xff] %v15030_v10  ;;  %v4970_v9 = vmul.f32 %v15030_v10, %v18456_v11  ;;  %v5066_v27 = vmul.f32 %v15030_v10, %v18461_v38 }
 0x72d   : > { %18459 = vst [vmem:[#allocation23_spill] sm:$0xff] %v15016_v55  ;;  %18460 = vst [vmem:[#allocation116_spill] sm:$0xff] %v15020_v33 }
 0x72e   : > { %5314 = vrot.lane.b32.xlu0 %v5274_v26, %s11747_s28  ;;  %5196 = vrot.lane.b32.xlu1 %v5159_v7, %s11748_s19  ;;  %v5767_v7 = vmul.f32 %v14890_v4, %v14886_v63 }
 0x730   : > { %v15026_v60 = vpop.permute.xlu0 %4646  ;;  %v15032_v22 = vpop.permute.xlu1 %5186 }
 0x731   : > { %18463 = vst [vmem:[#allocation109_spill] sm:$0xff] %v15032_v22  ;;  %v15054_v22 = vpop.f32.mrf.mxu0 }
 0x732   : > { %5410 = vrot.lane.b32.xlu0 %v5370_v57, %s11749_s20  ;;  %5708 = vrot.lane.b32.xlu1 %v5671_v62, %s11749_s20  ;;  %v4595_v57 = vmul.f32 %v14981_v24, %v14713_v32  ;;  %v4856_v32 = vmul.f32 %v14701_v1, %v14898_v8 }
 0x734   : > { %v15038_v26 = vpop.permute.xlu0 %5608  ;;  %v4645_v55 = vpop.permute.xlu1 %4644 }
 0x735   : > { %18464 = vst [vmem:[#allocation20_spill] sm:$0xff] %v15038_v26  ;;  %v4712_v26 = vmul.f32 %v14898_v8, %v18443_v37  ;;  %v4691_v63 = vadd.f32 %v4645_v55, %v4595_v57 }
 0x736   : > { %5010 = vrot.lane.b32.xlu0 %v4970_v9, %s11747_s28  ;;  %5804 = vrot.lane.b32.xlu1 %v5767_v7, %s11748_s19  ;;  %v18467_v9 = vld [vmem:[#allocation84_spill] sm:$0xff] }
 0x737   : > { %v4619_v7 = vmul.f32 %v15054_v22, %v18467_v9 }
 0x738   : > { %v15050_v62 = vpop.permute.xlu0 %4998  ;;  %v4741_v4 = vpop.permute.xlu1 %4740 }
 0x739   : > { %18466 = vst [vmem:[#allocation111_spill] sm:$0xff] %v15050_v62  ;;  %v4787_v59 = vadd.f32 %v4741_v4, %v4691_v63  ;;  %v15064_v62 = vpop.f32.mrf.mxu1  ;;  %v5464_v63 = vmul.f32 %v14701_v1, %v14905_v46 }
 0x73a   : > { %5106 = vrot.lane.b32.xlu0 %v5066_v27, %s11749_s20  ;;  %4750 = vrot.lane.b32.xlu1 %v4712_v26, %s11749_s20  ;;  %18469 = vst [vmem:[#allocation104_spill] sm:$0xff] %v15064_v62  ;;  %v5275_v55 = vmul.f32 %v15064_v62, %v18467_v9  ;;  %v15075_v27 = vpop.f32.mrf.mxu0 }
 0x73b   : > { %18470 = vst [vmem:[#allocation112_spill] sm:$0xff] %v15075_v27 }
 0x73c   : > { %v15060_v33 = vpop.permute.xlu0 %5094  ;;  %v4885_v24 = vpop.permute.xlu1 %4884 }
 0x73d   : > { %18468 = vst [vmem:[#allocation103_spill] sm:$0xff] %v15060_v33  ;;  %v4931_v13 = vadd.f32 %v4885_v24, %v4787_v59  ;;  %v4971_v24 = vmul.f32 %v15075_v27, %v18467_v9  ;;  %v15083_v59 = vpop.f32.mrf.mxu1  ;;  %v18476_v33 = vld [vmem:[#allocation35_spill] sm:$0xff] }
 0x73e   : > { %4660 = vrot.lane.b32.xlu0 %v4619_v7, %s11747_s28  ;;  %4894 = vrot.lane.b32.xlu1 %v4856_v32, %s11748_s19  ;;  %18472 = vst [vmem:[#allocation74_spill] sm:$0xff] %v15083_v59  ;;  %v15089_v7 = vpop.f32.mrf.mxu0 }
 0x73f   : > { %10582 = vmatmul.mubr.msk.f32.vlgmr.msra.gmra.mxu0 %vm1410_vm5, %v4931_v13  ;;  %v5160_v13 = vmul.f32 %v14701_v1, %v14927_v28  ;;  %v4857_v28 = vmul.f32 %v14907_v0, %v14957_v3  ;;  %v18481_v1 = vld [vmem:[#allocation38_spill] sm:$0xff] }
 0x740   : > { %v15071_v26 = vpop.permute.xlu0 %4648  ;;  %v15077_v57 = vpop.permute.xlu1 %4996 }
 0x741   : > { %18471 = vst [vmem:[#allocation113_spill] sm:$0xff] %v15077_v57  ;;  %v4713_v57 = vmul.f32 %v14957_v3, %v18476_v33  ;;  %v15123_v20 = vpop.f32.mrf.mxu0 }
 0x742   : > { %5316 = vrot.lane.b32.xlu0 %v5275_v55, %s11747_s28  ;;  %5502 = vrot.lane.b32.xlu1 %v5464_v63, %s11748_s19  ;;  %v18475_v55 = vld [vmem:[#allocation86_spill] sm:$0xff]  ;;  %18483 = vst [vmem:[#allocation66_spill] sm:$0xff] %v15123_v20 }
 0x743   : > { %v4620_v63 = vmul.f32 %v15089_v7, %v18475_v55 }
 0x744   : > { %v15085_v4 = vpop.permute.xlu0 %5000  ;;  %v15091_v32 = vpop.permute.xlu1 %5092 }
 0x745   : > { %18473 = vst [vmem:[#allocation105_spill] sm:$0xff] %v15085_v4  ;;  %18474 = vst [vmem:[#allocation121_spill] sm:$0xff] %v15091_v32  ;;  %v15101_v4 = vpop.f32.mrf.mxu1 }
 0x746   : > { %5012 = vrot.lane.b32.xlu0 %v4971_v24, %s11747_s28  ;;  %5198 = vrot.lane.b32.xlu1 %v5160_v13, %s11748_s19  ;;  %18477 = vst [vmem:[#allocation114_spill] sm:$0xff] %v15101_v4  ;;  %v5276_v24 = vmul.f32 %v15101_v4, %v18475_v55 }
 0x748   : > { %v15097_v46 = vpop.permute.xlu0 %4650  ;;  %v15103_v58 = vpop.permute.xlu1 %5188 }
 0x749   : > { %18478 = vst [vmem:[#allocation115_spill] sm:$0xff] %v15103_v58  ;;  %v5372_v58 = vmul.f32 %v15101_v4, %v18481_v1 }
 0x74a   : > { %4662 = vrot.lane.b32.xlu0 %v4620_v63, %s11747_s28  ;;  %4752 = vrot.lane.b32.xlu1 %v4713_v57, %s11749_s20  ;;  %v5369_v57 = vmul.f32 %v14965_v49, %v18476_v33 }
 0x74c   : > { %v15109_v13 = vpop.permute.xlu0 %5306  ;;  %v15113_v32 = vpop.permute.xlu1 %5400 }
 0x74d   : > { %18479 = vst [vmem:[#allocation21_spill] sm:$0xff] %v15109_v13  ;;  %18480 = vst [vmem:[#allocation107_spill] sm:$0xff] %v15113_v32 }
 0x74e   : > { %5318 = vrot.lane.b32.xlu0 %v5276_v24, %s11747_s28  ;;  %4896 = vrot.lane.b32.xlu1 %v4857_v28, %s11748_s19  ;;  %v4972_v24 = vmul.f32 %v15123_v20, %v18475_v55  ;;  %v4596_v28 = vmul.f32 %v14801_v2, %v14736_v36  ;;  %v5065_v36 = vmul.f32 %v14977_v23, %v18476_v33 }
 0x750   : > { %v15119_v63 = vpop.permute.xlu0 %5402  ;;  %v15125_v13 = vpop.permute.xlu1 %5496  ;;  %v4692_v12 = vadd.f32 %v15026_v60, %v4596_v28  ;;  %v18488_v60 = vld [vmem:[#allocation87_spill] sm:$0xff] }
 0x751   : > { %18482 = vst [vmem:[#allocation63_spill] sm:$0xff] %v15119_v63  ;;  %18484 = vst [vmem:[#allocation69_spill] sm:$0xff] %v15125_v13  ;;  %v5465_v63 = vmul.f32 %v14907_v0, %v14965_v49 }
 0x752   : > { %5414 = vrot.lane.b32.xlu0 %v5372_v58, %s11749_s20  ;;  %5408 = vrot.lane.b32.xlu1 %v5369_v57, %s11749_s20  ;;  %v5068_v58 = vmul.f32 %v15123_v20, %v18481_v1  ;;  %v15142_v57 = vpop.f32.mrf.mxu1 }
 0x753   : > { %18486 = vst [vmem:[#allocation129_spill] sm:$0xff] %v15142_v57 }
 0x754   : > { %v15133_v32 = vpop.permute.xlu0 %5002  ;;  %v4743_v29 = vpop.permute.xlu1 %4742 }
 0x755   : > { %18485 = vst [vmem:[#allocation70_spill] sm:$0xff] %v15133_v32  ;;  %v4788_v13 = vadd.f32 %v4743_v29, %v4692_v12  ;;  %v15148_v32 = vpop.f32.mrf.mxu0  ;;  %v5161_v12 = vmul.f32 %v14907_v0, %v14977_v23  ;;  %v15159_v29 = vpop.f32.mrf.mxu1  ;;  %v5466_v0 = vmul.f32 %v14717_v5, %v15009_v48 }
 0x756   : > { %5014 = vrot.lane.b32.xlu0 %v4972_v24, %s11747_s28  ;;  %5504 = vrot.lane.b32.xlu1 %v5465_v63, %s11748_s19  ;;  %v4621_v63 = vmul.f32 %v15148_v32, %v18488_v60  ;;  %18490 = vst [vmem:[#allocation64_spill] sm:$0xff] %v15159_v29 }
 0x758   : > { %v15144_v30 = vpop.permute.xlu0 %5098  ;;  %v4887_v49 = vpop.permute.xlu1 %4886 }
 0x759   : > { %18487 = vst [vmem:[#allocation19_spill] sm:$0xff] %v15144_v30  ;;  %v4932_v2 = vadd.f32 %v4887_v49, %v4788_v13  ;;  %v5277_v49 = vmul.f32 %v15159_v29, %v18488_v60 }
 0x75a   : > { %5110 = vrot.lane.b32.xlu0 %v5068_v58, %s11749_s20  ;;  %5104 = vrot.lane.b32.xlu1 %v5065_v36, %s11749_s20  ;;  %v15171_v58 = vpop.f32.mrf.mxu0 }
 0x75b   : > { %10584 = vmatprep.mubr.msk.f32.mxu0 %vm1410_vm5, %v4932_v2  ;;  %v4714_v2 = vmul.f32 %v14999_v44, %v18461_v38  ;;  %18493 = vst [vmem:[#allocation117_spill] sm:$0xff] %v15171_v58 }
 0x75c   : > { %v15155_v24 = vpop.permute.xlu0 %5610  ;;  %v15161_v28 = vpop.permute.xlu1 %5704 }
 0x75d   : > { %18489 = vst [vmem:[#allocation92_spill] sm:$0xff] %v15155_v24  ;;  %18491 = vst [vmem:[#allocation68_spill] sm:$0xff] %v15161_v28  ;;  %v15185_v24 = vpop.f32.mrf.mxu0 }
 0x75e   : > { %4664 = vrot.lane.b32.xlu0 %v4621_v63, %s11747_s28  ;;  %5200 = vrot.lane.b32.xlu1 %v5161_v12, %s11748_s19  ;;  %v4973_v63 = vmul.f32 %v15171_v58, %v18488_v60  ;;  %v15179_v12 = vpop.f32.mrf.mxu1 }
 0x75f   : > { %18495 = vst [vmem:[#allocation132_spill] sm:$0xff] %v15179_v12 }
 0x760   : > { %v15167_v13 = vpop.permute.xlu0 %5706  ;;  %v15173_v36 = vpop.permute.xlu1 %5800 }
 0x761   : > { %18492 = vst [vmem:[#allocation24_spill] sm:$0xff] %v15167_v13  ;;  %18494 = vst [vmem:[#allocation75_spill] sm:$0xff] %v15173_v36  ;;  %v4858_v13 = vmul.f32 %v14717_v5, %v14999_v44  ;;  %v4597_v36 = vmul.f32 %v14815_v19, %v14781_v47  ;;  %v15199_v33 = vpop.f32.mrf.mxu1  ;;  %v5162_v47 = vmul.f32 %v14717_v5, %v15030_v10 }
 0x762   : > { %5320 = vrot.lane.b32.xlu0 %v5277_v49, %s11747_s28  ;;  %4754 = vrot.lane.b32.xlu1 %v4714_v2, %s11749_s20  ;;  %v18497_v49 = vld [vmem:[#allocation88_spill] sm:$0xff]  ;;  %18499 = vst [vmem:[#allocation46_spill] sm:$0xff] %v15199_v33 }
 0x763   : > { %v4622_v2 = vmul.f32 %v15185_v24, %v18497_v49 }
 0x764   : > { %v15181_v28 = vpop.permute.xlu0 %4652  ;;  %v15187_v23 = vpop.permute.xlu1 %5190 }
 0x765   : > { %18496 = vst [vmem:[#allocation45_spill] sm:$0xff] %v15187_v23  ;;  %v4693_v23 = vadd.f32 %v15071_v26, %v4597_v36  ;;  %v18501_v26 = vld [vmem:[#allocation40_spill] sm:$0xff] }
 0x766   : > { %5016 = vrot.lane.b32.xlu0 %v4973_v63, %s11747_s28  ;;  %4898 = vrot.lane.b32.xlu1 %v4858_v13, %s11748_s19  ;;  %v5278_v13 = vmul.f32 %v15199_v33, %v18497_v49  ;;  %v5374_v36 = vmul.f32 %v15199_v33, %v18501_v26 }
 0x768   : > { %v15195_v30 = vpop.permute.xlu0 %5308  ;;  %v4745_v51 = vpop.permute.xlu1 %4744 }
 0x769   : > { %18498 = vst [vmem:[#allocation47_spill] sm:$0xff] %v15195_v30  ;;  %v4789_v63 = vadd.f32 %v4745_v51, %v4693_v23  ;;  %v15219_v23 = vpop.f32.mrf.mxu0 }
 0x76a   : > { %4666 = vrot.lane.b32.xlu0 %v4622_v2, %s11747_s28  ;;  %5506 = vrot.lane.b32.xlu1 %v5466_v0, %s11748_s19  ;;  %v18503_v2 = vld [vmem:[#allocation37_spill] sm:$0xff]  ;;  %18504 = vst [vmem:[#allocation49_spill] sm:$0xff] %v15219_v23 }
 0x76b   : > { %v4715_v51 = vmul.f32 %v15054_v22, %v18503_v2  ;;  %v5371_v10 = vmul.f32 %v15064_v62, %v18503_v2 }
 0x76c   : > { %v15206_v40 = vpop.permute.xlu0 %5004  ;;  %v4889_v30 = vpop.permute.xlu1 %4888 }
 0x76d   : > { %18500 = vst [vmem:[#allocation44_spill] sm:$0xff] %v15206_v40  ;;  %v4933_v48 = vadd.f32 %v4889_v30, %v4789_v63  ;;  %v4974_v30 = vmul.f32 %v15219_v23, %v18497_v49 }
 0x76e   : > { %5322 = vrot.lane.b32.xlu0 %v5278_v13, %s11747_s28  ;;  %5202 = vrot.lane.b32.xlu1 %v5162_v47, %s11748_s19  ;;  %v5070_v47 = vmul.f32 %v15219_v23, %v18501_v26 }
 0x76f   : > { %10585 = vmatmul.mubr.msk.f32.gmra.mxu0 %vm1410_vm5, %v4933_v48  ;;  %v4859_v48 = vmul.f32 %v14919_v21, %v15054_v22 }
 0x770   : > { %v15215_v0 = vpop.permute.xlu0 %5612  ;;  %v15221_v40 = vpop.permute.xlu1 %5096 }
 0x771   : > { %18502 = vst [vmem:[#allocation48_spill] sm:$0xff] %v15215_v0  ;;  %18505 = vst [vmem:[#allocation50_spill] sm:$0xff] %v15221_v40  ;;  %v15245_v40 = vpop.f32.mrf.mxu0 }
 0x772   : > { %5418 = vrot.lane.b32.xlu0 %v5374_v36, %s11749_s20  ;;  %4756 = vrot.lane.b32.xlu1 %v4715_v51, %s11749_s20  ;;  %v15237_v36 = vpop.f32.mrf.mxu1  ;;  %v4598_v51 = vmul.f32 %v14828_v31, %v14799_v52  ;;  %v5467_v52 = vmul.f32 %v14919_v21, %v15064_v62  ;;  %v4716_v62 = vmul.f32 %v15089_v7, %v18481_v1 }
 0x773   : > { %18507 = vst [vmem:[#allocation52_spill] sm:$0xff] %v15237_v36 }
 0x774   : > { %v15227_v13 = vpop.permute.xlu0 %4654  ;;  %v15231_v63 = vpop.permute.xlu1 %5192 }
 0x775   : > { %18506 = vst [vmem:[#allocation51_spill] sm:$0xff] %v15231_v63 }
 0x776   : > { %5018 = vrot.lane.b32.xlu0 %v4974_v30, %s11747_s28  ;;  %4900 = vrot.lane.b32.xlu1 %v4859_v48, %s11748_s19  ;;  %v4694_v30 = vadd.f32 %v15097_v46, %v4598_v51  ;;  %v18509_v48 = vld [vmem:[#allocation89_spill] sm:$0xff] }
 0x777   : > { %v4623_v19 = vmul.f32 %v15245_v40, %v18509_v48 }
 0x778   : > { %v15241_v0 = vpop.permute.xlu0 %5310  ;;  %v4747_v63 = vpop.permute.xlu1 %4746 }
 0x779   : > { %18508 = vst [vmem:[#allocation53_spill] sm:$0xff] %v15241_v0  ;;  %v4790_v5 = vadd.f32 %v4747_v63, %v4694_v30  ;;  %v15256_v0 = vpop.f32.mrf.mxu1  ;;  %v5067_v63 = vmul.f32 %v15075_v27, %v18503_v2 }
 0x77a   : > { %5114 = vrot.lane.b32.xlu0 %v5070_v47, %s11749_s20  ;;  %5412 = vrot.lane.b32.xlu1 %v5371_v10, %s11749_s20  ;;  %18511 = vst [vmem:[#allocation57_spill] sm:$0xff] %v15256_v0  ;;  %v5279_v46 = vmul.f32 %v15256_v0, %v18509_v48  ;;  %v15267_v47 = vpop.f32.mrf.mxu0 }
 0x77c   : > { %v15252_v36 = vpop.permute.xlu0 %5406  ;;  %v4891_v31 = vpop.permute.xlu1 %4890 }
 0x77d   : > { %18510 = vst [vmem:[#allocation54_spill] sm:$0xff] %v15252_v36  ;;  %v4934_v49 = vadd.f32 %v4891_v31, %v4790_v5  ;;  %v4975_v5 = vmul.f32 %v15267_v47, %v18509_v48  ;;  %v5163_v31 = vmul.f32 %v14919_v21, %v15075_v27 }
 0x77e   : > { %4668 = vrot.lane.b32.xlu0 %v4623_v19, %s11747_s28  ;;  %5508 = vrot.lane.b32.xlu1 %v5467_v52, %s11748_s19  ;;  %v18516_v52 = vld [vmem:[#allocation91_spill] sm:$0xff] }
 0x77f   : > { %10587 = vmatprep.mubr.msk.f32.mxu0 %vm1410_vm5, %v4934_v49  ;;  %v15279_v49 = vpop.f32.mrf.mxu0 }
 0x780   : > { %v15263_v10 = vpop.permute.xlu0 %5006  ;;  %v15269_v51 = vpop.permute.xlu1 %5498 }
 0x781   : > { %18512 = vst [vmem:[#allocation60_spill] sm:$0xff] %v15263_v10  ;;  %18513 = vst [vmem:[#allocation61_spill] sm:$0xff] %v15269_v51  ;;  %v18519_v51 = vld [vmem:[#allocation42_spill] sm:$0xff] }
 0x782   : > { %5324 = vrot.lane.b32.xlu0 %v5279_v46, %s11747_s28  ;;  %5108 = vrot.lane.b32.xlu1 %v5067_v63, %s11749_s20  ;;  %v4624_v46 = vmul.f32 %v15279_v49, %v18516_v52  ;;  %v4720_v27 = vmul.f32 %v15279_v49, %v18519_v51 }
 0x784   : > { %v15275_v19 = vpop.permute.xlu0 %5102  ;;  %v15281_v30 = vpop.permute.xlu1 %5194 }
 0x785   : > { %18514 = vst [vmem:[#allocation65_spill] sm:$0xff] %v15275_v19  ;;  %18515 = vst [vmem:[#allocation62_spill] sm:$0xff] %v15281_v30  ;;  %v15303_v19 = vpop.f32.mrf.mxu1 }
 0x786   : > { %5020 = vrot.lane.b32.xlu0 %v4975_v5, %s11747_s28  ;;  %5204 = vrot.lane.b32.xlu1 %v5163_v31, %s11748_s19  ;;  %v4599_v5 = vmul.f32 %v14838_v54, %v14859_v34  ;;  %18520 = vst [vmem:[#allocation5_spill] sm:$0xff] %v15303_v19  ;;  %v5468_v34 = vmul.f32 %v14738_v17, %v15101_v4 }
 0x787   : > { %v15314_v54 = vpop.f32.mrf.mxu1 }
 0x788   : > { %v15287_v63 = vpop.permute.xlu0 %5614  ;;  %v15291_v36 = vpop.permute.xlu1 %5802  ;;  %18522 = vst [vmem:[#allocation7_spill] sm:$0xff] %v15314_v54 }
 0x789   : > { %18517 = vst [vmem:[#allocation2_spill] sm:$0xff] %v15287_v63  ;;  %18518 = vst [vmem:[#allocation3_spill] sm:$0xff] %v15291_v36  ;;  %v4860_v63 = vmul.f32 %v14738_v17, %v15089_v7  ;;  %v4695_v36 = vadd.f32 %v15181_v28, %v4599_v5  ;;  %v18526_v5 = vld [vmem:[#allocation39_spill] sm:$0xff] }
 0x78a   : > { %4670 = vrot.lane.b32.xlu0 %v4624_v46, %s11747_s28  ;;  %4758 = vrot.lane.b32.xlu1 %v4716_v62, %s11749_s20  ;;  %v4864_v62 = vmul.f32 %v14773_v18, %v15279_v49 }
 0x78c   : > { %v15299_v31 = vpop.permute.xlu0 %4656  ;;  %v4749_v30 = vpop.permute.xlu1 %4748 }
 0x78d   : > { %v4791_v46 = vadd.f32 %v4749_v30, %v4695_v36  ;;  %v5164_v36 = vmul.f32 %v14738_v17, %v15123_v20 }
 0x78e   : > { %4766 = vrot.lane.b32.xlu0 %v4720_v27, %s11749_s20  ;;  %4902 = vrot.lane.b32.xlu1 %v4860_v63, %s11748_s19  ;;  %v5280_v27 = vmul.f32 %v15314_v54, %v18516_v52 }
 0x790   : > { %v15310_v10 = vpop.permute.xlu0 %5312  ;;  %v4893_v21 = vpop.permute.xlu1 %4892 }
 0x791   : > { %18521 = vst [vmem:[#allocation4_spill] sm:$0xff] %v15310_v10  ;;  %v4935_v2 = vadd.f32 %v4893_v21, %v4791_v46  ;;  %v5376_v21 = vmul.f32 %v15314_v54, %v18519_v51  ;;  %v5472_v46 = vmul.f32 %v14773_v18, %v15314_v54  ;;  %v5373_v54 = vmul.f32 %v15159_v29, %v18526_v5 }
 0x792   : > { %4910 = vrot.lane.b32.xlu0 %v4864_v62, %s11748_s19  ;;  %5510 = vrot.lane.b32.xlu1 %v5468_v34, %s11748_s19  ;;  %v4717_v62 = vmul.f32 %v15148_v32, %v18526_v5 }
 0x793   : > { %10588 = vmatmul.mubr.msk.f32.gmra.mxu0 %vm1410_vm5, %v4935_v2 }
 0x794   : > { %v15321_v28 = vpop.permute.xlu0 %5008  ;;  %v15325_v30 = vpop.permute.xlu1 %5404 }
 0x795   : > { %18523 = vst [vmem:[#allocation6_spill] sm:$0xff] %v15321_v28  ;;  %18524 = vst [vmem:[#allocation9_spill] sm:$0xff] %v15325_v30 }
 0x796   : > { %5326 = vrot.lane.b32.xlu0 %v5280_v27, %s11747_s28  ;;  %5206 = vrot.lane.b32.xlu1 %v5164_v36, %s11748_s19  ;;  %v4861_v27 = vmul.f32 %v14935_v25, %v15148_v32  ;;  %v15345_v36 = vpop.f32.mrf.mxu0 }
 0x797   : > { %18528 = vst [vmem:[#allocation10_spill] sm:$0xff] %v15345_v36 }
 0x798   : > { %v15331_v63 = vpop.permute.xlu0 %5616  ;;  %v15335_v2 = vpop.permute.xlu1 %5500 }
 0x799   : > { %18525 = vst [vmem:[#allocation8_spill] sm:$0xff] %v15331_v63  ;;  %18527 = vst [vmem:[#allocation11_spill] sm:$0xff] %v15335_v2  ;;  %v5072_v2 = vmul.f32 %v15345_v36, %v18519_v51  ;;  %v15377_v30 = vpop.f32.mrf.mxu0 }
 0x79a   : > { %5422 = vrot.lane.b32.xlu0 %v5376_v21, %s11749_s20  ;;  %4760 = vrot.lane.b32.xlu1 %v4717_v62, %s11749_s20  ;;  %v4976_v21 = vmul.f32 %v15345_v36, %v18516_v52 }
 0x79c   : > { %v15341_v34 = vpop.permute.xlu0 %4658  ;;  %v15347_v63 = vpop.permute.xlu1 %5100 }
 0x79d   : > { %18529 = vst [vmem:[#allocation13_spill] sm:$0xff] %v15347_v63 }
 0x79e   : > { %5518 = vrot.lane.b32.xlu0 %v5472_v46, %s11748_s19  ;;  %4904 = vrot.lane.b32.xlu1 %v4861_v27, %s11748_s19  ;;  %v5469_v27 = vmul.f32 %v14935_v25, %v15159_v29 }
 0x7a0   : > { %v15353_v62 = vpop.permute.xlu0 %5314  ;;  %v15357_v4 = vpop.permute.xlu1 %5196 }
 0x7a1   : > { %18530 = vst [vmem:[#allocation12_spill] sm:$0xff] %v15353_v62  ;;  %18531 = vst [vmem:[#allocation15_spill] sm:$0xff] %v15357_v4  ;;  %v5168_v62 = vmul.f32 %v14773_v18, %v15345_v36  ;;  %v5165_v36 = vmul.f32 %v14935_v25, %v15171_v58 }
 0x7a2   : > { %5022 = vrot.lane.b32.xlu0 %v4976_v21, %s11747_s28  ;;  %5416 = vrot.lane.b32.xlu1 %v5373_v54, %s11749_s20  ;;  %v5069_v54 = vmul.f32 %v15171_v58, %v18526_v5 }
 0x7a4   : > { %v15363_v46 = vpop.permute.xlu0 %5410  ;;  %v15367_v10 = vpop.permute.xlu1 %5708 }
 0x7a5   : > { %18532 = vst [vmem:[#allocation14_spill] sm:$0xff] %v15363_v46  ;;  %18533 = vst [vmem:[#allocation17_spill] sm:$0xff] %v15367_v10  ;;  %v18536_v10 = vld [vmem:[#allocation90_spill] sm:$0xff] }
 0x7a6   : > { %5118 = vrot.lane.b32.xlu0 %v5072_v2, %s11749_s20  ;;  %5512 = vrot.lane.b32.xlu1 %v5469_v27, %s11748_s19  ;;  %v4625_v2 = vmul.f32 %v15377_v30, %v18536_v10  ;;  %v4600_v27 = vmul.f32 %v14852_v53, %v14898_v8  ;;  %v4718_v8 = vmul.f32 %v15185_v24, %v18501_v26 }
 0x7a8   : > { %v15373_v21 = vpop.permute.xlu0 %5010  ;;  %v15379_v46 = vpop.permute.xlu1 %5804 }
 0x7a9   : > { %18534 = vst [vmem:[#allocation16_spill] sm:$0xff] %v15373_v21  ;;  %18535 = vst [vmem:[#allocation77_spill] sm:$0xff] %v15379_v46  ;;  %v4696_v21 = vadd.f32 %v15227_v13, %v4600_v27  ;;  %v5672_v13 = vmul.f32 %v14945_v45, %v18443_v37  ;;  %v5470_v37 = vmul.f32 %v14759_v15, %v15199_v33 }
 0x7aa   : > { %5214 = vrot.lane.b32.xlu0 %v5168_v62, %s11748_s19  ;;  %5112 = vrot.lane.b32.xlu1 %v5069_v54, %s11749_s20  ;;  %v4865_v62 = vmul.f32 %v14967_v50, %v15377_v30 }
 0x7ac   : > { %v15387_v29 = vpop.permute.xlu0 %5106  ;;  %v4751_v20 = vpop.permute.xlu1 %4750 }
 0x7ad   : > { %18537 = vst [vmem:[#allocation28_spill] sm:$0xff] %v15387_v29  ;;  %v4792_v54 = vadd.f32 %v4751_v20, %v4696_v21  ;;  %v15400_v29 = vpop.f32.mrf.mxu1  ;;  %v4862_v20 = vmul.f32 %v14759_v15, %v15185_v24 }
 0x7ae   : > { %4672 = vrot.lane.b32.xlu0 %v4625_v2, %s11747_s28  ;;  %5208 = vrot.lane.b32.xlu1 %v5165_v36, %s11748_s19  ;;  %18538 = vst [vmem:[#allocation78_spill] sm:$0xff] %v15400_v29 }
 0x7af   : > { %v15411_v21 = vpop.f32.mrf.mxu1 }
 0x7b0   : > { %v15396_v46 = vpop.permute.xlu0 %4660  ;;  %v4895_v4 = vpop.permute.xlu1 %4894  ;;  %18540 = vst [vmem:[#allocation30_spill] sm:$0xff] %v15411_v21 }
 0x7b1   : > { %v4936_v58 = vadd.f32 %v4895_v4, %v4792_v54  ;;  %v5281_v4 = vmul.f32 %v15411_v21, %v18536_v10  ;;  %v5473_v54 = vmul.f32 %v14967_v50, %v15411_v21 }
 0x7b2   : > { %4912 = vrot.lane.b32.xlu0 %v4865_v62, %s11748_s19  ;;  %4762 = vrot.lane.b32.xlu1 %v4718_v8, %s11749_s20  ;;  %v4601_v8 = vmul.f32 %v14863_v41, %v14957_v3  ;;  %v18545_v3 = vld [vmem:[#allocation41_spill] sm:$0xff] }
 0x7b3   : > { %10590 = vmatprep.mubr.msk.f32.mxu0 %vm1410_vm5, %v4936_v58  ;;  %v15423_v58 = vpop.f32.mrf.mxu0 }
 0x7b4   : > { %v15407_v36 = vpop.permute.xlu0 %5316  ;;  %v15413_v2 = vpop.permute.xlu1 %5502 }
 0x7b5   : > { %18539 = vst [vmem:[#allocation79_spill] sm:$0xff] %v15407_v36  ;;  %18541 = vst [vmem:[#allocation81_spill] sm:$0xff] %v15413_v2  ;;  %v15437_v33 = vpop.f32.mrf.mxu0  ;;  %v4697_v2 = vadd.f32 %v15299_v31, %v4601_v8  ;;  %v5169_v31 = vmul.f32 %v14967_v50, %v15423_v58 }
 0x7b6   : > { %5710 = vrot.lane.b32.xlu0 %v5672_v13, %s11749_s20  ;;  %4906 = vrot.lane.b32.xlu1 %v4862_v20, %s11748_s19  ;;  %v5166_v20 = vmul.f32 %v14759_v15, %v15219_v23 }
 0x7b7   : > { %v15448_v28 = vpop.f32.mrf.mxu0 }
 0x7b8   : > { %v15419_v27 = vpop.permute.xlu0 %5012  ;;  %v15425_v62 = vpop.permute.xlu1 %5198  ;;  %18546 = vst [vmem:[#allocation83_spill] sm:$0xff] %v15448_v28 }
 0x7b9   : > { %18542 = vst [vmem:[#allocation31_spill] sm:$0xff] %v15419_v27  ;;  %18543 = vst [vmem:[#allocation32_spill] sm:$0xff] %v15425_v62  ;;  %v4719_v62 = vmul.f32 %v15245_v40, %v18545_v3 }
 0x7ba   : > { %5328 = vrot.lane.b32.xlu0 %v5281_v4, %s11747_s28  ;;  %5514 = vrot.lane.b32.xlu1 %v5470_v37, %s11748_s19  ;;  %v4977_v4 = vmul.f32 %v15423_v58, %v18536_v10 }
 0x7bc   : > { %v15433_v13 = vpop.permute.xlu0 %4662  ;;  %v4753_v36 = vpop.permute.xlu1 %4752 }
 0x7bd   : > { %v4793_v37 = vadd.f32 %v4753_v36, %v4697_v2  ;;  %v4863_v36 = vmul.f32 %v14949_v6, %v15245_v40  ;;  %v15459_v2 = vpop.f32.mrf.mxu0 }
 0x7be   : > { %5520 = vrot.lane.b32.xlu0 %v5473_v54, %s11748_s19  ;;  %5210 = vrot.lane.b32.xlu1 %v5166_v20, %s11748_s19  ;;  %18548 = vst [vmem:[#allocation82_spill] sm:$0xff] %v15459_v2 }
 0x7bf   : > { %v15471_v20 = vpop.f32.mrf.mxu0 }
 0x7c0   : > { %v15444_v27 = vpop.permute.xlu0 %5318  ;;  %v4897_v23 = vpop.permute.xlu1 %4896  ;;  %18551 = vst [vmem:[#allocation36_spill] sm:$0xff] %v15471_v20 }
 0x7c1   : > { %18544 = vst [vmem:[#allocation80_spill] sm:$0xff] %v15444_v27  ;;  %v4937_v63 = vadd.f32 %v4897_v23, %v4793_v37  ;;  %v5362_v23 = vmul.f32 %v15437_v33, %v18407_v43  ;;  %v5666_v37 = vmul.f32 %v15448_v28, %v18407_v43  ;;  %v5071_v43 = vmul.f32 %v15267_v47, %v18545_v3 }
 0x7c2   : > { %5024 = vrot.lane.b32.xlu0 %v4977_v4, %s11747_s28  ;;  %4764 = vrot.lane.b32.xlu1 %v4719_v62, %s11749_s20 }
 0x7c3   : > { %10591 = vmatmul.mubr.msk.f32.gmra.mxu0 %vm1410_vm5, %v4937_v63  ;;  %v5375_v63 = vmul.f32 %v15256_v0, %v18545_v3 }
 0x7c4   : > { %v15455_v54 = vpop.permute.xlu0 %5414  ;;  %v15461_v8 = vpop.permute.xlu1 %5408 }
 0x7c5   : > { %18547 = vst [vmem:[#allocation34_spill] sm:$0xff] %v15455_v54  ;;  %18549 = vst [vmem:[#allocation33_spill] sm:$0xff] %v15461_v8  ;;  %v15483_v54 = vpop.f32.mrf.mxu0  ;;  %v5167_v8 = vmul.f32 %v14949_v6, %v15267_v47 }
 0x7c6   : > { %5216 = vrot.lane.b32.xlu0 %v5169_v31, %s11748_s19  ;;  %4908 = vrot.lane.b32.xlu1 %v4863_v36, %s11748_s19  ;;  %v5471_v36 = vmul.f32 %v14949_v6, %v15256_v0  ;;  %v5364_v0 = vmul.f32 %v15483_v54, %v18418_v56 }
 0x7c8   : > { %v15467_v62 = vpop.permute.xlu0 %5014  ;;  %v15473_v4 = vpop.permute.xlu1 %5504 }
 0x7c9   : > { %18550 = vst [vmem:[#allocation85_spill] sm:$0xff] %v15467_v62  ;;  %18552 = vst [vmem:[#allocation84_spill] sm:$0xff] %v15473_v4 }
 0x7ca   : > { %5394 = vrot.lane.b32.xlu0 %v5362_v23, %s11749_s20  ;;  %5420 = vrot.lane.b32.xlu1 %v5375_v63, %s11749_s20  ;;  %v5268_v23 = vmul.f32 %v15483_v54, %v18413_v14 }
 0x7cc   : > { %v15479_v31 = vpop.permute.xlu0 %5110  ;;  %v15485_v27 = vpop.permute.xlu1 %5104 }
 0x7cd   : > { %18553 = vst [vmem:[#allocation86_spill] sm:$0xff] %v15479_v31  ;;  %18554 = vst [vmem:[#allocation38_spill] sm:$0xff] %v15485_v27  ;;  %v18557_v27 = vld [vmem:[#allocation43_spill] sm:$0xff] }
 0x7ce   : > { %5698 = vrot.lane.b32.xlu0 %v5666_v37, %s11749_s20  ;;  %5516 = vrot.lane.b32.xlu1 %v5471_v36, %s11748_s19  ;;  %v4602_v37 = vmul.f32 %v14879_v42, %v14999_v44  ;;  %v4721_v44 = vmul.f32 %v15377_v30, %v18557_v27 }
 0x7d0   : > { %v15491_v63 = vpop.permute.xlu0 %4664  ;;  %v15495_v4 = vpop.permute.xlu1 %5200  ;;  %v4698_v62 = vadd.f32 %v15341_v34, %v4602_v37  ;;  %v5580_v37 = vmul.f32 %v15142_v57, %v18475_v55 }
 0x7d1   : > { %18555 = vst [vmem:[#allocation87_spill] sm:$0xff] %v15495_v4 }
 0x7d2   : > { %5302 = vrot.lane.b32.xlu0 %v5268_v23, %s11747_s28  ;;  %5116 = vrot.lane.b32.xlu1 %v5071_v43, %s11749_s20  ;;  %v5578_v23 = vmul.f32 %v15046_v39, %v18456_v11  ;;  %v5377_v11 = vmul.f32 %v15411_v21, %v18557_v27  ;;  %v5583_v21 = vmul.f32 %v15303_v19, %v18509_v48 }
 0x7d4   : > { %v15503_v36 = vpop.permute.xlu0 %5320  ;;  %v4755_v31 = vpop.permute.xlu1 %4754 }
 0x7d5   : > { %18556 = vst [vmem:[#allocation40_spill] sm:$0xff] %v15503_v36  ;;  %v4794_v43 = vadd.f32 %v4755_v31, %v4698_v62  ;;  %v5674_v62 = vmul.f32 %v15046_v39, %v18461_v38  ;;  %v5266_v38 = vmul.f32 %v15437_v33, %v18406_v61 }
 0x7d6   : > { %5398 = vrot.lane.b32.xlu0 %v5364_v0, %s11749_s20  ;;  %5212 = vrot.lane.b32.xlu1 %v5167_v8, %s11748_s19  ;;  %v5579_v0 = vmul.f32 %v15083_v59, %v18467_v9  ;;  %v5073_v9 = vmul.f32 %v15423_v58, %v18557_v27 }
 0x7d8   : > { %v15512_v4 = vpop.permute.xlu0 %5016  ;;  %v4899_v36 = vpop.permute.xlu1 %4898 }
 0x7d9   : > { %v4938_v42 = vadd.f32 %v4899_v36, %v4794_v43  ;;  %v4603_v36 = vmul.f32 %v14892_v16, %v15054_v22  ;;  %v5458_v22 = vmul.f32 %v14715_v35, %v15437_v33 }
 0x7da   : > { %5618 = vrot.lane.b32.xlu0 %v5578_v23, %s11747_s28  ;;  %4768 = vrot.lane.b32.xlu1 %v4721_v44, %s11749_s20 }
 0x7db   : > { %10593 = vmatprep.mubr.msk.f32.mxu0 %vm1410_vm5, %v4938_v42  ;;  %v4699_v44 = vadd.f32 %v15396_v46, %v4603_v36  ;;  %v5676_v46 = vmul.f32 %v15142_v57, %v18481_v1  ;;  %v15565_v36 = vpop.f32.mrf.mxu0  ;;  %v5762_v1 = vmul.f32 %v14715_v35, %v15448_v28  ;;  %v18566_v35 = vld [vmem:[#allocation88_spill] sm:$0xff] }
 0x7dc   : > { %v15521_v34 = vpop.permute.xlu0 %4666  ;;  %v15525_v8 = vpop.permute.xlu1 %5506  ;;  %18561 = vst [vmem:[#allocation39_spill] sm:$0xff] %v15565_v36 }
 0x7dd   : > { %18558 = vst [vmem:[#allocation89_spill] sm:$0xff] %v15525_v8 }
 0x7de   : > { %5620 = vrot.lane.b32.xlu0 %v5579_v0, %s11747_s28  ;;  %5424 = vrot.lane.b32.xlu1 %v5377_v11, %s11749_s20  ;;  %v5581_v0 = vmul.f32 %v15179_v12, %v18488_v60  ;;  %v5570_v60 = vmul.f32 %v15448_v28, %v18406_v61  ;;  %v5668_v61 = vmul.f32 %v15565_v36, %v18418_v56 }
 0x7e0   : > { %v15531_v31 = vpop.permute.xlu0 %5322  ;;  %v15535_v42 = vpop.permute.xlu1 %5202 }
 0x7e1   : > { %18559 = vst [vmem:[#allocation91_spill] sm:$0xff] %v15531_v31 }
 0x7e2   : > { %5714 = vrot.lane.b32.xlu0 %v5674_v62, %s11749_s20  ;;  %5120 = vrot.lane.b32.xlu1 %v5073_v9, %s11749_s20 }
 0x7e4   : > { %v15543_v23 = vpop.permute.xlu0 %5418  ;;  %v4757_v43 = vpop.permute.xlu1 %4756 }
 0x7e5   : > { %18560 = vst [vmem:[#allocation42_spill] sm:$0xff] %v15543_v23  ;;  %v4795_v11 = vadd.f32 %v4757_v43, %v4699_v44  ;;  %v5572_v43 = vmul.f32 %v15565_v36, %v18413_v14 }
 0x7e6   : > { %5622 = vrot.lane.b32.xlu0 %v5580_v37, %s11747_s28  ;;  %5298 = vrot.lane.b32.xlu1 %v5266_v38, %s11747_s28 }
 0x7e8   : > { %v15552_v55 = vpop.permute.xlu0 %5018  ;;  %v4901_v62 = vpop.permute.xlu1 %4900 }
 0x7e9   : > { %v4939_v9 = vadd.f32 %v4901_v62, %v4795_v11 }
 0x7ea   : > { %5624 = vrot.lane.b32.xlu0 %v5581_v0, %s11747_s28  ;;  %5490 = vrot.lane.b32.xlu1 %v5458_v22, %s11748_s19  ;;  %v18565_v22 = vld [vmem:[#allocation76_spill] sm:$0xff] }
 0x7eb   : > { %10594 = vmatmul.mubr.msk.f32.gmra.mxu0 %vm1410_vm5, %v4939_v9  ;;  %v5267_v62 = vmul.f32 %v15459_v2, %v18565_v22  ;;  %v18567_v9 = vld [vmem:[#allocation52_spill] sm:$0xff] }
 0x7ec   : > { %v15561_v37 = vpop.permute.xlu0 %5114  ;;  %v15567_v38 = vpop.permute.xlu1 %5412 }
 0x7ed   : > { %18562 = vst [vmem:[#allocation90_spill] sm:$0xff] %v15567_v38 }
 0x7ee   : > { %5718 = vrot.lane.b32.xlu0 %v5676_v46, %s11749_s20  ;;  %5602 = vrot.lane.b32.xlu1 %v5570_v60, %s11747_s28  ;;  %v5582_v46 = vmul.f32 %v18567_v9, %v18566_v35  ;;  %v18570_v35 = vld [vmem:[#allocation22_spill] sm:$0xff] }
 0x7ef   : > { %v5459_v28 = vmul.f32 %v18570_v35, %v15459_v2 }
 0x7f0   : > { %v15573_v44 = vpop.permute.xlu0 %4668  ;;  %v15577_v0 = vpop.permute.xlu1 %5508 }
 0x7f1   : > { %18563 = vst [vmem:[#allocation41_spill] sm:$0xff] %v15577_v0 }
 0x7f2   : > { %5606 = vrot.lane.b32.xlu0 %v5572_v43, %s11747_s28  ;;  %5794 = vrot.lane.b32.xlu1 %v5762_v1, %s11748_s19  ;;  %v18568_v43 = vld [vmem:[#allocation29_spill] sm:$0xff] }
 0x7f3   : > { %v5363_v1 = vmul.f32 %v15459_v2, %v18568_v43 }
 0x7f4   : > { %v15583_v11 = vpop.permute.xlu0 %5324  ;;  %v15587_v14 = vpop.permute.xlu1 %5108 }
 0x7f5   : > { %18564 = vst [vmem:[#allocation43_spill] sm:$0xff] %v15583_v11 }
 0x7f6   : > { %5702 = vrot.lane.b32.xlu0 %v5668_v61, %s11749_s20  ;;  %5300 = vrot.lane.b32.xlu1 %v5267_v62, %s11747_s28  ;;  %v18569_v61 = vld [vmem:[#allocation127_spill] sm:$0xff] }
 0x7f7   : > { %v4604_v62 = vmul.f32 %v18569_v61, %v15089_v7  ;;  %v5571_v7 = vmul.f32 %v15471_v20, %v18565_v22 }
 0x7f8   : > { %v15593_v60 = vpop.permute.xlu0 %5020  ;;  %v15597_v56 = vpop.permute.xlu1 %5204 }
 0x7f9   : > { %v4700_v31 = vadd.f32 %v15433_v13, %v4604_v62  ;;  %v18575_v62 = vld [vmem:[#allocation56_spill] sm:$0xff] }
 0x7fa   : > { %5626 = vrot.lane.b32.xlu0 %v5582_v46, %s11747_s28  ;;  %5396 = vrot.lane.b32.xlu1 %v5363_v1, %s11749_s20  ;;  %v5678_v46 = vmul.f32 %v18567_v9, %v18501_v26  ;;  %v5584_v26 = vmul.f32 %v15400_v29, %v18516_v52 }
 0x7fc   : > { %v15605_v11 = vpop.permute.xlu0 %4670  ;;  %v4759_v23 = vpop.permute.xlu1 %4758 }
 0x7fd   : > { %v4796_v1 = vadd.f32 %v4759_v23, %v4700_v31  ;;  %v15635_v31 = vpop.f32.mrf.mxu1  ;;  %v5667_v23 = vmul.f32 %v15471_v20, %v18568_v43  ;;  %v5680_v43 = vmul.f32 %v15400_v29, %v18519_v51 }
 0x7fe   : > { %5628 = vrot.lane.b32.xlu0 %v5583_v21, %s11747_s28  ;;  %5492 = vrot.lane.b32.xlu1 %v5459_v28, %s11748_s19  ;;  %v15624_v28 = vld [vmem:[%s17541_s8] ss:$0 sm:$0xff]  ;;  %18572 = vst [vmem:[#allocation88_spill] sm:$0xff] %v15635_v31  ;;  %v5585_v52 = vmul.f32 %v15635_v31, %v18536_v10 }
 0x7ff   : > { %v15614_v48 = vpop.f32.mrf.mxu0 }
 0x800   : > { %v15616_v0 = vpop.permute.xlu0 %4766  ;;  %v4903_v38 = vpop.permute.xlu1 %4902 }
 0x801   : > { %v4940_v8 = vadd.f32 %v4903_v38, %v4796_v1  ;;  %v6127_v2 = vpop.f32.mrf.mxu0  ;;  %v18577_v1 = vld [vmem:[#allocation133_spill] sm:$0xff] }
 0x802   : > { %5722 = vrot.lane.b32.xlu0 %v5678_v46, %s11749_s20  ;;  %5604 = vrot.lane.b32.xlu1 %v5571_v7, %s11747_s28  ;;  %v15630_v21 = vadd.f32 %v15624_v28, %v6127_v2  ;;  %v4605_v46 = vmul.f32 %v18575_v62, %v15148_v32  ;;  %v5460_v7 = vmul.f32 %v18577_v1, %v15483_v54  ;;  %v18580_v32 = vld [vmem:[#allocation101_spill] sm:$0xff] }
 0x803   : > { %10596 = vmatprep.mubr.msk.f32.mxu0 %vm1410_vm5, %v4940_v8  ;;  %v5763_v8 = vmul.f32 %v18570_v35, %v15471_v20 }
 0x804   : > { %18571 = vst [vmem:[#allocation76_spill] sm:$0xff] %v15630_v21  ;;  %v15633_v13 = vpop.permute.xlu0 %4910  ;;  %v15639_v38 = vpop.permute.xlu1 %5510  ;;  %11352 = vtanh.f32 %v15630_v21  ;;  %v4701_v35 = vadd.f32 %v15491_v63, %v4605_v46  ;;  %v18581_v46 = vld [vmem:[#allocation93_spill] sm:$0xff] }
 0x805   : > { %18573 = vst [vmem:[#allocation29_spill] sm:$0xff] %v15639_v38 }
 0x806   : > { %5630 = vrot.lane.b32.xlu0 %v5584_v26, %s11747_s28  ;;  %5700 = vrot.lane.b32.xlu1 %v5667_v23, %s11749_s20  ;;  %v5776_v23 = vmul.f32 %v14773_v18, %v15400_v29  ;;  %v5768_v18 = vmul.f32 %v18581_v46, %v14945_v45  ;;  %v18586_v46 = vld [vmem:[#allocation26_spill] sm:$0xff] }
 0x808   : > { %v15646_v2 = vpop.permute.xlu0 %5326  ;;  %v15650_v22 = vpop.permute.xlu1 %5206 }
 0x809   : > { %18574 = vst [vmem:[#allocation127_spill] sm:$0xff] %v15646_v2 }
 0x80a   : > { %5632 = vrot.lane.b32.xlu0 %v5585_v52, %s11747_s28  ;;  %5796 = vrot.lane.b32.xlu1 %v5763_v8, %s11748_s19  ;;  %v18579_v8 = vld [vmem:[#allocation35_spill] sm:$0xff] }
 0x80b   : > { %v5673_v21 = vmul.f32 %v18580_v32, %v18579_v8 }
 0x80c   : > { %v15658_v10 = vpop.permute.xlu0 %5422  ;;  %v4761_v26 = vpop.permute.xlu1 %4760 }
 0x80d   : > { %18576 = vst [vmem:[#allocation22_spill] sm:$0xff] %v15658_v10  ;;  %v4797_v52 = vadd.f32 %v4761_v26, %v4701_v35 }
 0x80e   : > { %5726 = vrot.lane.b32.xlu0 %v5680_v43, %s11749_s20  ;;  %5494 = vrot.lane.b32.xlu1 %v5460_v7, %s11748_s19 }
 0x810   : > { %v15667_v51 = vpop.permute.xlu0 %5518  ;;  %v4905_v20 = vpop.permute.xlu1 %4904 }
 0x811   : > { %18578 = vst [vmem:[#allocation56_spill] sm:$0xff] %v15667_v51  ;;  %v4941_v10 = vadd.f32 %v4905_v20, %v4797_v52  ;;  %v11353_v43 = vpop.eup %11352  ;;  %v18583_v20 = vld [vmem:[#allocation126_spill] sm:$0xff] }
 0x812   : > { %5822 = vrot.lane.b32.xlu0 %v5776_v23, %s11748_s19  ;;  %5712 = vrot.lane.b32.xlu1 %v5673_v21, %s11749_s20  ;;  %v5769_v35 = vmul.f32 %v18583_v20, %v18580_v32  ;;  %v18585_v23 = vld [vmem:[#allocation37_spill] sm:$0xff]  ;;  %v18587_v20 = vld [vmem:[#allocation59_spill] sm:$0xff] }
 0x813   : > { %10597 = vmatmul.mubr.msk.f32.gmra.mxu0 %vm1410_vm5, %v4941_v10  ;;  %v5675_v52 = vmul.f32 %v15083_v59, %v18585_v23  ;;  %v18588_v23 = vld [vmem:[#allocation55_spill] sm:$0xff] }
 0x814   : > { %v15674_v63 = vpop.permute.xlu0 %5022  ;;  %v15678_v7 = vpop.permute.xlu1 %5416  ;;  %v5771_v45 = vmul.f32 %v18588_v23, %v15083_v59  ;;  %v5764_v23 = vmul.f32 %v18577_v1, %v15565_v36  ;;  %v18594_v1 = vld [vmem:[#allocation71_spill] sm:$0xff] }
 0x815   : > { %18582 = vst [vmem:[#allocation133_spill] sm:$0xff] %v15678_v7 }
 0x816   : > { %6576 = vrot.lane.b32.xlu0 %v11353_v43, %s11747_s28  ;;  %5806 = vrot.lane.b32.xlu1 %v5768_v18, %s11748_s19  ;;  %v5770_v18 = vmul.f32 %v18586_v46, %v15046_v39  ;;  %v5677_v46 = vmul.f32 %v15179_v12, %v18526_v5  ;;  %v5772_v5 = vmul.f32 %v14738_v17, %v15142_v57 }
 0x818   : > { %v15682_v26 = vpop.permute.xlu0 %5118  ;;  %v15686_v21 = vpop.permute.xlu1 %5512 }
 0x819   : > { %18584 = vst [vmem:[#allocation35_spill] sm:$0xff] %v15686_v21 }
 0x81a   : > { %5808 = vrot.lane.b32.xlu1 %v5769_v35, %s11748_s19  ;;  %v4606_v35 = vmul.f32 %v18587_v20, %v15185_v24 }
 0x81c   : > { %v15689_v10 = vpop.permute.xlu0 %5214  ;;  %v15693_v8 = vpop.permute.xlu1 %5112 }
 0x81e   : > { %5716 = vrot.lane.b32.xlu1 %v5675_v52, %s11749_s20  ;;  %v4702_v52 = vadd.f32 %v15521_v34, %v4606_v35 }
 0x820   : > { %v15696_v43 = vpop.permute.xlu0 %4672  ;;  %v15700_v29 = vpop.permute.xlu1 %5208 }
 0x822   : > { %5810 = vrot.lane.b32.xlu1 %v5770_v18, %s11748_s19 }
 0x824   : > { %v15705_v32 = vpop.permute.xlu0 %4912  ;;  %v4763_v51 = vpop.permute.xlu1 %4762 }
 0x825   : > { %v4798_v2 = vadd.f32 %v4763_v51, %v4702_v52  ;;  %v4607_v52 = vmul.f32 %v18594_v1, %v15245_v40  ;;  %v5679_v40 = vmul.f32 %v15303_v19, %v18545_v3 }
 0x826   : > { %5812 = vrot.lane.b32.xlu1 %v5771_v45, %s11748_s19 }
 0x827   : > { %v4703_v57 = vadd.f32 %v15573_v44, %v4607_v52 }
 0x828   : > { %v15711_v21 = vpop.permute.xlu0 %5710  ;;  %v4907_v18 = vpop.permute.xlu1 %4906 }
 0x829   : > { %18589 = vst [vmem:[#allocation93_spill] sm:$0xff] %v15711_v21  ;;  %v4942_v39 = vadd.f32 %v4907_v18, %v4798_v2  ;;  %v5773_v18 = vmul.f32 %v14935_v25, %v15179_v12 }
 0x82a   : > { %5720 = vrot.lane.b32.xlu1 %v5677_v46, %s11749_s20 }
 0x82b   : > { %10599 = vmatprep.mubr.msk.f32.mxu0 %vm1410_vm5, %v4942_v39 }
 0x82c   : > { %v15717_v24 = vpop.permute.xlu0 %5328  ;;  %v15721_v34 = vpop.permute.xlu1 %5514 }
 0x82d   : > { %18590 = vst [vmem:[#allocation126_spill] sm:$0xff] %v15717_v24  ;;  %18591 = vst [vmem:[#allocation37_spill] sm:$0xff] %v15721_v34 }
 0x82e   : > { %5798 = vrot.lane.b32.xlu1 %v5764_v23, %s11748_s19  ;;  %v18595_v23 = vld [vmem:[#allocation130_spill] sm:$0xff] }
 0x82f   : > { %v10586_v45 = vpop.f32.mrf.mxu0  ;;  %v4608_v59 = vmul.f32 %v18595_v23, %v15279_v49 }
 0x830   : > { %v15724_v51 = vpop.permute.xlu0 %5520  ;;  %v15728_v2 = vpop.permute.xlu1 %5210 }
 0x831   : > { %18592 = vst [vmem:[#allocation26_spill] sm:$0xff] %v15724_v51  ;;  %v6137_v35 = vpop.f32.mrf.mxu0 }
 0x832   : > { %v15731_v39 = vadd.f32 %v15624_v28, %v6137_v35  ;;  %5814 = vrot.lane.b32.xlu1 %v5772_v5, %s11748_s19  ;;  %v4704_v35 = vadd.f32 %v15605_v11, %v4608_v59  ;;  %v5774_v59 = vmul.f32 %v14759_v15, %v18567_v9  ;;  %v6510_v15 = vld [vmem:[%s17542_s9] sm:$0xff]  ;;  %v15778_v11 = vadd.f32 %v10586_v45, %v15624_v28 }
 0x833   : > { %v18601_v45 = vld [vmem:[#allocation118_spill] sm:$0xff] }
 0x834   : > { %18593 = vst [vmem:[#allocation59_spill] sm:$0xff] %v15731_v39  ;;  %v15736_v46 = vpop.permute.xlu0 %5024  ;;  %11354 = vtanh.f32 %v15731_v39  ;;  %v4765_v17 = vpop.permute.xlu1 %4764  ;;  %v4800_v25 = vadd.f32 %v15616_v0, %v4704_v35  ;;  %v5775_v0 = vmul.f32 %v14949_v6, %v15303_v19  ;;  %18599 = vst [vmem:[#allocation136_spill] sm:$0xff] %v15778_v11  ;;  %v18607_v39 = vld [vmem:[#allocation94_spill] sm:$0xff] }
 0x835   : > { %v4799_v5 = vadd.f32 %v4765_v17, %v4703_v57  ;;  %v15760_v57 = vadd.f32 %v15614_v48, %v15624_v28  ;;  %v18602_v17 = vld [vmem:[#allocation131_spill] sm:$0xff] }
 0x836   : > { %5816 = vrot.lane.b32.xlu1 %v5773_v18, %s11748_s19  ;;  %v4944_v49 = vadd.f32 %v15633_v13, %v4800_v25  ;;  %v5681_v18 = vmul.f32 %v15635_v31, %v18557_v27  ;;  %v4946_v35 = vmul.f32 %v18602_v17, %v18601_v45  ;;  %v18603_v25 = vld [vmem:[#allocation116_spill] sm:$0xff] }
 0x837   : > { %18596 = vst [vmem:[#allocation55_spill] sm:$0xff] %v15760_v57  ;;  %11356 = vtanh.f32 %v15760_v57  ;;  %v18604_v27 = vld [vmem:[#allocation100_spill] sm:$0xff]  ;;  %v18608_v57 = vld [vmem:[#allocation18_spill] sm:$0xff] }
 0x838   : > { %v15746_v21 = vpop.permute.xlu0 %5216  ;;  %v4909_v12 = vpop.permute.xlu1 %4908  ;;  %11358 = vtanh.f32 %v15778_v11 }
 0x839   : > { %v4943_v36 = vadd.f32 %v4909_v12, %v4799_v5  ;;  %v6511_v12 = vld [vmem:[%s17542_s9 + $0x8] sm:$0xff] }
 0x83a   : > { %5724 = vrot.lane.b32.xlu1 %v5679_v40, %s11749_s20  ;;  %10677 = vmatprep.subr.mxu1 %v6511_v12  ;;  %v5777_v40 = vmul.f32 %v14967_v50, %v15635_v31  ;;  %v4947_v50 = vmul.f32 %v18608_v57, %v18607_v39  ;;  %v18616_v39 = vld [vmem:[#allocation72_spill] sm:$0xff] }
 0x83b   : > { %10600 = vmatmul.mubr.msk.f32.gmra.mxu0 %vm1410_vm5, %v4943_v36  ;;  %10678 = vmatpush3.msra.mxu1 %v6511_v12  ;;  %v4609_v12 = vmul.f32 %v18604_v27, %v15377_v30  ;;  %v18611_v30 = vld [vmem:[#allocation113_spill] sm:$0xff] }
 0x83c   : > { %v15754_v44 = vpop.permute.xlu0 %5394  ;;  %10602 = vmatprep.mubr.msk.f32.mxu0 %vm1410_vm5, %v4944_v49  ;;  %v15763_v3 = vpop.permute.xlu1 %5420  ;;  %10679 = vmatprep.subr.mxu1 %v6510_v15  ;;  %v5042_v49 = vadd.f32 %v18603_v25, %v4946_v35  ;;  %v18609_v35 = vld [vmem:[#allocation120_spill] sm:$0xff]  ;;  %v5043_v9 = vadd.f32 %v18611_v30, %v4947_v50  ;;  %v18620_v30 = vld [vmem:[#allocation98_spill] sm:$0xff] }
 0x83d   : > { %18597 = vst [vmem:[#allocation71_spill] sm:$0xff] %v15763_v3  ;;  %10680 = vmatpush3.msra.mxu1 %v6510_v15  ;;  %v4705_v15 = vadd.f32 %v15696_v43, %v4609_v12  ;;  %v18610_v25 = vld [vmem:[#allocation128_spill] sm:$0xff]  ;;  %v18613_v12 = vld [vmem:[#allocation109_spill] sm:$0xff] }
 0x83e   : > { %5818 = vrot.lane.b32.xlu1 %v5774_v59, %s11748_s19  ;;  %v4948_v19 = vmul.f32 %v18610_v25, %v18609_v35 }
 0x840   : > { %v15769_v36 = vpop.permute.xlu0 %5698  ;;  %v15780_v48 = vpop.permute.xlu1 %5516 }
 0x841   : > { %18598 = vst [vmem:[#allocation130_spill] sm:$0xff] %v15769_v36  ;;  %18600 = vst [vmem:[#allocation137_spill] sm:$0xff] %v15780_v48  ;;  %v11355_v13 = vpop.eup %11354  ;;  %v18618_v48 = vld [vmem:[#allocation121_spill] sm:$0xff] }
 0x842   : > { %6580 = vrot.lane.b32.xlu0 %v11355_v13, %s11747_s28  ;;  %5820 = vrot.lane.b32.xlu1 %v5775_v0, %s11748_s19  ;;  %v18606_v13 = vld [vmem:[#allocation102_spill] sm:$0xff]  ;;  %v5139_v35 = vadd.f32 %v18618_v48, %v5043_v9  ;;  %v18626_v48 = vld [vmem:[#allocation45_spill] sm:$0xff] }
 0x844   : > { %v15784_v52 = vpop.permute.xlu0 %5302  ;;  %v15789_v6 = vpop.permute.xlu1 %5116 }
 0x845   : > { %v11357_v11 = vpop.eup %11356 }
 0x846   : > { %5728 = vrot.lane.b32.xlu1 %v5681_v18, %s11749_s20  ;;  %v5138_v18 = vadd.f32 %v18606_v13, %v5042_v49  ;;  %v18614_v49 = vld [vmem:[#allocation111_spill] sm:$0xff]  ;;  %v11359_v36 = vpop.eup %11358 }
 0x847   : > { %v5044_v13 = vadd.f32 %v18614_v49, %v4948_v19  ;;  %v18622_v19 = vld [vmem:[#allocation105_spill] sm:$0xff] }
 0x848   : > { %v15794_v5 = vpop.permute.xlu0 %5398  ;;  %v15799_v59 = vpop.permute.xlu1 %5212 }
 0x84a   : > { %5824 = vrot.lane.b32.xlu1 %v5777_v40, %s11748_s19 }
 0x84c   : > { %v15805_v0 = vpop.permute.xlu0 %5618  ;;  %v4769_v45 = vpop.permute.xlu1 %4768 }
 0x84d   : > { %18605 = vst [vmem:[#allocation118_spill] sm:$0xff] %v15805_v0  ;;  %v4801_v31 = vadd.f32 %v4769_v45, %v4705_v15  ;;  %v5234_v0 = vadd.f32 %v18613_v12, %v5138_v18  ;;  %v18617_v15 = vld [vmem:[#allocation119_spill] sm:$0xff] }
 0x84e   : > { %6578 = vrot.lane.b32.xlu1 %v11357_v11, %s11747_s28  ;;  %v4949_v45 = vmul.f32 %v18617_v15, %v18616_v39  ;;  %v18619_v11 = vld [vmem:[#allocation103_spill] sm:$0xff]  ;;  %v18625_v39 = vld [vmem:[#allocation70_spill] sm:$0xff] }
 0x84f   : > { %v4945_v40 = vadd.f32 %v15705_v32, %v4801_v31  ;;  %v5140_v50 = vadd.f32 %v18619_v11, %v5044_v13  ;;  %v18621_v31 = vld [vmem:[#allocation134_spill] sm:$0xff]  ;;  %v18623_v12 = vld [vmem:[#allocation115_spill] sm:$0xff] }
 0x850   : > { %v15815_v43 = vpop.permute.xlu0 %5620  ;;  %v15819_v51 = vpop.permute.xlu1 %5424  ;;  %v4950_v32 = vmul.f32 %v18621_v31, %v18620_v30  ;;  %v5045_v18 = vadd.f32 %v18622_v19, %v4949_v45  ;;  %v5235_v49 = vadd.f32 %v18623_v12, %v5139_v35  ;;  %v18628_v30 = vld [vmem:[#allocation123_spill] sm:$0xff]  ;;  %v18632_v12 = vld [vmem:[#allocation58_spill] sm:$0xff] }
 0x851   : > { %18612 = vst [vmem:[#allocation131_spill] sm:$0xff] %v15815_v43  ;;  %18615 = vst [vmem:[#allocation116_spill] sm:$0xff] %v15819_v51  ;;  %10603 = vmatmul.mubr.msk.f32.gmra.mxu0 %vm1410_vm5, %v4945_v40  ;;  %v5236_v40 = vadd.f32 %v18626_v48, %v5140_v50  ;;  %v18631_v35 = vld [vmem:[#allocation19_spill] sm:$0xff]  ;;  %v18634_v50 = vld [vmem:[#allocation44_spill] sm:$0xff] }
 0x852   : > { %6582 = vrot.lane.b32.xlu1 %v11359_v36, %s11747_s28  ;;  %10605 = vmatprep.mubr.msk.f32.mxu0 %vm1410_vm5, %v5234_v0  ;;  %v5046_v9 = vadd.f32 %v18625_v39, %v4950_v32  ;;  %v18629_v36 = vld [vmem:[#allocation27_spill] sm:$0xff]  ;;  %v18630_v0 = vld [vmem:[#allocation50_spill] sm:$0xff]  ;;  %v4952_v32 = vmul.f32 %v14852_v53, %v18632_v12 }
 0x853   : > { %v10589_v43 = vpop.f32.mrf.mxu0  ;;  %v4951_v3 = vmul.f32 %v18629_v36, %v18628_v30  ;;  %v5141_v24 = vadd.f32 %v18630_v0, %v5045_v18  ;;  %v18635_v48 = vld [vmem:[#allocation51_spill] sm:$0xff]  ;;  %v18637_v0 = vld [vmem:[#allocation60_spill] sm:$0xff] }
 0x854   : > { %v15832_v51 = vpop.permute.xlu0 %5714  ;;  %v15837_v13 = vadd.f32 %v10589_v43, %v15624_v28  ;;  %v15839_v11 = vpop.permute.xlu1 %5120  ;;  %v5142_v19 = vadd.f32 %v18631_v35, %v5046_v9  ;;  %v18639_v12 = vld [vmem:[#allocation99_spill] sm:$0xff] }
 0x855   : > { %18624 = vst [vmem:[#allocation100_spill] sm:$0xff] %v15832_v51  ;;  %v6147_v45 = vpop.f32.mrf.mxu0  ;;  %10606 = vmatmul.mubr.msk.f32.gmra.mxu0 %vm1410_vm5, %v5235_v49  ;;  %v5047_v39 = vadd.f32 %v18634_v50, %v4951_v3  ;;  %v5237_v30 = vadd.f32 %v18635_v48, %v5141_v24  ;;  %v5048_v49 = vadd.f32 %v18637_v0, %v4952_v32  ;;  %v18638_v51 = vld [vmem:[#allocation62_spill] sm:$0xff]  ;;  %v18642_v50 = vld [vmem:[#allocation108_spill] sm:$0xff] }
 0x856   : > { %18627 = vst [vmem:[#allocation102_spill] sm:$0xff] %v15837_v13  ;;  %11360 = vtanh.f32 %v15837_v13  ;;  %v15850_v43 = vadd.f32 %v15624_v28, %v6147_v45  ;;  %10608 = vmatprep.mubr.msk.f32.mxu0 %vm1410_vm5, %v5236_v40  ;;  %v5238_v9 = vadd.f32 %v18638_v51, %v5142_v19  ;;  %v4953_v13 = vmul.f32 %v14863_v41, %v18639_v12  ;;  %v18640_v45 = vld [vmem:[#allocation13_spill] sm:$0xff]  ;;  %v18643_v24 = vld [vmem:[#allocation124_spill] sm:$0xff]  ;;  %v18644_v32 = vld [vmem:[#allocation6_spill] sm:$0xff] }
 0x857   : > { %v5143_v34 = vadd.f32 %v18640_v45, %v5047_v39  ;;  %v18641_v40 = vld [vmem:[#allocation65_spill] sm:$0xff]  ;;  %v4954_v48 = vmul.f32 %v18643_v24, %v18642_v50  ;;  %v18645_v51 = vld [vmem:[#allocation15_spill] sm:$0xff]  ;;  %v18647_v12 = vld [vmem:[#allocation32_spill] sm:$0xff] }
 0x858   : > { %18633 = vst [vmem:[#allocation94_spill] sm:$0xff] %v15850_v43  ;;  %v15855_v18 = vpop.permute.xlu0 %5622  ;;  %11362 = vtanh.f32 %v15850_v43  ;;  %v5299_v35 = vpop.permute.xlu1 %5298  ;;  %v5144_v3 = vadd.f32 %v18641_v40, %v5048_v49  ;;  %v5049_v0 = vadd.f32 %v18644_v32, %v4953_v13  ;;  %v18648_v45 = vld [vmem:[#allocation112_spill] sm:$0xff]  ;;  %v18649_v49 = vld [vmem:[#allocation38_spill] sm:$0xff] }
 0x859   : > { %18636 = vst [vmem:[#allocation18_spill] sm:$0xff] %v15855_v18  ;;  %10609 = vmatmul.mubr.msk.f32.gmra.mxu0 %vm1410_vm5, %v5237_v30  ;;  %v5239_v19 = vadd.f32 %v18645_v51, %v5143_v34  ;;  %v18646_v18 = vld [vmem:[#allocation16_spill] sm:$0xff]  ;;  %v4955_v30 = vmul.f32 %v14892_v16, %v18648_v45  ;;  %v18651_v24 = vld [vmem:[#allocation66_spill] sm:$0xff]  ;;  %v18652_v34 = vld [vmem:[#allocation31_spill] sm:$0xff] }
 0x85a   : > { %10611 = vmatprep.mubr.msk.f32.mxu0 %vm1410_vm5, %v5238_v9  ;;  %v5050_v7 = vadd.f32 %v18646_v18, %v4954_v48  ;;  %v5240_v38 = vadd.f32 %v18647_v12, %v5144_v3  ;;  %v5145_v40 = vadd.f32 %v18649_v49, %v5049_v0  ;;  %v18650_v50 = vld [vmem:[#allocation28_spill] sm:$0xff]  ;;  %v4956_v13 = vmul.f32 %v18569_v61, %v18651_v24  ;;  %v18653_v18 = vld [vmem:[#allocation87_spill] sm:$0xff]  ;;  %v18654_v51 = vld [vmem:[#allocation85_spill] sm:$0xff] }
 0x85b   : > { %v5051_v32 = vadd.f32 %v18652_v34, %v4955_v30  ;;  %v18657_v30 = vld [vmem:[#allocation49_spill] sm:$0xff] }
 0x85c   : > { %v15870_v43 = vpop.permute.xlu0 %5624  ;;  %v5491_v39 = vpop.permute.xlu1 %5490  ;;  %v5146_v9 = vadd.f32 %v18650_v50, %v5050_v7  ;;  %v5241_v48 = vadd.f32 %v18653_v18, %v5145_v40  ;;  %v5052_v12 = vadd.f32 %v18654_v51, %v4956_v13  ;;  %v4958_v40 = vmul.f32 %v18587_v20, %v18657_v30 }
 0x85d   : > { %10612 = vmatmul.mubr.msk.f32.gmra.mxu0 %vm1410_vm5, %v5239_v19  ;;  %v18655_v19 = vld [vmem:[#allocation117_spill] sm:$0xff]  ;;  %v5147_v49 = vadd.f32 %v15587_v14, %v5051_v32 }
 0x85e   : > { %10614 = vmatprep.mubr.msk.f32.mxu0 %vm1410_vm5, %v5240_v38  ;;  %v5242_v45 = vadd.f32 %v15535_v42, %v5146_v9  ;;  %v4957_v7 = vmul.f32 %v18575_v62, %v18655_v19  ;;  %v18656_v38 = vld [vmem:[#allocation86_spill] sm:$0xff]  ;;  %v5054_v34 = vadd.f32 %v15552_v55, %v4958_v40  ;;  %v5250_v55 = vmul.f32 %v18602_v17, %v15437_v33 }
 0x85f   : > { %v5148_v24 = vadd.f32 %v18656_v38, %v5052_v12  ;;  %v5243_v42 = vadd.f32 %v15597_v56, %v5147_v49  ;;  %v18658_v56 = vld [vmem:[#allocation10_spill] sm:$0xff] }
 0x860   : > { %v15884_v3 = vpop.permute.xlu0 %5718  ;;  %v15888_v0 = vpop.permute.xlu1 %5602  ;;  %v5053_v13 = vadd.f32 %v15512_v4, %v4957_v7  ;;  %v5150_v4 = vadd.f32 %v15561_v37, %v5054_v34  ;;  %v4960_v12 = vmul.f32 %v18595_v23, %v18658_v56  ;;  %v5346_v7 = vadd.f32 %v5299_v35, %v5250_v55 }
 0x861   : > { %10615 = vmatmul.mubr.msk.f32.gmra.mxu0 %vm1410_vm5, %v5241_v48  ;;  %v5244_v14 = vadd.f32 %v15650_v22, %v5148_v24  ;;  %v4959_v48 = vmul.f32 %v18594_v1, %v15267_v47 }
 0x862   : > { %10617 = vmatprep.mubr.msk.f32.mxu0 %vm1410_vm5, %v5242_v45  ;;  %v5149_v51 = vadd.f32 %v15693_v8, %v5053_v13  ;;  %v4961_v8 = vmul.f32 %v18604_v27, %v15423_v58  ;;  %v5056_v37 = vadd.f32 %v15674_v63, %v4960_v12  ;;  %v5246_v19 = vadd.f32 %v15728_v2, %v5150_v4  ;;  %v18662_v12 = vld [vmem:[#allocation23_spill] sm:$0xff] }
 0x863   : > { %v11361_v50 = vpop.eup %11360  ;;  %v5055_v22 = vadd.f32 %v15593_v60, %v4959_v48  ;;  %v5442_v2 = vadd.f32 %v15754_v44, %v5346_v7  ;;  %v18665_v7 = vld [vmem:[#allocation122_spill] sm:$0xff] }
 0x864   : > { %v15900_v9 = vpop.permute.xlu0 %5606  ;;  %6586 = vrot.lane.b32.xlu1 %v11361_v50, %s11747_s28  ;;  %v15905_v32 = vpop.permute.xlu1 %5794  ;;  %v5245_v47 = vadd.f32 %v15700_v29, %v5149_v51  ;;  %v5057_v33 = vadd.f32 %v15736_v46, %v4961_v8  ;;  %v5152_v60 = vadd.f32 %v15682_v26, %v5056_v37  ;;  %v18659_v46 = vld [vmem:[#allocation82_spill] sm:$0xff]  ;;  %v18661_v51 = vld [vmem:[#allocation96_spill] sm:$0xff] }
 0x865   : > { %v11363_v18 = vpop.eup %11362  ;;  %10618 = vmatmul.mubr.msk.f32.gmra.mxu0 %vm1410_vm5, %v5243_v42  ;;  %v5151_v38 = vadd.f32 %v15789_v6, %v5055_v22  ;;  %v5251_v6 = vmul.f32 %v18608_v57, %v18659_v46  ;;  %v5254_v4 = vmul.f32 %v18621_v31, %v18661_v51  ;;  %v18663_v22 = vld [vmem:[#allocation21_spill] sm:$0xff] }
 0x866   : > { %6584 = vrot.lane.b32.xlu0 %v11363_v18, %s11747_s28  ;;  %10620 = vmatprep.mubr.msk.f32.mxu0 %vm1410_vm5, %v5244_v14  ;;  %v5153_v58 = vadd.f32 %v15839_v11, %v5057_v33  ;;  %v5248_v63 = vadd.f32 %v15689_v10, %v5152_v60  ;;  %v5538_v11 = vadd.f32 %v5491_v39, %v5442_v2  ;;  %v18660_v14 = vld [vmem:[#allocation25_spill] sm:$0xff] }
 0x867   : > { %v5247_v29 = vadd.f32 %v15799_v59, %v5151_v38  ;;  %v5252_v39 = vmul.f32 %v18610_v25, %v15483_v54  ;;  %v5253_v18 = vmul.f32 %v18617_v15, %v18660_v14  ;;  %v18664_v54 = vld [vmem:[#allocation107_spill] sm:$0xff] }
 0x868   : > { %v15922_v45 = vpop.permute.xlu0 %5702  ;;  %v5301_v49 = vpop.permute.xlu1 %5300  ;;  %v5249_v26 = vadd.f32 %v15746_v21, %v5153_v58  ;;  %v18666_v38 = vld [vmem:[#allocation63_spill] sm:$0xff] }
 0x869   : > { %10621 = vmatmul.mubr.msk.f32.gmra.mxu0 %vm1410_vm5, %v5245_v47  ;;  %v5347_v30 = vadd.f32 %v5301_v49, %v5251_v6  ;;  %v5348_v56 = vadd.f32 %v15784_v52, %v5252_v39  ;;  %v5349_v55 = vadd.f32 %v18662_v12, %v5253_v18  ;;  %v5350_v47 = vadd.f32 %v18663_v22, %v5254_v4  ;;  %v18670_v6 = vld [vmem:[#allocation53_spill] sm:$0xff]  ;;  %v18674_v4 = vld [vmem:[#allocation54_spill] sm:$0xff] }
 0x86a   : > { %10623 = vmatprep.mubr.msk.f32.mxu0 %vm1410_vm5, %v5246_v19  ;;  %v5255_v49 = vmul.f32 %v18629_v36, %v18665_v7  ;;  %v18673_v39 = vld [vmem:[#allocation9_spill] sm:$0xff]  ;;  %v18675_v12 = vld [vmem:[#allocation106_spill] sm:$0xff] }
 0x86b   : > { %v5444_v8 = vadd.f32 %v15794_v5, %v5348_v56  ;;  %v5445_v19 = vadd.f32 %v18664_v54, %v5349_v55  ;;  %v5446_v60 = vadd.f32 %v18666_v38, %v5350_v47  ;;  %v18676_v55 = vld [vmem:[#allocation124_spill] sm:$0xff] }
 0x86c   : > { %v15933_v24 = vpop.permute.xlu0 %5626  ;;  %v5397_v35 = vpop.permute.xlu1 %5396  ;;  %v5258_v22 = vmul.f32 %v18676_v55, %v18675_v12 }
 0x86d   : > { %10624 = vmatmul.mubr.msk.f32.gmra.mxu0 %vm1410_vm5, %v5247_v29  ;;  %v5443_v50 = vadd.f32 %v5397_v35, %v5347_v30  ;;  %v18667_v29 = vld [vmem:[#allocation125_spill] sm:$0xff]  ;;  %v18669_v35 = vld [vmem:[#allocation47_spill] sm:$0xff] }
 0x86e   : > { %10626 = vmatprep.mubr.msk.f32.mxu0 %vm1410_vm5, %v5248_v63  ;;  %v5256_v58 = vmul.f32 %v14852_v53, %v18667_v29  ;;  %v18668_v63 = vld [vmem:[#allocation69_spill] sm:$0xff]  ;;  %v5351_v46 = vadd.f32 %v18669_v35, %v5255_v49 }
 0x86f   : > { %v5541_v2 = vadd.f32 %v18668_v63, %v5445_v19  ;;  %v18678_v19 = vld [vmem:[#allocation11_spill] sm:$0xff] }
 0x870   : > { %v15942_v59 = vpop.permute.xlu0 %5628  ;;  %v5493_v40 = vpop.permute.xlu1 %5492  ;;  %v5352_v5 = vadd.f32 %v18670_v6, %v5256_v58  ;;  %v5447_v14 = vadd.f32 %v18673_v39, %v5351_v46  ;;  %v18683_v6 = vld [vmem:[#allocation14_spill] sm:$0xff] }
 0x871   : > { %10627 = vmatmul.mubr.msk.f32.gmra.mxu0 %vm1410_vm5, %v5249_v26  ;;  %v5539_v10 = vadd.f32 %v5493_v40, %v5443_v50  ;;  %v18671_v26 = vld [vmem:[#allocation61_spill] sm:$0xff] }
 0x872   : > { %10629 = vmatprep.mubr.msk.f32.mxu0 %vm1410_vm5, %v5538_v11  ;;  %v5542_v30 = vadd.f32 %v18671_v26, %v5446_v60  ;;  %v18672_v50 = vld [vmem:[#allocation97_spill] sm:$0xff]  ;;  %v5448_v56 = vadd.f32 %v18674_v4, %v5352_v5  ;;  %v5543_v7 = vadd.f32 %v18678_v19, %v5447_v14  ;;  %v18684_v26 = vld [vmem:[#allocation114_spill] sm:$0xff]  ;;  %v18687_v14 = vld [vmem:[#allocation80_spill] sm:$0xff] }
 0x873   : > { %v18680_v60 = vld [vmem:[#allocation81_spill] sm:$0xff] }
 0x874   : > { %v15946_v44 = vpop.permute.xlu0 %5722  ;;  %v15948_v13 = vpop.permute.xlu1 %5604  ;;  %v5544_v29 = vadd.f32 %v18680_v60, %v5448_v56  ;;  %v18688_v56 = vld [vmem:[#allocation89_spill] sm:$0xff] }
 0x875   : > { %10630 = vmatmul.mubr.msk.f32.gmra.mxu0 %vm1410_vm5, %v5539_v10  ;;  %v5257_v10 = vmul.f32 %v14863_v41, %v18672_v50 }
 0x878   : > { %v15951_v42 = vpop.permute.xlu0 %5630  ;;  %v15953_v21 = vpop.permute.xlu1 %5700 }
 0x87c   : > { %v15957_v34 = vpop.permute.xlu0 %5632  ;;  %v15961_v48 = vpop.permute.xlu1 %5796 }
 0x880   : > { %v15969_v37 = vpop.permute.xlu0 %5726  ;;  %v5495_v33 = vpop.permute.xlu1 %5494 }
 0x881   : > { %v5540_v52 = vadd.f32 %v5495_v33, %v5444_v8  ;;  %v18677_v8 = vld [vmem:[#allocation4_spill] sm:$0xff] }
 0x882   : > { %v5353_v54 = vadd.f32 %v18677_v8, %v5257_v10  ;;  %v18679_v33 = vld [vmem:[#allocation12_spill] sm:$0xff]  ;;  %v18690_v8 = vld [vmem:[#allocation90_spill] sm:$0xff] }
 0x883   : > { %v10592_v11 = vpop.f32.mrf.mxu0  ;;  %10632 = vmatprep.mubr.msk.f32.mxu0 %vm1410_vm5, %v5540_v52  ;;  %v5354_v38 = vadd.f32 %v18679_v33, %v5258_v22  ;;  %v18681_v52 = vld [vmem:[#allocation104_spill] sm:$0xff] }
 0x884   : > { %v15982_v40 = vpop.permute.xlu0 %5822  ;;  %v15988_v18 = vadd.f32 %v10592_v11, %v15624_v28  ;;  %10633 = vmatmul.mubr.msk.f32.gmra.mxu0 %vm1410_vm5, %v5541_v2  ;;  %v15991_v51 = vpop.permute.xlu1 %5712  ;;  %v5259_v63 = vmul.f32 %v14892_v16, %v18681_v52  ;;  %v18682_v2 = vld [vmem:[#allocation33_spill] sm:$0xff]  ;;  %v18685_v11 = vld [vmem:[#allocation79_spill] sm:$0xff]  ;;  %v18686_v10 = vld [vmem:[#allocation84_spill] sm:$0xff] }
 0x885   : > { %v6157_v47 = vpop.f32.mrf.mxu0  ;;  %10635 = vmatprep.mubr.msk.f32.mxu0 %vm1410_vm5, %v5542_v30  ;;  %v5449_v35 = vadd.f32 %v18682_v2, %v5353_v54  ;;  %v5450_v5 = vadd.f32 %v18683_v6, %v5354_v38  ;;  %v5260_v30 = vmul.f32 %v18569_v61, %v18684_v26  ;;  %v18689_v22 = vld [vmem:[#allocation64_spill] sm:$0xff]  ;;  %v18692_v38 = vld [vmem:[#allocation46_spill] sm:$0xff]  ;;  %v18694_v52 = vld [vmem:[#allocation41_spill] sm:$0xff] }
 0x886   : > { %11364 = vtanh.f32 %v15988_v18  ;;  %v16001_v49 = vadd.f32 %v15624_v28, %v6157_v47  ;;  %v5355_v50 = vadd.f32 %v18685_v11, %v5259_v63  ;;  %v5261_v47 = vmul.f32 %v18575_v62, %v18689_v22  ;;  %v18695_v2 = vld [vmem:[#allocation91_spill] sm:$0xff]  ;;  %v18696_v6 = vld [vmem:[#allocation29_spill] sm:$0xff] }
 0x887   : > { %v5545_v39 = vadd.f32 %v18686_v10, %v5449_v35  ;;  %v5356_v4 = vadd.f32 %v18687_v14, %v5260_v30  ;;  %v5546_v12 = vadd.f32 %v18688_v56, %v5450_v5  ;;  %v5262_v60 = vmul.f32 %v18587_v20, %v18692_v38  ;;  %v18697_v26 = vld [vmem:[#allocation57_spill] sm:$0xff] }
 0x888   : > { %v6577_v58 = vpop.permute.xlu0 %6576  ;;  %11366 = vtanh.f32 %v16001_v49  ;;  %10636 = vmatmul.mubr.msk.f32.gmra.mxu0 %vm1410_vm5, %v5543_v7  ;;  %v16010_v46 = vpop.permute.xlu1 %5806  ;;  %v5451_v54 = vadd.f32 %v18690_v8, %v5355_v50  ;;  %v18691_v7 = vld [vmem:[#allocation34_spill] sm:$0xff]  ;;  %v5263_v30 = vmul.f32 %v18594_v1, %v18697_v26  ;;  %v18698_v11 = vld [vmem:[#allocation133_spill] sm:$0xff]  ;;  %v18708_v26 = vld [vmem:[#allocation71_spill] sm:$0xff] }
 0x889   : > { %10681 = vmatprep.mubr.msk.f32.mxu1 %vm6704_vm7, %v6577_v58  ;;  %10638 = vmatprep.mubr.msk.f32.mxu0 %vm1410_vm5, %v5544_v29  ;;  %v5452_v33 = vadd.f32 %v18691_v7, %v5356_v4  ;;  %v18693_v29 = vld [vmem:[#allocation40_spill] sm:$0xff]  ;;  %v5358_v35 = vadd.f32 %v18695_v2, %v5262_v60  ;;  %v18700_v4 = vld [vmem:[#allocation7_spill] sm:$0xff] }
 0x88a   : > { %v5357_v58 = vadd.f32 %v18693_v29, %v5261_v47  ;;  %v5547_v63 = vadd.f32 %v18694_v52, %v5451_v54  ;;  %v5264_v56 = vmul.f32 %v18595_v23, %v18700_v4  ;;  %v18702_v47 = vld [vmem:[#allocation43_spill] sm:$0xff]  ;;  %v18706_v52 = vld [vmem:[#allocation37_spill] sm:$0xff] }
 0x88b   : > { %v5548_v5 = vadd.f32 %v18696_v6, %v5452_v33  ;;  %v5359_v8 = vadd.f32 %v18702_v47, %v5263_v30  ;;  %v18703_v54 = vld [vmem:[#allocation35_spill] sm:$0xff]  ;;  %v18704_v33 = vld [vmem:[#allocation30_spill] sm:$0xff] }
 0x88c   : > { %10639 = vmatmul.mubr.msk.f32.gmra.mxu0 %vm1410_vm5, %v5545_v39  ;;  %v16025_v19 = vpop.permute.xlu1 %5808  ;;  %v5453_v50 = vadd.f32 %v18698_v11, %v5357_v58  ;;  %v18699_v39 = vld [vmem:[#allocation42_spill] sm:$0xff]  ;;  %v5265_v38 = vmul.f32 %v18604_v27, %v18704_v33  ;;  %v18705_v29 = vld [vmem:[#allocation127_spill] sm:$0xff] }
 0x88d   : > { %10641 = vmatprep.mubr.msk.f32.mxu0 %vm1410_vm5, %v5546_v12  ;;  %v5454_v14 = vadd.f32 %v18699_v39, %v5358_v35  ;;  %v18701_v12 = vld [vmem:[#allocation83_spill] sm:$0xff]  ;;  %v5360_v58 = vadd.f32 %v18705_v29, %v5264_v56  ;;  %v18707_v35 = vld [vmem:[#allocation126_spill] sm:$0xff]  ;;  %v18710_v39 = vld [vmem:[#allocation137_spill] sm:$0xff] }
 0x88e   : > { %v5554_v22 = vmul.f32 %v18602_v17, %v18701_v12  ;;  %v5549_v7 = vadd.f32 %v18703_v54, %v5453_v50  ;;  %v5361_v6 = vadd.f32 %v18707_v35, %v5265_v38  ;;  %v5455_v17 = vadd.f32 %v18708_v26, %v5359_v8  ;;  %v18709_v11 = vld [vmem:[#allocation22_spill] sm:$0xff]  ;;  %v18711_v56 = vld [vmem:[#allocation116_spill] sm:$0xff]  ;;  %v18716_v29 = vld [vmem:[#allocation39_spill] sm:$0xff] }
 0x88f   : > { %v5456_v50 = vadd.f32 %v18709_v11, %v5360_v58  ;;  %v18714_v8 = vld [vmem:[#allocation36_spill] sm:$0xff]  ;;  %v18715_v33 = vld [vmem:[#allocation26_spill] sm:$0xff]  ;;  %v5556_v58 = vmul.f32 %v18610_v25, %v18716_v29  ;;  %v18730_v29 = vld [vmem:[#allocation17_spill] sm:$0xff] }
 0x890   : > { %10642 = vmatmul.mubr.msk.f32.gmra.mxu0 %vm1410_vm5, %v5547_v63  ;;  %v16039_v10 = vpop.permute.xlu1 %5716  ;;  %v5550_v63 = vadd.f32 %v18706_v52, %v5454_v14  ;;  %v5650_v2 = vadd.f32 %v15888_v0, %v5554_v22  ;;  %v5551_v4 = vadd.f32 %v18710_v39, %v5455_v17  ;;  %v5457_v14 = vadd.f32 %v18711_v56, %v5361_v6  ;;  %v18712_v0 = vld [vmem:[#allocation56_spill] sm:$0xff]  ;;  %v18713_v22 = vld [vmem:[#allocation130_spill] sm:$0xff]  ;;  %v18718_v6 = vld [vmem:[#allocation95_spill] sm:$0xff] }
 0x891   : > { %10644 = vmatprep.mubr.msk.f32.mxu0 %vm1410_vm5, %v5548_v5  ;;  %v5552_v12 = vadd.f32 %v18712_v0, %v5456_v50  ;;  %v5555_v54 = vmul.f32 %v18608_v57, %v18714_v8  ;;  %v5558_v26 = vmul.f32 %v18621_v31, %v18718_v6  ;;  %v5652_v17 = vadd.f32 %v15900_v9, %v5556_v58  ;;  %v18721_v50 = vld [vmem:[#allocation68_spill] sm:$0xff]  ;;  %v18722_v39 = vld [vmem:[#allocation135_spill] sm:$0xff] }
 0x892   : > { %v5746_v47 = vadd.f32 %v18713_v22, %v5650_v2  ;;  %v5553_v38 = vadd.f32 %v18715_v33, %v5457_v14  ;;  %v18723_v56 = vld [vmem:[#allocation24_spill] sm:$0xff]  ;;  %v18724_v14 = vld [vmem:[#allocation67_spill] sm:$0xff] }
 0x893   : > { %v11365_v60 = vpop.eup %11364  ;;  %v5560_v0 = vmul.f32 %v14852_v53, %v18724_v14  ;;  %v18725_v22 = vld [vmem:[#allocation75_spill] sm:$0xff]  ;;  %v18731_v53 = vld [vmem:[#allocation93_spill] sm:$0xff]  ;;  %v18733_v6 = vld [vmem:[#allocation8_spill] sm:$0xff] }
 0x894   : > { %6590 = vrot.lane.b32.xlu1 %v11365_v60, %s11747_s28  ;;  %10645 = vmatmul.mubr.msk.f32.gmra.mxu0 %vm1410_vm5, %v5549_v7  ;;  %v5811_v5 = vpop.permute.xlu1 %5810  ;;  %v5651_v60 = vadd.f32 %v15948_v13, %v5555_v54  ;;  %v5842_v52 = vadd.f32 %v15905_v32, %v5746_v47  ;;  %v18719_v13 = vld [vmem:[#allocation20_spill] sm:$0xff]  ;;  %v18727_v54 = vld [vmem:[#allocation2_spill] sm:$0xff]  ;;  %v18728_v33 = vld [vmem:[#allocation3_spill] sm:$0xff] }
 0x895   : > { %v11367_v30 = vpop.eup %11366  ;;  %10647 = vmatprep.mubr.msk.f32.mxu0 %vm1410_vm5, %v5550_v63  ;;  %v18717_v63 = vld [vmem:[#allocation73_spill] sm:$0xff]  ;;  %v18720_v32 = vld [vmem:[#allocation92_spill] sm:$0xff] }
 0x896   : > { %6588 = vrot.lane.b32.xlu0 %v11367_v30, %s11747_s28  ;;  %v5557_v2 = vmul.f32 %v18617_v15, %v18717_v63  ;;  %v5747_v35 = vadd.f32 %v15953_v21, %v5651_v60  ;;  %v5654_v11 = vadd.f32 %v18720_v32, %v5558_v26  ;;  %v5748_v15 = vadd.f32 %v15922_v45, %v5652_v17  ;;  %v18726_v47 = vld [vmem:[#allocation48_spill] sm:$0xff]  ;;  %v18734_v17 = vld [vmem:[#allocation77_spill] sm:$0xff]  ;;  %v18736_v32 = vld [vmem:[#allocation74_spill] sm:$0xff] }
 0x897   : > { %v5656_v45 = vadd.f32 %v18727_v54, %v5560_v0 }
 0x898   : > { %10648 = vmatmul.mubr.msk.f32.gmra.mxu0 %vm1410_vm5, %v5551_v4  ;;  %v5813_v7 = vpop.permute.xlu1 %5812  ;;  %v5653_v30 = vadd.f32 %v18719_v13, %v5557_v2  ;;  %v5843_v25 = vadd.f32 %v15961_v48, %v5747_v35  ;;  %v5559_v4 = vmul.f32 %v18629_v36, %v18722_v39  ;;  %v5750_v9 = vadd.f32 %v18723_v56, %v5654_v11  ;;  %v18729_v36 = vld [vmem:[#allocation101_spill] sm:$0xff]  ;;  %v18732_v2 = vld [vmem:[#allocation110_spill] sm:$0xff] }
 0x899   : > { %10650 = vmatprep.mubr.msk.f32.mxu0 %vm1410_vm5, %v5552_v12  ;;  %v5561_v60 = vmul.f32 %v14863_v41, %v18729_v36  ;;  %v5752_v63 = vadd.f32 %v18731_v53, %v5656_v45  ;;  %v5562_v35 = vmul.f32 %v18676_v55, %v18732_v2  ;;  %v5563_v11 = vmul.f32 %v14892_v16, %v18736_v32  ;;  %v18738_v39 = vld [vmem:[#allocation129_spill] sm:$0xff] }
 0x89a   : > { %v5749_v21 = vadd.f32 %v18721_v50, %v5653_v30  ;;  %v5655_v8 = vadd.f32 %v18726_v47, %v5559_v4  ;;  %v18735_v30 = vld [vmem:[#allocation118_spill] sm:$0xff]  ;;  %v5564_v4 = vmul.f32 %v18569_v61, %v18738_v39 }
 0x89b   : > { %v5657_v26 = vadd.f32 %v18733_v6, %v5561_v60  ;;  %v5848_v41 = vadd.f32 %v16010_v46, %v5752_v63  ;;  %v18740_v46 = vld [vmem:[#allocation18_spill] sm:$0xff] }
 0x89c   : > { %10651 = vmatmul.mubr.msk.f32.gmra.mxu0 %vm1410_vm5, %v5553_v38  ;;  %v5721_v57 = vpop.permute.xlu1 %5720  ;;  %v5845_v48 = vadd.f32 %v18725_v22, %v5749_v21  ;;  %v5846_v38 = vadd.f32 %v18728_v33, %v5750_v9  ;;  %v5751_v58 = vadd.f32 %v18730_v29, %v5655_v8  ;;  %v18737_v21 = vld [vmem:[#allocation100_spill] sm:$0xff]  ;;  %v5660_v14 = vadd.f32 %v18740_v46, %v5564_v4  ;;  %v18745_v33 = vld [vmem:[#allocation5_spill] sm:$0xff]  ;;  %v18746_v60 = vld [vmem:[#allocation78_spill] sm:$0xff] }
 0x89d   : > { %10653 = vmatprep.mubr.msk.f32.mxu0 %vm1410_vm5, %v5842_v52  ;;  %v18743_v8 = vld [vmem:[#allocation52_spill] sm:$0xff]  ;;  %v5568_v29 = vmul.f32 %v18595_v23, %v18746_v60  ;;  %v16227_v60 = vld [vmem:[%s17541_s8] ss:$0 sm:$0xff] }
 0x89e   : > { %v5847_v13 = vadd.f32 %v18734_v17, %v5751_v58  ;;  %v5756_v47 = vadd.f32 %v15884_v3, %v5660_v14 }
 0x89f   : > { %v5664_v58 = vadd.f32 %v15951_v42, %v5568_v29 }
 0x8a0   : > { %10654 = vmatmul.mubr.msk.f32.gmra.mxu0 %vm1410_vm5, %v5843_v25  ;;  %v5799_v31 = vpop.permute.xlu1 %5798  ;;  %v5658_v25 = vadd.f32 %v18735_v30, %v5562_v35 }
 0x8a1   : > { %v5844_v12 = vadd.f32 %v5799_v31, %v5748_v15  ;;  %v5753_v15 = vadd.f32 %v15991_v51, %v5657_v26  ;;  %v18739_v31 = vld [vmem:[#allocation131_spill] sm:$0xff]  ;;  %v5760_v53 = vadd.f32 %v15969_v37, %v5664_v58 }
 0x8a2   : > { %v5754_v55 = vadd.f32 %v18737_v21, %v5658_v25  ;;  %v5659_v56 = vadd.f32 %v18739_v31, %v5563_v11 }
 0x8a3   : > { %10656 = vmatprep.mubr.msk.f32.mxu0 %vm1410_vm5, %v5844_v12  ;;  %v5849_v9 = vadd.f32 %v16025_v19, %v5753_v15  ;;  %v18741_v12 = vld [vmem:[#allocation132_spill] sm:$0xff]  ;;  %v5566_v19 = vmul.f32 %v18587_v20, %v18743_v8  ;;  %v5856_v23 = vadd.f32 %v15982_v40, %v5760_v53 }
 0x8a4   : > { %10657 = vmatmul.mubr.msk.f32.gmra.mxu0 %vm1410_vm5, %v5845_v48  ;;  %v5815_v52 = vpop.permute.xlu1 %5814  ;;  %v5850_v0 = vadd.f32 %v5811_v5, %v5754_v55  ;;  %v5565_v51 = vmul.f32 %v18575_v62, %v18741_v12  ;;  %v5755_v22 = vadd.f32 %v16039_v10, %v5659_v56 }
 0x8a5   : > { %10659 = vmatprep.mubr.msk.f32.mxu0 %vm1410_vm5, %v5846_v38  ;;  %v5662_v10 = vadd.f32 %v15933_v24, %v5566_v19  ;;  %v5567_v38 = vmul.f32 %v18594_v1, %v18745_v33  ;;  %v5852_v3 = vadd.f32 %v5815_v52, %v5756_v47 }
 0x8a6   : > { %v5661_v5 = vadd.f32 %v15870_v43, %v5565_v51  ;;  %v5851_v45 = vadd.f32 %v5813_v7, %v5755_v22 }
 0x8a7   : > { %v5663_v43 = vadd.f32 %v15942_v59, %v5567_v38  ;;  %v5758_v7 = vadd.f32 %v15946_v44, %v5662_v10  ;;  %v18747_v59 = vld [vmem:[#allocation88_spill] sm:$0xff] }
 0x8a8   : > { %10660 = vmatmul.mubr.msk.f32.gmra.mxu0 %vm1410_vm5, %v5847_v13  ;;  %v5817_v50 = vpop.permute.xlu1 %5816  ;;  %v5757_v36 = vadd.f32 %v5721_v57, %v5661_v5  ;;  %v5569_v44 = vmul.f32 %v18604_v27, %v18747_v59 }
 0x8a9   : > { %10662 = vmatprep.mubr.msk.f32.mxu0 %vm1410_vm5, %v5848_v41 }
 0x8aa   : > { %v5853_v24 = vadd.f32 %v5817_v50, %v5757_v36  ;;  %v5665_v42 = vadd.f32 %v15957_v34, %v5569_v44 }
 0x8ab   : > { %v10595_v16 = vpop.f32.mrf.mxu0 }
 0x8ac   : > { %v16125_v48 = vadd.f32 %v10595_v16, %v15624_v28  ;;  %10663 = vmatmul.mubr.msk.f32.gmra.mxu0 %vm1410_vm5, %v5849_v9  ;;  %v5725_v61 = vpop.permute.xlu1 %5724 }
 0x8ad   : > { %v6167_v54 = vpop.f32.mrf.mxu0  ;;  %10665 = vmatprep.mubr.msk.f32.mxu0 %vm1410_vm5, %v5850_v0  ;;  %v5759_v1 = vadd.f32 %v5725_v61, %v5663_v43 }
 0x8ae   : > { %18742 = vst [vmem:[#allocation120_spill] sm:$0xff] %v16125_v48  ;;  %11368 = vtanh.f32 %v16125_v48  ;;  %v16135_v62 = vadd.f32 %v15624_v28, %v6167_v54 }
 0x8b0   : > { %18744 = vst [vmem:[#allocation128_spill] sm:$0xff] %v16135_v62  ;;  %11370 = vtanh.f32 %v16135_v62  ;;  %10666 = vmatmul.mubr.msk.f32.gmra.mxu0 %vm1410_vm5, %v5851_v45  ;;  %v5819_v20 = vpop.permute.xlu1 %5818 }
 0x8b1   : > { %10668 = vmatprep.mubr.msk.f32.mxu0 %vm1410_vm5, %v5852_v3  ;;  %v5854_v52 = vadd.f32 %v5819_v20, %v5758_v7 }
 0x8b4   : > { %10669 = vmatmul.mubr.msk.f32.gmra.mxu0 %vm1410_vm5, %v5853_v24  ;;  %v5821_v57 = vpop.permute.xlu1 %5820  ;;  %v6581_v40 = vpop.permute.xlu0 %6580 }
 0x8b5   : > { %v5855_v63 = vadd.f32 %v5821_v57, %v5759_v1  ;;  %10671 = vmatprep.mubr.msk.f32.mxu0 %vm1410_vm5, %v5854_v52 }
 0x8b8   : > { %10672 = vmatmul.mubr.msk.f32.gmra.mxu0 %vm1410_vm5, %v5855_v63  ;;  %v5729_v2 = vpop.permute.xlu1 %5728 }
 0x8b9   : > { %10674 = vmatprep.mubr.msk.f32.mxu0 %vm1410_vm5, %v5856_v23  ;;  %v5761_v6 = vadd.f32 %v5729_v2, %v5665_v42 }
 0x8bb   : > { %v11369_v35 = vpop.eup %11368 }
 0x8bc   : > { %6594 = vrot.lane.b32.xlu1 %v11369_v35, %s11747_s28  ;;  %v5825_v37 = vpop.permute.xlu1 %5824 }
 0x8bd   : > { %v11371_v26 = vpop.eup %11370  ;;  %v5857_v17 = vadd.f32 %v5825_v37, %v5761_v6 }
 0x8be   : > { %6592 = vrot.lane.b32.xlu0 %v11371_v26, %s11747_s28 }
 0x8bf   : > { %10675 = vmatmul.mubr.msk.f32.gmra.mxu0 %vm1410_vm5, %v5857_v17 }
 0x8c0   : > { %v6579_v27 = vpop.permute.xlu1 %6578 }
 0x8c1   : > { %10682 = vmatmul.mubr.msk.f32.vlgmr.msra.gmra.mxu1 %vm6704_vm7, %v6579_v27 }
 0x8c2   : > { %10684 = vmatprep.mubr.msk.f32.mxu1 %vm6704_vm7, %v6581_v40 }
 0x8c4   : > { %v6583_v34 = vpop.permute.xlu1 %6582 }
 0x8c5   : > { %10685 = vmatmul.mubr.msk.f32.gmra.mxu1 %vm6704_vm7, %v6583_v34 }
 0x8d3   : > { %v10598_v13 = vpop.f32.mrf.mxu0 }
 0x8d4   : > { %v16164_v30 = vadd.f32 %v10598_v13, %v15624_v28 }
 0x8d5   : > { %v6177_v25 = vpop.f32.mrf.mxu0 }
 0x8d6   : > { %18748 = vst [vmem:[#allocation113_spill] sm:$0xff] %v16164_v30  ;;  %11372 = vtanh.f32 %v16164_v30  ;;  %v16168_v41 = vadd.f32 %v15624_v28, %v6177_v25  ;;  %v6587_v11 = vpop.permute.xlu1 %6586 }
 0x8d8   : > { %18749 = vst [vmem:[#allocation109_spill] sm:$0xff] %v16168_v41  ;;  %11374 = vtanh.f32 %v16168_v41  ;;  %v6585_v32 = vpop.permute.xlu0 %6584 }
 0x8d9   : > { %10687 = vmatprep.mubr.msk.f32.mxu1 %vm6704_vm7, %v6585_v32 }
 0x8da   : > { %10688 = vmatmul.mubr.msk.f32.gmra.mxu1 %vm6704_vm7, %v6587_v11 }
 0x8e3   : > { %v11373_v15 = vpop.eup %11372 }
 0x8e4   : > { %6598 = vrot.lane.b32.xlu1 %v11373_v15, %s11747_s28 }
 0x8e5   : > { %v11375_v50 = vpop.eup %11374 }
 0x8e6   : > { %6596 = vrot.lane.b32.xlu0 %v11375_v50, %s11747_s28 }
 0x8fb   : > { %v10601_v21 = vpop.f32.mrf.mxu0 }
 0x8fc   : > { %v16176_v55 = vadd.f32 %v10601_v21, %v15624_v28 }
 0x8fd   : > { %v6187_v39 = vpop.f32.mrf.mxu0 }
 0x8fe   : > { %18750 = vst [vmem:[#allocation111_spill] sm:$0xff] %v16176_v55  ;;  %11376 = vtanh.f32 %v16176_v55  ;;  %v16180_v4 = vadd.f32 %v15624_v28, %v6187_v39 }
 0x900   : > { %18751 = vst [vmem:[#allocation72_spill] sm:$0xff] %v16180_v4  ;;  %11378 = vtanh.f32 %v16180_v4 }
 0x906   : > { %v6591_v56 = vpop.permute.xlu1 %6590 }
 0x908   : > { %v6589_v31 = vpop.permute.xlu0 %6588 }
 0x909   : > { %10690 = vmatprep.mubr.msk.f32.mxu1 %vm6704_vm7, %v6589_v31 }
 0x90a   : > { %10691 = vmatmul.mubr.msk.f32.gmra.mxu1 %vm6704_vm7, %v6591_v56 }
 0x90b   : > { %v11377_v9 = vpop.eup %11376 }
 0x90c   : > { %6602 = vrot.lane.b32.xlu1 %v11377_v9, %s11747_s28 }
 0x90d   : > { %v11379_v46 = vpop.eup %11378 }
 0x90e   : > { %6600 = vrot.lane.b32.xlu0 %v11379_v46, %s11747_s28 }
 0x911   : > { %v10604_v14 = vpop.f32.mrf.mxu0 }
 0x912   : > { %v16188_v0 = vadd.f32 %v10604_v14, %v15624_v28 }
 0x913   : > { %v6197_v16 = vpop.f32.mrf.mxu0 }
 0x914   : > { %18752 = vst [vmem:[#allocation119_spill] sm:$0xff] %v16188_v0  ;;  %11380 = vtanh.f32 %v16188_v0  ;;  %v16192_v12 = vadd.f32 %v15624_v28, %v6197_v16 }
 0x915   : > { %v10607_v51 = vpop.f32.mrf.mxu0 }
 0x916   : > { %18753 = vst [vmem:[#allocation121_spill] sm:$0xff] %v16192_v12  ;;  %11382 = vtanh.f32 %v16192_v12  ;;  %v16196_v22 = vadd.f32 %v10607_v51, %v15624_v28 }
 0x917   : > { %v6207_v61 = vpop.f32.mrf.mxu0 }
 0x918   : > { %18754 = vst [vmem:[#allocation103_spill] sm:$0xff] %v16196_v22  ;;  %11384 = vtanh.f32 %v16196_v22  ;;  %v16200_v47 = vadd.f32 %v15624_v28, %v6207_v61 }
 0x919   : > { %v10610_v8 = vpop.f32.mrf.mxu0 }
 0x91a   : > { %18755 = vst [vmem:[#allocation98_spill] sm:$0xff] %v16200_v47  ;;  %11386 = vtanh.f32 %v16200_v47  ;;  %v16204_v19 = vadd.f32 %v10610_v8, %v15624_v28 }
 0x91b   : > { %v6217_v54 = vpop.f32.mrf.mxu0 }
 0x91c   : > { %18756 = vst [vmem:[#allocation134_spill] sm:$0xff] %v16204_v19  ;;  %11388 = vtanh.f32 %v16204_v19  ;;  %v16208_v5 = vadd.f32 %v15624_v28, %v6217_v54 }
 0x91d   : > { %v10613_v45 = vpop.f32.mrf.mxu0 }
 0x91e   : > { %18757 = vst [vmem:[#allocation105_spill] sm:$0xff] %v16208_v5  ;;  %11390 = vtanh.f32 %v16208_v5  ;;  %v16212_v10 = vadd.f32 %v10613_v45, %v15624_v28 }
 0x91f   : > { %v6227_v33 = vpop.f32.mrf.mxu0 }
 0x920   : > { %18758 = vst [vmem:[#allocation115_spill] sm:$0xff] %v16212_v10  ;;  %11392 = vtanh.f32 %v16212_v10  ;;  %v16216_v38 = vadd.f32 %v15624_v28, %v6227_v33 }
 0x921   : > { %v11381_v3 = vpop.eup %11380  ;;  %v10616_v36 = vpop.f32.mrf.mxu0 }
 0x922   : > { %18759 = vst [vmem:[#allocation70_spill] sm:$0xff] %v16216_v38  ;;  %11394 = vtanh.f32 %v16216_v38  ;;  %v16220_v20 = vadd.f32 %v10616_v36, %v15624_v28  ;;  %6606 = vrot.lane.b32.xlu1 %v11381_v3, %s11747_s28 }
 0x923   : > { %v11383_v43 = vpop.eup %11382  ;;  %v6237_v7 = vpop.f32.mrf.mxu0 }
 0x924   : > { %18760 = vst [vmem:[#allocation45_spill] sm:$0xff] %v16220_v20  ;;  %11396 = vtanh.f32 %v16220_v20  ;;  %v16230_v29 = vadd.f32 %v16227_v60, %v6237_v7  ;;  %6604 = vrot.lane.b32.xlu0 %v11383_v43, %s11747_s28 }
 0x925   : > { %v11385_v24 = vpop.eup %11384  ;;  %v10619_v58 = vpop.f32.mrf.mxu0 }
 0x926   : > { %18761 = vst [vmem:[#allocation123_spill] sm:$0xff] %v16230_v29  ;;  %11398 = vtanh.f32 %v16230_v29  ;;  %v16235_v28 = vadd.f32 %v16227_v60, %v10619_v58  ;;  %6610 = vrot.lane.b32.xlu1 %v11385_v24, %s11747_s28 }
 0x927   : > { %v11387_v1 = vpop.eup %11386  ;;  %v6247_v52 = vpop.f32.mrf.mxu0 }
 0x928   : > { %18762 = vst [vmem:[#allocation27_spill] sm:$0xff] %v16235_v28  ;;  %11400 = vtanh.f32 %v16235_v28  ;;  %v16240_v57 = vadd.f32 %v16227_v60, %v6247_v52  ;;  %6608 = vrot.lane.b32.xlu0 %v11387_v1, %s11747_s28 }
 0x929   : > { %v11389_v53 = vpop.eup %11388  ;;  %v10622_v63 = vpop.f32.mrf.mxu0 }
 0x92a   : > { %18763 = vst [vmem:[#allocation50_spill] sm:$0xff] %v16240_v57  ;;  %11402 = vtanh.f32 %v16240_v57  ;;  %v16245_v59 = vadd.f32 %v16227_v60, %v10622_v63  ;;  %6614 = vrot.lane.b32.xlu1 %v11389_v53, %s11747_s28 }
 0x92b   : > { %v11391_v44 = vpop.eup %11390  ;;  %v6257_v23 = vpop.f32.mrf.mxu0 }
 0x92c   : > { %18764 = vst [vmem:[#allocation19_spill] sm:$0xff] %v16245_v59  ;;  %11404 = vtanh.f32 %v16245_v59  ;;  %v16250_v2 = vadd.f32 %v16227_v60, %v6257_v23  ;;  %6612 = vrot.lane.b32.xlu0 %v11391_v44, %s11747_s28 }
 0x92d   : > { %v11393_v42 = vpop.eup %11392  ;;  %v10625_v35 = vpop.f32.mrf.mxu0 }
 0x92e   : > { %18765 = vst [vmem:[#allocation58_spill] sm:$0xff] %v16250_v2  ;;  %11406 = vtanh.f32 %v16250_v2  ;;  %v16255_v6 = vadd.f32 %v16227_v60, %v10625_v35  ;;  %6618 = vrot.lane.b32.xlu1 %v11393_v42, %s11747_s28  ;;  %v6595_v34 = vpop.permute.xlu1 %6594  ;;  %v18808_v2 = vld [vmem:[#allocation94_spill] sm:$0xff] }
 0x92f   : > { %v11395_v37 = vpop.eup %11394  ;;  %v6267_v26 = vpop.f32.mrf.mxu0 }
 0x930   : > { %18766 = vst [vmem:[#allocation44_spill] sm:$0xff] %v16255_v6  ;;  %11408 = vtanh.f32 %v16255_v6  ;;  %v16260_v17 = vadd.f32 %v16227_v60, %v6267_v26  ;;  %v6593_v27 = vpop.permute.xlu0 %6592  ;;  %6616 = vrot.lane.b32.xlu0 %v11395_v37, %s11747_s28 }
 0x931   : > { %v11397_v40 = vpop.eup %11396  ;;  %v10628_v13 = vpop.f32.mrf.mxu0  ;;  %10693 = vmatprep.mubr.msk.f32.mxu1 %vm6704_vm7, %v6593_v27 }
 0x932   : > { %18767 = vst [vmem:[#allocation51_spill] sm:$0xff] %v16260_v17  ;;  %11410 = vtanh.f32 %v16260_v17  ;;  %v16266_v25 = vadd.f32 %v16227_v60, %v10628_v13  ;;  %6622 = vrot.lane.b32.xlu1 %v11397_v40, %s11747_s28  ;;  %10694 = vmatmul.mubr.msk.f32.gmra.mxu1 %vm6704_vm7, %v6595_v34 }
 0x933   : > { %v11399_v32 = vpop.eup %11398  ;;  %v6277_v11 = vpop.f32.mrf.mxu0 }
 0x934   : > { %18768 = vst [vmem:[#allocation60_spill] sm:$0xff] %v16266_v25  ;;  %11412 = vtanh.f32 %v16266_v25  ;;  %v16272_v15 = vadd.f32 %v16227_v60, %v6277_v11  ;;  %6620 = vrot.lane.b32.xlu0 %v11399_v32, %s11747_s28 }
 0x935   : > { %v11401_v50 = vpop.eup %11400  ;;  %v10631_v21 = vpop.f32.mrf.mxu0 }
 0x936   : > { %18769 = vst [vmem:[#allocation62_spill] sm:$0xff] %v16272_v15  ;;  %11414 = vtanh.f32 %v16272_v15  ;;  %v16277_v39 = vadd.f32 %v16227_v60, %v10631_v21  ;;  %6626 = vrot.lane.b32.xlu1 %v11401_v50, %s11747_s28 }
 0x937   : > { %v11403_v31 = vpop.eup %11402  ;;  %v6287_v56 = vpop.f32.mrf.mxu0 }
 0x938   : > { %18770 = vst [vmem:[#allocation99_spill] sm:$0xff] %v16277_v39  ;;  %11416 = vtanh.f32 %v16277_v39  ;;  %v16282_v9 = vadd.f32 %v16227_v60, %v6287_v56  ;;  %6624 = vrot.lane.b32.xlu0 %v11403_v31, %s11747_s28 }
 0x939   : > { %v11405_v46 = vpop.eup %11404 }
 0x93a   : > { %18771 = vst [vmem:[#allocation13_spill] sm:$0xff] %v16282_v9  ;;  %11418 = vtanh.f32 %v16282_v9  ;;  %6630 = vrot.lane.b32.xlu1 %v11405_v46, %s11747_s28 }
 0x93b   : > { %v11407_v14 = vpop.eup %11406 }
 0x93c   : > { %6628 = vrot.lane.b32.xlu0 %v11407_v14, %s11747_s28 }
 0x93d   : > { %v11409_v16 = vpop.eup %11408 }
 0x93e   : > { %6634 = vrot.lane.b32.xlu1 %v11409_v16, %s11747_s28 }
 0x93f   : > { %v11411_v51 = vpop.eup %11410 }
 0x940   : > { %6632 = vrot.lane.b32.xlu0 %v11411_v51, %s11747_s28 }
 0x941   : > { %v11413_v61 = vpop.eup %11412 }
 0x942   : > { %6638 = vrot.lane.b32.xlu1 %v11413_v61, %s11747_s28 }
 0x943   : > { %v11415_v8 = vpop.eup %11414 }
 0x944   : > { %6636 = vrot.lane.b32.xlu0 %v11415_v8, %s11747_s28  ;;  %v10634_v54 = vpop.f32.mrf.mxu0 }
 0x945   : > { %v11417_v45 = vpop.eup %11416  ;;  %v16293_v33 = vadd.f32 %v16227_v60, %v10634_v54 }
 0x946   : > { %6642 = vrot.lane.b32.xlu1 %v11417_v45, %s11747_s28  ;;  %v6297_v3 = vpop.f32.mrf.mxu0 }
 0x947   : > { %18772 = vst [vmem:[#allocation65_spill] sm:$0xff] %v16293_v33  ;;  %v11419_v36 = vpop.eup %11418  ;;  %11420 = vtanh.f32 %v16293_v33  ;;  %v16298_v43 = vadd.f32 %v16227_v60, %v6297_v3 }
 0x948   : > { %6640 = vrot.lane.b32.xlu0 %v11419_v36, %s11747_s28  ;;  %v10637_v7 = vpop.f32.mrf.mxu0 }
 0x949   : > { %18773 = vst [vmem:[#allocation108_spill] sm:$0xff] %v16298_v43  ;;  %11422 = vtanh.f32 %v16298_v43  ;;  %v16303_v24 = vadd.f32 %v16227_v60, %v10637_v7  ;;  %v18806_v43 = vld [vmem:[#allocation136_spill] sm:$0xff] }
 0x94a   : > { %v6307_v58 = vpop.f32.mrf.mxu0 }
 0x94b   : > { %18774 = vst [vmem:[#allocation6_spill] sm:$0xff] %v16303_v24  ;;  %11424 = vtanh.f32 %v16303_v24  ;;  %v16307_v1 = vadd.f32 %v16227_v60, %v6307_v58 }
 0x94c   : > { %v10640_v52 = vpop.f32.mrf.mxu0 }
 0x94d   : > { %18775 = vst [vmem:[#allocation15_spill] sm:$0xff] %v16307_v1  ;;  %11426 = vtanh.f32 %v16307_v1  ;;  %v16311_v53 = vadd.f32 %v16227_v60, %v10640_v52 }
 0x94e   : > { %v6317_v63 = vpop.f32.mrf.mxu0 }
 0x94f   : > { %18776 = vst [vmem:[#allocation16_spill] sm:$0xff] %v16311_v53  ;;  %11428 = vtanh.f32 %v16311_v53  ;;  %v16315_v44 = vadd.f32 %v16227_v60, %v6317_v63 }
 0x950   : > { %v10643_v23 = vpop.f32.mrf.mxu0 }
 0x951   : > { %18777 = vst [vmem:[#allocation32_spill] sm:$0xff] %v16315_v44  ;;  %11430 = vtanh.f32 %v16315_v44  ;;  %v16319_v42 = vadd.f32 %v16227_v60, %v10643_v23 }
 0x952   : > { %v6327_v35 = vpop.f32.mrf.mxu0 }
 0x953   : > { %18778 = vst [vmem:[#allocation112_spill] sm:$0xff] %v16319_v42  ;;  %11432 = vtanh.f32 %v16319_v42  ;;  %v16323_v37 = vadd.f32 %v16227_v60, %v6327_v35 }
 0x954   : > { %v11421_v26 = vpop.eup %11420  ;;  %v10646_v27 = vpop.f32.mrf.mxu0 }
 0x955   : > { %18779 = vst [vmem:[#allocation38_spill] sm:$0xff] %v16323_v37  ;;  %11434 = vtanh.f32 %v16323_v37  ;;  %v16327_v40 = vadd.f32 %v16227_v60, %v10646_v27  ;;  %6646 = vrot.lane.b32.xlu1 %v11421_v26, %s11747_s28 }
 0x956   : > { %v11423_v34 = vpop.eup %11422  ;;  %v6337_v13 = vpop.f32.mrf.mxu0 }
 0x957   : > { %18780 = vst [vmem:[#allocation28_spill] sm:$0xff] %v16327_v40  ;;  %11436 = vtanh.f32 %v16327_v40  ;;  %v16332_v32 = vadd.f32 %v16227_v60, %v6337_v13  ;;  %6644 = vrot.lane.b32.xlu0 %v11423_v34, %s11747_s28  ;;  %v6599_v31 = vpop.permute.xlu1 %6598 }
 0x958   : > { %v11425_v11 = vpop.eup %11424  ;;  %v6597_v50 = vpop.permute.xlu0 %6596 }
 0x959   : > { %18781 = vst [vmem:[#allocation66_spill] sm:$0xff] %v16332_v32  ;;  %v10649_v21 = vpop.f32.mrf.mxu0  ;;  %11438 = vtanh.f32 %v16332_v32  ;;  %6650 = vrot.lane.b32.xlu1 %v11425_v11, %s11747_s28  ;;  %10696 = vmatprep.mubr.msk.f32.mxu1 %vm6704_vm7, %v6597_v50 }
 0x95a   : > { %v16337_v56 = vadd.f32 %v16227_v60, %v10649_v21  ;;  %v11427_v46 = vpop.eup %11426  ;;  %10697 = vmatmul.mubr.msk.f32.gmra.mxu1 %vm6704_vm7, %v6599_v31 }
 0x95b   : > { %v6347_v14 = vpop.f32.mrf.mxu0  ;;  %6648 = vrot.lane.b32.xlu0 %v11427_v46, %s11747_s28 }
 0x95c   : > { %18782 = vst [vmem:[#allocation31_spill] sm:$0xff] %v16337_v56  ;;  %11440 = vtanh.f32 %v16337_v56  ;;  %v16344_v16 = vadd.f32 %v16227_v60, %v6347_v14  ;;  %v11429_v51 = vpop.eup %11428 }
 0x95d   : > { %v10652_v61 = vpop.f32.mrf.mxu0  ;;  %6654 = vrot.lane.b32.xlu1 %v11429_v51, %s11747_s28 }
 0x95e   : > { %18783 = vst [vmem:[#allocation87_spill] sm:$0xff] %v16344_v16  ;;  %11442 = vtanh.f32 %v16344_v16  ;;  %v16349_v8 = vadd.f32 %v16227_v60, %v10652_v61  ;;  %v11431_v54 = vpop.eup %11430 }
 0x95f   : > { %v6357_v45 = vpop.f32.mrf.mxu0  ;;  %6652 = vrot.lane.b32.xlu0 %v11431_v54, %s11747_s28 }
 0x960   : > { %18784 = vst [vmem:[#allocation85_spill] sm:$0xff] %v16349_v8  ;;  %11444 = vtanh.f32 %v16349_v8  ;;  %v16354_v3 = vadd.f32 %v16227_v60, %v6357_v45  ;;  %v11433_v36 = vpop.eup %11432 }
 0x961   : > { %v10655_v7 = vpop.f32.mrf.mxu0  ;;  %6658 = vrot.lane.b32.xlu1 %v11433_v36, %s11747_s28 }
 0x962   : > { %18785 = vst [vmem:[#allocation117_spill] sm:$0xff] %v16354_v3  ;;  %11446 = vtanh.f32 %v16354_v3  ;;  %v16359_v58 = vadd.f32 %v16227_v60, %v10655_v7  ;;  %v11435_v52 = vpop.eup %11434 }
 0x963   : > { %v6367_v63 = vpop.f32.mrf.mxu0  ;;  %6656 = vrot.lane.b32.xlu0 %v11435_v52, %s11747_s28 }
 0x964   : > { %18786 = vst [vmem:[#allocation86_spill] sm:$0xff] %v16359_v58  ;;  %11448 = vtanh.f32 %v16359_v58  ;;  %v16364_v23 = vadd.f32 %v16227_v60, %v6367_v63  ;;  %v11437_v35 = vpop.eup %11436 }
 0x965   : > { %v10658_v26 = vpop.f32.mrf.mxu0  ;;  %6662 = vrot.lane.b32.xlu1 %v11437_v35, %s11747_s28 }
 0x966   : > { %18787 = vst [vmem:[#allocation49_spill] sm:$0xff] %v16364_v23  ;;  %11450 = vtanh.f32 %v16364_v23  ;;  %v16369_v27 = vadd.f32 %v16227_v60, %v10658_v26  ;;  %v11439_v34 = vpop.eup %11438 }
 0x967   : > { %v6377_v13 = vpop.f32.mrf.mxu0  ;;  %6660 = vrot.lane.b32.xlu0 %v11439_v34, %s11747_s28 }
 0x968   : > { %18788 = vst [vmem:[#allocation10_spill] sm:$0xff] %v16369_v27  ;;  %11452 = vtanh.f32 %v16369_v27  ;;  %v16374_v11 = vadd.f32 %v16227_v60, %v6377_v13 }
 0x969   : > { %v11441_v50 = vpop.eup %11440  ;;  %v10661_v21 = vpop.f32.mrf.mxu0 }
 0x96a   : > { %18789 = vst [vmem:[#allocation82_spill] sm:$0xff] %v16374_v11  ;;  %11454 = vtanh.f32 %v16374_v11  ;;  %v16379_v31 = vadd.f32 %v16227_v60, %v10661_v21  ;;  %6666 = vrot.lane.b32.xlu1 %v11441_v50, %s11747_s28 }
 0x96b   : > { %v11443_v46 = vpop.eup %11442  ;;  %v6387_v14 = vpop.f32.mrf.mxu0 }
 0x96c   : > { %18790 = vst [vmem:[#allocation25_spill] sm:$0xff] %v16379_v31  ;;  %11456 = vtanh.f32 %v16379_v31  ;;  %v16384_v51 = vadd.f32 %v16227_v60, %v6387_v14  ;;  %6664 = vrot.lane.b32.xlu0 %v11443_v46, %s11747_s28 }
 0x96d   : > { %v11445_v61 = vpop.eup %11444  ;;  %v10664_v54 = vpop.f32.mrf.mxu0 }
 0x96e   : > { %18791 = vst [vmem:[#allocation96_spill] sm:$0xff] %v16384_v51  ;;  %11458 = vtanh.f32 %v16384_v51  ;;  %v16389_v45 = vadd.f32 %v16227_v60, %v10664_v54  ;;  %6670 = vrot.lane.b32.xlu1 %v11445_v61, %s11747_s28 }
 0x96f   : > { %v11447_v36 = vpop.eup %11446  ;;  %v6397_v7 = vpop.f32.mrf.mxu0 }
 0x970   : > { %18792 = vst [vmem:[#allocation23_spill] sm:$0xff] %v16389_v45  ;;  %11460 = vtanh.f32 %v16389_v45  ;;  %v16394_v52 = vadd.f32 %v16227_v60, %v6397_v7  ;;  %6668 = vrot.lane.b32.xlu0 %v11447_v36, %s11747_s28 }
 0x971   : > { %v11449_v63 = vpop.eup %11448  ;;  %v10667_v35 = vpop.f32.mrf.mxu0 }
 0x972   : > { %18793 = vst [vmem:[#allocation21_spill] sm:$0xff] %v16394_v52  ;;  %11462 = vtanh.f32 %v16394_v52  ;;  %v16399_v26 = vadd.f32 %v16227_v60, %v10667_v35  ;;  %6674 = vrot.lane.b32.xlu1 %v11449_v63, %s11747_s28 }
 0x973   : > { %v11451_v34 = vpop.eup %11450  ;;  %v6407_v13 = vpop.f32.mrf.mxu0 }
 0x974   : > { %18794 = vst [vmem:[#allocation107_spill] sm:$0xff] %v16399_v26  ;;  %11464 = vtanh.f32 %v16399_v26  ;;  %v16404_v50 = vadd.f32 %v16227_v60, %v6407_v13  ;;  %6672 = vrot.lane.b32.xlu0 %v11451_v34, %s11747_s28 }
 0x975   : > { %v11453_v21 = vpop.eup %11452  ;;  %v10670_v46 = vpop.f32.mrf.mxu0 }
 0x976   : > { %18795 = vst [vmem:[#allocation122_spill] sm:$0xff] %v16404_v50  ;;  %11466 = vtanh.f32 %v16404_v50  ;;  %v16409_v14 = vadd.f32 %v16227_v60, %v10670_v46  ;;  %6678 = vrot.lane.b32.xlu1 %v11453_v21, %s11747_s28 }
 0x977   : > { %v11455_v61 = vpop.eup %11454  ;;  %v6417_v54 = vpop.f32.mrf.mxu0 }
 0x978   : > { %18796 = vst [vmem:[#allocation63_spill] sm:$0xff] %v16409_v14  ;;  %11468 = vtanh.f32 %v16409_v14  ;;  %v16414_v36 = vadd.f32 %v16227_v60, %v6417_v54  ;;  %6676 = vrot.lane.b32.xlu0 %v11455_v61, %s11747_s28 }
 0x979   : > { %v11457_v7 = vpop.eup %11456  ;;  %v10673_v63 = vpop.f32.mrf.mxu0 }
 0x97a   : > { %18797 = vst [vmem:[#allocation125_spill] sm:$0xff] %v16414_v36  ;;  %11470 = vtanh.f32 %v16414_v36  ;;  %v16419_v35 = vadd.f32 %v16227_v60, %v10673_v63  ;;  %6682 = vrot.lane.b32.xlu1 %v11457_v7, %s11747_s28 }
 0x97b   : > { %v11459_v34 = vpop.eup %11458  ;;  %v6427_v13 = vpop.f32.mrf.mxu0 }
 0x97c   : > { %18798 = vst [vmem:[#allocation69_spill] sm:$0xff] %v16419_v35  ;;  %11472 = vtanh.f32 %v16419_v35  ;;  %v16424_v21 = vadd.f32 %v16227_v60, %v6427_v13  ;;  %6680 = vrot.lane.b32.xlu0 %v11459_v34, %s11747_s28 }
 0x97d   : > { %v11461_v46 = vpop.eup %11460 }
 0x97e   : > { %18799 = vst [vmem:[#allocation47_spill] sm:$0xff] %v16424_v21  ;;  %11474 = vtanh.f32 %v16424_v21  ;;  %6686 = vrot.lane.b32.xlu1 %v11461_v46, %s11747_s28  ;;  %v6603_v63 = vpop.permute.xlu1 %6602 }
 0x97f   : > { %v11463_v61 = vpop.eup %11462  ;;  %v10676_v54 = vpop.f32.mrf.mxu0 }
 0x980   : > { %6684 = vrot.lane.b32.xlu0 %v11463_v61, %s11747_s28  ;;  %v16431_v36 = vadd.f32 %v16227_v60, %v10676_v54  ;;  %v6601_v35 = vpop.permute.xlu0 %6600 }
 0x981   : > { %v11465_v7 = vpop.eup %11464  ;;  %v6437_v13 = vpop.f32.mrf.mxu0  ;;  %10699 = vmatprep.mubr.msk.f32.mxu1 %vm6704_vm7, %v6601_v35 }
 0x982   : > { %18800 = vst [vmem:[#allocation53_spill] sm:$0xff] %v16431_v36  ;;  %6690 = vrot.lane.b32.xlu1 %v11465_v7, %s11747_s28  ;;  %v10683_v34 = vpop.f32.mrf.mxu1  ;;  %11476 = vtanh.f32 %v16431_v36  ;;  %v16437_v46 = vadd.f32 %v16227_v60, %v6437_v13  ;;  %10700 = vmatmul.mubr.msk.f32.gmra.mxu1 %vm6704_vm7, %v6603_v63 }
 0x983   : > { %v11467_v21 = vpop.eup %11466  ;;  %v7226_v61 = vsel %vm7218_vm8, %v10683_v34, -inf }
 0x984   : > { %18801 = vst [vmem:[#allocation61_spill] sm:$0xff] %v16437_v46  ;;  %v7227_v50 = vrot.slane %v7226_v61, 4  ;;  %6688 = vrot.lane.b32.xlu0 %v11467_v21, %s11747_s28  ;;  %v6899_v54 = vpop.f32.mrf.mxu1  ;;  %11478 = vtanh.f32 %v16437_v46 }
 0x985   : > { %v11469_v14 = vpop.eup %11468  ;;  %v7219_v7 = vsel %vm7218_vm8, %v6899_v54, -inf }
 0x986   : > { %v7228_v35 = vmax.f32 %v7226_v61, %v7227_v50  ;;  %v7220_v45 = vrot.slane %v7219_v7, 4  ;;  %6694 = vrot.lane.b32.xlu1 %v11469_v14, %s11747_s28  ;;  %v10686_v36 = vpop.f32.mrf.mxu1 }
 0x987   : > { %v11471_v60 = vpop.eup %11470  ;;  %v7240_v13 = vsel %vm7218_vm8, %v10686_v36, -inf }
 0x988   : > { %v7229_v26 = vrot.slane %v7228_v35, 2  ;;  %v7221_v51 = vmax.f32 %v7219_v7, %v7220_v45  ;;  %v7241_v63 = vrot.slane %v7240_v13, 4  ;;  %6692 = vrot.lane.b32.xlu0 %v11471_v60, %s11747_s28  ;;  %v6909_v21 = vpop.f32.mrf.mxu1 }
 0x989   : > { %v11473_v52 = vpop.eup %11472  ;;  %v7233_v31 = vsel %vm7218_vm8, %v6909_v21, -inf }
 0x98a   : > { %v7230_v46 = vmax.f32 %v7228_v35, %v7229_v26  ;;  %v7222_v11 = vrot.slane %v7221_v51, 2  ;;  %v7242_v27 = vmax.f32 %v7240_v13, %v7241_v63  ;;  %v7234_v50 = vrot.slane %v7233_v31, 4  ;;  %6698 = vrot.lane.b32.xlu1 %v11473_v52, %s11747_s28 }
 0x98b   : > { %v11475_v14 = vpop.eup %11474 }
 0x98c   : > { %v7231_v61 = vrot.slane %v7230_v46, 1  ;;  %v7223_v23 = vmax.f32 %v7221_v51, %v7222_v11  ;;  %v7243_v58 = vrot.slane %v7242_v27, 2  ;;  %v7235_v8 = vmax.f32 %v7233_v31, %v7234_v50  ;;  %6696 = vrot.lane.b32.xlu0 %v11475_v14, %s11747_s28 }
 0x98e   : > { %v7232_v45 = vmax.f32 %v7230_v46, %v7231_v61  ;;  %v7224_v7 = vrot.slane %v7223_v23, 1  ;;  %v7244_v60 = vmax.f32 %v7242_v27, %v7243_v58  ;;  %v7236_v3 = vrot.slane %v7235_v8, 2 }
 0x98f   : > { %v11477_v16 = vpop.eup %11476 }
 0x990   : > { %v7668_v32 = vsub.f32 %v10683_v34, %v7232_v45  ;;  %v7225_v56 = vmax.f32 %v7223_v23, %v7224_v7  ;;  %v7245_v26 = vrot.slane %v7244_v60, 1  ;;  %v7237_v35 = vmax.f32 %v7235_v8, %v7236_v3  ;;  %6702 = vrot.lane.b32.xlu1 %v11477_v16, %s11747_s28 }
 0x991   : > { %v11479_v13 = vpop.eup %11478 }
 0x992   : > { %v7733_v52 = vmul.f32 1.442695, %v7668_v32  ;;  %v7667_v63 = vsub.f32 %v6899_v54, %v7225_v56  ;;  %v7246_v42 = vmax.f32 %v7244_v60, %v7245_v26  ;;  %v7238_v11 = vrot.slane %v7237_v35, 1  ;;  %6700 = vrot.lane.b32.xlu0 %v11479_v13, %s11747_s28 }
 0x994   : > { %11480 = vpow2.f32 %v7733_v52  ;;  %v7731_v31 = vmul.f32 1.442695, %v7667_v63  ;;  %v7670_v51 = vsub.f32 %v10686_v36, %v7246_v42  ;;  %v7239_v46 = vmax.f32 %v7237_v35, %v7238_v11  ;;  %v6607_v58 = vpop.permute.xlu1 %6606 }
 0x996   : > { %11482 = vpow2.f32 %v7731_v31  ;;  %v7737_v27 = vmul.f32 1.442695, %v7670_v51  ;;  %v7669_v34 = vsub.f32 %v6909_v21, %v7239_v46  ;;  %v6605_v23 = vpop.permute.xlu0 %6604 }
 0x997   : > { %10702 = vmatprep.mubr.msk.f32.mxu1 %vm6704_vm7, %v6605_v23 }
 0x998   : > { %11484 = vpow2.f32 %v7737_v27  ;;  %v7735_v8 = vmul.f32 1.442695, %v7669_v34  ;;  %10703 = vmatmul.mubr.msk.f32.gmra.mxu1 %vm6704_vm7, %v6607_v58  ;;  %v6611_v32 = vpop.permute.xlu1 %6610 }
 0x99a   : > { %11486 = vpow2.f32 %v7735_v8  ;;  %v6609_v56 = vpop.permute.xlu0 %6608  ;;  %v10689_v16 = vpop.f32.mrf.mxu1 }
 0x99b   : > { %v7254_v3 = vsel %vm7218_vm8, %v10689_v16, -inf  ;;  %10705 = vmatprep.mubr.msk.f32.mxu1 %vm6704_vm7, %v6609_v56 }
 0x99c   : > { %v7255_v42 = vrot.slane %v7254_v3, 4  ;;  %v6919_v36 = vpop.f32.mrf.mxu1  ;;  %10706 = vmatmul.mubr.msk.f32.gmra.mxu1 %vm6704_vm7, %v6611_v32  ;;  %v6615_v54 = vpop.permute.xlu1 %6614 }
 0x99d   : > { %v7247_v21 = vsel %vm7218_vm8, %v6919_v36, -inf }
 0x99e   : > { %v7256_v50 = vmax.f32 %v7254_v3, %v7255_v42  ;;  %v7248_v14 = vrot.slane %v7247_v21, 4  ;;  %v6613_v61 = vpop.permute.xlu0 %6612 }
 0x99f   : > { %10708 = vmatprep.mubr.msk.f32.mxu1 %vm6704_vm7, %v6613_v61 }
 0x9a0   : > { %v7257_v7 = vrot.slane %v7256_v50, 2  ;;  %v7249_v60 = vmax.f32 %v7247_v21, %v7248_v14  ;;  %10709 = vmatmul.mubr.msk.f32.gmra.mxu1 %vm6704_vm7, %v6615_v54  ;;  %v6619_v26 = vpop.permute.xlu1 %6618 }
 0x9a1   : > { %v16459_v45 = vpop.eup %11480 }
 0x9a2   : > { %v7866_v35 = vsel %vm7218_vm8, %v16459_v45, 0.0  ;;  %v7258_v63 = vmax.f32 %v7256_v50, %v7257_v7  ;;  %v7250_v11 = vrot.slane %v7249_v60, 2  ;;  %v6617_v31 = vpop.permute.xlu0 %6616 }
 0x9a3   : > { %v16464_v13 = vpop.eup %11482  ;;  %v7867_v52 = vrot.slane %v7866_v35, 4  ;;  %10711 = vmatprep.mubr.msk.f32.mxu1 %vm6704_vm7, %v6617_v31 }
 0x9a4   : > { %v7859_v51 = vsel %vm7218_vm8, %v16464_v13, 0.0  ;;  %v7259_v34 = vrot.slane %v7258_v63, 1  ;;  %v7251_v23 = vmax.f32 %v7249_v60, %v7250_v11  ;;  %10712 = vmatmul.mubr.msk.f32.gmra.mxu1 %vm6704_vm7, %v6619_v26  ;;  %v6623_v8 = vpop.permute.xlu1 %6622 }
 0x9a5   : > { %v16469_v46 = vpop.eup %11484  ;;  %v7868_v58 = vadd.f32 %v7867_v52, %v7866_v35  ;;  %v7860_v27 = vrot.slane %v7859_v51, 4 }
 0x9a6   : > { %v7880_v32 = vsel %vm7218_vm8, %v16469_v46, 0.0  ;;  %v7260_v21 = vmax.f32 %v7258_v63, %v7259_v34  ;;  %v6621_v50 = vpop.permute.xlu0 %6620  ;;  %v7252_v61 = vrot.slane %v7251_v23, 1 }
 0x9a7   : > { %v16474_v56 = vpop.eup %11486  ;;  %v7869_v3 = vrot.slane %v7868_v58, 2  ;;  %v7861_v42 = vadd.f32 %v7860_v27, %v7859_v51  ;;  %v7881_v54 = vrot.slane %v7880_v32, 4  ;;  %10714 = vmatprep.mubr.msk.f32.mxu1 %vm6704_vm7, %v6621_v50 }
 0x9a8   : > { %v7873_v14 = vsel %vm7218_vm8, %v16474_v56, 0.0  ;;  %10715 = vmatmul.mubr.msk.f32.gmra.mxu1 %vm6704_vm7, %v6623_v8  ;;  %v6627_v52 = vpop.permute.xlu1 %6626  ;;  %v7672_v11 = vsub.f32 %v10689_v16, %v7260_v21  ;;  %v7253_v31 = vmax.f32 %v7251_v23, %v7252_v61 }
 0x9a9   : > { %v7870_v7 = vadd.f32 %v7869_v3, %v7868_v58  ;;  %v7862_v60 = vrot.slane %v7861_v42, 2  ;;  %v7882_v26 = vadd.f32 %v7881_v54, %v7880_v32  ;;  %v7874_v35 = vrot.slane %v7873_v14, 4 }
 0x9aa   : > { %v6625_v34 = vpop.permute.xlu0 %6624  ;;  %v7741_v44 = vmul.f32 1.442695, %v7672_v11  ;;  %v7671_v37 = vsub.f32 %v6919_v36, %v7253_v31 }
 0x9ab   : > { %v7871_v40 = vrot.slane %v7870_v7, 1  ;;  %v7863_v51 = vadd.f32 %v7862_v60, %v7861_v42  ;;  %v7883_v27 = vrot.slane %v7882_v26, 2  ;;  %v7875_v63 = vadd.f32 %v7874_v35, %v7873_v14  ;;  %10717 = vmatprep.mubr.msk.f32.mxu1 %vm6704_vm7, %v6625_v34 }
 0x9ac   : > { %10718 = vmatmul.mubr.msk.f32.gmra.mxu1 %vm6704_vm7, %v6627_v52  ;;  %v6631_v32 = vpop.permute.xlu1 %6630  ;;  %11488 = vpow2.f32 %v7741_v44  ;;  %v7739_v8 = vmul.f32 1.442695, %v7671_v37 }
 0x9ad   : > { %v7872_v1 = vadd.f32 %v7871_v40, %v7870_v7  ;;  %v7864_v50 = vrot.slane %v7863_v51, 1  ;;  %v7884_v58 = vadd.f32 %v7883_v27, %v7882_v26  ;;  %v7876_v3 = vrot.slane %v7875_v63, 2 }
 0x9ae   : > { %v6629_v42 = vpop.permute.xlu0 %6628 }
 0x9af   : > { %v7865_v16 = vadd.f32 %v7864_v50, %v7863_v51  ;;  %v7885_v23 = vrot.slane %v7884_v58, 1  ;;  %v7877_v54 = vadd.f32 %v7876_v3, %v7875_v63  ;;  %11490 = vrcp.f32 %v7872_v1  ;;  %10720 = vmatprep.mubr.msk.f32.mxu1 %vm6704_vm7, %v6629_v42 }
 0x9b0   : > { %11492 = vpow2.f32 %v7739_v8  ;;  %10721 = vmatmul.mubr.msk.f32.gmra.mxu1 %vm6704_vm7, %v6631_v32  ;;  %v6635_v40 = vpop.permute.xlu1 %6634 }
 0x9b1   : > { %v7886_v36 = vadd.f32 %v7885_v23, %v7884_v58  ;;  %v7878_v21 = vrot.slane %v7877_v54, 1  ;;  %11494 = vrcp.f32 %v7865_v16 }
 0x9b2   : > { %v6633_v61 = vpop.permute.xlu0 %6632 }
 0x9b3   : > { %v7879_v14 = vadd.f32 %v7878_v21, %v7877_v54  ;;  %11496 = vrcp.f32 %v7886_v36  ;;  %10723 = vmatprep.mubr.msk.f32.mxu1 %vm6704_vm7, %v6633_v61 }
 0x9b4   : > { %10724 = vmatmul.mubr.msk.f32.gmra.mxu1 %vm6704_vm7, %v6635_v40  ;;  %v6639_v44 = vpop.permute.xlu1 %6638 }
 0x9b5   : > { %11498 = vrcp.f32 %v7879_v14 }
 0x9b6   : > { %v6637_v37 = vpop.permute.xlu0 %6636 }
 0x9b7   : > { %10726 = vmatprep.mubr.msk.f32.mxu1 %vm6704_vm7, %v6637_v37 }
 0x9b8   : > { %10727 = vmatmul.mubr.msk.f32.gmra.mxu1 %vm6704_vm7, %v6639_v44  ;;  %v6643_v35 = vpop.permute.xlu1 %6642 }
 0x9b9   : > { %v16488_v1 = vpop.eup %11488 }
 0x9ba   : > { %v6641_v7 = vpop.permute.xlu0 %6640  ;;  %v7894_v26 = vsel %vm7218_vm8, %v16488_v1, 0.0 }
 0x9bb   : > { %10729 = vmatprep.mubr.msk.f32.mxu1 %vm6704_vm7, %v6641_v7  ;;  %v7895_v11 = vrot.slane %v7894_v26, 4 }
 0x9bc   : > { %v11491_v60 = vpop.eup %11490  ;;  %10730 = vmatmul.mubr.msk.f32.gmra.mxu1 %vm6704_vm7, %v6643_v35 }
 0x9bd   : > { %v16493_v52 = vpop.eup %11492  ;;  %v8372_v31 = vmul.f32 %v11491_v60, %v16459_v45  ;;  %v7896_v63 = vadd.f32 %v7895_v11, %v7894_v26 }
 0x9be   : > { %v11495_v51 = vpop.eup %11494  ;;  %v7887_v27 = vsel %vm7218_vm8, %v16493_v52, 0.0 }
 0x9bf   : > { %v7888_v34 = vrot.slane %v7887_v27, 4  ;;  %8442 = vperm.xlu1 %10807, %v8372_v31   ;;  %v8371_v50 = vmul.f32 %v11495_v51, %v16464_v13  ;;  %v7897_v3 = vrot.slane %v7896_v63, 2 }
 0x9c0   : > { %v11497_v58 = vpop.eup %11496 }
 0x9c1   : > { %v7889_v32 = vadd.f32 %v7888_v34, %v7887_v27  ;;  %8437 = vperm.xlu0 %10806, %v8371_v50   ;;  %v8374_v8 = vmul.f32 %v11497_v58, %v16469_v46  ;;  %v7898_v23 = vadd.f32 %v7897_v3, %v7896_v63 }
 0x9c2   : > { %v11499_v16 = vpop.eup %11498 }
 0x9c3   : > { %v7890_v54 = vrot.slane %v7889_v32, 2  ;;  %8452 = vperm.xlu1 %10807, %v8374_v8   ;;  %v8373_v45 = vmul.f32 %v11499_v16, %v16474_v56  ;;  %v7899_v42 = vrot.slane %v7898_v23, 1 }
 0x9c5   : > { %v7891_v36 = vadd.f32 %v7890_v54, %v7889_v32  ;;  %8447 = vperm.xlu0 %10806, %v8373_v45   ;;  %v7900_v21 = vadd.f32 %v7899_v42, %v7898_v23 }
 0x9c7   : > { %v7892_v40 = vrot.slane %v7891_v36, 1  ;;  %v6647_v14 = vpop.permute.xlu1 %6646  ;;  %11500 = vrcp.f32 %v7900_v21 }
 0x9c9   : > { %v7893_v61 = vadd.f32 %v7892_v40, %v7891_v36  ;;  %v6645_v13 = vpop.permute.xlu0 %6644 }
 0x9ca   : > { %v10692_v44 = vpop.f32.mrf.mxu1  ;;  %10732 = vmatprep.mubr.msk.f32.mxu1 %vm6704_vm7, %v6645_v13 }
 0x9cb   : > { %11502 = vrcp.f32 %v7893_v61  ;;  %v7268_v46 = vsel %vm7218_vm8, %v10692_v44, -inf  ;;  %10733 = vmatmul.mubr.msk.f32.gmra.mxu1 %vm6704_vm7, %v6647_v14  ;;  %v6651_v37 = vpop.permute.xlu1 %6650 }
 0x9cc   : > { %v7269_v7 = vrot.slane %v7268_v46, 4  ;;  %v6929_v56 = vpop.f32.mrf.mxu1 }
 0x9cd   : > { %v7261_v60 = vsel %vm7218_vm8, %v6929_v56, -inf  ;;  %v6649_v26 = vpop.permute.xlu0 %6648 }
 0x9ce   : > { %v7270_v35 = vmax.f32 %v7268_v46, %v7269_v7  ;;  %v7262_v11 = vrot.slane %v7261_v60, 4  ;;  %10735 = vmatprep.mubr.msk.f32.mxu1 %vm6704_vm7, %v6649_v26 }
 0x9cf   : > { %10736 = vmatmul.mubr.msk.f32.gmra.mxu1 %vm6704_vm7, %v6651_v37  ;;  %v6655_v31 = vpop.permute.xlu1 %6654 }
 0x9d0   : > { %v7271_v51 = vrot.slane %v7270_v35, 2  ;;  %v7263_v27 = vmax.f32 %v7261_v60, %v7262_v11 }
 0x9d1   : > { %v6653_v63 = vpop.permute.xlu0 %6652 }
 0x9d2   : > { %v7272_v34 = vmax.f32 %v7270_v35, %v7271_v51  ;;  %v7264_v50 = vrot.slane %v7263_v27, 2  ;;  %10738 = vmatprep.mubr.msk.f32.mxu1 %vm6704_vm7, %v6653_v63 }
 0x9d3   : > { %10739 = vmatmul.mubr.msk.f32.gmra.mxu1 %vm6704_vm7, %v6655_v31  ;;  %v6659_v58 = vpop.permute.xlu1 %6658 }
 0x9d4   : > { %v7273_v3 = vrot.slane %v7272_v34, 1  ;;  %v7265_v32 = vmax.f32 %v7263_v27, %v7264_v50  ;;  %v11501_v8 = vpop.eup %11500 }
 0x9d5   : > { %v6657_v16 = vpop.permute.xlu0 %6656  ;;  %v8376_v45 = vmul.f32 %v11501_v8, %v16488_v1 }
 0x9d6   : > { %v7274_v23 = vmax.f32 %v7272_v34, %v7273_v3  ;;  %v7266_v54 = vrot.slane %v7265_v32, 1  ;;  %10741 = vmatprep.mubr.msk.f32.mxu1 %vm6704_vm7, %v6657_v16 }
 0x9d7   : > { %10742 = vmatmul.mubr.msk.f32.gmra.mxu1 %vm6704_vm7, %v6659_v58  ;;  %v6663_v36 = vpop.permute.xlu1 %6662  ;;  %8462 = vperm.xlu1 %10807, %v8376_v45  }
 0x9d8   : > { %v11503_v42 = vpop.eup %11502  ;;  %v7674_v21 = vsub.f32 %v10692_v44, %v7274_v23  ;;  %v7267_v40 = vmax.f32 %v7265_v32, %v7266_v54 }
 0x9d9   : > { %v8375_v14 = vmul.f32 %v11503_v42, %v16493_v52  ;;  %v6661_v61 = vpop.permute.xlu0 %6660 }
 0x9da   : > { %v7745_v13 = vmul.f32 1.442695, %v7674_v21  ;;  %v7673_v46 = vsub.f32 %v6929_v56, %v7267_v40  ;;  %10744 = vmatprep.mubr.msk.f32.mxu1 %vm6704_vm7, %v6661_v61 }
 0x9db   : > { %8457 = vperm.xlu0 %10806, %v8375_v14   ;;  %10745 = vmatmul.mubr.msk.f32.gmra.mxu1 %vm6704_vm7, %v6663_v36 }
 0x9dc   : > { %v6667_v37 = vpop.permute.xlu1 %6666  ;;  %11504 = vpow2.f32 %v7745_v13  ;;  %v7743_v1 = vmul.f32 1.442695, %v7673_v46 }
 0x9de   : > { %v6665_v7 = vpop.permute.xlu0 %6664  ;;  %11506 = vpow2.f32 %v7743_v1 }
 0x9df   : > { %10747 = vmatprep.mubr.msk.f32.mxu1 %vm6704_vm7, %v6665_v7 }
 0x9e0   : > { %10748 = vmatmul.mubr.msk.f32.gmra.mxu1 %vm6704_vm7, %v6667_v37  ;;  %v6671_v44 = vpop.permute.xlu1 %6670 }
 0x9e2   : > { %v6669_v60 = vpop.permute.xlu0 %6668 }
 0x9e3   : > { %10750 = vmatprep.mubr.msk.f32.mxu1 %vm6704_vm7, %v6669_v60 }
 0x9e4   : > { %10751 = vmatmul.mubr.msk.f32.gmra.mxu1 %vm6704_vm7, %v6671_v44  ;;  %v6675_v52 = vpop.permute.xlu1 %6674 }
 0x9e6   : > { %v6673_v56 = vpop.permute.xlu0 %6672 }
 0x9e7   : > { %10753 = vmatprep.mubr.msk.f32.mxu1 %vm6704_vm7, %v6673_v56 }
 0x9e8   : > { %10754 = vmatmul.mubr.msk.f32.gmra.mxu1 %vm6704_vm7, %v6675_v52  ;;  %v6679_v26 = vpop.permute.xlu1 %6678 }
 0x9e9   : > { %v16522_v35 = vpop.eup %11504 }
 0x9ea   : > { %v6677_v11 = vpop.permute.xlu0 %6676  ;;  %v7908_v31 = vsel %vm7218_vm8, %v16522_v35, 0.0 }
 0x9eb   : > { %10756 = vmatprep.mubr.msk.f32.mxu1 %vm6704_vm7, %v6677_v11  ;;  %v16527_v51 = vpop.eup %11506  ;;  %v7909_v27 = vrot.slane %v7908_v31, 4 }
 0x9ec   : > { %10757 = vmatmul.mubr.msk.f32.gmra.mxu1 %vm6704_vm7, %v6679_v26  ;;  %v6683_v63 = vpop.permute.xlu1 %6682  ;;  %v7901_v34 = vsel %vm7218_vm8, %v16527_v51, 0.0 }
 0x9ed   : > { %v7910_v50 = vadd.f32 %v7909_v27, %v7908_v31  ;;  %v7902_v58 = vrot.slane %v7901_v34, 4 }
 0x9ee   : > { %v6681_v3 = vpop.permute.xlu0 %6680 }
 0x9ef   : > { %10759 = vmatprep.mubr.msk.f32.mxu1 %vm6704_vm7, %v6681_v3  ;;  %v7911_v32 = vrot.slane %v7910_v50, 2  ;;  %v7903_v8 = vadd.f32 %v7902_v58, %v7901_v34 }
 0x9f0   : > { %10760 = vmatmul.mubr.msk.f32.gmra.mxu1 %vm6704_vm7, %v6683_v63  ;;  %v6687_v16 = vpop.permute.xlu1 %6686 }
 0x9f1   : > { %v7912_v23 = vadd.f32 %v7911_v32, %v7910_v50  ;;  %v7904_v54 = vrot.slane %v7903_v8, 2 }
 0x9f2   : > { %v6685_v45 = vpop.permute.xlu0 %6684  ;;  %v10695_v42 = vpop.f32.mrf.mxu1 }
 0x9f3   : > { %10762 = vmatprep.mubr.msk.f32.mxu1 %vm6704_vm7, %v6685_v45  ;;  %v7913_v36 = vrot.slane %v7912_v23, 1  ;;  %v7905_v21 = vadd.f32 %v7904_v54, %v7903_v8  ;;  %v7282_v40 = vsel %vm7218_vm8, %v10695_v42, -inf }
 0x9f4   : > { %10763 = vmatmul.mubr.msk.f32.gmra.mxu1 %vm6704_vm7, %v6687_v16  ;;  %v6691_v14 = vpop.permute.xlu1 %6690  ;;  %v7283_v61 = vrot.slane %v7282_v40, 4  ;;  %v6939_v13 = vpop.f32.mrf.mxu1 }
 0x9f5   : > { %v7914_v46 = vadd.f32 %v7913_v36, %v7912_v23  ;;  %v7906_v37 = vrot.slane %v7905_v21, 1  ;;  %v7275_v1 = vsel %vm7218_vm8, %v6939_v13, -inf }
 0x9f6   : > { %v6689_v7 = vpop.permute.xlu0 %6688  ;;  %v7284_v44 = vmax.f32 %v7282_v40, %v7283_v61  ;;  %v7276_v60 = vrot.slane %v7275_v1, 4 }
 0x9f7   : > { %10765 = vmatprep.mubr.msk.f32.mxu1 %vm6704_vm7, %v6689_v7  ;;  %v7907_v52 = vadd.f32 %v7906_v37, %v7905_v21  ;;  %11508 = vrcp.f32 %v7914_v46 }
 0x9f8   : > { %10766 = vmatmul.mubr.msk.f32.gmra.mxu1 %vm6704_vm7, %v6691_v14  ;;  %v7285_v56 = vrot.slane %v7284_v44, 2  ;;  %v7277_v26 = vmax.f32 %v7275_v1, %v7276_v60  ;;  %v6695_v11 = vpop.permute.xlu1 %6694 }
 0x9f9   : > { %11510 = vrcp.f32 %v7907_v52 }
 0x9fa   : > { %v6693_v31 = vpop.permute.xlu0 %6692  ;;  %v7286_v27 = vmax.f32 %v7284_v44, %v7285_v56  ;;  %v7278_v63 = vrot.slane %v7277_v26, 2 }
 0x9fb   : > { %10768 = vmatprep.mubr.msk.f32.mxu1 %vm6704_vm7, %v6693_v31 }
 0x9fc   : > { %10769 = vmatmul.mubr.msk.f32.gmra.mxu1 %vm6704_vm7, %v6695_v11  ;;  %v7287_v34 = vrot.slane %v7286_v27, 1  ;;  %v7279_v50 = vmax.f32 %v7277_v26, %v7278_v63  ;;  %v6699_v8 = vpop.permute.xlu1 %6698 }
 0x9fe   : > { %v6697_v58 = vpop.permute.xlu0 %6696  ;;  %v7288_v3 = vmax.f32 %v7286_v27, %v7287_v34  ;;  %v7280_v32 = vrot.slane %v7279_v50, 1 }
 0x9ff   : > { %10771 = vmatprep.mubr.msk.f32.mxu1 %vm6704_vm7, %v6697_v58 }
 0xa00   : > { %10772 = vmatmul.mubr.msk.f32.gmra.mxu1 %vm6704_vm7, %v6699_v8  ;;  %v7676_v16 = vsub.f32 %v10695_v42, %v7288_v3  ;;  %v7281_v23 = vmax.f32 %v7279_v50, %v7280_v32 }
 0xa02   : > { %v7749_v54 = vmul.f32 1.442695, %v7676_v16  ;;  %v7675_v45 = vsub.f32 %v6939_v13, %v7281_v23  ;;  %v6703_v14 = vpop.permute.xlu1 %6702 }
 0xa04   : > { %v11509_v36 = vpop.eup %11508  ;;  %11512 = vpow2.f32 %v7749_v54  ;;  %v7747_v21 = vmul.f32 1.442695, %v7675_v45  ;;  %v6701_v40 = vpop.permute.xlu0 %6700 }
 0xa05   : > { %10774 = vmatprep.mubr.msk.f32.mxu1 %vm6704_vm7, %v6701_v40  ;;  %v8378_v61 = vmul.f32 %v11509_v36, %v16522_v35 }
 0xa06   : > { %v11511_v46 = vpop.eup %11510  ;;  %11514 = vpow2.f32 %v7747_v21  ;;  %10775 = vmatmul.mubr.msk.f32.gmra.mxu1 %vm6704_vm7, %v6703_v14 }
 0xa07   : > { %8472 = vperm.xlu1 %10807, %v8378_v61   ;;  %v8377_v37 = vmul.f32 %v11511_v46, %v16527_v51 }
 0xa09   : > { %8467 = vperm.xlu0 %10806, %v8377_v37  }
 0xa11   : > { %v11513_v42 = vpop.eup %11512 }
 0xa12   : > { %v7922_v13 = vsel %vm7218_vm8, %v11513_v42, 0.0 }
 0xa13   : > { %v11515_v1 = vpop.eup %11514  ;;  %v7923_v7 = vrot.slane %v7922_v13, 4 }
 0xa14   : > { %v7915_v44 = vsel %vm7218_vm8, %v11515_v1, 0.0 }
 0xa15   : > { %v7924_v60 = vadd.f32 %v7923_v7, %v7922_v13  ;;  %v7916_v52 = vrot.slane %v7915_v44, 4 }
 0xa17   : > { %v7925_v56 = vrot.slane %v7924_v60, 2  ;;  %v7917_v26 = vadd.f32 %v7916_v52, %v7915_v44 }
 0xa19   : > { %v7926_v35 = vadd.f32 %v7925_v56, %v7924_v60  ;;  %v7918_v11 = vrot.slane %v7917_v26, 2 }
 0xa1a   : > { %v10698_v31 = vpop.f32.mrf.mxu1 }
 0xa1b   : > { %v7927_v27 = vrot.slane %v7926_v35, 1  ;;  %v7919_v63 = vadd.f32 %v7918_v11, %v7917_v26  ;;  %v7296_v34 = vsel %vm7218_vm8, %v10698_v31, -inf }
 0xa1c   : > { %v7297_v51 = vrot.slane %v7296_v34, 4  ;;  %v6949_v50 = vpop.f32.mrf.mxu1 }
 0xa1d   : > { %v7928_v58 = vadd.f32 %v7927_v27, %v7926_v35  ;;  %v7920_v3 = vrot.slane %v7919_v63, 1  ;;  %v7289_v32 = vsel %vm7218_vm8, %v6949_v50, -inf }
 0xa1e   : > { %v7298_v8 = vmax.f32 %v7296_v34, %v7297_v51  ;;  %v7290_v16 = vrot.slane %v7289_v32, 4  ;;  %v18802_v34 = vld [vmem:[#allocation55_spill] sm:$0xff] }
 0xa1f   : > { %v7921_v23 = vadd.f32 %v7920_v3, %v7919_v63  ;;  %11516 = vrcp.f32 %v7928_v58 }
 0xa20   : > { %v7299_v54 = vrot.slane %v7298_v8, 2  ;;  %v7291_v45 = vmax.f32 %v7289_v32, %v7290_v16 }
 0xa21   : > { %11518 = vrcp.f32 %v7921_v23 }
 0xa22   : > { %v7300_v36 = vmax.f32 %v7298_v8, %v7299_v54  ;;  %v7292_v21 = vrot.slane %v7291_v45, 2  ;;  %v18803_v8 = vld [vmem:[#allocation76_spill] sm:$0xff] }
 0xa24   : > { %v7301_v40 = vrot.slane %v7300_v36, 1  ;;  %v7293_v14 = vmax.f32 %v7291_v45, %v7292_v21 }
 0xa26   : > { %v7302_v61 = vmax.f32 %v7300_v36, %v7301_v40  ;;  %v7294_v46 = vrot.slane %v7293_v14, 1 }
 0xa28   : > { %v7678_v37 = vsub.f32 %v10698_v31, %v7302_v61  ;;  %v7295_v13 = vmax.f32 %v7293_v14, %v7294_v46  ;;  %v18804_v61 = vld [vmem:[#allocation59_spill] sm:$0xff] }
 0xa2a   : > { %v7753_v7 = vmul.f32 1.442695, %v7678_v37  ;;  %v7677_v44 = vsub.f32 %v6949_v50, %v7295_v13 }
 0xa2c   : > { %v11517_v60 = vpop.eup %11516  ;;  %11520 = vpow2.f32 %v7753_v7  ;;  %v7751_v52 = vmul.f32 1.442695, %v7677_v44 }
 0xa2d   : > { %v8380_v56 = vmul.f32 %v11517_v60, %v11513_v42 }
 0xa2e   : > { %v11519_v26 = vpop.eup %11518  ;;  %11522 = vpow2.f32 %v7751_v52 }
 0xa2f   : > { %8482 = vperm.xlu1 %10807, %v8380_v56   ;;  %v8379_v35 = vmul.f32 %v11519_v26, %v11515_v1 }
 0xa31   : > { %8477 = vperm.xlu0 %10806, %v8379_v35  }
 0xa39   : > { %v11521_v11 = vpop.eup %11520 }
 0xa3a   : > { %v8443_v27 = vpop.permute.xlu1 %8442  ;;  %v7936_v63 = vsel %vm7218_vm8, %v11521_v11, 0.0 }
 0xa3b   : > { %v8756_v51 = vmul.f32 %v8443_v27, %v18802_v34  ;;  %v11523_v58 = vpop.eup %11522  ;;  %v7937_v31 = vrot.slane %v7936_v63, 4 }
 0xa3c   : > { %v8438_v3 = vpop.permute.xlu0 %8437  ;;  %v7929_v50 = vsel %vm7218_vm8, %v11523_v58, 0.0 }
 0xa3d   : > { %v8826_v32 = vsel %vm1410_vm5, %v8756_v51, 0.0  ;;  %v8755_v42 = vmul.f32 %v8438_v3, %v18803_v8  ;;  %v7938_v16 = vadd.f32 %v7937_v31, %v7936_v63  ;;  %v7930_v23 = vrot.slane %v7929_v50, 4 }
 0xa3e   : > { %v8827_v54 = vrot.slane %v8826_v32, 4 }
 0xa3f   : > { %v8819_v1 = vsel %vm1410_vm5, %v8755_v42, 0.0  ;;  %v7939_v45 = vrot.slane %v7938_v16, 2  ;;  %v7931_v36 = vadd.f32 %v7930_v23, %v7929_v50 }
 0xa40   : > { %v8828_v21 = vadd.f32 %v8827_v54, %v8826_v32  ;;  %v8820_v40 = vrot.slane %v8819_v1, 4  ;;  %v8448_v14 = vpop.permute.xlu0 %8447 }
 0xa41   : > { %v8757_v46 = vmul.f32 %v8448_v14, %v18804_v61  ;;  %v7940_v37 = vadd.f32 %v7939_v45, %v7938_v16  ;;  %v7932_v13 = vrot.slane %v7931_v36, 2 }
 0xa42   : > { %v8829_v7 = vrot.slane %v8828_v21, 2  ;;  %v8821_v44 = vadd.f32 %v8820_v40, %v8819_v1  ;;  %v16560_v8 = vpop.f32.mrf.mxu1 }
 0xa43   : > { %v8833_v60 = vsel %vm1410_vm5, %v8757_v46, 0.0  ;;  %v7941_v52 = vrot.slane %v7940_v37, 1  ;;  %v7933_v56 = vadd.f32 %v7932_v13, %v7931_v36 }
 0xa44   : > { %v8830_v26 = vadd.f32 %v8829_v7, %v8828_v21  ;;  %v8822_v35 = vrot.slane %v8821_v44, 2  ;;  %v8834_v27 = vrot.slane %v8833_v60, 4  ;;  %v16563_v45 = vpop.f32.mrf.mxu1  ;;  %v7310_v21 = vsel %vm7218_vm8, %v16560_v8, -inf }
 0xa45   : > { %v7942_v63 = vadd.f32 %v7941_v52, %v7940_v37  ;;  %v7934_v34 = vrot.slane %v7933_v56, 1  ;;  %v7303_v14 = vsel %vm7218_vm8, %v16563_v45, -inf  ;;  %v7311_v61 = vrot.slane %v7310_v21, 4 }
 0xa46   : > { %v8831_v51 = vrot.slane %v8830_v26, 1  ;;  %v8823_v31 = vadd.f32 %v8822_v35, %v8821_v44  ;;  %v8835_v3 = vadd.f32 %v8834_v27, %v8833_v60  ;;  %v7304_v37 = vrot.slane %v7303_v14, 4 }
 0xa47   : > { %v7935_v50 = vadd.f32 %v7934_v34, %v7933_v56  ;;  %11524 = vrcp.f32 %v7942_v63  ;;  %v7312_v13 = vmax.f32 %v7310_v21, %v7311_v61 }
 0xa48   : > { %v8824_v32 = vrot.slane %v8823_v31, 1  ;;  %v8836_v42 = vrot.slane %v8835_v3, 2  ;;  %v8832_v16 = vadd.f32 %v8831_v51, %v8830_v26  ;;  %v7305_v44 = vmax.f32 %v7303_v14, %v7304_v37 }
 0xa49   : > { %11526 = vrcp.f32 %v7935_v50  ;;  %v7313_v56 = vrot.slane %v7312_v13, 2 }
 0xa4a   : > { %v8825_v23 = vadd.f32 %v8824_v32, %v8823_v31  ;;  %v8837_v54 = vadd.f32 %v8836_v42, %v8835_v3  ;;  %v7306_v27 = vrot.slane %v7305_v44, 2 }
 0xa4b   : > { %v7314_v31 = vmax.f32 %v7312_v13, %v7313_v56 }
 0xa4c   : > { %v9284_v1 = vsel %vm9283_vm9, %v8832_v16, %v8825_v23  ;;  %v8838_v36 = vrot.slane %v8837_v54, 1 }
 0xa4e   : > { %v8839_v40 = vadd.f32 %v8838_v36, %v8837_v54  ;;  %v7315_v36 = vrot.slane %v7314_v31, 1 }
 0xa50   : > { %v16570_v46 = vsel %vm9285_vm10, %v8839_v40, %v9284_v1 }
 0xa51   : > { %18805 = vst [vmem:[#allocation97_spill] sm:$0xff] %v16570_v46 }
 0xa54   : > { %v11525_v7 = vpop.eup %11524 }
 0xa55   : > { %v8382_v52 = vmul.f32 %v11525_v7, %v11521_v11 }
 0xa56   : > { %v11527_v60 = vpop.eup %11526 }
 0xa57   : > { %v8381_v26 = vmul.f32 %v11527_v60, %v11523_v58  ;;  %8492 = vperm.xlu1 %10807, %v8382_v52   ;;  %v7307_v58 = vmax.f32 %v7305_v44, %v7306_v27  ;;  %v8453_v27 = vpop.permute.xlu1 %8452 }
 0xa58   : > { %v16572_v35 = vpop.f32.mrf.mxu1 }
 0xa59   : > { %v7324_v63 = vsel %vm7218_vm8, %v16572_v35, -inf  ;;  %8487 = vperm.xlu0 %10806, %v8381_v26   ;;  %v7308_v7 = vrot.slane %v7307_v58, 1 }
 0xa5a   : > { %v7325_v34 = vrot.slane %v7324_v63, 4  ;;  %v16576_v51 = vpop.f32.mrf.mxu1 }
 0xa5b   : > { %v7317_v3 = vsel %vm7218_vm8, %v16576_v51, -inf }
 0xa5c   : > { %v7326_v50 = vmax.f32 %v7324_v63, %v7325_v34  ;;  %v7318_v32 = vrot.slane %v7317_v3, 4  ;;  %v16580_v11 = vpop.f32.mrf.mxu1  ;;  %v7316_v63 = vmax.f32 %v7314_v31, %v7315_v36 }
 0xa5d   : > { %v7338_v42 = vsel %vm7218_vm8, %v16580_v11, -inf }
 0xa5e   : > { %v7327_v16 = vrot.slane %v7326_v50, 2  ;;  %v7319_v23 = vmax.f32 %v7317_v3, %v7318_v32  ;;  %v7339_v54 = vrot.slane %v7338_v42, 4  ;;  %v16584_v1 = vpop.f32.mrf.mxu1 }
 0xa5f   : > { %v7331_v21 = vsel %vm7218_vm8, %v16584_v1, -inf }
 0xa60   : > { %v7328_v40 = vmax.f32 %v7326_v50, %v7327_v16  ;;  %v7320_v14 = vrot.slane %v7319_v23, 2  ;;  %v7340_v61 = vmax.f32 %v7338_v42, %v7339_v54  ;;  %v7332_v37 = vrot.slane %v7331_v21, 4  ;;  %v16588_v13 = vpop.f32.mrf.mxu1 }
 0xa61   : > { %v7352_v44 = vsel %vm7218_vm8, %v16588_v13, -inf  ;;  %v7309_v54 = vmax.f32 %v7307_v58, %v7308_v7 }
 0xa62   : > { %v7321_v60 = vmax.f32 %v7319_v23, %v7320_v14  ;;  %v7341_v52 = vrot.slane %v7340_v61, 2  ;;  %v7333_v56 = vmax.f32 %v7331_v21, %v7332_v37  ;;  %v16592_v26 = vpop.f32.mrf.mxu1  ;;  %v7329_v34 = vrot.slane %v7328_v40, 1 }
 0xa63   : > { %v7353_v3 = vrot.slane %v7352_v44, 4  ;;  %v7345_v42 = vsel %vm7218_vm8, %v16592_v26, -inf  ;;  %v8758_v23 = vmul.f32 %v8453_v27, %v18806_v43  ;;  %v7680_v21 = vsub.f32 %v16560_v8, %v7316_v63 }
 0xa64   : > { %v7322_v32 = vrot.slane %v7321_v60, 1  ;;  %v7342_v50 = vmax.f32 %v7340_v61, %v7341_v52  ;;  %v16596_v16 = vpop.f32.mrf.mxu1  ;;  %v7334_v24 = vrot.slane %v7333_v56, 2  ;;  %v7330_v37 = vmax.f32 %v7328_v40, %v7329_v34 }
 0xa65   : > { %v7354_v53 = vmax.f32 %v7352_v44, %v7353_v3  ;;  %v7346_v36 = vrot.slane %v7345_v42, 4  ;;  %v7679_v61 = vsub.f32 %v16563_v45, %v7309_v54  ;;  %v8840_v58 = vsel %vm1410_vm5, %v8758_v23, 0.0 }
 0xa66   : > { %v16599_v14 = vpop.f32.mrf.mxu1  ;;  %v7323_v31 = vmax.f32 %v7321_v60, %v7322_v32  ;;  %v7343_v33 = vrot.slane %v7342_v50, 1  ;;  %v7335_v52 = vmax.f32 %v7333_v56, %v7334_v24  ;;  %v7757_v43 = vmul.f32 1.442695, %v7680_v21  ;;  %v8463_v60 = vpop.permute.xlu1 %8462 }
 0xa67   : > { %v7355_v39 = vrot.slane %v7354_v53, 2  ;;  %v7347_v15 = vmax.f32 %v7345_v42, %v7346_v36  ;;  %v7682_v44 = vsub.f32 %v16572_v35, %v7330_v37  ;;  %v7366_v63 = vsel %vm7218_vm8, %v16596_v16, -inf  ;;  %v18807_v35 = vld [vmem:[#allocation102_spill] sm:$0xff] }
 0xa68   : > { %v16602_v9 = vpop.f32.mrf.mxu1  ;;  %v7681_v8 = vsub.f32 %v16576_v51, %v7323_v31  ;;  %v7344_v27 = vmax.f32 %v7342_v50, %v7343_v33  ;;  %v7755_v34 = vmul.f32 1.442695, %v7679_v61  ;;  %v7336_v45 = vrot.slane %v7335_v52, 1 }
 0xa69   : > { %v7348_v40 = vrot.slane %v7347_v15, 2  ;;  %v7356_v24 = vmax.f32 %v7354_v53, %v7355_v39  ;;  %v8841_v56 = vrot.slane %v8840_v58, 4  ;;  %v7367_v32 = vrot.slane %v7366_v63, 4 }
 0xa6a   : > { %v16606_v7 = vpop.f32.mrf.mxu1  ;;  %v7359_v42 = vsel %vm7218_vm8, %v16599_v14, -inf  ;;  %11528 = vpow2.f32 %v7757_v43  ;;  %v8760_v51 = vmul.f32 %v8463_v60, %v18807_v35  ;;  %v7761_v23 = vmul.f32 1.442695, %v7682_v44 }
 0xa6b   : > { %v7349_v3 = vmax.f32 %v7347_v15, %v7348_v40  ;;  %v7759_v21 = vmul.f32 1.442695, %v7681_v8  ;;  %v7684_v33 = vsub.f32 %v16580_v11, %v7344_v27  ;;  %v7368_v50 = vmax.f32 %v7366_v63, %v7367_v32 }
 0xa6c   : > { %v16614_v54 = vpop.f32.mrf.mxu1  ;;  %v7360_v37 = vrot.slane %v7359_v42, 4  ;;  %v7380_v39 = vsel %vm7218_vm8, %v16602_v9, -inf  ;;  %11530 = vpow2.f32 %v7755_v34  ;;  %v7337_v15 = vmax.f32 %v7335_v52, %v7336_v45  ;;  %v8458_v34 = vpop.permute.xlu0 %8457 }
 0xa6d   : > { %v7357_v53 = vrot.slane %v7356_v24, 1  ;;  %v7381_v31 = vrot.slane %v7380_v39, 4  ;;  %v7350_v36 = vrot.slane %v7349_v3, 1  ;;  %v7369_v61 = vrot.slane %v7368_v50, 2 }
 0xa6e   : > { %v7361_v40 = vmax.f32 %v7359_v42, %v7360_v37  ;;  %v7373_v43 = vsel %vm7218_vm8, %v16606_v7, -inf  ;;  %v16622_v60 = vpop.f32.mrf.mxu1  ;;  %11532 = vpow2.f32 %v7761_v23  ;;  %v7394_v8 = vsel %vm7218_vm8, %v16614_v54, -inf }
 0xa6f   : > { %v7382_v44 = vmax.f32 %v7380_v39, %v7381_v31  ;;  %v7374_v11 = vrot.slane %v7373_v43, 4  ;;  %11534 = vpow2.f32 %v7759_v21  ;;  %v7765_v27 = vmul.f32 1.442695, %v7684_v33 }
 0xa70   : > { %v7370_v63 = vmax.f32 %v7368_v50, %v7369_v61  ;;  %v7362_v52 = vrot.slane %v7361_v40, 2  ;;  %v7683_v45 = vsub.f32 %v16584_v1, %v7337_v15  ;;  %v7358_v32 = vmax.f32 %v7356_v24, %v7357_v53 }
 0xa71   : > { %v7383_v42 = vrot.slane %v7382_v44, 2  ;;  %v7387_v35 = vsel %vm7218_vm8, %v16622_v60, -inf  ;;  %v7351_v37 = vmax.f32 %v7349_v3, %v7350_v36  ;;  %v7375_v23 = vmax.f32 %v7373_v43, %v7374_v11 }
 0xa72   : > { %v7363_v25 = vmax.f32 %v7361_v40, %v7362_v52  ;;  %v7395_v39 = vrot.slane %v7394_v8, 4  ;;  %v7371_v31 = vrot.slane %v7370_v63, 1  ;;  %v8842_v6 = vadd.f32 %v8841_v56, %v8840_v58 }
 0xa73   : > { %v7384_v17 = vmax.f32 %v7382_v44, %v7383_v42  ;;  %v8759_v21 = vmul.f32 %v8458_v34, %v18808_v2  ;;  %11536 = vpow2.f32 %v7765_v27  ;;  %v7388_v33 = vrot.slane %v7387_v35, 4 }
 0xa74   : > { %v8854_v50 = vsel %vm1410_vm5, %v8760_v51, 0.0  ;;  %v7763_v61 = vmul.f32 1.442695, %v7683_v45  ;;  %v7686_v1 = vsub.f32 %v16588_v13, %v7358_v32  ;;  %v7364_v24 = vrot.slane %v7363_v25, 1 }
 0xa75   : > { %v7685_v15 = vsub.f32 %v16592_v26, %v7351_v37  ;;  %v7385_v53 = vrot.slane %v7384_v17, 1  ;;  %v7376_v3 = vrot.slane %v7375_v23, 2  ;;  %v7396_v36 = vmax.f32 %v7394_v8, %v7395_v39 }
 0xa76   : > { %v7372_v40 = vmax.f32 %v7370_v63, %v7371_v31  ;;  %v8843_v44 = vrot.slane %v8842_v6, 2  ;;  %v8847_v58 = vsel %vm1410_vm5, %v8759_v21, 0.0  ;;  %v7389_v2 = vmax.f32 %v7387_v35, %v7388_v33 }
 0xa77   : > { %v16633_v43 = vpop.eup %11528  ;;  %v8855_v56 = vrot.slane %v8854_v50, 4  ;;  %11538 = vpow2.f32 %v7763_v61  ;;  %v7769_v11 = vmul.f32 1.442695, %v7686_v1  ;;  %v7365_v51 = vmax.f32 %v7363_v25, %v7364_v24 }
 0xa78   : > { %v7767_v13 = vmul.f32 1.442695, %v7685_v15  ;;  %v7386_v52 = vmax.f32 %v7384_v17, %v7385_v53  ;;  %v7377_v34 = vmax.f32 %v7375_v23, %v7376_v3  ;;  %v7397_v26 = vrot.slane %v7396_v36, 2  ;;  %v16648_v23 = vpop.f32.mrf.mxu1 }
 0xa79   : > { %v16636_v27 = vpop.eup %11530  ;;  %v8848_v45 = vrot.slane %v8847_v58, 4  ;;  %v7688_v8 = vsub.f32 %v16596_v16, %v7372_v40  ;;  %v8844_v32 = vadd.f32 %v8843_v44, %v8842_v6  ;;  %v7950_v42 = vsel %vm7218_vm8, %v16633_v43, 0.0 }
 0xa7a   : > { %v7390_v35 = vrot.slane %v7389_v2, 2  ;;  %v7943_v25 = vsel %vm7218_vm8, %v16636_v27, 0.0  ;;  %v8856_v39 = vadd.f32 %v8855_v56, %v8854_v50  ;;  %11540 = vpow2.f32 %v7769_v11  ;;  %v16657_v44 = vpop.f32.mrf.mxu1 }
 0xa7b   : > { %v16639_v63 = vpop.eup %11532  ;;  %v7687_v17 = vsub.f32 %v16599_v14, %v7365_v51  ;;  %11542 = vpow2.f32 %v7767_v13  ;;  %v7690_v16 = vsub.f32 %v16602_v9, %v7386_v52  ;;  %v7378_v31 = vrot.slane %v7377_v34, 1 }
 0xa7c   : > { %v16643_v37 = vpop.eup %11534  ;;  %v7398_v6 = vmax.f32 %v7396_v36, %v7397_v26  ;;  %v7951_v21 = vrot.slane %v7950_v42, 4  ;;  %v8849_v33 = vadd.f32 %v8848_v45, %v8847_v58  ;;  %v7773_v61 = vmul.f32 1.442695, %v7688_v8  ;;  %v16665_v59 = vpop.f32.mrf.mxu1 }
 0xa7d   : > { %v8845_v1 = vrot.slane %v8844_v32, 1  ;;  %v7391_v24 = vmax.f32 %v7389_v2, %v7390_v35  ;;  %v7408_v15 = vsel %vm7218_vm8, %v16648_v23, -inf  ;;  %v7944_v50 = vrot.slane %v7943_v25, 4 }
 0xa7e   : > { %v8857_v3 = vrot.slane %v8856_v39, 2  ;;  %v7964_v14 = vsel %vm7218_vm8, %v16639_v63, 0.0  ;;  %v7771_v40 = vmul.f32 1.442695, %v7687_v17  ;;  %v7957_v9 = vsel %vm7218_vm8, %v16643_v37, 0.0  ;;  %v16674_v12 = vpop.f32.mrf.mxu1 }
 0xa7f   : > { %v7777_v36 = vmul.f32 1.442695, %v7690_v16  ;;  %v7379_v58 = vmax.f32 %v7377_v34, %v7378_v31  ;;  %v7399_v56 = vrot.slane %v7398_v6, 1  ;;  %v7952_v2 = vadd.f32 %v7951_v21, %v7950_v42 }
 0xa80   : > { %v16653_v53 = vpop.eup %11536  ;;  %v8850_v11 = vrot.slane %v8849_v33, 2  ;;  %11544 = vpow2.f32 %v7773_v61  ;;  %v7409_v51 = vrot.slane %v7408_v15, 4  ;;  %v7965_v13 = vrot.slane %v7964_v14, 4 }
 0xa81   : > { %v7978_v52 = vsel %vm7218_vm8, %v16653_v53, 0.0  ;;  %v7392_v26 = vrot.slane %v7391_v24, 1  ;;  %v7401_v45 = vsel %vm7218_vm8, %v16657_v44, -inf  ;;  %v7945_v8 = vadd.f32 %v7944_v50, %v7943_v25 }
 0xa82   : > { %v7958_v35 = vrot.slane %v7957_v9, 4  ;;  %11546 = vpow2.f32 %v7771_v40  ;;  %v7410_v17 = vmax.f32 %v7408_v15, %v7409_v51  ;;  %v8858_v42 = vadd.f32 %v8857_v3, %v8856_v39 }
 0xa83   : > { %11548 = vpow2.f32 %v7777_v36  ;;  %v7689_v16 = vsub.f32 %v16606_v7, %v7379_v58  ;;  %v7400_v31 = vmax.f32 %v7398_v6, %v7399_v56  ;;  %v7953_v21 = vrot.slane %v7952_v2, 2 }
 0xa84   : > { %v16667_v34 = vpop.eup %11538  ;;  %v8851_v61 = vadd.f32 %v8850_v11, %v8849_v33  ;;  %v7979_v28 = vrot.slane %v7978_v52, 4  ;;  %v7402_v57 = vrot.slane %v7401_v45, 4  ;;  %v16670_v0 = vadd.f32 %v8845_v1, %v8844_v32 }
 0xa85   : > { %v7966_v29 = vadd.f32 %v7965_v13, %v7964_v14  ;;  %v7393_v25 = vmax.f32 %v7391_v24, %v7392_v26  ;;  %v7946_v50 = vrot.slane %v7945_v8, 2  ;;  %v7959_v40 = vadd.f32 %v7958_v35, %v7957_v9 }
 0xa86   : > { %18809 = vst [vmem:[#allocation9_spill] sm:$0xff] %v16670_v0  ;;  %v7411_v15 = vrot.slane %v7410_v17, 2  ;;  %v7422_v51 = vsel %vm7218_vm8, %v16665_v59, -inf  ;;  %v8859_v7 = vrot.slane %v8858_v42, 1  ;;  %v7971_v6 = vsel %vm7218_vm8, %v16667_v34, 0.0 }
 0xa87   : > { %v16676_v39 = vpop.eup %11540  ;;  %v7775_v33 = vmul.f32 1.442695, %v7689_v16  ;;  %v7692_v32 = vsub.f32 %v16614_v54, %v7400_v31  ;;  %v7954_v24 = vadd.f32 %v7953_v21, %v7952_v2  ;;  %v8852_v3 = vrot.slane %v8851_v61, 1 }
 0xa88   : > { %v16681_v1 = vpop.eup %11542  ;;  %v7980_v14 = vadd.f32 %v7979_v28, %v7978_v52  ;;  %v7403_v9 = vmax.f32 %v7401_v45, %v7402_v57  ;;  %v7967_v36 = vrot.slane %v7966_v29, 2  ;;  %v7691_v58 = vsub.f32 %v16622_v60, %v7393_v25 }
 0xa89   : > { %v7423_v56 = vrot.slane %v7422_v51, 4  ;;  %v7415_v11 = vsel %vm7218_vm8, %v16674_v12, -inf  ;;  %v7947_v13 = vadd.f32 %v7946_v50, %v7945_v8  ;;  %v7960_v26 = vrot.slane %v7959_v40, 2 }
 0xa8a   : > { %v7972_v35 = vrot.slane %v7971_v6, 4  ;;  %v7412_v55 = vmax.f32 %v7410_v17, %v7411_v15  ;;  %v7992_v54 = vsel %vm7218_vm8, %v16676_v39, 0.0  ;;  %v7985_v2 = vsel %vm7218_vm8, %v16681_v1, 0.0  ;;  %v16694_v17 = vpop.f32.mrf.mxu1 }
 0xa8b   : > { %11550 = vpow2.f32 %v7775_v33  ;;  %v7781_v28 = vmul.f32 1.442695, %v7692_v32  ;;  %v16690_v57 = vadd.f32 %v8859_v7, %v8858_v42  ;;  %v7981_v52 = vrot.slane %v7980_v14, 2 }
 0xa8c   : > { %v7404_v60 = vrot.slane %v7403_v9, 2  ;;  %v7416_v45 = vrot.slane %v7415_v11, 4  ;;  %v7955_v31 = vrot.slane %v7954_v24, 1  ;;  %v7968_v8 = vadd.f32 %v7967_v36, %v7966_v29 }
 0xa8d   : > { %18810 = vst [vmem:[#allocation54_spill] sm:$0xff] %v16690_v57  ;;  %v16692_v16 = vpop.eup %11544  ;;  %v7779_v21 = vmul.f32 1.442695, %v7691_v58  ;;  %v7424_v25 = vmax.f32 %v7422_v51, %v7423_v56  ;;  %v7961_v50 = vadd.f32 %v7960_v26, %v7959_v40  ;;  %v7993_v15 = vrot.slane %v7992_v54, 4  ;;  %v16704_v26 = vpop.f32.mrf.mxu1 }
 0xa8e   : > { %v7986_v4 = vrot.slane %v7985_v2, 4  ;;  %v7413_v20 = vrot.slane %v7412_v55, 1  ;;  %v7948_v33 = vrot.slane %v7947_v13, 1  ;;  %v16698_v42 = vadd.f32 %v8852_v3, %v8851_v61 }
 0xa8f   : > { %v16696_v0 = vpop.eup %11546  ;;  %v7973_v7 = vadd.f32 %v7972_v35, %v7971_v6  ;;  %11552 = vpow2.f32 %v7781_v28  ;;  %v7982_v57 = vadd.f32 %v7981_v52, %v7980_v14  ;;  %v8006_v29 = vsel %vm7218_vm8, %v16692_v16, 0.0 }
 0xa90   : > { %18811 = vst [vmem:[#allocation106_spill] sm:$0xff] %v16698_v42  ;;  %v16700_v32 = vpop.eup %11548  ;;  %v7405_v51 = vmax.f32 %v7403_v9, %v7404_v60  ;;  %v7417_v36 = vmax.f32 %v7415_v11, %v7416_v45  ;;  %v7956_v58 = vadd.f32 %v7955_v31, %v7954_v24  ;;  %v7969_v40 = vrot.slane %v7968_v8, 1 }
 0xa91   : > { %18812 = vst [vmem:[#allocation124_spill] sm:$0xff] %v16700_v32  ;;  %11554 = vpow2.f32 %v7779_v21  ;;  %v7425_v56 = vrot.slane %v7424_v25, 2  ;;  %v7962_v46 = vrot.slane %v7961_v50, 1  ;;  %v7994_v38 = vadd.f32 %v7993_v15, %v7992_v54 }
 0xa92   : > { %v7987_v61 = vadd.f32 %v7986_v4, %v7985_v2  ;;  %v7414_v3 = vmax.f32 %v7412_v55, %v7413_v20  ;;  %v8007_v6 = vrot.slane %v8006_v29, 4  ;;  %v7999_v35 = vsel %vm7218_vm8, %v16696_v0, 0.0  ;;  %v16714_v55 = vpop.f32.mrf.mxu1 }
 0xa93   : > { %v8020_v14 = vsel %vm7218_vm8, %v16700_v32, 0.0  ;;  %v7436_v9 = vsel %vm7218_vm8, %v16694_v17, -inf  ;;  %v7983_v24 = vrot.slane %v7982_v57, 1  ;;  %v7974_v11 = vrot.slane %v7973_v7, 2 }
 0xa94   : > { %v7406_v28 = vrot.slane %v7405_v51, 1  ;;  %v7418_v52 = vrot.slane %v7417_v36, 2  ;;  %v7949_v60 = vadd.f32 %v7948_v33, %v7947_v13  ;;  %v16712_v45 = vadd.f32 %v7969_v40, %v7968_v8  ;;  %v16725_v22 = vpop.f32.mrf.mxu1 }
 0xa95   : > { %v7426_v54 = vmax.f32 %v7424_v25, %v7425_v56  ;;  %v7437_v4 = vrot.slane %v7436_v9, 4  ;;  %v8000_v20 = vrot.slane %v7999_v35, 4  ;;  %v8021_v2 = vrot.slane %v8020_v14, 4 }
 0xa96   : > { %v7694_v31 = vsub.f32 %v16648_v23, %v7414_v3  ;;  %v7429_v21 = vsel %vm7218_vm8, %v16704_v26, -inf  ;;  %v16719_v15 = vadd.f32 %v7962_v46, %v7961_v50  ;;  %v7995_v42 = vrot.slane %v7994_v38, 2 }
 0xa97   : > { %v7988_v10 = vrot.slane %v7987_v61, 2  ;;  %v8008_v5 = vadd.f32 %v8007_v6, %v8006_v29  ;;  %v16723_v13 = vadd.f32 %v7983_v24, %v7982_v57  ;;  %v7975_v8 = vadd.f32 %v7974_v11, %v7973_v7 }
 0xa98   : > { %v16721_v19 = vpop.eup %11550  ;;  %v7407_v25 = vmax.f32 %v7405_v51, %v7406_v28  ;;  %v7419_v33 = vmax.f32 %v7417_v36, %v7418_v52  ;;  %v7427_v40 = vrot.slane %v7426_v54, 1  ;;  %v7438_v56 = vmax.f32 %v7436_v9, %v7437_v4 }
 0xa99   : > { %18813 = vst [vmem:[#allocation4_spill] sm:$0xff] %v16721_v19  ;;  %v7430_v47 = vrot.slane %v7429_v21, 4  ;;  %11556 = vrcp.f32 %v7956_v58  ;;  %v8001_v23 = vadd.f32 %v8000_v20, %v7999_v35  ;;  %v8022_v3 = vadd.f32 %v8021_v2, %v8020_v14 }
 0xa9a   : > { %v7785_v46 = vmul.f32 1.442695, %v7694_v31  ;;  %11558 = vrcp.f32 %v7949_v60  ;;  %v7996_v50 = vadd.f32 %v7995_v42, %v7994_v38  ;;  %v7989_v30 = vadd.f32 %v7988_v10, %v7987_v61  ;;  %v16736_v10 = vpop.f32.mrf.mxu1 }
 0xa9b   : > { %v8009_v29 = vrot.slane %v8008_v5, 2  ;;  %v8013_v57 = vsel %vm7218_vm8, %v16721_v19, 0.0  ;;  %v7693_v7 = vsub.f32 %v16657_v44, %v7407_v25  ;;  %v7420_v51 = vrot.slane %v7419_v33, 1 }
 0xa9c   : > { %v16729_v6 = vpop.eup %11552  ;;  %v7450_v36 = vsel %vm7218_vm8, %v16714_v55, -inf  ;;  %v7443_v58 = vsel %vm7218_vm8, %v16725_v22, -inf  ;;  %v7976_v35 = vrot.slane %v7975_v8, 1  ;;  %v7428_v14 = vmax.f32 %v7426_v54, %v7427_v40  ;;  %v16745_v40 = vpop.f32.mrf.mxu1 }
 0xa9d   : > { %18814 = vst [vmem:[#allocation11_spill] sm:$0xff] %v16729_v6  ;;  %v7439_v9 = vrot.slane %v7438_v56, 2  ;;  %v7431_v38 = vmax.f32 %v7429_v21, %v7430_v47  ;;  %v8002_v61 = vrot.slane %v8001_v23, 2  ;;  %v8023_v24 = vrot.slane %v8022_v3, 2 }
 0xa9e   : > { %v16738_v42 = vpop.eup %11554  ;;  %v8014_v11 = vrot.slane %v8013_v57, 4  ;;  %11560 = vpow2.f32 %v7785_v46  ;;  %v8010_v44 = vadd.f32 %v8009_v29, %v8008_v5  ;;  %v8034_v28 = vsel %vm7218_vm8, %v16729_v6, 0.0 }
 0xa9f   : > { %18815 = vst [vmem:[#allocation12_spill] sm:$0xff] %v16738_v42  ;;  %v7451_v52 = vrot.slane %v7450_v36, 4  ;;  %v7444_v60 = vrot.slane %v7443_v58, 4  ;;  %v7997_v4 = vrot.slane %v7996_v50, 1  ;;  %v7990_v20 = vrot.slane %v7989_v30, 1 }
 0xaa0   : > { %v7783_v2 = vmul.f32 1.442695, %v7693_v7  ;;  %v7421_v54 = vmax.f32 %v7419_v33, %v7420_v51  ;;  %v8027_v47 = vsel %vm7218_vm8, %v16738_v42, 0.0  ;;  %v7696_v31 = vsub.f32 %v16665_v59, %v7428_v14  ;;  %v8473_v59 = vpop.permute.xlu1 %8472 }
 0xaa1   : > { %v7440_v21 = vmax.f32 %v7438_v56, %v7439_v9  ;;  %v7432_v25 = vrot.slane %v7431_v38, 2  ;;  %v8003_v46 = vadd.f32 %v8002_v61, %v8001_v23  ;;  %v8024_v5 = vadd.f32 %v8023_v24, %v8022_v3  ;;  %v16754_v3 = vpop.f32.mrf.mxu1 }
 0xaa2   : > { %v8015_v29 = vadd.f32 %v8014_v11, %v8013_v57  ;;  %v8035_v41 = vrot.slane %v8034_v28, 4  ;;  %v16747_v6 = vadd.f32 %v7976_v35, %v7975_v8  ;;  %v8011_v62 = vrot.slane %v8010_v44, 1 }
 0xaa3   : > { %v7452_v19 = vmax.f32 %v7450_v36, %v7451_v52  ;;  %v7445_v48 = vmax.f32 %v7443_v58, %v7444_v60  ;;  %v16749_v7 = vadd.f32 %v7997_v4, %v7996_v50  ;;  %v8028_v33 = vrot.slane %v8027_v47, 4 }
 0xaa4   : > { %11562 = vpow2.f32 %v7783_v2  ;;  %v7695_v51 = vsub.f32 %v16674_v12, %v7421_v54  ;;  %v16752_v56 = vadd.f32 %v7990_v20, %v7989_v30  ;;  %v7789_v14 = vmul.f32 1.442695, %v7696_v31 }
 0xaa5   : > { %v7441_v9 = vrot.slane %v7440_v21, 1  ;;  %v7433_v23 = vmax.f32 %v7431_v38, %v7432_v25  ;;  %v8004_v8 = vrot.slane %v8003_v46, 1  ;;  %v8025_v35 = vrot.slane %v8024_v5, 1 }
 0xaa6   : > { %v11557_v57 = vpop.eup %11556  ;;  %v8016_v61 = vrot.slane %v8015_v29, 2  ;;  %v8036_v36 = vadd.f32 %v8035_v41, %v8034_v28  ;;  %v16756_v50 = vadd.f32 %v8011_v62, %v8010_v44  ;;  %v7453_v24 = vrot.slane %v7452_v19, 2  ;;  %v16763_v41 = vpop.f32.mrf.mxu1 }
 0xaa7   : > { %v11559_v58 = vpop.eup %11558  ;;  %v7446_v11 = vrot.slane %v7445_v48, 2  ;;  %v8762_v12 = vmul.f32 %v8473_v59, %v15988_v18  ;;  %v8029_v52 = vadd.f32 %v8028_v33, %v8027_v47  ;;  %v7787_v30 = vmul.f32 1.442695, %v7695_v51 }
 0xaa8   : > { %v8384_v60 = vmul.f32 %v11557_v57, %v16633_v43  ;;  %v7464_v38 = vsel %vm7218_vm8, %v16736_v10, -inf  ;;  %11564 = vpow2.f32 %v7789_v14  ;;  %v7442_v4 = vmax.f32 %v7440_v21, %v7441_v9  ;;  %v16777_v59 = vpop.f32.mrf.mxu1 }
 0xaa9   : > { %v7434_v20 = vrot.slane %v7433_v23, 1  ;;  %v8383_v2 = vmul.f32 %v11559_v58, %v16636_v27  ;;  %v16765_v62 = vadd.f32 %v8004_v8, %v8003_v46  ;;  %v16767_v44 = vadd.f32 %v8025_v35, %v8024_v5 }
 0xaaa   : > { %v8017_v28 = vadd.f32 %v8016_v61, %v8015_v29  ;;  %v8037_v18 = vrot.slane %v8036_v36, 2  ;;  %8502 = vperm.xlu1 %10807, %v8384_v60   ;;  %v7454_v43 = vmax.f32 %v7452_v19, %v7453_v24  ;;  %v7447_v47 = vmax.f32 %v7445_v48, %v7446_v11 }
 0xaab   : > { %v16769_v54 = vpop.eup %11560  ;;  %8497 = vperm.xlu0 %10806, %v8383_v2   ;;  %v8868_v31 = vsel %vm1410_vm5, %v8762_v12, 0.0  ;;  %v7465_v21 = vrot.slane %v7464_v38, 4  ;;  %v8030_v25 = vrot.slane %v8029_v52, 2  ;;  %11566 = vpow2.f32 %v7787_v30 }
 0xaac   : > { %18816 = vst [vmem:[#allocation81_spill] sm:$0xff] %v16769_v54  ;;  %v7457_v27 = vsel %vm7218_vm8, %v16745_v40, -inf  ;;  %v7478_v46 = vsel %vm7218_vm8, %v16754_v3, -inf  ;;  %v7698_v5 = vsub.f32 %v16694_v17, %v7442_v4  ;;  %v7435_v29 = vmax.f32 %v7433_v23, %v7434_v20 }
 0xaad   : > { %v7466_v33 = vmax.f32 %v7464_v38, %v7465_v21  ;;  %v7458_v51 = vrot.slane %v7457_v27, 4  ;;  %v8048_v48 = vsel %vm7218_vm8, %v16769_v54, 0.0  ;;  %v8869_v19 = vrot.slane %v8868_v31, 4 }
 0xaae   : > { %v7479_v14 = vrot.slane %v7478_v46, 4  ;;  %v7471_v9 = vsel %vm7218_vm8, %v16763_v41, -inf  ;;  %v7455_v57 = vrot.slane %v7454_v43, 1  ;;  %v7448_v8 = vrot.slane %v7447_v47, 1 }
 0xaaf   : > { %v7467_v35 = vrot.slane %v7466_v33, 2  ;;  %v7459_v61 = vmax.f32 %v7457_v27, %v7458_v51  ;;  %v7472_v24 = vrot.slane %v7471_v9, 4  ;;  %v7492_v17 = vsel %vm7218_vm8, %v16777_v59, -inf }
 0xab0   : > { %v7480_v58 = vmax.f32 %v7478_v46, %v7479_v14  ;;  %11568 = vrcp.f32 %v16712_v45  ;;  %v7793_v11 = vmul.f32 1.442695, %v7698_v5  ;;  %v7697_v12 = vsub.f32 %v16704_v26, %v7435_v29  ;;  %v8468_v26 = vpop.permute.xlu0 %8467 }
 0xab1   : > { %v16786_v23 = vpop.eup %11562  ;;  %v7468_v30 = vmax.f32 %v7466_v33, %v7467_v35  ;;  %v7460_v60 = vrot.slane %v7459_v61, 2  ;;  %v8038_v38 = vadd.f32 %v8037_v18, %v8036_v36  ;;  %v8049_v4 = vrot.slane %v8048_v48, 4  ;;  %v16791_v33 = vpop.f32.mrf.mxu1 }
 0xab2   : > { %v7481_v20 = vrot.slane %v7480_v58, 2  ;;  %v7473_v2 = vmax.f32 %v7471_v9, %v7472_v24  ;;  %v7456_v21 = vmax.f32 %v7454_v43, %v7455_v57  ;;  %v7493_v51 = vrot.slane %v7492_v17, 4 }
 0xab3   : > { %v7469_v27 = vrot.slane %v7468_v30, 1  ;;  %v7461_v46 = vmax.f32 %v7459_v61, %v7460_v60  ;;  %v8018_v14 = vrot.slane %v8017_v28, 1  ;;  %v8031_v54 = vadd.f32 %v8030_v25, %v8029_v52 }
 0xab4   : > { %v8041_v45 = vsel %vm7218_vm8, %v16786_v23, 0.0  ;;  %v7449_v42 = vmax.f32 %v7447_v47, %v7448_v8  ;;  %11570 = vpow2.f32 %v7793_v11  ;;  %v7791_v5 = vmul.f32 1.442695, %v7697_v12  ;;  %v16804_v12 = vpop.f32.mrf.mxu1 }
 0xab5   : > { %v8870_v32 = vadd.f32 %v8869_v19, %v8868_v31  ;;  %v7482_v29 = vmax.f32 %v7480_v58, %v7481_v20  ;;  %v16793_v36 = vpop.eup %11564  ;;  %v8050_v18 = vadd.f32 %v8049_v4, %v8048_v48  ;;  %v7470_v43 = vmax.f32 %v7468_v30, %v7469_v27 }
 0xab6   : > { %v7462_v9 = vrot.slane %v7461_v46, 1  ;;  %v7474_v57 = vrot.slane %v7473_v2, 2  ;;  %v8039_v35 = vrot.slane %v8038_v38, 1  ;;  %v8042_v61 = vrot.slane %v8041_v45, 4 }
 0xab7   : > { %v7700_v52 = vsub.f32 %v16714_v55, %v7456_v21  ;;  %v7494_v25 = vmax.f32 %v7492_v17, %v7493_v51  ;;  %v16796_v24 = vadd.f32 %v8018_v14, %v8017_v28  ;;  %v8032_v47 = vrot.slane %v8031_v54, 1 }
 0xab8   : > { %v7699_v31 = vsub.f32 %v16725_v22, %v7449_v42  ;;  %v8761_v19 = vmul.f32 %v8468_v26, %v16001_v49  ;;  %v16800_v8 = vpop.eup %11566  ;;  %v8062_v48 = vsel %vm7218_vm8, %v16793_v36, 0.0  ;;  %11572 = vpow2.f32 %v7791_v5 }
 0xab9   : > { %v7463_v58 = vmax.f32 %v7461_v46, %v7462_v9  ;;  %v7483_v11 = vrot.slane %v7482_v29, 1  ;;  %v8051_v30 = vrot.slane %v8050_v18, 2  ;;  %v8871_v55 = vrot.slane %v8870_v32, 2 }
 0xaba   : > { %v7702_v28 = vsub.f32 %v16736_v10, %v7470_v43  ;;  %v7475_v17 = vmax.f32 %v7473_v2, %v7474_v57  ;;  %v16807_v60 = vadd.f32 %v8039_v35, %v8038_v38  ;;  %v8043_v22 = vadd.f32 %v8042_v61, %v8041_v45  ;;  %v16819_v2 = vpop.f32.mrf.mxu1 }
 0xabb   : > { %v7797_v42 = vmul.f32 1.442695, %v7700_v52  ;;  %v7495_v49 = vrot.slane %v7494_v25, 2  ;;  %v16809_v4 = vadd.f32 %v8032_v47, %v8031_v54  ;;  %v8063_v20 = vrot.slane %v8062_v48, 4 }
 0xabc   : > { %v7795_v21 = vmul.f32 1.442695, %v7699_v31  ;;  %v16812_v27 = vsel %vm1410_vm5, %v8761_v19, 0.0  ;;  %v8055_v51 = vsel %vm7218_vm8, %v16800_v8, 0.0  ;;  %v7701_v14 = vsub.f32 %v16745_v40, %v7463_v58 }
 0xabd   : > { %v11569_v46 = vpop.eup %11568  ;;  %v7484_v10 = vmax.f32 %v7482_v29, %v7483_v11  ;;  %v7485_v38 = vsel %vm7218_vm8, %v16791_v33, -inf  ;;  %v16821_v45 = vadd.f32 %v8051_v30, %v8050_v18  ;;  %v16823_v54 = vadd.f32 %v8871_v55, %v8870_v32  ;;  %v16830_v18 = vpop.f32.mrf.mxu1 }
 0xabe   : > { %v7801_v5 = vmul.f32 1.442695, %v7702_v28  ;;  %v7476_v26 = vrot.slane %v7475_v17, 1  ;;  %v8044_v43 = vrot.slane %v8043_v22, 2  ;;  %11574 = vpow2.f32 %v7797_v42 }
 0xabf   : > { %18817 = vst [vmem:[#allocation104_spill] sm:$0xff] %v16823_v54  ;;  %v7496_v9 = vmax.f32 %v7494_v25, %v7495_v49  ;;  %v8386_v57 = vmul.f32 %v11569_v46, %v16639_v63  ;;  %v8064_v35 = vadd.f32 %v8063_v20, %v8062_v48  ;;  %v8056_v61 = vrot.slane %v8055_v51, 4 }
 0xac0   : > { %11576 = vpow2.f32 %v7795_v21  ;;  %v7486_v40 = vrot.slane %v7485_v38, 4  ;;  %v7799_v29 = vmul.f32 1.442695, %v7701_v14  ;;  %v7704_v52 = vsub.f32 %v16754_v3, %v7484_v10 }
 0xac1   : > { %8512 = vperm.xlu1 %10807, %v8386_v57   ;;  %11578 = vrcp.f32 %v16719_v15  ;;  %v7506_v32 = vsel %vm7218_vm8, %v16804_v12, -inf  ;;  %v16832_v47 = vpop.eup %11570  ;;  %v7477_v25 = vmax.f32 %v7475_v17, %v7476_v26  ;;  %v8053_v19 = vrot.slane %v16821_v45, 1  ;;  %v16843_v17 = vpop.f32.mrf.mxu1 }
 0xac2   : > { %11580 = vpow2.f32 %v7801_v5  ;;  %v7487_v63 = vmax.f32 %v7485_v38, %v7486_v40  ;;  %v7507_v31 = vrot.slane %v7506_v32, 4  ;;  %v7497_v48 = vrot.slane %v7496_v9, 1 }
 0xac3   : > { %11582 = vrcp.f32 %v16723_v13  ;;  %v7499_v3 = vsel %vm7218_vm8, %v16819_v2, -inf  ;;  %v8076_v30 = vsel %vm7218_vm8, %v16832_v47, 0.0  ;;  %v7805_v55 = vmul.f32 1.442695, %v7704_v52 }
 0xac4   : > { %v7488_v15 = vrot.slane %v7487_v63, 2  ;;  %v7508_v58 = vmax.f32 %v7506_v32, %v7507_v31  ;;  %v7500_v11 = vrot.slane %v7499_v3, 4  ;;  %11584 = vrcp.f32 %v16747_v6 }
 0xac5   : > { %11586 = vpow2.f32 %v7799_v29  ;;  %v7520_v28 = vsel %vm7218_vm8, %v16830_v18, -inf  ;;  %v16845_v42 = vpop.eup %11572  ;;  %v7703_v13 = vsub.f32 %v16763_v41, %v7477_v25  ;;  %v8045_v46 = vadd.f32 %v8044_v43, %v8043_v22  ;;  %v16852_v41 = vpop.f32.mrf.mxu1 }
 0xac6   : > { %v7489_v49 = vmax.f32 %v7487_v63, %v7488_v15  ;;  %v7509_v20 = vrot.slane %v7508_v58, 2  ;;  %v7501_v21 = vmax.f32 %v7499_v3, %v7500_v11  ;;  %v7498_v14 = vmax.f32 %v7496_v9, %v7497_v48 }
 0xac7   : > { %v7521_v6 = vrot.slane %v7520_v28, 4  ;;  %11588 = vrcp.f32 %v16749_v7  ;;  %v8065_v10 = vrot.slane %v8064_v35, 2  ;;  %v8057_v57 = vadd.f32 %v8056_v61, %v8055_v51 }
 0xac8   : > { %v7490_v38 = vrot.slane %v7489_v49, 1  ;;  %v7510_v5 = vmax.f32 %v7508_v58, %v7509_v20  ;;  %v7502_v26 = vrot.slane %v7501_v21, 2  ;;  %v8077_v40 = vrot.slane %v8076_v30, 4 }
 0xac9   : > { %v8069_v29 = vsel %vm7218_vm8, %v16845_v42, 0.0  ;;  %11590 = vrcp.f32 %v16752_v56  ;;  %v7803_v52 = vmul.f32 1.442695, %v7703_v13  ;;  %v7706_v9 = vsub.f32 %v16777_v59, %v7498_v14 }
 0xaca   : > { %11592 = vpow2.f32 %v7805_v55  ;;  %v7491_v22 = vmax.f32 %v7489_v49, %v7490_v38  ;;  %v7511_v43 = vrot.slane %v7510_v5, 1  ;;  %v7522_v7 = vmax.f32 %v7520_v28, %v7521_v6 }
 0xacb   : > { %v7513_v32 = vsel %vm7218_vm8, %v16843_v17, -inf  ;;  %11594 = vrcp.f32 %v16756_v50  ;;  %v16858_v51 = vpop.eup %11574  ;;  %v8046_v61 = vrot.slane %v8045_v46, 1  ;;  %v7503_v56 = vmax.f32 %v7501_v21, %v7502_v26 }
 0xacc   : > { %v7705_v25 = vsub.f32 %v16791_v33, %v7491_v22  ;;  %v7534_v63 = vsel %vm7218_vm8, %v16852_v41, -inf  ;;  %v16866_v48 = vadd.f32 %v8053_v19, %v16821_v45  ;;  %v16868_v59 = vadd.f32 %v8065_v10, %v8064_v35 }
 0xacd   : > { %v16863_v31 = vpop.eup %11576  ;;  %v8058_v3 = vrot.slane %v8057_v57, 2  ;;  %v7512_v15 = vmax.f32 %v7510_v5, %v7511_v43  ;;  %v8078_v50 = vadd.f32 %v8077_v40, %v8076_v30  ;;  %v8070_v11 = vrot.slane %v8069_v29, 4 }
 0xace   : > { %v11579_v58 = vpop.eup %11578  ;;  %11596 = vpow2.f32 %v7803_v52  ;;  %v7514_v55 = vrot.slane %v7513_v32, 4  ;;  %v7809_v33 = vmul.f32 1.442695, %v7706_v9  ;;  %v7523_v49 = vrot.slane %v7522_v7, 2 }
 0xacf   : > { %v16870_v28 = vpop.eup %11580  ;;  %v8385_v13 = vmul.f32 %v11579_v58, %v16643_v37  ;;  %v7535_v20 = vrot.slane %v7534_v63, 4  ;;  %v16873_v14 = vadd.f32 %v8046_v61, %v8045_v46  ;;  %v8862_v45 = vrot.slane %v16812_v27, 4 }
 0xad0   : > { %v11583_v21 = vpop.eup %11582  ;;  %v7807_v35 = vmul.f32 1.442695, %v7705_v25  ;;  %v7504_v19 = vrot.slane %v7503_v56, 1  ;;  %v8090_v30 = vsel %vm7218_vm8, %v16858_v51, 0.0  ;;  %v8083_v10 = vsel %vm7218_vm8, %v16863_v31, 0.0 }
 0xad1   : > { %v11585_v6 = vpop.eup %11584  ;;  %8507 = vperm.xlu0 %10806, %v8385_v13   ;;  %v7708_v38 = vsub.f32 %v16804_v12, %v7512_v15  ;;  %v8388_v37 = vmul.f32 %v11583_v21, %v16653_v53  ;;  %v8067_v46 = vrot.slane %v16868_v59, 1  ;;  %v8071_v26 = vadd.f32 %v8070_v11, %v8069_v29 }
 0xad2   : > { %v16882_v5 = vpop.eup %11586  ;;  %v8387_v40 = vmul.f32 %v11585_v6, %v16667_v34  ;;  %v7515_v52 = vmax.f32 %v7513_v32, %v7514_v55  ;;  %v8079_v22 = vrot.slane %v8078_v50, 2  ;;  %11598 = vpow2.f32 %v7809_v33  ;;  %v16894_v55 = vpop.f32.mrf.mxu1 }
 0xad3   : > { %18818 = vst [vmem:[#allocation33_spill] sm:$0xff] %v16882_v5  ;;  %8522 = vperm.xlu1 %10807, %v8388_v37   ;;  %v7524_v43 = vmax.f32 %v7522_v7, %v7523_v49  ;;  %v7536_v9 = vmax.f32 %v7534_v63, %v7535_v20  ;;  %v8091_v25 = vrot.slane %v8090_v30, 4  ;;  %v8084_v58 = vrot.slane %v8083_v10, 4 }
 0xad4   : > { %v11589_v61 = vpop.eup %11588  ;;  %11600 = vpow2.f32 %v7807_v35  ;;  %v7505_v12 = vmax.f32 %v7503_v56, %v7504_v19  ;;  %v8059_v15 = vadd.f32 %v8058_v3, %v8057_v57  ;;  %v8104_v53 = vsel %vm7218_vm8, %v16870_v28, 0.0 }
 0xad5   : > { %v7813_v13 = vmul.f32 1.442695, %v7708_v38  ;;  %8517 = vperm.xlu0 %10806, %v8387_v40   ;;  %v8390_v29 = vmul.f32 %v11589_v61, %v16676_v39  ;;  %v8072_v32 = vrot.slane %v8071_v26, 2  ;;  %v16890_v11 = vadd.f32 %v8862_v45, %v16812_v27 }
 0xad6   : > { %v11591_v34 = vpop.eup %11590  ;;  %v8097_v7 = vsel %vm7218_vm8, %v16882_v5, 0.0  ;;  %v7516_v63 = vrot.slane %v7515_v52, 2  ;;  %v8080_v57 = vadd.f32 %v8079_v22, %v8078_v50  ;;  %v7525_v3 = vrot.slane %v7524_v43, 1 }
 0xad7   : > { %18819 = vst [vmem:[#allocation14_spill] sm:$0xff] %v16890_v11  ;;  %v16896_v56 = vpop.eup %11592  ;;  %8532 = vperm.xlu1 %10807, %v8390_v29   ;;  %v8389_v33 = vmul.f32 %v11591_v34, %v16681_v1  ;;  %v7537_v49 = vrot.slane %v7536_v9, 2  ;;  %v8092_v20 = vadd.f32 %v8091_v25, %v8090_v30  ;;  %v8085_v21 = vadd.f32 %v8084_v58, %v8083_v10 }
 0xad8   : > { %18820 = vst [vmem:[#allocation114_spill] sm:$0xff] %v16896_v56  ;;  %v11595_v39 = vpop.eup %11594  ;;  %v8105_v35 = vrot.slane %v8104_v53, 4  ;;  %v7707_v27 = vsub.f32 %v16819_v2, %v7505_v12  ;;  %v8098_v45 = vrot.slane %v8097_v7, 4  ;;  %11602 = vpow2.f32 %v7813_v13  ;;  %v16911_v13 = vpop.f32.mrf.mxu1 }
 0xad9   : > { %8527 = vperm.xlu0 %10806, %v8389_v33   ;;  %v8392_v19 = vmul.f32 %v11595_v39, %v16692_v16  ;;  %v7527_v6 = vsel %vm7218_vm8, %v16894_v55, -inf  ;;  %v8073_v50 = vadd.f32 %v8072_v32, %v8071_v26  ;;  %v8118_v38 = vsel %vm7218_vm8, %v16896_v56, 0.0 }
 0xada   : > { %v7517_v1 = vmax.f32 %v7515_v52, %v7516_v63  ;;  %11604 = vrcp.f32 %v16765_v62  ;;  %v16909_v10 = vadd.f32 %v8067_v46, %v16868_v59  ;;  %v8060_v2 = vrot.slane %v8059_v15, 1  ;;  %v16926_v39 = vpop.f32.mrf.mxu1 }
 0xadb   : > { %v16906_v30 = vpop.eup %11596  ;;  %v7526_v37 = vmax.f32 %v7524_v43, %v7525_v3  ;;  %v7538_v40 = vmax.f32 %v7536_v9, %v7537_v49  ;;  %8542 = vperm.xlu1 %10807, %v8392_v19   ;;  %v8093_v16 = vrot.slane %v8092_v20, 2  ;;  %v8106_v22 = vadd.f32 %v8105_v35, %v8104_v53 }
 0xadc   : > { %18821 = vst [vmem:[#allocation79_spill] sm:$0xff] %v16906_v30  ;;  %v7811_v61 = vmul.f32 1.442695, %v7707_v27  ;;  %v7528_v25 = vrot.slane %v7527_v6, 4  ;;  %v8081_v26 = vrot.slane %v8080_v57, 1  ;;  %v8099_v58 = vadd.f32 %v8098_v45, %v8097_v7 }
 0xadd   : > { %v8119_v12 = vrot.slane %v8118_v38, 4  ;;  %11606 = vrcp.f32 %v16767_v44  ;;  %v8074_v62 = vrot.slane %v8073_v50, 1  ;;  %v8086_v52 = vrot.slane %v8085_v21, 2 }
 0xade   : > { %v8111_v59 = vsel %vm7218_vm8, %v16906_v30, 0.0  ;;  %v7518_v46 = vrot.slane %v7517_v1, 1  ;;  %v16916_v43 = vadd.f32 %v8060_v2, %v8059_v15  ;;  %v7710_v53 = vsub.f32 %v16830_v18, %v7526_v37 }
 0xadf   : > { %v7539_v29 = vrot.slane %v7538_v40, 1  ;;  %v16920_v34 = vpop.eup %11598  ;;  %v8094_v32 = vadd.f32 %v8093_v16, %v8092_v20  ;;  %v8107_v7 = vrot.slane %v8106_v22, 2  ;;  %11608 = vpow2.f32 %v7811_v61 }
 0xae0   : > { %18822 = vst [vmem:[#allocation84_spill] sm:$0xff] %v16920_v34  ;;  %v7529_v63 = vmax.f32 %v7527_v6, %v7528_v25  ;;  %v8100_v3 = vrot.slane %v8099_v58, 2  ;;  %v8120_v33 = vadd.f32 %v8119_v12, %v8118_v38  ;;  %v8112_v49 = vrot.slane %v8111_v59, 4 }
 0xae1   : > { %v16922_v44 = vpop.eup %11600  ;;  %v7548_v15 = vsel %vm7218_vm8, %v16911_v13, -inf  ;;  %v16928_v35 = vadd.f32 %v8081_v26, %v8080_v57  ;;  %v16930_v18 = vadd.f32 %v8074_v62, %v8073_v50  ;;  %v8087_v27 = vadd.f32 %v8086_v52, %v8085_v21  ;;  %v16937_v26 = vpop.f32.mrf.mxu1 }
 0xae2   : > { %18823 = vst [vmem:[#allocation80_spill] sm:$0xff] %v16922_v44  ;;  %v7519_v45 = vmax.f32 %v7517_v1, %v7518_v46  ;;  %v8132_v20 = vsel %vm7218_vm8, %v16920_v34, 0.0  ;;  %v7817_v19 = vmul.f32 1.442695, %v7710_v53  ;;  %v7540_v6 = vmax.f32 %v7538_v40, %v7539_v29 }
 0xae3   : > { %11610 = vrcp.f32 %v16796_v24  ;;  %v8095_v38 = vrot.slane %v8094_v32, 1  ;;  %v8125_v2 = vsel %vm7218_vm8, %v16922_v44, 0.0  ;;  %v7530_v37 = vrot.slane %v7529_v63, 2 }
 0xae4   : > { %v7549_v16 = vrot.slane %v7548_v15, 4  ;;  %v8108_v61 = vadd.f32 %v8107_v7, %v8106_v22  ;;  %v8101_v57 = vadd.f32 %v8100_v3, %v8099_v58  ;;  %v8121_v25 = vrot.slane %v8120_v33, 2 }
 0xae5   : > { %v8113_v50 = vadd.f32 %v8112_v49, %v8111_v59  ;;  %v16939_v21 = vpop.eup %11602  ;;  %v8133_v1 = vrot.slane %v8132_v20, 4  ;;  %v7709_v12 = vsub.f32 %v16843_v17, %v7519_v45  ;;  %v7541_v24 = vsel %vm7218_vm8, %v16926_v39, -inf }
 0xae6   : > { %18824 = vst [vmem:[#allocation89_spill] sm:$0xff] %v16939_v21  ;;  %11612 = vrcp.f32 %v16807_v60  ;;  %v8088_v62 = vrot.slane %v8087_v27, 1  ;;  %v8126_v52 = vrot.slane %v8125_v2, 4  ;;  %v7712_v22 = vsub.f32 %v16852_v41, %v7540_v6  ;;  %v8483_v41 = vpop.permute.xlu1 %8482 }
 0xae7   : > { %v11605_v40 = vpop.eup %11604  ;;  %11614 = vpow2.f32 %v7817_v19  ;;  %v7531_v58 = vmax.f32 %v7529_v63, %v7530_v37  ;;  %v7550_v46 = vmax.f32 %v7548_v15, %v7549_v16  ;;  %v7562_v53 = vsel %vm7218_vm8, %v16937_v26, -inf  ;;  %v18825_v15 = vld [vmem:[#allocation124_spill] sm:$0xff]  ;;  %v16954_v16 = vpop.f32.mrf.mxu1 }
 0xae8   : > { %v8391_v59 = vmul.f32 %v11605_v40, %v16696_v0  ;;  %v8109_v29 = vrot.slane %v8108_v61, 1  ;;  %v16949_v17 = vadd.f32 %v8121_v25, %v8120_v33  ;;  %v8114_v7 = vrot.slane %v8113_v50, 2 }
 0xae9   : > { %v7542_v3 = vrot.slane %v7541_v24, 4  ;;  %v8102_v60 = vrot.slane %v8101_v57, 1  ;;  %v8134_v45 = vadd.f32 %v8133_v1, %v8132_v20  ;;  %v8146_v19 = vsel %vm7218_vm8, %v16939_v21, 0.0 }
 0xaea   : > { %v11607_v49 = vpop.eup %11606  ;;  %v7815_v9 = vmul.f32 1.442695, %v7709_v12  ;;  %8537 = vperm.xlu0 %10806, %v8391_v59   ;;  %v8127_v63 = vadd.f32 %v8126_v52, %v8125_v2  ;;  %v7821_v0 = vmul.f32 1.442695, %v7712_v22  ;;  %v7563_v37 = vrot.slane %v7562_v53, 4  ;;  %v18827_v59 = vld [vmem:[#allocation120_spill] sm:$0xff] }
 0xaeb   : > { %v8394_v6 = vmul.f32 %v11607_v49, %v18825_v15  ;;  %v16956_v33 = vadd.f32 %v8095_v38, %v8094_v32  ;;  %v16958_v25 = vadd.f32 %v8088_v62, %v8087_v27  ;;  %v7532_v40 = vrot.slane %v7531_v58, 1  ;;  %v16968_v62 = vpop.f32.mrf.mxu1 }
 0xaec   : > { %v7551_v11 = vrot.slane %v7550_v46, 2  ;;  %v16960_v20 = vpop.eup %11608  ;;  %v8115_v1 = vadd.f32 %v8114_v7, %v8113_v50  ;;  %v8147_v54 = vrot.slane %v8146_v19, 4  ;;  %v7543_v12 = vmax.f32 %v7541_v24, %v7542_v3 }
 0xaed   : > { %18826 = vst [vmem:[#allocation64_spill] sm:$0xff] %v16960_v20  ;;  %8552 = vperm.xlu1 %10807, %v8394_v6   ;;  %v8764_v2 = vmul.f32 %v8483_v41, %v18827_v59  ;;  %v16963_v52 = vadd.f32 %v8109_v29, %v8108_v61  ;;  %v8123_v22 = vrot.slane %v16949_v17, 1  ;;  %v8135_v49 = vrot.slane %v8134_v45, 2  ;;  %v8478_v29 = vpop.permute.xlu0 %8477 }
 0xaee   : > { %11616 = vpow2.f32 %v7815_v9  ;;  %v16966_v32 = vadd.f32 %v8102_v60, %v8101_v57  ;;  %v8128_v27 = vrot.slane %v8127_v63, 2  ;;  %v7564_v38 = vmax.f32 %v7562_v53, %v7563_v37  ;;  %v18828_v9 = vld [vmem:[#allocation4_spill] sm:$0xff] }
 0xaef   : > { %11618 = vpow2.f32 %v7821_v0  ;;  %v8139_v50 = vsel %vm7218_vm8, %v16960_v20, 0.0  ;;  %v7533_v24 = vmax.f32 %v7531_v58, %v7532_v40  ;;  %v7552_v7 = vmax.f32 %v7550_v46, %v7551_v11  ;;  %v18829_v58 = vld [vmem:[#allocation128_spill] sm:$0xff]  ;;  %v16978_v40 = vpop.f32.mrf.mxu1 }
 0xaf0   : > { %v11611_v15 = vpop.eup %11610  ;;  %v8882_v61 = vsel %vm1410_vm5, %v8764_v2, 0.0  ;;  %v8116_v3 = vrot.slane %v8115_v1, 1  ;;  %v8148_v41 = vadd.f32 %v8147_v54, %v8146_v19  ;;  %v7544_v6 = vrot.slane %v7543_v12, 2  ;;  %v18831_v2 = vld [vmem:[#allocation11_spill] sm:$0xff] }
 0xaf1   : > { %v8393_v57 = vmul.f32 %v11611_v15, %v18828_v9  ;;  %v8136_v60 = vadd.f32 %v8135_v49, %v8134_v45  ;;  %v7555_v53 = vsel %vm7218_vm8, %v16954_v16, -inf  ;;  %v8883_v0 = vrot.slane %v8882_v61, 4 }
 0xaf2   : > { %11620 = vrcp.f32 %v16809_v4  ;;  %v8129_v59 = vadd.f32 %v8128_v27, %v8127_v63  ;;  %v8140_v21 = vrot.slane %v8139_v50, 4  ;;  %v7565_v11 = vrot.slane %v7564_v38, 2 }
 0xaf3   : > { %v11613_v37 = vpop.eup %11612  ;;  %8547 = vperm.xlu0 %10806, %v8393_v57   ;;  %v8763_v46 = vmul.f32 %v8478_v29, %v18829_v58  ;;  %v7711_v19 = vsub.f32 %v16894_v55, %v7533_v24  ;;  %v7553_v45 = vrot.slane %v7552_v7, 1  ;;  %v8884_v15 = vadd.f32 %v8883_v0, %v8882_v61  ;;  %v16991_v61 = vpop.f32.mrf.mxu1 }
 0xaf4   : > { %v16980_v54 = vpop.eup %11614  ;;  %v8396_v49 = vmul.f32 %v11613_v37, %v18831_v2  ;;  %v8149_v9 = vrot.slane %v8148_v41, 2  ;;  %v7545_v44 = vmax.f32 %v7543_v12, %v7544_v6  ;;  %v7556_v4 = vrot.slane %v7555_v53, 4 }
 0xaf5   : > { %18830 = vst [vmem:[#allocation90_spill] sm:$0xff] %v16980_v54  ;;  %v8875_v63 = vsel %vm1410_vm5, %v8763_v46, 0.0  ;;  %v8885_v27 = vrot.slane %v8884_v15, 2  ;;  %v7576_v29 = vsel %vm7218_vm8, %v16968_v62, -inf  ;;  %11622 = vrcp.f32 %v16866_v48 }
 0xaf6   : > { %8562 = vperm.xlu1 %10807, %v8396_v49   ;;  %v8876_v57 = vrot.slane %v8875_v63, 4  ;;  %v16989_v58 = vadd.f32 %v8123_v22, %v16949_v17  ;;  %v8137_v55 = vrot.slane %v8136_v60, 1  ;;  %v8130_v24 = vrot.slane %v8129_v59, 1 }
 0xaf7   : > { %v7566_v37 = vmax.f32 %v7564_v38, %v7565_v11  ;;  %v8160_v12 = vsel %vm7218_vm8, %v16980_v54, 0.0  ;;  %v7819_v6 = vmul.f32 1.442695, %v7711_v19  ;;  %v7554_v0 = vmax.f32 %v7552_v7, %v7553_v45  ;;  %v17002_v7 = vpop.f32.mrf.mxu1 }
 0xaf8   : > { %v8877_v46 = vadd.f32 %v8876_v57, %v8875_v63  ;;  %v16995_v2 = vadd.f32 %v8116_v3, %v8115_v1  ;;  %v7546_v49 = vrot.slane %v7545_v44, 1  ;;  %v7557_v20 = vmax.f32 %v7555_v53, %v7556_v4 }
 0xaf9   : > { %v7577_v30 = vrot.slane %v7576_v29, 4  ;;  %v8150_v48 = vadd.f32 %v8149_v9, %v8148_v41  ;;  %v8141_v56 = vadd.f32 %v8140_v21, %v8139_v50  ;;  %v8886_v17 = vadd.f32 %v8885_v27, %v8884_v15 }
 0xafa   : > { %v8878_v22 = vrot.slane %v8877_v46, 2  ;;  %v8161_v38 = vrot.slane %v8160_v12, 4  ;;  %v7567_v11 = vrot.slane %v7566_v37, 1  ;;  %v7569_v5 = vsel %vm7218_vm8, %v16978_v40, -inf }
 0xafb   : > { %v16997_v34 = vpop.eup %11616  ;;  %11624 = vrcp.f32 %v16873_v14  ;;  %v17006_v3 = vadd.f32 %v8137_v55, %v8136_v60  ;;  %v17008_v53 = vadd.f32 %v8130_v24, %v8129_v59  ;;  %v7714_v21 = vsub.f32 %v16911_v13, %v7554_v0  ;;  %v17014_v59 = vpop.f32.mrf.mxu1 }
 0xafc   : > { %18832 = vst [vmem:[#allocation34_spill] sm:$0xff] %v16997_v34  ;;  %v17004_v1 = vpop.eup %11618  ;;  %11626 = vpow2.f32 %v7819_v6  ;;  %v7547_v50 = vmax.f32 %v7545_v44, %v7546_v49  ;;  %v7558_v41 = vrot.slane %v7557_v20, 2  ;;  %v7578_v19 = vmax.f32 %v7576_v29, %v7577_v30  ;;  %v18834_v44 = vld [vmem:[#allocation12_spill] sm:$0xff] }
 0xafd   : > { %18833 = vst [vmem:[#allocation46_spill] sm:$0xff] %v17004_v1  ;;  %v8879_v45 = vadd.f32 %v8878_v22, %v8877_v46  ;;  %v8142_v15 = vrot.slane %v8141_v56, 2  ;;  %v8887_v9 = vrot.slane %v8886_v17, 1  ;;  %v7570_v4 = vrot.slane %v7569_v5, 4  ;;  %v17026_v54 = vpop.f32.mrf.mxu1 }
 0xafe   : > { %11628 = vrcp.f32 %v16909_v10  ;;  %v8151_v63 = vrot.slane %v8150_v48, 1  ;;  %v8162_v27 = vadd.f32 %v8161_v38, %v8160_v12  ;;  %v7568_v57 = vmax.f32 %v7566_v37, %v7567_v11 }
 0xaff   : > { %v11621_v14 = vpop.eup %11620  ;;  %v7590_v60 = vsel %vm7218_vm8, %v16991_v61, -inf  ;;  %v8153_v13 = vsel %vm7218_vm8, %v16997_v34, 0.0  ;;  %v8174_v30 = vsel %vm7218_vm8, %v17004_v1, 0.0  ;;  %v8880_v55 = vrot.slane %v8879_v45, 1 }
 0xb00   : > { %v8395_v29 = vmul.f32 %v11621_v14, %v18834_v44  ;;  %v7825_v24 = vmul.f32 1.442695, %v7714_v21  ;;  %v7713_v10 = vsub.f32 %v16926_v39, %v7547_v50  ;;  %v7559_v6 = vmax.f32 %v7557_v20, %v7558_v41  ;;  %v18835_v20 = vld [vmem:[#allocation81_spill] sm:$0xff] }
 0xb01   : > { %v7579_v12 = vrot.slane %v7578_v19, 2  ;;  %v8888_v37 = vadd.f32 %v8887_v9, %v8886_v17  ;;  %v8881_v0 = vadd.f32 %v8880_v55, %v8879_v45  ;;  %v7571_v46 = vmax.f32 %v7569_v5, %v7570_v4 }
 0xb02   : > { %8557 = vperm.xlu0 %10806, %v8395_v29   ;;  %v7591_v49 = vrot.slane %v7590_v60, 4  ;;  %v11623_v22 = vpop.eup %11622  ;;  %v17022_v38 = vadd.f32 %v8151_v63, %v8150_v48  ;;  %v17024_v11 = vadd.f32 %v8142_v15, %v8141_v56  ;;  %v8154_v34 = vrot.slane %v8153_v13, 4  ;;  %v17037_v63 = vpop.f32.mrf.mxu1 }
 0xb03   : > { %v8175_v1 = vrot.slane %v8174_v30, 4  ;;  %v7716_v21 = vsub.f32 %v16937_v26, %v7568_v57  ;;  %v17030_v39 = vsel %vm9283_vm9, %v8888_v37, %v8881_v0  ;;  %v8398_v17 = vmul.f32 %v11623_v22, %v18835_v20 }
 0xb04   : > { %v7592_v50 = vmax.f32 %v7590_v60, %v7591_v49  ;;  %v8163_v41 = vrot.slane %v8162_v27, 2  ;;  %11630 = vpow2.f32 %v7825_v24  ;;  %v7823_v5 = vmul.f32 1.442695, %v7713_v10  ;;  %v17049_v49 = vpop.f32.mrf.mxu1 }
 0xb05   : > { %v7560_v45 = vrot.slane %v7559_v6, 1  ;;  %v7580_v48 = vmax.f32 %v7578_v19, %v7579_v12  ;;  %8572 = vperm.xlu1 %10807, %v8398_v17   ;;  %v7572_v56 = vrot.slane %v7571_v46, 2  ;;  %v7583_v15 = vsel %vm7218_vm8, %v17002_v7, -inf }
 0xb06   : > { %11632 = vrcp.f32 %v16916_v43  ;;  %v8144_v26 = vrot.slane %v17024_v11, 1  ;;  %v8155_v9 = vadd.f32 %v8154_v34, %v8153_v13  ;;  %v8176_v4 = vadd.f32 %v8175_v1, %v8174_v30 }
 0xb07   : > { %v7584_v14 = vrot.slane %v7583_v15, 4  ;;  %v7829_v60 = vmul.f32 1.442695, %v7716_v21  ;;  %v7593_v44 = vrot.slane %v7592_v50, 2  ;;  %v7604_v19 = vsel %vm7218_vm8, %v17014_v59, -inf }
 0xb08   : > { %v11625_v57 = vpop.eup %11624  ;;  %11634 = vrcp.f32 %v16928_v35  ;;  %v7561_v55 = vmax.f32 %v7559_v6, %v7560_v45  ;;  %v17045_v34 = vadd.f32 %v8163_v41, %v8162_v27  ;;  %v7581_v1 = vrot.slane %v7580_v48, 1 }
 0xb09   : > { %v17042_v29 = vpop.eup %11626  ;;  %11636 = vpow2.f32 %v7823_v5  ;;  %v8397_v43 = vmul.f32 %v11625_v57, %v16786_v23  ;;  %v7585_v24 = vmax.f32 %v7583_v15, %v7584_v14  ;;  %v7573_v13 = vmax.f32 %v7571_v46, %v7572_v56  ;;  %v17060_v15 = vpop.f32.mrf.mxu1 }
 0xb0a   : > { %v7605_v30 = vrot.slane %v7604_v19, 4  ;;  %v8156_v12 = vrot.slane %v8155_v9, 2  ;;  %v8177_v37 = vrot.slane %v8176_v4, 2  ;;  %v7597_v35 = vsel %vm7218_vm8, %v17026_v54, -inf }
 0xb0b   : > { %v11629_v10 = vpop.eup %11628  ;;  %8567 = vperm.xlu0 %10806, %v8397_v43   ;;  %v7586_v0 = vrot.slane %v7585_v24, 2  ;;  %v7594_v22 = vmax.f32 %v7592_v50, %v7593_v44  ;;  %v7598_v21 = vrot.slane %v7597_v35, 4  ;;  %11638 = vpow2.f32 %v7829_v60 }
 0xb0c   : > { %v8400_v6 = vmul.f32 %v11629_v10, %v16793_v36  ;;  %v7606_v23 = vmax.f32 %v7604_v19, %v7605_v30  ;;  %v7715_v27 = vsub.f32 %v16954_v16, %v7561_v55  ;;  %v7618_v20 = vsel %vm7218_vm8, %v17037_v63, -inf }
 0xb0d   : > { %v7587_v46 = vmax.f32 %v7585_v24, %v7586_v0  ;;  %v7582_v17 = vmax.f32 %v7580_v48, %v7581_v1  ;;  %v7574_v41 = vrot.slane %v7573_v13, 1  ;;  %v7599_v5 = vmax.f32 %v7597_v35, %v7598_v21 }
 0xb0e   : > { %8582 = vperm.xlu1 %10807, %v8400_v6   ;;  %11640 = vrcp.f32 %v16930_v18  ;;  %v17056_v45 = vadd.f32 %v8156_v12, %v8155_v9  ;;  %v7607_v50 = vrot.slane %v7606_v23, 2  ;;  %v7619_v56 = vrot.slane %v7618_v20, 4 }
 0xb0f   : > { %v7611_v36 = vsel %vm7218_vm8, %v17049_v49, -inf  ;;  %v17062_v16 = vadd.f32 %v8177_v37, %v8176_v4  ;;  %v8167_v14 = vsel %vm7218_vm8, %v17042_v29, 0.0  ;;  %v7595_v48 = vrot.slane %v7594_v22, 1  ;;  %v17074_v37 = vpop.f32.mrf.mxu1 }
 0xb10   : > { %v7612_v57 = vrot.slane %v7611_v36, 4  ;;  %v7827_v60 = vmul.f32 1.442695, %v7715_v27  ;;  %v7588_v44 = vrot.slane %v7587_v46, 1  ;;  %v7620_v19 = vmax.f32 %v7618_v20, %v7619_v56 }
 0xb11   : > { %11642 = vrcp.f32 %v16956_v33  ;;  %v17067_v18 = vpop.eup %11630  ;;  %v17070_v9 = vadd.f32 %v8144_v26, %v17024_v11  ;;  %v7718_v55 = vsub.f32 %v16968_v62, %v7582_v17  ;;  %v7575_v43 = vmax.f32 %v7573_v13, %v7574_v41  ;;  %v17087_v56 = vpop.f32.mrf.mxu1 }
 0xb12   : > { %v7600_v4 = vrot.slane %v7599_v5, 2  ;;  %v8165_v1 = vrot.slane %v17045_v34, 1  ;;  %v7608_v30 = vmax.f32 %v7606_v23, %v7607_v50  ;;  %v7621_v10 = vrot.slane %v7620_v19, 2 }
 0xb13   : > { %v11633_v24 = vpop.eup %11632  ;;  %v7613_v12 = vmax.f32 %v7611_v36, %v7612_v57  ;;  %v8158_v0 = vrot.slane %v17056_v45, 1  ;;  %v8168_v33 = vrot.slane %v8167_v14, 4  ;;  %v7596_v35 = vmax.f32 %v7594_v22, %v7595_v48 }
 0xb14   : > { %v8399_v6 = vmul.f32 %v11633_v24, %v16800_v8  ;;  %v8179_v26 = vrot.slane %v17062_v16, 1  ;;  %v8188_v62 = vsel %vm7218_vm8, %v17067_v18, 0.0  ;;  %11644 = vpow2.f32 %v7827_v60  ;;  %v17100_v24 = vpop.f32.mrf.mxu1 }
 0xb15   : > { %v11635_v11 = vpop.eup %11634  ;;  %v7589_v13 = vmax.f32 %v7587_v46, %v7588_v44  ;;  %v7833_v23 = vmul.f32 1.442695, %v7718_v55  ;;  %v7717_v27 = vsub.f32 %v16978_v40, %v7575_v43  ;;  %v7601_v17 = vmax.f32 %v7599_v5, %v7600_v4 }
 0xb16   : > { %v17081_v21 = vpop.eup %11636  ;;  %8577 = vperm.xlu0 %10806, %v8399_v6   ;;  %v8402_v20 = vmul.f32 %v11635_v11, %v16832_v47  ;;  %v7609_v22 = vrot.slane %v7608_v30, 1  ;;  %v7622_v41 = vmax.f32 %v7620_v19, %v7621_v10  ;;  %v7614_v8 = vrot.slane %v7613_v12, 2 }
 0xb17   : > { %v7632_v50 = vsel %vm7218_vm8, %v17060_v15, -inf  ;;  %v8169_v36 = vadd.f32 %v8168_v33, %v8167_v14  ;;  %v8189_v48 = vrot.slane %v8188_v62, 4  ;;  %v7720_v46 = vsub.f32 %v16991_v61, %v7596_v35 }
 0xb18   : > { %8592 = vperm.xlu1 %10807, %v8402_v20   ;;  %11646 = vrcp.f32 %v16958_v25  ;;  %v17093_v40 = vsel %vm7218_vm8, %v17081_v21, 0.0  ;;  %v7719_v47 = vsub.f32 %v17002_v7, %v7589_v13  ;;  %v7633_v5 = vrot.slane %v7632_v50, 4  ;;  %v17098_v60 = vpop.eup %11638 }
 0xb19   : > { %v7625_v57 = vsel %vm7218_vm8, %v17074_v37, -inf  ;;  %11648 = vpow2.f32 %v7833_v23  ;;  %v7831_v14 = vmul.f32 1.442695, %v7717_v27  ;;  %v7602_v44 = vrot.slane %v7601_v17, 1 }
 0xb1a   : > { %v7626_v19 = vrot.slane %v7625_v57, 4  ;;  %v7610_v55 = vmax.f32 %v7608_v30, %v7609_v22  ;;  %v7623_v43 = vrot.slane %v7622_v41, 1  ;;  %v7615_v25 = vmax.f32 %v7613_v12, %v7614_v8 }
 0xb1b   : > { %v11641_v61 = vpop.eup %11640  ;;  %v7634_v4 = vmax.f32 %v7632_v50, %v7633_v5  ;;  %v8170_v10 = vrot.slane %v8169_v36, 2  ;;  %v17102_v33 = vadd.f32 %v8189_v48, %v8188_v62  ;;  %v7837_v7 = vmul.f32 1.442695, %v7720_v46  ;;  %v17111_v50 = vpop.f32.mrf.mxu1 }
 0xb1c   : > { %v8401_v35 = vmul.f32 %v11641_v61, %v16845_v42  ;;  %v8182_v6 = vrot.slane %v17093_v40, 4  ;;  %v7835_v11 = vmul.f32 1.442695, %v7719_v47  ;;  %v7627_v23 = vmax.f32 %v7625_v57, %v7626_v19 }
 0xb1d   : > { %v7635_v13 = vrot.slane %v7634_v4, 2  ;;  %11650 = vpow2.f32 %v7831_v14  ;;  %v7603_v20 = vmax.f32 %v7601_v17, %v7602_v44  ;;  %v7646_v30 = vsel %vm7218_vm8, %v17087_v56, -inf }
 0xb1e   : > { %v11643_v27 = vpop.eup %11642  ;;  %8587 = vperm.xlu0 %10806, %v8401_v35   ;;  %v7639_v12 = vsel %vm7218_vm8, %v17100_v24, -inf  ;;  %v7722_v62 = vsub.f32 %v17014_v59, %v7610_v55  ;;  %v7624_v22 = vmax.f32 %v7622_v41, %v7623_v43  ;;  %v7616_v8 = vrot.slane %v7615_v25, 1 }
 0xb1f   : > { %v7636_v42 = vmax.f32 %v7634_v4, %v7635_v13  ;;  %11652 = vpow2.f32 %v7837_v7  ;;  %v8404_v48 = vmul.f32 %v11643_v27, %v16858_v51  ;;  %v7628_v46 = vrot.slane %v7627_v23, 2 }
 0xb20   : > { %v7647_v47 = vrot.slane %v7646_v30, 4  ;;  %v8202_v17 = vsel %vm7218_vm8, %v17098_v60, 0.0  ;;  %11654 = vpow2.f32 %v7835_v11  ;;  %v7640_v57 = vrot.slane %v7639_v12, 4 }
 0xb21   : > { %v7637_v5 = vrot.slane %v7636_v42, 1  ;;  %v17116_v14 = vpop.eup %11644  ;;  %v7721_v59 = vsub.f32 %v17026_v54, %v7603_v20  ;;  %v7629_v41 = vmax.f32 %v7627_v23, %v7628_v46  ;;  %v7660_v19 = vsel %vm7218_vm8, %v17111_v50, -inf }
 0xb22   : > { %8602 = vperm.xlu0 %10806, %v8404_v48   ;;  %v7648_v44 = vmax.f32 %v7646_v30, %v7647_v47  ;;  %v7841_v61 = vmul.f32 1.442695, %v7722_v62  ;;  %v7724_v51 = vsub.f32 %v17037_v63, %v7624_v22  ;;  %v7617_v55 = vmax.f32 %v7615_v25, %v7616_v8 }
 0xb23   : > { %v7641_v43 = vmax.f32 %v7639_v12, %v7640_v57  ;;  %v7630_v4 = vrot.slane %v7629_v41, 1  ;;  %v7661_v35 = vrot.slane %v7660_v19, 4  ;;  %11656 = vrcp.f32 %v16963_v52 }
 0xb24   : > { %v7649_v7 = vrot.slane %v7648_v44, 2  ;;  %v8171_v13 = vadd.f32 %v8170_v10, %v8169_v36  ;;  %v8203_v27 = vrot.slane %v8202_v17, 4  ;;  %v7638_v54 = vmax.f32 %v7636_v42, %v7637_v5 }
 0xb25   : > { %v11647_v11 = vpop.eup %11646  ;;  %v7642_v20 = vrot.slane %v7641_v43, 2  ;;  %v8195_v23 = vsel %vm7218_vm8, %v17116_v14, 0.0  ;;  %v7839_v30 = vmul.f32 1.442695, %v7721_v59  ;;  %v7631_v48 = vmax.f32 %v7629_v41, %v7630_v4 }
 0xb26   : > { %v8403_v62 = vmul.f32 %v11647_v11, %v16863_v31  ;;  %v17126_v63 = vpop.eup %11648  ;;  %v8191_v25 = vrot.slane %v17102_v33, 2  ;;  %v8183_v12 = vadd.f32 %v8182_v6, %v17093_v40  ;;  %v7650_v22 = vmax.f32 %v7648_v44, %v7649_v7 }
 0xb27   : > { %v7643_v52 = vmax.f32 %v7641_v43, %v7642_v20  ;;  %11658 = vpow2.f32 %v7841_v61  ;;  %v7845_v36 = vmul.f32 1.442695, %v7724_v51  ;;  %v7723_v10 = vsub.f32 %v17049_v49, %v7617_v55 }
 0xb28   : > { %8597 = vperm.xlu1 %10807, %v8403_v62   ;;  %v7662_v8 = vmax.f32 %v7660_v19, %v7661_v35  ;;  %v8204_v42 = vadd.f32 %v8203_v27, %v8202_v17  ;;  %v8196_v46 = vrot.slane %v8195_v23, 4  ;;  %v7726_v47 = vsub.f32 %v17060_v15, %v7638_v54 }
 0xb29   : > { %v7651_v31 = vrot.slane %v7650_v22, 1  ;;  %v8216_v5 = vsel %vm7218_vm8, %v17126_v63, 0.0  ;;  %11660 = vpow2.f32 %v7839_v30  ;;  %v7725_v57 = vsub.f32 %v17074_v37, %v7631_v48 }
 0xb2a   : > { %v7644_v40 = vrot.slane %v7643_v52, 1  ;;  %v17135_v6 = vpop.eup %11650  ;;  %v8172_v59 = vrot.slane %v8171_v13, 1  ;;  %v8192_v41 = vadd.f32 %v8191_v25, %v17102_v33  ;;  %v8184_v49 = vrot.slane %v8183_v12, 2 }
 0xb2b   : > { %v7652_v44 = vmax.f32 %v7650_v22, %v7651_v31  ;;  %11662 = vpow2.f32 %v7845_v36  ;;  %v7843_v17 = vmul.f32 1.442695, %v7723_v10  ;;  %v7663_v61 = vrot.slane %v7662_v8, 2 }
 0xb2c   : > { %v7645_v19 = vmax.f32 %v7643_v52, %v7644_v40  ;;  %v17138_v15 = vpop.eup %11652  ;;  %v8205_v51 = vrot.slane %v8204_v42, 2  ;;  %v8217_v55 = vrot.slane %v8216_v5, 4  ;;  %v7849_v43 = vmul.f32 1.442695, %v7726_v47 }
 0xb2d   : > { %v7728_v4 = vsub.f32 %v17087_v56, %v7652_v44  ;;  %v17141_v37 = vpop.eup %11654  ;;  %v17146_v7 = vadd.f32 %v8165_v1, %v17045_v34  ;;  %v8197_v33 = vadd.f32 %v8196_v46, %v8195_v23  ;;  %v7847_v35 = vmul.f32 1.442695, %v7725_v57  ;;  %v17163_v23 = vpop.f32.mrf.mxu1 }
 0xb2e   : > { %v7664_v11 = vmax.f32 %v7662_v8, %v7663_v61  ;;  %v17151_v27 = vadd.f32 %v8158_v0, %v17056_v45  ;;  %v17156_v54 = vadd.f32 %v8179_v26, %v17062_v16  ;;  %v7727_v20 = vsub.f32 %v17100_v24, %v7645_v19 }
 0xb2f   : > { %v7853_v56 = vmul.f32 1.442695, %v7728_v4  ;;  %v17159_v30 = vadd.f32 %v8172_v59, %v8171_v13  ;;  %v8193_v34 = vrot.slane %v8192_v41, 1  ;;  %v17161_v1 = vadd.f32 %v8184_v49, %v8183_v12 }
 0xb30   : > { %11664 = vpow2.f32 %v7843_v17  ;;  %v11657_v62 = vpop.eup %11656  ;;  %v17165_v48 = vadd.f32 %v8205_v51, %v8204_v42  ;;  %v8218_v45 = vadd.f32 %v8217_v55, %v8216_v5  ;;  %v7665_v0 = vrot.slane %v7664_v11, 1  ;;  %v8488_v5 = vpop.permute.xlu0 %8487 }
 0xb31   : > { %11666 = vpow2.f32 %v7849_v43  ;;  %v8198_v25 = vrot.slane %v8197_v33, 2  ;;  %v8209_v16 = vsel %vm7218_vm8, %v17135_v6, 0.0  ;;  %v8406_v26 = vmul.f32 %v11657_v62, %v16870_v28 }
 0xb32   : > { %11668 = vpow2.f32 %v7847_v35  ;;  %v7851_v24 = vmul.f32 1.442695, %v7727_v20  ;;  %v7666_v13 = vmax.f32 %v7664_v11, %v7665_v0  ;;  %v7653_v12 = vsel %vm7218_vm8, %v17163_v23, -inf }
 0xb33   : > { %11670 = vpow2.f32 %v7853_v56  ;;  %v8230_v22 = vsel %vm7218_vm8, %v17138_v15, 0.0  ;;  %v8223_v52 = vsel %vm7218_vm8, %v17141_v37, 0.0  ;;  %8612 = vperm.xlu0 %10806, %v8406_v26   ;;  %v7654_v36 = vrot.slane %v7653_v12, 4 }
 0xb34   : > { %11672 = vrcp.f32 %v16966_v32  ;;  %v17177_v10 = vpop.eup %11658  ;;  %v8219_v8 = vrot.slane %v8218_v45, 2  ;;  %v8210_v28 = vrot.slane %v8209_v16, 4  ;;  %v7730_v42 = vsub.f32 %v17111_v50, %v7666_v13 }
 0xb35   : > { %11674 = vrcp.f32 %v16989_v58  ;;  %v17181_v46 = vadd.f32 %v8193_v34, %v8192_v41  ;;  %v8199_v47 = vadd.f32 %v8198_v25, %v8197_v33  ;;  %v7655_v31 = vmax.f32 %v7653_v12, %v7654_v36 }
 0xb36   : > { %11676 = vrcp.f32 %v17006_v3  ;;  %v17184_v57 = vpop.eup %11660  ;;  %v8231_v40 = vrot.slane %v8230_v22, 4  ;;  %v8224_v59 = vrot.slane %v8223_v52, 4  ;;  %v7857_v32 = vmul.f32 1.442695, %v7730_v42  ;;  %v18836_v3 = vld [vmem:[#allocation109_spill] sm:$0xff] }
 0xb37   : > { %11678 = vpow2.f32 %v7851_v24  ;;  %v8186_v49 = vrot.slane %v17161_v1, 1  ;;  %v8207_v44 = vrot.slane %v17165_v48, 1  ;;  %v8244_v58 = vsel %vm7218_vm8, %v17177_v10, 0.0 }
 0xb38   : > { %v7656_v50 = vrot.slane %v7655_v31, 2  ;;  %v17190_v41 = vpop.eup %11662  ;;  %v8220_v17 = vadd.f32 %v8219_v8, %v8218_v45  ;;  %v8211_v19 = vadd.f32 %v8210_v28, %v8209_v16  ;;  %11680 = vpow2.f32 %v7857_v32  ;;  %v18837_v32 = vld [vmem:[#allocation33_spill] sm:$0xff] }
 0xb39   : > { %v8765_v61 = vmul.f32 %v8488_v5, %v18836_v3  ;;  %v8200_v51 = vrot.slane %v8199_v47, 1  ;;  %v8237_v55 = vsel %vm7218_vm8, %v17184_v57, 0.0  ;;  %11682 = vrcp.f32 %v16995_v2 }
 0xb3a   : > { %v7657_v43 = vmax.f32 %v7655_v31, %v7656_v50  ;;  %v8232_v4 = vadd.f32 %v8231_v40, %v8230_v22  ;;  %v8225_v33 = vadd.f32 %v8224_v59, %v8223_v52  ;;  %v8245_v35 = vrot.slane %v8244_v58, 4 }
 0xb3b   : > { %v8889_v11 = vsel %vm1410_vm5, %v8765_v61, 0.0  ;;  %v8258_v56 = vsel %vm7218_vm8, %v17190_v41, 0.0  ;;  %11684 = vrcp.f32 %v17070_v9  ;;  %v8221_v45 = vrot.slane %v8220_v17, 1 }
 0xb3c   : > { %v7658_v20 = vrot.slane %v7657_v43, 1  ;;  %v8890_v34 = vrot.slane %v8889_v11, 4  ;;  %v8212_v0 = vrot.slane %v8211_v19, 2  ;;  %v8238_v25 = vrot.slane %v8237_v55, 4 }
 0xb3d   : > { %v17200_v62 = vpop.eup %11664  ;;  %11686 = vrcp.f32 %v17008_v53  ;;  %v8187_v16 = vadd.f32 %v8186_v49, %v17161_v1  ;;  %v17210_v12 = vadd.f32 %v8207_v44, %v17165_v48  ;;  %v8233_v9 = vrot.slane %v8232_v4, 2 }
 0xb3e   : > { %v17203_v2 = vpop.eup %11666  ;;  %v7659_v26 = vmax.f32 %v7657_v43, %v7658_v20  ;;  %v8891_v24 = vadd.f32 %v8890_v34, %v8889_v11  ;;  %11688 = vrcp.f32 %v17146_v7  ;;  %v8226_v22 = vrot.slane %v8225_v33, 2 }
 0xb3f   : > { %v17207_v13 = vpop.eup %11668  ;;  %v8259_v52 = vrot.slane %v8258_v56, 4  ;;  %v17214_v8 = vadd.f32 %v8200_v51, %v8199_v47  ;;  %v17216_v53 = vadd.f32 %v8245_v35, %v8244_v58  ;;  %v8251_v1 = vsel %vm7218_vm8, %v17200_v62, 0.0  ;;  %v18838_v51 = vld [vmem:[#allocation84_spill] sm:$0xff] }
 0xb40   : > { %v17212_v36 = vpop.eup %11670  ;;  %v7729_v28 = vsub.f32 %v17163_v23, %v7659_v26  ;;  %v17221_v42 = vadd.f32 %v8221_v45, %v8220_v17  ;;  %v17223_v31 = vadd.f32 %v8212_v0, %v8211_v19  ;;  %v8239_v48 = vadd.f32 %v8238_v25, %v8237_v55  ;;  %v17233_v19 = vpop.permute.xlu1 %8492 }
 0xb41   : > { %v11673_v7 = vpop.eup %11672  ;;  %v8892_v5 = vrot.slane %v8891_v24, 2  ;;  %v8272_v59 = vsel %vm7218_vm8, %v17203_v2, 0.0  ;;  %11690 = vrcp.f32 %v17022_v38  ;;  %v17229_v58 = vadd.f32 %v8233_v9, %v8232_v4 }
 0xb42   : > { %v11675_v40 = vpop.eup %11674  ;;  %v7855_v47 = vmul.f32 1.442695, %v7729_v28  ;;  %v8405_v49 = vmul.f32 %v11673_v7, %v18837_v32  ;;  %v17231_v23 = vadd.f32 %v8226_v22, %v8225_v33  ;;  %v8260_v50 = vadd.f32 %v8259_v52, %v8258_v56  ;;  %v18839_v56 = vld [vmem:[#allocation114_spill] sm:$0xff] }
 0xb43   : > { %v11677_v44 = vpop.eup %11676  ;;  %v8252_v17 = vrot.slane %v8251_v1, 4  ;;  %v8247_v61 = vrot.slane %v17216_v53, 2  ;;  %v8893_v43 = vadd.f32 %v8892_v5, %v8891_v24  ;;  %v8240_v35 = vrot.slane %v8239_v48, 2 }
 0xb44   : > { %v17235_v3 = vpop.eup %11678  ;;  %11692 = vpow2.f32 %v7855_v47  ;;  %8607 = vperm.xlu1 %10807, %v8405_v49   ;;  %v8410_v55 = vmul.f32 %v11677_v44, %v18838_v51  ;;  %v8273_v38 = vrot.slane %v8272_v59, 4  ;;  %v8265_v4 = vsel %vm7218_vm8, %v17207_v13, 0.0  ;;  %v18840_v47 = vld [vmem:[#allocation79_spill] sm:$0xff]  ;;  %v18842_v49 = vld [vmem:[#allocation64_spill] sm:$0xff] }
 0xb45   : > { %11694 = vrcp.f32 %v17156_v54  ;;  %v17242_v33 = vpop.eup %11680  ;;  %v8286_v11 = vsel %vm7218_vm8, %v17212_v36, 0.0  ;;  %v8408_v20 = vmul.f32 %v11675_v40, %v18839_v56  ;;  %v8894_v34 = vrot.slane %v8893_v43, 1  ;;  %v17251_v54 = vpop.permute.xlu1 %8502 }
 0xb46   : > { %8632 = vperm.xlu0 %10806, %v8410_v55   ;;  %11696 = vrcp.f32 %v17151_v27  ;;  %v11683_v45 = vpop.eup %11682  ;;  %v8261_v0 = vrot.slane %v8260_v50, 2  ;;  %v8253_v25 = vadd.f32 %v8252_v17, %v8251_v1  ;;  %v8279_v26 = vsel %vm7218_vm8, %v17235_v3, 0.0 }
 0xb47   : > { %11698 = vrcp.f32 %v17159_v30  ;;  %v8266_v24 = vrot.slane %v8265_v4, 4  ;;  %v8300_v9 = vsel %vm7218_vm8, %v17242_v33, 0.0  ;;  %v8895_v22 = vadd.f32 %v8894_v34, %v8893_v43 }
 0xb48   : > { %8622 = vperm.xlu1 %10807, %v8408_v20   ;;  %11700 = vrcp.f32 %v8187_v16  ;;  %v11685_v52 = vpop.eup %11684  ;;  %v8214_v27 = vrot.slane %v17223_v31, 1  ;;  %v8241_v28 = vadd.f32 %v8240_v35, %v8239_v48  ;;  %v8274_v7 = vadd.f32 %v8273_v38, %v8272_v59  ;;  %v17265_v48 = vpop.permute.xlu0 %8497 }
 0xb49   : > { %v8287_v1 = vrot.slane %v8286_v11, 4  ;;  %v8280_v40 = vrot.slane %v8279_v26, 4  ;;  %v8407_v32 = vmul.f32 %v11683_v45, %v18840_v47  ;;  %v17259_v30 = vsel %vm9285_vm10, %v8895_v22, %v17030_v39  ;;  %v17267_v59 = vpop.permute.xlu1 %8512  ;;  %v18844_v47 = vld [vmem:[#allocation90_spill] sm:$0xff] }
 0xb4a   : > { %v11687_v5 = vpop.eup %11686  ;;  %18841 = vst [vmem:[#allocation40_spill] sm:$0xff] %v17259_v30  ;;  %v8411_v44 = vmul.f32 %v11685_v52, %v18842_v49  ;;  %v8235_v51 = vrot.slane %v17229_v58, 1  ;;  %v8228_v16 = vrot.slane %v17231_v23, 1  ;;  %v8301_v55 = vrot.slane %v8300_v9, 4  ;;  %v18843_v52 = vld [vmem:[#allocation80_spill] sm:$0xff] }
 0xb4b   : > { %v11689_v17 = vpop.eup %11688  ;;  %11702 = vrcp.f32 %v17181_v46  ;;  %v17270_v43 = vadd.f32 %v8247_v61, %v17216_v53  ;;  %v8262_v35 = vadd.f32 %v8261_v0, %v8260_v50  ;;  %v8254_v39 = vrot.slane %v8253_v25, 2 }
 0xb4c   : > { %v8267_v38 = vadd.f32 %v8266_v24, %v8265_v4  ;;  %8617 = vperm.xlu1 %10807, %v8407_v32   ;;  %8637 = vperm.xlu0 %10806, %v8411_v44   ;;  %v8215_v56 = vadd.f32 %v8214_v27, %v17223_v31  ;;  %v8242_v20 = vrot.slane %v8241_v28, 1  ;;  %v8275_v34 = vrot.slane %v8274_v7, 2  ;;  %v17279_v4 = vpop.permute.xlu0 %8507  ;;  %v18846_v32 = vld [vmem:[#allocation89_spill] sm:$0xff] }
 0xb4d   : > { %v8288_v45 = vadd.f32 %v8287_v1, %v8286_v11  ;;  %v8281_v22 = vadd.f32 %v8280_v40, %v8279_v26  ;;  %v8409_v46 = vmul.f32 %v11687_v5, %v18843_v52  ;;  %v8414_v49 = vmul.f32 %v11689_v17, %v18844_v47 }
 0xb4e   : > { %11704 = vrcp.f32 %v17210_v12  ;;  %v11691_v30 = vpop.eup %11690  ;;  %v8236_v53 = vadd.f32 %v8235_v51, %v17229_v58  ;;  %v8229_v50 = vadd.f32 %v8228_v16, %v17231_v23  ;;  %v8302_v61 = vadd.f32 %v8301_v55, %v8300_v9  ;;  %v18845_v58 = vld [vmem:[#allocation113_spill] sm:$0xff]  ;;  %v8523_v9 = vpop.permute.xlu1 %8522  ;;  %v18847_v16 = vld [vmem:[#allocation46_spill] sm:$0xff] }
 0xb4f   : > { %11706 = vrcp.f32 %v17214_v8  ;;  %v8249_v31 = vrot.slane %v17270_v43, 1  ;;  %v8263_v11 = vrot.slane %v8262_v35, 1  ;;  %v8255_v0 = vadd.f32 %v8254_v39, %v8253_v25 }
 0xb50   : > { %v8268_v26 = vrot.slane %v8267_v38, 2  ;;  %8627 = vperm.xlu1 %10807, %v8409_v46   ;;  %8652 = vperm.xlu0 %10806, %v8414_v49   ;;  %v8243_v12 = vadd.f32 %v8242_v20, %v8241_v28  ;;  %v8276_v27 = vadd.f32 %v8275_v34, %v8274_v7  ;;  %v8289_v1 = vrot.slane %v8288_v45, 2 }
 0xb51   : > { %v17282_v24 = vpop.eup %11692  ;;  %v8766_v23 = vmul.f32 %v17233_v19, %v18845_v58  ;;  %v8282_v8 = vrot.slane %v8281_v22, 2  ;;  %v8412_v44 = vmul.f32 %v11691_v30, %v18846_v32  ;;  %11708 = vrcp.f32 %v17221_v42  ;;  %v18848_v30 = vld [vmem:[#allocation103_spill] sm:$0xff]  ;;  %v8518_v42 = vpop.permute.xlu0 %8517  ;;  %v18849_v58 = vld [vmem:[#allocation34_spill] sm:$0xff] }
 0xb52   : > { %v11695_v5 = vpop.eup %11694  ;;  %v8293_v40 = vsel %vm7218_vm8, %v17282_v24, 0.0  ;;  %v8303_v17 = vrot.slane %v8302_v61, 2  ;;  %11710 = vrcp.f32 %v8215_v56  ;;  %v8264_v55 = vadd.f32 %v8263_v11, %v8262_v35  ;;  %v18850_v56 = vld [vmem:[#allocation104_spill] sm:$0xff]  ;;  %v18851_v35 = vld [vmem:[#allocation14_spill] sm:$0xff] }
 0xb53   : > { %v11697_v25 = vpop.eup %11696  ;;  %v8294_v51 = vrot.slane %v8293_v40, 4  ;;  %v8416_v28 = vmul.f32 %v11695_v5, %v18847_v16  ;;  %v8256_v39 = vrot.slane %v8255_v0, 1  ;;  %v8269_v19 = vadd.f32 %v8268_v26, %v8267_v38  ;;  %v8533_v26 = vpop.permute.xlu1 %8532 }
 0xb54   : > { %v11699_v7 = vpop.eup %11698  ;;  %8642 = vperm.xlu1 %10807, %v8412_v44   ;;  %11712 = vrcp.f32 %v8236_v53  ;;  %v8290_v34 = vadd.f32 %v8289_v1, %v8288_v45  ;;  %v8772_v46 = vmul.f32 %v8523_v9, %v18848_v30  ;;  %v8277_v47 = vrot.slane %v8276_v27, 1 }
 0xb55   : > { %v11701_v20 = vpop.eup %11700  ;;  %v8295_v52 = vadd.f32 %v8294_v51, %v8293_v40  ;;  %8662 = vperm.xlu0 %10806, %v8416_v28   ;;  %11714 = vrcp.f32 %v8243_v12  ;;  %v8283_v49 = vadd.f32 %v8282_v8, %v8281_v22  ;;  %v8413_v32 = vmul.f32 %v11697_v25, %v18849_v58  ;;  %v18853_v25 = vld [vmem:[#allocation98_spill] sm:$0xff] }
 0xb56   : > { %11716 = vrcp.f32 %v8229_v50  ;;  %v8873_v5 = vrot.slane %v18850_v56, 1  ;;  %v18852_v38 = vrot.slane %v18851_v35, 2  ;;  %v8304_v53 = vadd.f32 %v8303_v17, %v8302_v61 }
 0xb57   : > { %v8415_v45 = vmul.f32 %v11699_v7, %v17042_v29  ;;  %v8250_v12 = vadd.f32 %v8249_v31, %v17270_v43  ;;  %v8296_v9 = vrot.slane %v8295_v52, 2  ;;  %v8896_v40 = vsel %vm1410_vm5, %v8766_v23, 0.0  ;;  %v18854_v23 = vld [vmem:[#allocation134_spill] sm:$0xff] }
 0xb58   : > { %v8865_v11 = vadd.f32 %v18852_v38, %v18851_v35  ;;  %v11703_v1 = vpop.eup %11702  ;;  %8647 = vperm.xlu1 %10807, %v8413_v32   ;;  %v8417_v22 = vmul.f32 %v11701_v20, %v17081_v21  ;;  %v8270_v50 = vrot.slane %v8269_v19, 1  ;;  %v8291_v8 = vrot.slane %v8290_v34, 1  ;;  %v8528_v21 = vpop.permute.xlu0 %8527 }
 0xb59   : > { %8657 = vperm.xlu0 %10806, %v8415_v45   ;;  %v8938_v44 = vsel %vm1410_vm5, %v8772_v46, 0.0  ;;  %v8771_v51 = vmul.f32 %v8518_v42, %v18853_v25  ;;  %v8257_v61 = vadd.f32 %v8256_v39, %v8255_v0  ;;  %v8278_v17 = vadd.f32 %v8277_v47, %v8276_v27  ;;  %v8543_v39 = vpop.permute.xlu1 %8542  ;;  %v18855_v47 = vld [vmem:[#allocation105_spill] sm:$0xff] }
 0xb5a   : > { %v8284_v29 = vrot.slane %v8283_v49, 1  ;;  %11718 = vrcp.f32 %v8264_v55  ;;  %v8305_v28 = vrot.slane %v8304_v53, 1  ;;  %v8418_v43 = vmul.f32 %v11703_v1, %v17067_v18 }
 0xb5b   : > { %v11705_v16 = vpop.eup %11704  ;;  %v8931_v31 = vsel %vm1410_vm5, %v8771_v51, 0.0  ;;  %v8774_v7 = vmul.f32 %v8533_v26, %v18854_v23  ;;  %v8866_v30 = vrot.slane %v8865_v11, 1  ;;  %v8297_v58 = vadd.f32 %v8296_v9, %v8295_v52  ;;  %v18856_v9 = vld [vmem:[#allocation115_spill] sm:$0xff] }
 0xb5c   : > { %v11707_v20 = vpop.eup %11706  ;;  %v8897_v32 = vrot.slane %v8896_v40, 4  ;;  %8667 = vperm.xlu1 %10807, %v8417_v22   ;;  %v8939_v46 = vrot.slane %v8938_v44, 4  ;;  %v8271_v0 = vadd.f32 %v8270_v50, %v8269_v19  ;;  %v8292_v27 = vadd.f32 %v8291_v8, %v8290_v34 }
 0xb5d   : > { %8672 = vperm.xlu0 %10806, %v8418_v43   ;;  %11720 = vrcp.f32 %v8250_v12  ;;  %v8932_v55 = vrot.slane %v8931_v31, 4  ;;  %v8285_v42 = vadd.f32 %v8284_v29, %v8283_v49  ;;  %v8420_v18 = vmul.f32 %v11705_v16, %v17098_v60 }
 0xb5e   : > { %11722 = vrcp.f32 %v8257_v61  ;;  %v8773_v35 = vmul.f32 %v8528_v21, %v18855_v47  ;;  %v11709_v38 = vpop.eup %11708  ;;  %v8306_v45 = vadd.f32 %v8305_v28, %v8304_v53  ;;  %v8419_v52 = vmul.f32 %v11707_v20, %v17116_v14  ;;  %v18857_v21 = vld [vmem:[#allocation70_spill] sm:$0xff] }
 0xb5f   : > { %11724 = vrcp.f32 %v8278_v17  ;;  %v8952_v26 = vsel %vm1410_vm5, %v8774_v7, 0.0  ;;  %v11711_v1 = vpop.eup %11710  ;;  %v8298_v19 = vrot.slane %v8297_v58, 1  ;;  %v8940_v34 = vadd.f32 %v8939_v46, %v8938_v44  ;;  %v18860_v46 = vld [vmem:[#allocation106_spill] sm:$0xff] }
 0xb60   : > { %8682 = vperm.xlu1 %10807, %v8420_v18   ;;  %v8945_v12 = vsel %vm1410_vm5, %v8773_v35, 0.0  ;;  %v8776_v49 = vmul.f32 %v8543_v39, %v18856_v9  ;;  %v8874_v60 = vadd.f32 %v8873_v5, %v18850_v56  ;;  %11726 = vrcp.f32 %v8271_v0 }
 0xb61   : > { %v11713_v22 = vpop.eup %11712  ;;  %8677 = vperm.xlu0 %10806, %v8419_v52   ;;  %v8933_v50 = vadd.f32 %v8932_v55, %v8931_v31  ;;  %v8946_v53 = vrot.slane %v8945_v12, 4  ;;  %v8867_v14 = vadd.f32 %v8866_v30, %v8865_v11  ;;  %v8422_v25 = vmul.f32 %v11709_v38, %v17126_v63  ;;  %v18858_v30 = vld [vmem:[#allocation97_spill] sm:$0xff] }
 0xb62   : > { %v11715_v8 = vpop.eup %11714  ;;  %11728 = vrcp.f32 %v8292_v27  ;;  %v8953_v51 = vrot.slane %v8952_v26, 4  ;;  %v17314_v17 = vadd.f32 %v8897_v32, %v8896_v40  ;;  %v8421_v44 = vmul.f32 %v11711_v1, %v17135_v6  ;;  %v18861_v55 = vld [vmem:[#allocation45_spill] sm:$0xff] }
 0xb63   : > { %v11717_v61 = vpop.eup %11716  ;;  %11730 = vrcp.f32 %v8285_v42  ;;  %v8947_v29 = vadd.f32 %v8946_v53, %v8945_v12  ;;  %v8299_v16 = vadd.f32 %v8298_v19, %v8297_v58  ;;  %v8941_v56 = vrot.slane %v8940_v34, 2  ;;  %v18859_v58 = vld [vmem:[#allocation9_spill] sm:$0xff]  ;;  %v18862_v42 = vld [vmem:[#allocation54_spill] sm:$0xff] }
 0xb64   : > { %8692 = vperm.xlu1 %10807, %v8422_v25   ;;  %11732 = vrcp.f32 %v8306_v45  ;;  %v8966_v5 = vsel %vm1410_vm5, %v8776_v49, 0.0  ;;  %v8424_v11 = vmul.f32 %v11713_v22, %v17138_v15  ;;  %v8425_v63 = vmul.f32 %v11715_v8, %v17184_v57  ;;  %v18863_v22 = vld [vmem:[#allocation72_spill] sm:$0xff] }
 0xb65   : > { %8687 = vperm.xlu0 %10806, %v8421_v44   ;;  %v8934_v28 = vrot.slane %v8933_v50, 2  ;;  %v8538_v43 = vpop.permute.xlu0 %8537  ;;  %v8423_v40 = vmul.f32 %v11717_v61, %v17141_v37  ;;  %v8954_v31 = vadd.f32 %v8953_v51, %v8952_v26  ;;  %v8948_v6 = vrot.slane %v8947_v29, 2  ;;  %v18865_v51 = vld [vmem:[#allocation121_spill] sm:$0xff] }
 0xb66   : > { %v8967_v7 = vrot.slane %v8966_v5, 4  ;;  %v8775_v20 = vmul.f32 %v8538_v43, %v18857_v21  ;;  %v9288_v32 = vsel %vm9287_vm11, %v18859_v58, %v18858_v30  ;;  %11734 = vrcp.f32 %v8299_v16 }
 0xb67   : > { %v11719_v23 = vpop.eup %11718  ;;  %v8942_v15 = vadd.f32 %v8941_v56, %v8940_v34  ;;  %v9290_v37 = vsel %vm9289_vm12, %v18860_v46, %v9288_v32  ;;  %v8935_v0 = vadd.f32 %v8934_v28, %v8933_v50  ;;  %v8949_v38 = vadd.f32 %v8948_v6, %v8947_v29 }
 0xb68   : > { %8702 = vperm.xlu1 %10807, %v8424_v11   ;;  %v8553_v57 = vpop.permute.xlu1 %8552  ;;  %v8959_v27 = vsel %vm1410_vm5, %v8775_v20, 0.0  ;;  %v9292_v18 = vsel %vm9291_vm13, %v18862_v42, %v9290_v37  ;;  %v8428_v35 = vmul.f32 %v11719_v23, %v17190_v41  ;;  %v8955_v1 = vrot.slane %v8954_v31, 2  ;;  %v18867_v23 = vld [vmem:[#allocation119_spill] sm:$0xff] }
 0xb69   : > { %8707 = vperm.xlu0 %10806, %v8425_v63   ;;  %v8778_v39 = vmul.f32 %v8553_v57, %v18861_v55  ;;  %v8960_v45 = vrot.slane %v8959_v27, 4  ;;  %v9294_v52 = vsel %vm9293_vm14, %v8867_v14, %v9292_v18  ;;  %v8968_v19 = vadd.f32 %v8967_v7, %v8966_v5  ;;  %v18864_v14 = vld [vmem:[#allocation111_spill] sm:$0xff] }
 0xb6a   : > { %v11721_v47 = vpop.eup %11720  ;;  %v17335_v12 = vsel %vm9295_vm15, %v8874_v60, %v9294_v52  ;;  %v8899_v49 = vrot.slane %v17314_v17, 2  ;;  %v8767_v50 = vmul.f32 %v17265_v48, %v18863_v22  ;;  %v8768_v25 = vmul.f32 %v17251_v54, %v18864_v14 }
 0xb6b   : > { %v11723_v26 = vpop.eup %11722  ;;  %v8980_v34 = vsel %vm1410_vm5, %v8778_v39, 0.0  ;;  %v8961_v41 = vadd.f32 %v8960_v45, %v8959_v27  ;;  %v8426_v8 = vmul.f32 %v11721_v47, %v17177_v10  ;;  %v8769_v61 = vmul.f32 %v17279_v4, %v18865_v51  ;;  %v18866_v10 = vld [vmem:[#allocation123_spill] sm:$0xff] }
 0xb6c   : > { %v11725_v9 = vpop.eup %11724  ;;  %8697 = vperm.xlu1 %10807, %v8423_v40   ;;  %v8981_v53 = vrot.slane %v8980_v34, 4  ;;  %v8936_v60 = vrot.slane %v8935_v0, 1  ;;  %v8943_v29 = vrot.slane %v8942_v15, 1  ;;  %v8950_v16 = vrot.slane %v8949_v38, 1 }
 0xb6d   : > { %8722 = vperm.xlu0 %10806, %v8428_v35   ;;  %v11727_v44 = vpop.eup %11726  ;;  %v8962_v56 = vrot.slane %v8961_v41, 2  ;;  %v8430_v48 = vmul.f32 %v11725_v9, %v17203_v2  ;;  %v8956_v28 = vadd.f32 %v8955_v1, %v8954_v31  ;;  %v8969_v43 = vrot.slane %v8968_v19, 2 }
 0xb6e   : > { %v8982_v5 = vadd.f32 %v8981_v53, %v8980_v34  ;;  %v8548_v11 = vpop.permute.xlu0 %8547  ;;  %v8900_v54 = vadd.f32 %v8899_v49, %v17314_v17  ;;  %v8903_v4 = vsel %vm1410_vm5, %v8767_v50, 0.0  ;;  %v8770_v7 = vmul.f32 %v17267_v59, %v18867_v23 }
 0xb6f   : > { %v11729_v63 = vpop.eup %11728  ;;  %v8777_v40 = vmul.f32 %v8548_v11, %v18866_v10  ;;  %v8963_v21 = vadd.f32 %v8962_v56, %v8961_v41  ;;  %v8917_v30 = vsel %vm1410_vm5, %v8769_v61, 0.0  ;;  %v8937_v58 = vadd.f32 %v8936_v60, %v8935_v0 }
 0xb70   : > { %v11731_v6 = vpop.eup %11730  ;;  %8712 = vperm.xlu1 %10807, %v8426_v8   ;;  %v8983_v2 = vrot.slane %v8982_v5, 2  ;;  %v8427_v32 = vmul.f32 %v11723_v26, %v17200_v62  ;;  %v8951_v57 = vadd.f32 %v8950_v16, %v8949_v38  ;;  %v8429_v37 = vmul.f32 %v11727_v44, %v17207_v13  ;;  %v18868_v16 = vld [vmem:[#allocation40_spill] sm:$0xff] }
 0xb71   : > { %v11733_v20 = vpop.eup %11732  ;;  %8732 = vperm.xlu0 %10806, %v8430_v48   ;;  %v8973_v31 = vsel %vm1410_vm5, %v8777_v40, 0.0  ;;  %v8964_v46 = vrot.slane %v8963_v21, 1  ;;  %v8944_v27 = vadd.f32 %v8943_v29, %v8942_v15  ;;  %v8957_v55 = vrot.slane %v8956_v28, 1 }
 0xb72   : > { %v8974_v17 = vrot.slane %v8973_v31, 4  ;;  %v8970_v39 = vadd.f32 %v8969_v43, %v8968_v19  ;;  %v8901_v59 = vrot.slane %v8900_v54, 1  ;;  %v8910_v42 = vsel %vm1410_vm5, %v8768_v25, 0.0 }
 0xb73   : > { %v8904_v18 = vrot.slane %v8903_v4, 4  ;;  %v11735_v0 = vpop.eup %11734  ;;  %v8924_v35 = vsel %vm1410_vm5, %v8770_v7, 0.0  ;;  %v8918_v45 = vrot.slane %v8917_v30, 4  ;;  %v9322_v62 = vsel %vm9283_vm9, %v8944_v27, %v8937_v58 }
 0xb74   : > { %8717 = vperm.xlu1 %10807, %v8427_v32   ;;  %v8975_v47 = vadd.f32 %v8974_v17, %v8973_v31  ;;  %v8984_v38 = vadd.f32 %v8983_v2, %v8982_v5  ;;  %v8432_v52 = vmul.f32 %v11729_v63, %v17212_v36  ;;  %v9323_v13 = vsel %vm9285_vm10, %v8951_v57, %v9322_v62  ;;  %v8563_v5 = vpop.permute.xlu1 %8562 }
 0xb75   : > { %8727 = vperm.xlu0 %10806, %v8429_v37   ;;  %v8965_v15 = vadd.f32 %v8964_v46, %v8963_v21  ;;  %v8911_v1 = vrot.slane %v8910_v42, 4  ;;  %v8431_v19 = vmul.f32 %v11731_v6, %v17235_v3  ;;  %v8958_v34 = vadd.f32 %v8957_v55, %v8956_v28  ;;  %v18870_v21 = vld [vmem:[#allocation27_spill] sm:$0xff]  ;;  %v18872_v55 = vld [vmem:[#allocation58_spill] sm:$0xff] }
 0xb76   : > { %v8976_v26 = vrot.slane %v8975_v47, 2  ;;  %v8971_v9 = vrot.slane %v8970_v39, 1  ;;  %v8905_v49 = vadd.f32 %v8904_v18, %v8903_v4  ;;  %v8434_v22 = vmul.f32 %v11733_v20, %v17242_v33  ;;  %v18871_v37 = vld [vmem:[#allocation19_spill] sm:$0xff] }
 0xb77   : > { %v8433_v41 = vmul.f32 %v11735_v0, %v17282_v24  ;;  %v8925_v53 = vrot.slane %v8924_v35, 4  ;;  %v8985_v8 = vrot.slane %v8984_v38, 1  ;;  %v9324_v36 = vsel %vm9287_vm11, %v8958_v34, %v9323_v13  ;;  %v18873_v13 = vld [vmem:[#allocation44_spill] sm:$0xff] }
 0xb78   : > { %8742 = vperm.xlu1 %10807, %v8432_v52   ;;  %v8977_v50 = vadd.f32 %v8976_v26, %v8975_v47  ;;  %v8902_v14 = vadd.f32 %v8901_v59, %v8900_v54  ;;  %v8919_v25 = vadd.f32 %v8918_v45, %v8917_v30  ;;  %v9325_v61 = vsel %vm9289_vm12, %v8965_v15, %v9324_v36  ;;  %v18869_v54 = vld [vmem:[#allocation50_spill] sm:$0xff] }
 0xb79   : > { %8737 = vperm.xlu0 %10806, %v8431_v19   ;;  %v8912_v3 = vadd.f32 %v8911_v1, %v8910_v42  ;;  %v8972_v60 = vadd.f32 %v8971_v9, %v8970_v39  ;;  %v8906_v44 = vrot.slane %v8905_v49, 2  ;;  %v8926_v56 = vadd.f32 %v8925_v53, %v8924_v35 }
 0xb7a   : > { %v8978_v51 = vrot.slane %v8977_v50, 1  ;;  %v9299_v33 = vsel %vm9287_vm11, %v8902_v14, %v18868_v16  ;;  %v8986_v24 = vadd.f32 %v8985_v8, %v8984_v38  ;;  %v8920_v63 = vrot.slane %v8919_v25, 2 }
 0xb7b   : > { %v9326_v11 = vsel %vm9291_vm13, %v8972_v60, %v9325_v61  ;;  %v8913_v43 = vrot.slane %v8912_v3, 2  ;;  %v8907_v40 = vadd.f32 %v8906_v44, %v8905_v49  ;;  %v8927_v6 = vrot.slane %v8926_v56, 2 }
 0xb7c   : > { %8752 = vperm.xlu1 %10807, %v8434_v22   ;;  %v8979_v29 = vadd.f32 %v8978_v51, %v8977_v50  ;;  %v8921_v23 = vadd.f32 %v8920_v63, %v8919_v25  ;;  %v8780_v20 = vmul.f32 %v8563_v5, %v18870_v21 }
 0xb7d   : > { %8747 = vperm.xlu0 %10806, %v8433_v41   ;;  %v8558_v48 = vpop.permute.xlu0 %8557  ;;  %v8914_v7 = vadd.f32 %v8913_v43, %v8912_v3  ;;  %v8908_v58 = vrot.slane %v8907_v40, 1  ;;  %v8928_v2 = vadd.f32 %v8927_v6, %v8926_v56  ;;  %v18874_v3 = vld [vmem:[#allocation51_spill] sm:$0xff] }
 0xb7e   : > { %v9327_v28 = vsel %vm9293_vm14, %v8979_v29, %v9326_v11  ;;  %v8779_v4 = vmul.f32 %v8558_v48, %v18869_v54  ;;  %v8922_v32 = vrot.slane %v8921_v23, 1  ;;  %v8994_v17 = vsel %vm1410_vm5, %v8780_v20, 0.0 }
 0xb7f   : > { %v9328_v10 = vsel %vm9295_vm15, %v8986_v24, %v9327_v28  ;;  %v8915_v46 = vrot.slane %v8914_v7, 1  ;;  %v8909_v59 = vadd.f32 %v8908_v58, %v8907_v40  ;;  %v8929_v18 = vrot.slane %v8928_v2, 1 }
 0xb80   : > { %v8573_v30 = vpop.permute.xlu1 %8572  ;;  %v8987_v31 = vsel %vm1410_vm5, %v8779_v4, 0.0  ;;  %v8923_v35 = vadd.f32 %v8922_v32, %v8921_v23  ;;  %v8995_v45 = vrot.slane %v8994_v17, 4 }
 0xb81   : > { %9336 = vrot.lane.b32.xlu0 %v9328_v10, %s11748_s19  ;;  %v8782_v27 = vmul.f32 %v8573_v30, %v18871_v37  ;;  %v8988_v42 = vrot.slane %v8987_v31, 4  ;;  %v8916_v38 = vadd.f32 %v8915_v46, %v8914_v7  ;;  %v9300_v1 = vsel %vm9289_vm12, %v8909_v59, %v9299_v33  ;;  %v18875_v33 = vld [vmem:[#allocation60_spill] sm:$0xff]  ;;  %v18876_v30 = vld [vmem:[#allocation62_spill] sm:$0xff] }
 0xb82   : > { %v8930_v19 = vadd.f32 %v8929_v18, %v8928_v2  ;;  %v8996_v49 = vadd.f32 %v8995_v45, %v8994_v17 }
 0xb83   : > { %v9008_v52 = vsel %vm1410_vm5, %v8782_v27, 0.0  ;;  %v8989_v26 = vadd.f32 %v8988_v42, %v8987_v31  ;;  %v9301_v9 = vsel %vm9291_vm13, %v8916_v38, %v9300_v1 }
 0xb84   : > { %v9009_v22 = vrot.slane %v9008_v52, 4  ;;  %v9302_v50 = vsel %vm9293_vm14, %v8923_v35, %v9301_v9  ;;  %v8997_v25 = vrot.slane %v8996_v49, 2 }
 0xb85   : > { %v17385_v53 = vsel %vm9295_vm15, %v8930_v19, %v9302_v50  ;;  %v8990_v8 = vrot.slane %v8989_v26, 2 }
 0xb86   : > { %v8568_v57 = vpop.permute.xlu0 %8567  ;;  %v9010_v51 = vadd.f32 %v9009_v22, %v9008_v52  ;;  %v8998_v11 = vadd.f32 %v8997_v25, %v8996_v49 }
 0xb87   : > { %v8781_v39 = vmul.f32 %v8568_v57, %v18872_v55  ;;  %v8991_v29 = vadd.f32 %v8990_v8, %v8989_v26  ;;  %v18877_v8 = vld [vmem:[#allocation99_spill] sm:$0xff] }
 0xb88   : > { %v9011_v63 = vrot.slane %v9010_v51, 2  ;;  %v8999_v7 = vrot.slane %v8998_v11, 1 }
 0xb89   : > { %v9001_v47 = vsel %vm1410_vm5, %v8781_v39, 0.0  ;;  %v8583_v0 = vpop.permute.xlu1 %8582  ;;  %v8992_v40 = vrot.slane %v8991_v29, 1 }
 0xb8a   : > { %v9002_v62 = vrot.slane %v9001_v47, 4  ;;  %v8784_v15 = vmul.f32 %v8583_v0, %v18873_v13  ;;  %v9012_v21 = vadd.f32 %v9011_v63, %v9010_v51  ;;  %v9000_v27 = vadd.f32 %v8999_v7, %v8998_v11 }
 0xb8b   : > { %v8993_v31 = vadd.f32 %v8992_v40, %v8991_v29  ;;  %v18879_v29 = vld [vmem:[#allocation65_spill] sm:$0xff] }
 0xb8c   : > { %v9003_v34 = vadd.f32 %v9002_v62, %v9001_v47  ;;  %v9022_v41 = vsel %vm1410_vm5, %v8784_v15, 0.0  ;;  %v9013_v55 = vrot.slane %v9012_v21, 1 }
 0xb8d   : > { %v9023_v61 = vrot.slane %v9022_v41, 4  ;;  %v9329_v42 = vsel %vm9283_vm9, %v9000_v27, %v8993_v31 }
 0xb8e   : > { %v9004_v36 = vrot.slane %v9003_v34, 2  ;;  %v9014_v45 = vadd.f32 %v9013_v55, %v9012_v21 }
 0xb8f   : > { %v9024_v48 = vadd.f32 %v9023_v61, %v9022_v41 }
 0xb90   : > { %v9005_v24 = vadd.f32 %v9004_v36, %v9003_v34 }
 0xb91   : > { %v8578_v14 = vpop.permute.xlu0 %8577  ;;  %v9025_v20 = vrot.slane %v9024_v48, 2 }
 0xb92   : > { %v8783_v60 = vmul.f32 %v8578_v14, %v18874_v3  ;;  %v9006_v6 = vrot.slane %v9005_v24, 1  ;;  %v18878_v14 = vld [vmem:[#allocation13_spill] sm:$0xff] }
 0xb93   : > { %v8593_v44 = vpop.permute.xlu1 %8592  ;;  %v9026_v39 = vadd.f32 %v9025_v20, %v9024_v48 }
 0xb94   : > { %v9015_v16 = vsel %vm1410_vm5, %v8783_v60, 0.0  ;;  %v8786_v56 = vmul.f32 %v8593_v44, %v18875_v33  ;;  %v9007_v46 = vadd.f32 %v9006_v6, %v9005_v24 }
 0xb95   : > { %v9016_v5 = vrot.slane %v9015_v16, 4  ;;  %v9027_v62 = vrot.slane %v9026_v39, 1 }
 0xb96   : > { %v9036_v28 = vsel %vm1410_vm5, %v8786_v56, 0.0  ;;  %v9330_v47 = vsel %vm9285_vm10, %v9007_v46, %v9329_v42 }
 0xb97   : > { %v9017_v43 = vadd.f32 %v9016_v5, %v9015_v16  ;;  %v9037_v10 = vrot.slane %v9036_v28, 4  ;;  %v9331_v13 = vsel %vm9287_vm11, %v9014_v45, %v9330_v47  ;;  %v9028_v1 = vadd.f32 %v9027_v62, %v9026_v39 }
 0xb99   : > { %v9018_v54 = vrot.slane %v9017_v43, 2  ;;  %v9038_v4 = vadd.f32 %v9037_v10, %v9036_v28  ;;  %v8588_v23 = vpop.permute.xlu0 %8587  ;;  %v18880_v28 = vld [vmem:[#allocation108_spill] sm:$0xff] }
 0xb9a   : > { %v8785_v58 = vmul.f32 %v8588_v23, %v18876_v30  ;;  %v18881_v23 = vld [vmem:[#allocation16_spill] sm:$0xff]  ;;  %v18882_v30 = vld [vmem:[#allocation6_spill] sm:$0xff] }
 0xb9b   : > { %v9019_v2 = vadd.f32 %v9018_v54, %v9017_v43  ;;  %v9039_v32 = vrot.slane %v9038_v4, 2 }
 0xb9c   : > { %v9029_v57 = vsel %vm1410_vm5, %v8785_v58, 0.0 }
 0xb9d   : > { %v9020_v17 = vrot.slane %v9019_v2, 1  ;;  %v9030_v37 = vrot.slane %v9029_v57, 4  ;;  %v9040_v18 = vadd.f32 %v9039_v32, %v9038_v4  ;;  %v8603_v50 = vpop.permute.xlu0 %8602 }
 0xb9e   : > { %v8788_v36 = vmul.f32 %v8603_v50, %v18877_v8  ;;  %v18885_v8 = vld [vmem:[#allocation32_spill] sm:$0xff] }
 0xb9f   : > { %v9031_v59 = vadd.f32 %v9030_v37, %v9029_v57  ;;  %v9021_v0 = vadd.f32 %v9020_v17, %v9019_v2  ;;  %v9041_v52 = vrot.slane %v9040_v18, 1 }
 0xba0   : > { %v9050_v51 = vsel %vm1410_vm5, %v8788_v36, 0.0 }
 0xba1   : > { %v9032_v35 = vrot.slane %v9031_v59, 2  ;;  %v9332_v26 = vsel %vm9289_vm12, %v9021_v0, %v9331_v13  ;;  %v9042_v34 = vadd.f32 %v9041_v52, %v9040_v18  ;;  %v9051_v60 = vrot.slane %v9050_v51, 4  ;;  %v18883_v18 = vld [vmem:[#allocation15_spill] sm:$0xff]  ;;  %v18884_v0 = vld [vmem:[#allocation38_spill] sm:$0xff] }
 0xba2   : > { %v9333_v9 = vsel %vm9291_vm13, %v9028_v1, %v9332_v26 }
 0xba3   : > { %v9033_v38 = vadd.f32 %v9032_v35, %v9031_v59  ;;  %v8598_v41 = vpop.permute.xlu1 %8597  ;;  %v9052_v33 = vadd.f32 %v9051_v60, %v9050_v51 }
 0xba4   : > { %v8787_v25 = vmul.f32 %v8598_v41, %v18878_v14  ;;  %v18886_v14 = vld [vmem:[#allocation28_spill] sm:$0xff] }
 0xba5   : > { %v9034_v15 = vrot.slane %v9033_v38, 1  ;;  %v9053_v11 = vrot.slane %v9052_v33, 2 }
 0xba6   : > { %v9043_v61 = vsel %vm1410_vm5, %v8787_v25, 0.0 }
 0xba7   : > { %v9035_v19 = vadd.f32 %v9034_v15, %v9033_v38  ;;  %v9044_v44 = vrot.slane %v9043_v61, 4  ;;  %v9054_v6 = vadd.f32 %v9053_v11, %v9052_v33 }
 0xba9   : > { %v9334_v49 = vsel %vm9293_vm14, %v9035_v19, %v9333_v9  ;;  %v9045_v56 = vadd.f32 %v9044_v44, %v9043_v61  ;;  %v9055_v46 = vrot.slane %v9054_v6, 1 }
 0xbaa   : > { %v9335_v22 = vsel %vm9295_vm15, %v9042_v34, %v9334_v49 }
 0xbab   : > { %9338 = vrot.lane.b32.xlu1 %v9335_v22, %s11748_s19  ;;  %v9046_v63 = vrot.slane %v9045_v56, 2  ;;  %v9056_v13 = vadd.f32 %v9055_v46, %v9054_v6  ;;  %s9485_s19 = sshll.u32 %s9478_s14, 1 }
 0xbac   : > { %p358_p4 = scmp.lt.s32.totalorder %s9485_s19, 3 }
 0xbad   : > { %v9047_v54 = vadd.f32 %v9046_v63, %v9045_v56 }
 0xbae   : > { %v8613_v3 = vpop.permute.xlu0 %8612  ;;  %s18912_s19 = smov (!%p358_p4, %s9485_s19), 3 }
 0xbaf   : > { %v8790_v16 = vmul.f32 %v8613_v3, %v18879_v29  ;;  %v9048_v17 = vrot.slane %v9047_v54, 1 }
 0xbb1   : > { %v9064_v24 = vsel %vm1410_vm5, %v8790_v16, 0.0  ;;  %v9049_v15 = vadd.f32 %v9048_v17, %v9047_v54 }
 0xbb2   : > { %v9065_v5 = vrot.slane %v9064_v24, 4 }
 0xbb3   : > { %v9358_v33 = vsel %vm9283_vm9, %v9056_v13, %v9049_v15 }
 0xbb4   : > { %v9066_v10 = vadd.f32 %v9065_v5, %v9064_v24 }
 0xbb6   : > { %v9067_v31 = vrot.slane %v9066_v10, 2 }
 0xbb8   : > { %v9068_v45 = vadd.f32 %v9067_v31, %v9066_v10 }
 0xbba   : > { %v9069_v51 = vrot.slane %v9068_v45, 1 }
 0xbbf   : > { %v8608_v48 = vpop.permute.xlu1 %8607 }
 0xbc0   : > { %v8789_v43 = vmul.f32 %v8608_v48, %v18880_v28  ;;  %v18887_v28 = vld [vmem:[#allocation112_spill] sm:$0xff] }
 0xbc1   : > { %v8633_v40 = vpop.permute.xlu0 %8632 }
 0xbc2   : > { %v9057_v4 = vsel %vm1410_vm5, %v8789_v43, 0.0  ;;  %v8794_v7 = vmul.f32 %v8633_v40, %v18881_v23  ;;  %v9070_v40 = vadd.f32 %v9069_v51, %v9068_v45 }
 0xbc3   : > { %v9058_v21 = vrot.slane %v9057_v4, 4  ;;  %v8623_v20 = vpop.permute.xlu1 %8622 }
 0xbc4   : > { %v8792_v58 = vmul.f32 %v8623_v20, %v18882_v30  ;;  %v9092_v2 = vsel %vm1410_vm5, %v8794_v7, 0.0 }
 0xbc5   : > { %v9059_v32 = vadd.f32 %v9058_v21, %v9057_v4  ;;  %v9093_v57 = vrot.slane %v9092_v2, 4  ;;  %v18888_v4 = vld [vmem:[#allocation31_spill] sm:$0xff] }
 0xbc6   : > { %v9078_v37 = vsel %vm1410_vm5, %v8792_v58, 0.0 }
 0xbc7   : > { %v9060_v27 = vrot.slane %v9059_v32, 2  ;;  %v9079_v55 = vrot.slane %v9078_v37, 4  ;;  %v9094_v39 = vadd.f32 %v9093_v57, %v9092_v2  ;;  %v8618_v59 = vpop.permute.xlu1 %8617  ;;  %v8638_v42 = vpop.permute.xlu0 %8637 }
 0xbc8   : > { %v8791_v47 = vmul.f32 %v8618_v59, %v18883_v18  ;;  %v8795_v35 = vmul.f32 %v8638_v42, %v18884_v0  ;;  %v18889_v42 = vld [vmem:[#allocation66_spill] sm:$0xff] }
 0xbc9   : > { %v9061_v62 = vadd.f32 %v9060_v27, %v9059_v32  ;;  %v9080_v38 = vadd.f32 %v9079_v55, %v9078_v37  ;;  %v9095_v52 = vrot.slane %v9094_v39, 2 }
 0xbca   : > { %v9071_v26 = vsel %vm1410_vm5, %v8791_v47, 0.0  ;;  %v9099_v1 = vsel %vm1410_vm5, %v8795_v35, 0.0  ;;  %v18890_v47 = vld [vmem:[#allocation87_spill] sm:$0xff] }
 0xbcb   : > { %v9062_v19 = vrot.slane %v9061_v62, 1  ;;  %v9081_v34 = vrot.slane %v9080_v38, 2  ;;  %v9096_v9 = vadd.f32 %v9095_v52, %v9094_v39  ;;  %v9072_v49 = vrot.slane %v9071_v26, 4  ;;  %v8628_v22 = vpop.permute.xlu1 %8627  ;;  %v8653_v50 = vpop.permute.xlu0 %8652 }
 0xbcc   : > { %v9100_v41 = vrot.slane %v9099_v1, 4  ;;  %v8793_v36 = vmul.f32 %v8628_v22, %v18885_v8  ;;  %v8798_v25 = vmul.f32 %v8653_v50, %v18886_v14  ;;  %v18891_v8 = vld [vmem:[#allocation117_spill] sm:$0xff] }
 0xbcd   : > { %v9082_v61 = vadd.f32 %v9081_v34, %v9080_v38  ;;  %v9073_v3 = vadd.f32 %v9072_v49, %v9071_v26  ;;  %v9063_v60 = vadd.f32 %v9062_v19, %v9061_v62  ;;  %v9097_v56 = vrot.slane %v9096_v9, 1  ;;  %v18892_v14 = vld [vmem:[#allocation85_spill] sm:$0xff] }
 0xbce   : > { %v9101_v44 = vadd.f32 %v9100_v41, %v9099_v1  ;;  %v9085_v29 = vsel %vm1410_vm5, %v8793_v36, 0.0  ;;  %v9120_v16 = vsel %vm1410_vm5, %v8798_v25, 0.0 }
 0xbcf   : > { %v9074_v24 = vrot.slane %v9073_v3, 2  ;;  %v8643_v5 = vpop.permute.xlu1 %8642  ;;  %v9086_v63 = vrot.slane %v9085_v29, 4  ;;  %v9121_v48 = vrot.slane %v9120_v16, 4  ;;  %v9083_v6 = vrot.slane %v9082_v61, 1 }
 0xbd0   : > { %v9102_v11 = vrot.slane %v9101_v44, 2  ;;  %v8796_v43 = vmul.f32 %v8643_v5, %v18887_v28  ;;  %v8663_v10 = vpop.permute.xlu0 %8662  ;;  %v9359_v7 = vsel %vm9285_vm10, %v9063_v60, %v9358_v33  ;;  %v9098_v46 = vadd.f32 %v9097_v56, %v9096_v9 }
 0xbd1   : > { %v9075_v54 = vadd.f32 %v9074_v24, %v9073_v3  ;;  %v8800_v23 = vmul.f32 %v8663_v10, %v18888_v4  ;;  %v9087_v21 = vadd.f32 %v9086_v63, %v9085_v29  ;;  %v9122_v20 = vadd.f32 %v9121_v48, %v9120_v16 }
 0xbd2   : > { %v9106_v30 = vsel %vm1410_vm5, %v8796_v43, 0.0  ;;  %v9103_v2 = vadd.f32 %v9102_v11, %v9101_v44  ;;  %v9084_v39 = vadd.f32 %v9083_v6, %v9082_v61  ;;  %v9360_v38 = vsel %vm9287_vm11, %v9070_v40, %v9359_v7  ;;  %v18893_v40 = vld [vmem:[#allocation86_spill] sm:$0xff] }
 0xbd3   : > { %v9076_v58 = vrot.slane %v9075_v54, 1  ;;  %v9107_v31 = vrot.slane %v9106_v30, 4  ;;  %v9134_v32 = vsel %vm1410_vm5, %v8800_v23, 0.0  ;;  %v8648_v57 = vpop.permute.xlu1 %8647  ;;  %v9088_v17 = vrot.slane %v9087_v21, 2 }
 0xbd4   : > { %v9123_v37 = vrot.slane %v9122_v20, 2  ;;  %v9135_v27 = vrot.slane %v9134_v32, 4  ;;  %v8658_v55 = vpop.permute.xlu0 %8657  ;;  %v8797_v18 = vmul.f32 %v8648_v57, %v18889_v42  ;;  %v9104_v52 = vrot.slane %v9103_v2, 1 }
 0xbd5   : > { %v9108_v59 = vadd.f32 %v9107_v31, %v9106_v30  ;;  %v8799_v0 = vmul.f32 %v8658_v55, %v18890_v47  ;;  %v9077_v35 = vadd.f32 %v9076_v58, %v9075_v54  ;;  %v9089_v45 = vadd.f32 %v9088_v17, %v9087_v21 }
 0xbd6   : > { %v9136_v62 = vadd.f32 %v9135_v27, %v9134_v32  ;;  %v9113_v15 = vsel %vm1410_vm5, %v8797_v18, 0.0  ;;  %v9124_v34 = vadd.f32 %v9123_v37, %v9122_v20  ;;  %v9105_v24 = vadd.f32 %v9104_v52, %v9103_v2  ;;  %v18895_v18 = vld [vmem:[#allocation10_spill] sm:$0xff] }
 0xbd7   : > { %v9109_v13 = vrot.slane %v9108_v59, 2  ;;  %v9127_v26 = vsel %vm1410_vm5, %v8799_v0, 0.0  ;;  %v8668_v1 = vpop.permute.xlu1 %8667  ;;  %v9090_v19 = vrot.slane %v9089_v45, 1  ;;  %v9114_v49 = vrot.slane %v9113_v15, 4 }
 0xbd8   : > { %v9137_v9 = vrot.slane %v9136_v62, 2  ;;  %v8673_v22 = vpop.permute.xlu0 %8672  ;;  %v9128_v41 = vrot.slane %v9127_v26, 4  ;;  %v8801_v36 = vmul.f32 %v8668_v1, %v18891_v8  ;;  %v9361_v60 = vsel %vm9289_vm12, %v9077_v35, %v9360_v38 }
 0xbd9   : > { %v9110_v50 = vadd.f32 %v9109_v13, %v9108_v59  ;;  %v8802_v25 = vmul.f32 %v8673_v22, %v18892_v14  ;;  %v9091_v51 = vadd.f32 %v9090_v19, %v9089_v45  ;;  %v9115_v3 = vadd.f32 %v9114_v49, %v9113_v15  ;;  %v18894_v59 = vld [vmem:[#allocation49_spill] sm:$0xff]  ;;  %v18896_v13 = vld [vmem:[#allocation82_spill] sm:$0xff] }
 0xbda   : > { %v9138_v61 = vadd.f32 %v9137_v9, %v9136_v62  ;;  %v9129_v29 = vadd.f32 %v9128_v41, %v9127_v26  ;;  %v9141_v16 = vsel %vm1410_vm5, %v8801_v36, 0.0  ;;  %v9125_v28 = vrot.slane %v9124_v34, 1  ;;  %v18897_v41 = vld [vmem:[#allocation25_spill] sm:$0xff] }
 0xbdb   : > { %v9111_v44 = vrot.slane %v9110_v50, 1  ;;  %v9148_v33 = vsel %vm1410_vm5, %v8802_v25, 0.0  ;;  %v8683_v56 = vpop.permute.xlu1 %8682  ;;  %v9116_v5 = vrot.slane %v9115_v3, 2  ;;  %v9142_v11 = vrot.slane %v9141_v16, 4 }
 0xbdc   : > { %v9149_v63 = vrot.slane %v9148_v33, 4  ;;  %v8678_v48 = vpop.permute.xlu0 %8677  ;;  %v9139_v43 = vrot.slane %v9138_v61, 1  ;;  %v9130_v10 = vrot.slane %v9129_v29, 2  ;;  %v8804_v6 = vmul.f32 %v8683_v56, %v18893_v40 }
 0xbdd   : > { %v9117_v54 = vadd.f32 %v9116_v5, %v9115_v3  ;;  %v9143_v4 = vadd.f32 %v9142_v11, %v9141_v16  ;;  %v9362_v7 = vsel %vm9291_vm13, %v9084_v39, %v9361_v60  ;;  %v9112_v21 = vadd.f32 %v9111_v44, %v9110_v50  ;;  %v18898_v44 = vld [vmem:[#allocation21_spill] sm:$0xff]  ;;  %v18899_v5 = vld [vmem:[#allocation96_spill] sm:$0xff] }
 0xbde   : > { %v9150_v23 = vadd.f32 %v9149_v63, %v9148_v33  ;;  %v9131_v20 = vadd.f32 %v9130_v10, %v9129_v29  ;;  %v9162_v30 = vsel %vm1410_vm5, %v8804_v6, 0.0  ;;  %v9363_v58 = vsel %vm9293_vm14, %v9091_v51, %v9362_v7  ;;  %v18900_v10 = vld [vmem:[#allocation107_spill] sm:$0xff] }
 0xbdf   : > { %v8693_v2 = vpop.permute.xlu1 %8692  ;;  %v9118_v31 = vrot.slane %v9117_v54, 1  ;;  %v9144_v32 = vrot.slane %v9143_v4, 2  ;;  %v9163_v17 = vrot.slane %v9162_v30, 4  ;;  %v9364_v55 = vsel %vm9295_vm15, %v9098_v46, %v9363_v58 }
 0xbe0   : > { %v9151_v57 = vrot.slane %v9150_v23, 2  ;;  %v8688_v37 = vpop.permute.xlu0 %8687  ;;  %v9132_v27 = vrot.slane %v9131_v20, 1  ;;  %v8803_v42 = vmul.f32 %v8678_v48, %v18894_v59  ;;  %v8806_v47 = vmul.f32 %v8693_v2, %v18895_v18  ;;  %9372 = vrot.lane.b32.xlu0 %v9364_v55, %s11749_s20  ;;  %v18901_v59 = vld [vmem:[#allocation23_spill] sm:$0xff] }
 0xbe1   : > { %v17444_v39 = vadd.f32 %v9125_v28, %v9124_v34  ;;  %v9119_v0 = vadd.f32 %v9118_v31, %v9117_v54  ;;  %v9145_v35 = vadd.f32 %v9144_v32, %v9143_v4  ;;  %v9164_v45 = vadd.f32 %v9163_v17, %v9162_v30 }
 0xbe2   : > { %v17447_v62 = vadd.f32 %v9139_v43, %v9138_v61  ;;  %v9155_v38 = vsel %vm1410_vm5, %v8803_v42, 0.0  ;;  %v9176_v52 = vsel %vm1410_vm5, %v8806_v47, 0.0  ;;  %v8805_v15 = vmul.f32 %v8688_v37, %v18896_v13 }
 0xbe3   : > { %v8703_v46 = vpop.permute.xlu1 %8702  ;;  %v9365_v26 = vsel %vm9283_vm9, %v9112_v21, %v9105_v24  ;;  %v17453_v1 = vadd.f32 %v9132_v27, %v9131_v20  ;;  %v9152_v19 = vadd.f32 %v9151_v57, %v9150_v23  ;;  %v9165_v34 = vrot.slane %v9164_v45, 2 }
 0xbe4   : > { %v8708_v9 = vpop.permute.xlu0 %8707  ;;  %v9156_v49 = vrot.slane %v9155_v38, 4  ;;  %v9177_v22 = vrot.slane %v9176_v52, 4  ;;  %v9169_v50 = vsel %vm1410_vm5, %v8805_v15, 0.0  ;;  %v8808_v8 = vmul.f32 %v8703_v46, %v18897_v41 }
 0xbe5   : > { %v9366_v36 = vsel %vm9285_vm10, %v9119_v0, %v9365_v26  ;;  %v9146_v14 = vrot.slane %v9145_v35, 1  ;;  %v9166_v25 = vadd.f32 %v9165_v34, %v9164_v45  ;;  %v9170_v51 = vrot.slane %v9169_v50, 4 }
 0xbe6   : > { %v9157_v61 = vadd.f32 %v9156_v49, %v9155_v38  ;;  %v9178_v3 = vadd.f32 %v9177_v22, %v9176_v52  ;;  %v9190_v60 = vsel %vm1410_vm5, %v8808_v8, 0.0  ;;  %v8809_v29 = vmul.f32 %v8708_v9, %v18898_v44 }
 0xbe7   : > { %v8698_v16 = vpop.permute.xlu1 %8697  ;;  %v9153_v33 = vrot.slane %v9152_v19, 1  ;;  %v9171_v56 = vadd.f32 %v9170_v51, %v9169_v50  ;;  %v9191_v24 = vrot.slane %v9190_v60, 4  ;;  %v9167_v6 = vrot.slane %v9166_v25, 1 }
 0xbe8   : > { %v8807_v11 = vmul.f32 %v8698_v16, %v18899_v5  ;;  %v8723_v63 = vpop.permute.xlu0 %8722  ;;  %v9158_v48 = vrot.slane %v9157_v61, 2  ;;  %v9179_v28 = vrot.slane %v9178_v3, 2  ;;  %v9197_v43 = vsel %vm1410_vm5, %v8809_v29, 0.0  ;;  %v18902_v29 = vld [vmem:[#allocation63_spill] sm:$0xff]  ;;  %v18903_v5 = vld [vmem:[#allocation122_spill] sm:$0xff] }
 0xbe9   : > { %v8812_v40 = vmul.f32 %v8723_v63, %v18900_v10  ;;  %v9172_v54 = vrot.slane %v9171_v56, 2  ;;  %v9192_v4 = vadd.f32 %v9191_v24, %v9190_v60  ;;  %v9198_v23 = vrot.slane %v9197_v43, 4 }
 0xbea   : > { %v9159_v7 = vadd.f32 %v9158_v48, %v9157_v61  ;;  %v9180_v21 = vadd.f32 %v9179_v28, %v9178_v3  ;;  %v9183_v20 = vsel %vm1410_vm5, %v8807_v11, 0.0  ;;  %v9147_v38 = vadd.f32 %v9146_v14, %v9145_v35 }
 0xbeb   : > { %v9218_v30 = vsel %vm1410_vm5, %v8812_v40, 0.0  ;;  %v8713_v58 = vpop.permute.xlu1 %8712  ;;  %v9173_v2 = vadd.f32 %v9172_v54, %v9171_v56  ;;  %v9193_v31 = vrot.slane %v9192_v4, 2  ;;  %v9199_v32 = vadd.f32 %v9198_v23, %v9197_v43 }
 0xbec   : > { %v9184_v57 = vrot.slane %v9183_v20, 4  ;;  %v8733_v17 = vpop.permute.xlu0 %8732  ;;  %v9160_v37 = vrot.slane %v9159_v7, 1  ;;  %v9181_v27 = vrot.slane %v9180_v21, 1  ;;  %v9219_v55 = vrot.slane %v9218_v30, 4 }
 0xbed   : > { %v8810_v42 = vmul.f32 %v8713_v58, %v18901_v59  ;;  %v9174_v18 = vrot.slane %v9173_v2, 1  ;;  %v9194_v47 = vadd.f32 %v9193_v31, %v9192_v4  ;;  %v9200_v0 = vrot.slane %v9199_v32, 2  ;;  %v18904_v4 = vld [vmem:[#allocation125_spill] sm:$0xff]  ;;  %v18906_v58 = vld [vmem:[#allocation47_spill] sm:$0xff] }
 0xbee   : > { %v9185_v45 = vadd.f32 %v9184_v57, %v9183_v20  ;;  %v9161_v52 = vadd.f32 %v9160_v37, %v9159_v7  ;;  %v9220_v13 = vadd.f32 %v9219_v55, %v9218_v30  ;;  %v9168_v26 = vadd.f32 %v9167_v6, %v9166_v25  ;;  %v18905_v20 = vld [vmem:[#allocation69_spill] sm:$0xff] }
 0xbef   : > { %v9204_v15 = vsel %vm1410_vm5, %v8810_v42, 0.0  ;;  %v8718_v46 = vpop.permute.xlu1 %8717  ;;  %v9175_v34 = vadd.f32 %v9174_v18, %v9173_v2  ;;  %v9195_v9 = vrot.slane %v9194_v47, 1  ;;  %v9154_v50 = vadd.f32 %v9153_v33, %v9152_v19  ;;  %v18907_v31 = vld [vmem:[#allocation53_spill] sm:$0xff] }
 0xbf0   : > { %v9186_v49 = vrot.slane %v9185_v45, 2  ;;  %v8728_v22 = vpop.permute.xlu0 %8727  ;;  %v17467_v41 = vadd.f32 %v9200_v0, %v9199_v32  ;;  %v9221_v8 = vrot.slane %v9220_v13, 2  ;;  %v9205_v51 = vrot.slane %v9204_v15, 4  ;;  %v18908_v55 = vld [vmem:[#allocation61_spill] sm:$0xff] }
 0xbf1   : > { %v9394_v61 = vsel %vm9283_vm9, %v9168_v26, %v9161_v52  ;;  %v9182_v3 = vadd.f32 %v9181_v27, %v9180_v21  ;;  %v9367_v35 = vsel %vm9287_vm11, %v17444_v39, %v9366_v36  ;;  %v8814_v16 = vmul.f32 %v8733_v17, %v18902_v29 }
 0xbf2   : > { %v9187_v60 = vadd.f32 %v9186_v49, %v9185_v45  ;;  %v17472_v14 = vadd.f32 %v9221_v8, %v9220_v13  ;;  %v9206_v44 = vadd.f32 %v9205_v51, %v9204_v15  ;;  %v9368_v25 = vsel %vm9289_vm12, %v17453_v1, %v9367_v35 }
 0xbf3   : > { %v8743_v19 = vpop.permute.xlu1 %8742  ;;  %v9395_v33 = vsel %vm9285_vm10, %v9175_v34, %v9394_v61  ;;  %v17478_v56 = vadd.f32 %v9195_v9, %v9194_v47  ;;  %v9369_v24 = vsel %vm9291_vm13, %v17447_v62, %v9368_v25  ;;  %v8811_v11 = vmul.f32 %v8718_v46, %v18903_v5 }
 0xbf4   : > { %v8738_v63 = vpop.permute.xlu0 %8737  ;;  %v9202_v39 = vrot.slane %v17467_v41, 1  ;;  %v9207_v36 = vrot.slane %v9206_v44, 2  ;;  %v9370_v48 = vsel %vm9293_vm14, %v9147_v38, %v9369_v24  ;;  %v9232_v1 = vsel %vm1410_vm5, %v8814_v16, 0.0 }
 0xbf5   : > { %v9188_v28 = vrot.slane %v9187_v60, 1  ;;  %v9371_v43 = vsel %vm9295_vm15, %v9154_v50, %v9370_v48  ;;  %v9233_v10 = vrot.slane %v9232_v1, 4  ;;  %v9211_v40 = vsel %vm1410_vm5, %v8811_v11, 0.0 }
 0xbf6   : > { %v9223_v6 = vrot.slane %v17472_v14, 1  ;;  %v9208_v54 = vadd.f32 %v9207_v36, %v9206_v44  ;;  %9374 = vrot.lane.b32.xlu1 %v9371_v43, %s11749_s20  ;;  %v9212_v62 = vrot.slane %v9211_v40, 4  ;;  %v8813_v23 = vmul.f32 %v8728_v22, %v18904_v4  ;;  %s9486_s20 = sshll.u32 %s18912_s19, 3 }
 0xbf7   : > { %v8753_v7 = vpop.permute.xlu1 %8752  ;;  %v9234_v21 = vadd.f32 %v9233_v10, %v9232_v1  ;;  %v8816_v30 = vmul.f32 %v8743_v19, %v18905_v20  ;;  %v8815_v2 = vmul.f32 %v8738_v63, %v18906_v58  ;;  %v9189_v45 = vadd.f32 %v9188_v28, %v9187_v60  ;;  %s361_s25 = scalar_lea.vmem %s17543_s10, %s9486_s20 }
 0xbf8   : > { %v8818_v32 = vmul.f32 %v8753_v7, %v18907_v31  ;;  %v8748_v57 = vpop.permute.xlu0 %8747  ;;  %v9209_v17 = vrot.slane %v9208_v54, 1  ;;  %v9213_v37 = vadd.f32 %v9212_v62, %v9211_v40  ;;  %v9225_v27 = vsel %vm1410_vm5, %v8813_v23, 0.0 }
 0xbf9   : > { %v8817_v59 = vmul.f32 %v8748_v57, %v18908_v55  ;;  %v9235_v42 = vrot.slane %v9234_v21, 2  ;;  %v9226_v18 = vrot.slane %v9225_v27, 4  ;;  %v9246_v47 = vsel %vm1410_vm5, %v8816_v30, 0.0 }
 0xbfa   : > { %v9239_v0 = vsel %vm1410_vm5, %v8815_v2, 0.0  ;;  %v9214_v38 = vrot.slane %v9213_v37, 2  ;;  %v9247_v52 = vrot.slane %v9246_v47, 4  ;;  %v9260_v26 = vsel %vm1410_vm5, %v8818_v32, 0.0 }
 0xbfb   : > { %v9240_v13 = vrot.slane %v9239_v0, 4  ;;  %v9236_v15 = vadd.f32 %v9235_v42, %v9234_v21  ;;  %v9227_v46 = vadd.f32 %v9226_v18, %v9225_v27  ;;  %v9253_v34 = vsel %vm1410_vm5, %v8817_v59, 0.0 }
 0xbfc   : > { %v9215_v9 = vadd.f32 %v9214_v38, %v9213_v37  ;;  %v9248_v49 = vadd.f32 %v9247_v52, %v9246_v47  ;;  %v9261_v50 = vrot.slane %v9260_v26, 4  ;;  %v9210_v8 = vadd.f32 %v9209_v17, %v9208_v54  ;;  %v9337_v37 = vpop.permute.xlu0 %9336 }
 0xbfd   : > { %v9241_v22 = vadd.f32 %v9240_v13, %v9239_v0  ;;  %v9228_v51 = vrot.slane %v9227_v46, 2  ;;  %v9254_v61 = vrot.slane %v9253_v34, 4  ;;  %v9396_v35 = vsel %vm9287_vm11, %v9182_v3, %v9395_v33 }
 0xbfe   : > { %v9216_v44 = vrot.slane %v9215_v9, 1  ;;  %v9249_v60 = vrot.slane %v9248_v49, 2  ;;  %v9262_v29 = vadd.f32 %v9261_v50, %v9260_v26  ;;  %v9237_v16 = vrot.slane %v9236_v15, 1 }
 0xbff   : > { %v9242_v25 = vrot.slane %v9241_v22, 2  ;;  %v9229_v19 = vadd.f32 %v9228_v51, %v9227_v46  ;;  %v9255_v24 = vadd.f32 %v9254_v61, %v9253_v34  ;;  %v9397_v5 = vsel %vm9289_vm12, %v9189_v45, %v9396_v35 }
 0xc00   : > { %v9217_v11 = vadd.f32 %v9216_v44, %v9215_v9  ;;  %v9250_v63 = vadd.f32 %v9249_v60, %v9248_v49  ;;  %v9263_v48 = vrot.slane %v9262_v29, 2  ;;  %v9203_v1 = vadd.f32 %v9202_v39, %v17467_v41 }
 0xc01   : > { %v9243_v36 = vadd.f32 %v9242_v25, %v9241_v22  ;;  %v9230_v28 = vrot.slane %v9229_v19, 1  ;;  %v9256_v43 = vrot.slane %v9255_v24, 2  ;;  %v9398_v3 = vsel %vm9291_vm13, %v17478_v56, %v9397_v5 }
 0xc02   : > { %v9224_v33 = vadd.f32 %v9223_v6, %v17472_v14  ;;  %v9251_v10 = vrot.slane %v9250_v63, 1  ;;  %v9264_v54 = vadd.f32 %v9263_v48, %v9262_v29  ;;  %v9238_v62 = vadd.f32 %v9237_v16, %v9236_v15 }
 0xc03   : > { %v9244_v40 = vrot.slane %v9243_v36, 1  ;;  %v9231_v4 = vadd.f32 %v9230_v28, %v9229_v19  ;;  %v9257_v23 = vadd.f32 %v9256_v43, %v9255_v24  ;;  %v9399_v7 = vsel %vm9293_vm14, %v9203_v1, %v9398_v3 }
 0xc04   : > { %v9401_v21 = vsel %vm9283_vm9, %v9224_v33, %v9217_v11  ;;  %v9265_v41 = vrot.slane %v9264_v54, 1  ;;  %v9400_v39 = vsel %vm9295_vm15, %v9210_v8, %v9399_v7  ;;  %v9252_v14 = vadd.f32 %v9251_v10, %v9250_v63 }
 0xc05   : > { %v9245_v20 = vadd.f32 %v9244_v40, %v9243_v36  ;;  %v9402_v30 = vsel %vm9285_vm10, %v9231_v4, %v9401_v21  ;;  %v9258_v56 = vrot.slane %v9257_v23, 1  ;;  %9408 = vrot.lane.b32.xlu0 %v9400_v39, %s11747_s28  ;;  %v9414_v59 = vsel %vm1410_vm5, %v17335_v12, %v9337_v37 }
 0xc06   : > { %v9403_v6 = vsel %vm9287_vm11, %v9238_v62, %v9402_v30  ;;  %v9266_v31 = vadd.f32 %v9265_v41, %v9264_v54 }
 0xc07   : > { %v9259_v58 = vadd.f32 %v9258_v56, %v9257_v23  ;;  %v9404_v2 = vsel %vm9289_vm12, %v9245_v20, %v9403_v6 }
 0xc08   : > { %v9405_v32 = vsel %vm9291_vm13, %v9252_v14, %v9404_v2 }
 0xc09   : > { %v9406_v57 = vsel %vm9293_vm14, %v9259_v58, %v9405_v32 }
 0xc0a   : > { %v9407_v17 = vsel %vm9295_vm15, %v9266_v31, %v9406_v57 }
 0xc0b   : > { %9410 = vrot.lane.b32.xlu1 %v9407_v17, %s11747_s28 }
 0xc1d   : > { %v9339_v55 = vpop.permute.xlu1 %9338 }
 0xc1e   : > { %v9415_v45 = vsel %vm1410_vm5, %v17385_v53, %v9339_v55 }
 0xc52   : > { %v9373_v27 = vpop.permute.xlu0 %9372 }
 0xc53   : > { %v9416_v42 = vsel %vm821_vm0, %v9414_v59, %v9373_v27 }
 0xc68   : > { %v9375_v0 = vpop.permute.xlu1 %9374 }
 0xc69   : > { %v9417_v38 = vsel %vm821_vm0, %v9415_v45, %v9375_v0 }
 0xc77   : > { %v9409_v18 = vpop.permute.xlu0 %9408 }
 0xc78   : > { %v9418_v47 = vsel %vm3300_vm6, %v9416_v42, %v9409_v18 }
 0xc79   : > { %9420 = vst [vmem:[%s361_s25] sm:$0xff] %v9418_v47 }
 0xc7d   : > { %v9411_v52 = vpop.permute.xlu1 %9410 }
 0xc7e   : > { %v9419_v13 = vsel %vm3300_vm6, %v9417_v38, %v9411_v52 }
 0xc7f   : > { %9421 = vst [vmem:[%s361_s25 + $0x8] sm:$0xff] %v9419_v13 }
 0xc80 PF: > { %s20_s13 = sadd.s32 1, %s11743_s13  }
 0xc81   : > { %p17_p5 = scmp.ge.s32.totalorder %s20_s13, 4  }
 0xc83   :  { %19 = sbr.rel (!%p17_p5) target bundleno = 1 (0x1), region = 90 }

</bundles_post_ra>
